<compile_context>
chip_gen: v7x
topology: tpu7x:2x2x1
jax: 0.10.0
libtpu: 0.0.40
codegen_flags: <defaults>
</compile_context>

<pallas_src>
import functools
import math

import jax
import jax.numpy as jnp
from jax.experimental import pallas as pl
from jax.experimental.pallas import tpu as pltpu


LAYER_DIMS = [3 * 100 * 100, 512, 256, 128, 64, 64, 32, 32, 16, 16, 1]

# Layer-1 tiling: K padded to a multiple of K_TILE, N split into N_TILE blocks.
K_TILE = 15360          # grid (2, 2): 7.9 MB bf16 weight block, ~15.7 MB 2x-buffered
N_TILE = 256            # two N tiles -> 2-TC sharding on v7x
VMEM_LIMIT_BYTES = 32 * 1024 * 1024   # covers ~16 MB working set on every chip gen


# ---------------------------------------------------------------------------
# Layer 1: y = relu(x @ W + b); K-tiled reduction, N-parallel, bf16 weight
# stream from contiguous per-N-tile slabs, f32 accumulation directly into the
# resident output block.
# ---------------------------------------------------------------------------
def _layer1_kernel(x_ref, w_ref, b_ref, o_ref):
    k = pl.program_id(1)

    @pl.when(k == 0)
    def _():
        o_ref[...] = jnp.zeros_like(o_ref)

    # In-kernel f32 -> bf16 cast of the small (B, K_TILE) activation block.
    x_bf16 = x_ref[...].astype(jnp.bfloat16)
    o_ref[...] += jnp.dot(x_bf16, w_ref[...], preferred_element_type=jnp.float32)

    @pl.when(k == pl.num_programs(1) - 1)
    def _():
        o_ref[...] = jnp.maximum(o_ref[...] + b_ref[...], 0.0)


def pallas_layer1(x_f32, w_tiles_bf16, b_f32):
    """x: (B, Kp) f32, w: (n_tiles, Kp, N_TILE) bf16, b: (1, N) f32 -> (B, N) f32."""
    B, Kp = x_f32.shape
    n_tiles, Kw, ntile = w_tiles_bf16.shape
    N = n_tiles * ntile
    assert Kp == Kw and Kp % K_TILE == 0 and ntile == N_TILE

    grid = (n_tiles, Kp // K_TILE)  # N outer (parallel on v7x), K inner (reduce)

    return pl.pallas_call(
        _layer1_kernel,
        out_shape=jax.ShapeDtypeStruct((B, N), jnp.float32),
        grid_spec=pltpu.PrefetchScalarGridSpec(
            num_scalar_prefetch=0,
            grid=grid,
            in_specs=[
                pl.BlockSpec((B, K_TILE), lambda j, k: (0, k)),
                # Contiguous per-N-tile weight slab; leading dim squeezed out.
                pl.BlockSpec((None, K_TILE, N_TILE), lambda j, k: (j, k, 0)),
                pl.BlockSpec((1, N_TILE), lambda j, k: (0, j)),
            ],
            out_specs=pl.BlockSpec((B, N_TILE), lambda j, k: (0, j)),
        ),
        compiler_params=pltpu.CompilerParams(
            dimension_semantics=("parallel", "arbitrary"),
            vmem_limit_bytes=VMEM_LIMIT_BYTES,
        ),
    )(x_f32, w_tiles_bf16, b_f32)


# ---------------------------------------------------------------------------
# Layers 2..10 fused: all weights (<0.4 MB bf16) are explicitly VMEM-resident;
# the whole chain of matmul + bias + ReLU (Sigmoid on the last layer) runs in
# one kernel with f32 accumulation.
# ---------------------------------------------------------------------------
def _tail_kernel(*refs, n_layers):
    x_ref = refs[0]
    o_ref = refs[-1]
    wb = refs[1:-1]

    h = x_ref[...]
    for i in range(n_layers):
        w = wb[2 * i][...]
        b = wb[2 * i + 1][...]
        h = jnp.dot(h.astype(w.dtype), w, preferred_element_type=jnp.float32) + b
        if i < n_layers - 1:
            h = jnp.maximum(h, 0.0)
        else:
            h = jax.nn.sigmoid(h)
    o_ref[...] = h.astype(o_ref.dtype)


def pallas_tail(h, tail_params):
    """h: (B, 512) f32; tail_params: list of (w (K,N) bf16, b (1,N) f32)."""
    B = h.shape[0]
    n_layers = len(tail_params)
    flat = []
    for w, b in tail_params:
        flat.append(w)
        flat.append(b)
    out_dim = tail_params[-1][0].shape[1]
    kernel = functools.partial(_tail_kernel, n_layers=n_layers)
    vmem = pltpu.MemorySpace.VMEM
    return pl.pallas_call(
        kernel,
        out_shape=jax.ShapeDtypeStruct((B, out_dim), jnp.float32),
        in_specs=[pl.BlockSpec(memory_space=vmem) for _ in range(1 + len(flat))],
        out_specs=pl.BlockSpec(memory_space=vmem),
    )(h, *flat)


# ---------------------------------------------------------------------------
# Parameter setup (one-time) and forward pass.
# ---------------------------------------------------------------------------
def init_params(key):
    """Deterministic init mimicking nn.Linear default (U[-1/sqrt(fan_in), ...])."""
    params = []
    for i in range(len(LAYER_DIMS) - 1):
        fan_in, fan_out = LAYER_DIMS[i], LAYER_DIMS[i + 1]
        key, kw, kb = jax.random.split(key, 3)
        bound = 1.0 / math.sqrt(fan_in)
        w = jax.random.uniform(
            kw, (fan_in, fan_out), jnp.float32, minval=-bound, maxval=bound
        )
        b = jax.random.uniform(
            kb, (fan_out,), jnp.float32, minval=-bound, maxval=bound
        )
        params.append((w, b))
    return params


def prepare_params(params):
    """One-time prep: pad + N-tile-contiguous bf16 layer-1 weight, bf16 tail."""
    (w1, b1), *tail = params
    K, N = w1.shape
    assert N % N_TILE == 0
    n_tiles = N // N_TILE
    Kp = math.ceil(K / K_TILE) * K_TILE
    if Kp != K:
        w1 = jnp.pad(w1, ((0, Kp - K), (0, 0)))  # zero rows are neutral
    # (Kp, N) -> (n_tiles, Kp, N_TILE): each N-tile's weight is one contiguous
    # HBM slab, so every weight DMA in layer 1 is full-line contiguous.
    w1 = w1.reshape(Kp, n_tiles, N_TILE).transpose(1, 0, 2)
    w1 = jax.block_until_ready(w1.astype(jnp.bfloat16))
    b1 = b1.reshape(1, N).astype(jnp.float32)
    tail_prepped = [
        (jax.block_until_ready(w.astype(jnp.bfloat16)),
         b.reshape(1, -1).astype(jnp.float32))
        for (w, b) in tail
    ]
    return (Kp, w1, b1, tail_prepped)


def net2_forward(prepared, x):
    """Equivalent of net2.forward(x): x is (B, 30000) f32, returns (B, 1) f32."""
    Kp, w1, b1, tail = prepared
    B, F = x.shape
    if F != Kp:
        x = jnp.pad(x, ((0, 0), (0, Kp - F)))  # tiny (B x 720) zero pad, neutral
    h = pallas_layer1(x, w1, b1)
    return pallas_tail(h, tail)


def net2_reference(params, x):
    """Pure-JAX f32 reference for correctness checking."""
    h = x
    n_layers = len(params)
    for i, (w, b) in enumerate(params):
        h = h @ w + b
        h = jax.nn.sigmoid(h) if i == n_layers - 1 else jnp.maximum(h, 0.0)
    return h


if __name__ == "__main__":
    key = jax.random.PRNGKey(0)
    key, kx = jax.random.split(key)

    batch = 2
    x = jax.random.normal(kx, (batch, LAYER_DIMS[0]), jnp.float32)

    params = init_params(key)
    prepared = prepare_params(params)

    out = net2_forward(prepared, x)
    out = jax.block_until_ready(out)

    ref = net2_reference(params, x)
    assert out.shape == (batch, 1), out.shape
    # bf16 weight/activation streaming -> slightly looser tolerance than f32.
    assert jnp.allclose(out, ref, atol=2e-2, rtol=2e-2), (out, ref)

    print("KERNEL_OK")
</pallas_src>

<mosaic_0001>
module attributes {stable_mosaic.version = 11 : i64} {
  func.func @_layer1_kernel(%arg0: i32, %arg1: i32, %arg2: memref<2x15360xf32, #tpu.memory_space<vmem>>, %arg3: memref<1x15360x256xbf16, #tpu.memory_space<vmem>>, %arg4: memref<1x256xf32, #tpu.memory_space<vmem>>, %arg5: memref<2x256xf32, #tpu.memory_space<vmem>>) attributes {dimension_semantics = [#tpu.dimension_semantics<parallel>, #tpu.dimension_semantics<arbitrary>], iteration_bounds = array<i64: 2, 2>, scalar_prefetch = 0 : i64, scratch_operands = 0 : i64, tpu.core_type = #tpu.core_type<tc>, window_params = [{transform_indices = @transform_0, window_bounds = array<i64: 2, 15360>}, {transform_indices = @transform_1, window_bounds = array<i64: 1, 15360, 256>}, {transform_indices = @transform_2, window_bounds = array<i64: 1, 256>}, {transform_indices = @transform_3, window_bounds = array<i64: 2, 256>}]} {
    %c0_i32 = arith.constant 0 : i32
    %0 = arith.cmpi eq, %arg1, %c0_i32 : i32
    %1 = arith.extui %0 : i1 to i32
    %c0_i32_0 = arith.constant 0 : i32
    %2 = arith.cmpi ne, %1, %c0_i32_0 : i32
    scf.if %2 {
      %cst_10 = arith.constant 0.000000e+00 : f32
      %14 = vector.broadcast %cst_10 : f32 to vector<2x256xf32>
      %c0_11 = arith.constant 0 : index
      %c0_12 = arith.constant 0 : index
      %15 = vector.load %arg5[%c0_11, %c0_12] : memref<2x256xf32, #tpu.memory_space<vmem>>, vector<2x256xf32>
      tpu.vector_store %arg5[%c0_11, %c0_12], %14 {strides = array<i32>} : memref<2x256xf32, #tpu.memory_space<vmem>>, vector<2x256xf32>,
    } else {
    }
    %c0 = arith.constant 0 : index
    %c0_1 = arith.constant 0 : index
    %3 = vector.load %arg2[%c0, %c0_1] : memref<2x15360xf32, #tpu.memory_space<vmem>>, vector<2x15360xf32>
    %4 = arith.truncf %3 : vector<2x15360xf32> to vector<2x15360xbf16>
    %c0_2 = arith.constant 0 : index
    %c0_3 = arith.constant 0 : index
    %5 = vector.load %arg5[%c0_2, %c0_3] : memref<2x256xf32, #tpu.memory_space<vmem>>, vector<2x256xf32>
    %c0_4 = arith.constant 0 : index
    %c0_5 = arith.constant 0 : index
    %c0_6 = arith.constant 0 : index
    %6 = vector.load %arg3[%c0_4, %c0_5, %c0_6] : memref<1x15360x256xbf16, #tpu.memory_space<vmem>>, vector<1x15360x256xbf16>
    %7 = vector.shape_cast %6 : vector<1x15360x256xbf16> to vector<15360x256xbf16>
    %cst = arith.constant dense<0.000000e+00> : vector<2x256xf32>
    %8 = tpu.matmul %4, %7, %cst {dimension_numbers = #tpu.dot_dimension_numbers<[1], [0], [0], [1], [0, 0, 1, 1], [], []>} : vector<2x15360xbf16>, vector<15360x256xbf16>, vector<2x256xf32> -> vector<2x256xf32>
    %9 = arith.addf %5, %8 : vector<2x256xf32>
    %c0_7 = arith.constant 0 : index
    %c0_8 = arith.constant 0 : index
    %10 = vector.load %arg5[%c0_7, %c0_8] : memref<2x256xf32, #tpu.memory_space<vmem>>, vector<2x256xf32>
    tpu.vector_store %arg5[%c0_7, %c0_8], %9 {strides = array<i32>} : memref<2x256xf32, #tpu.memory_space<vmem>>, vector<2x256xf32>,
    %c1_i32 = arith.constant 1 : i32
    %11 = arith.cmpi eq, %arg1, %c1_i32 : i32
    %12 = arith.extui %11 : i1 to i32
    %c0_i32_9 = arith.constant 0 : i32
    %13 = arith.cmpi ne, %12, %c0_i32_9 : i32
    scf.if %13 {
      %c0_10 = arith.constant 0 : index
      %c0_11 = arith.constant 0 : index
      %14 = vector.load %arg5[%c0_10, %c0_11] : memref<2x256xf32, #tpu.memory_space<vmem>>, vector<2x256xf32>
      %c0_12 = arith.constant 0 : index
      %c0_13 = arith.constant 0 : index
      %15 = vector.load %arg4[%c0_12, %c0_13] : memref<1x256xf32, #tpu.memory_space<vmem>>, vector<1x256xf32>
      %16 = vector.broadcast %15 : vector<1x256xf32> to vector<2x256xf32>
      %17 = arith.addf %14, %16 : vector<2x256xf32>
      %cst_14 = arith.constant 0.000000e+00 : f32
      %18 = vector.broadcast %cst_14 : f32 to vector<2x256xf32>
      %19 = arith.maximumf %17, %18 : vector<2x256xf32>
      %c0_15 = arith.constant 0 : index
      %c0_16 = arith.constant 0 : index
      %20 = vector.load %arg5[%c0_15, %c0_16] : memref<2x256xf32, #tpu.memory_space<vmem>>, vector<2x256xf32>
      tpu.vector_store %arg5[%c0_15, %c0_16], %19 {strides = array<i32>} : memref<2x256xf32, #tpu.memory_space<vmem>>, vector<2x256xf32>,
    } else {
    }
    return
  }
  func.func @transform_0(%arg0: i32, %arg1: i32) -> (i32, i32) {
    %c0_i32 = arith.constant 0 : i32
    %c0_i32_0 = arith.constant 0 : i32
    return %c0_i32, %arg1 : i32, i32
  }
  func.func @transform_1(%arg0: i32, %arg1: i32) -> (i32, i32, i32) {
    %c0_i32 = arith.constant 0 : i32
    %c0_i32_0 = arith.constant 0 : i32
    return %arg0, %arg1, %c0_i32 : i32, i32, i32
  }
  func.func @transform_2(%arg0: i32, %arg1: i32) -> (i32, i32) {
    %c0_i32 = arith.constant 0 : i32
    %c0_i32_0 = arith.constant 0 : i32
    return %c0_i32, %arg0 : i32, i32
  }
  func.func @transform_3(%arg0: i32, %arg1: i32) -> (i32, i32) {
    %c0_i32 = arith.constant 0 : i32
    %c0_i32_0 = arith.constant 0 : i32
    return %c0_i32, %arg0 : i32, i32
  }
}

</mosaic_0001>

<bundles_post_ra>
// kernel: tpu_custom_call.1
= control target key start
LH: loop header
LB: loop body
LE: loop exit
PB: predicated region body
PF: predicated region fallthrough
CT: control target
= control target key end

     0   :  { %s23699_s0 = inlined_call_operand.hbm [shape: f32[2,30720], index: 0, kind: input, shape index: {}]   ;;  %s23700_s1 = inlined_call_operand.hbm [shape: bf16[2,30720,256], index: 1, kind: input, shape index: {}]   ;;  %s23701_s2 = inlined_call_operand.hbm [shape: f32[1,512], index: 2, kind: input, shape index: {}]   ;;  %s23702_s3 = inlined_call_operand.hbm [shape: f32[2,512], index: 3, kind: output, shape index: {}]  }
   0x1   :  { %23714 = sst [smem:[#allocation19_spill]] %s23699_s0 }
   0x2   :  { %23715 = sst [smem:[#allocation20_spill]] %s23700_s1 }
   0x3   :  { %23716 = sst [smem:[#allocation21_spill]] %s23702_s3 }
   0x4   :  { %8 = vsyncpa [#allocation3], 0 }
   0x5   :  { %10 = vsyncpa [#allocation3 + $0x1], 0 }
   0x6   :  { %11 = vsyncpa [#allocation6], 0 }
   0x7   :  { %13 = vsyncpa [#allocation6 + $0x1], 0 }
   0x8   :  { %14 = vsyncpa [#allocation4], 0 }
   0x9   :  { %16 = vsyncpa [#allocation4 + $0x1], 0  ;;  %s20768_s12 = smov 0   ;;  %s20770_s13 = smov 0  }
   0xa   :  { %s20772_s14 = smov 0   ;;  %s20774_s15 = smov 0  }
   0xb   :  { %s20776_s16 = smov 0   ;;  %s20778_s17 = smov 0  }
   0xc   :  { %s20780_s18 = smov 0   ;;  %s20782_s19 = smov 0  }
   0xd   :  { %s20784_s20 = smov 0   ;;  %s20786_s21 = smov 0  }
   0xe   :  { %s20788_s22 = smov 0   ;;  %s20790_s23 = smov 0  }
   0xf   :  { %s20792_s24 = smov 0   ;;  %s20794_s25 = smov 0  }
  0x10 LB: > { %23717 = sst [smem:[#allocation13_spill]] %s20722_s21  ;;  %s31_s26 = sadd.s32 1, %s20730_s23  ;;  %s20738_s25 = sphi %s20794_s25, %s22_s25   ;;  %s20734_s24 = sphi %s20792_s24, %s23769_s24   ;;  %s20730_s23 = sphi %s20790_s23, %s23757_s23   ;;  %s20726_s22 = sphi %s20788_s22, %s23768_s22   ;;  %s20722_s21 = sphi %s20786_s21, %s23756_s21   ;;  %s20718_s20 = sphi %s20784_s20, %s23767_s20   ;;  %s20714_s19 = sphi %s20782_s19, %s23766_s19   ;;  %s20710_s18 = sphi %s20780_s18, %s23765_s18   ;;  %s20706_s17 = sphi %s20778_s17, %s23764_s17   ;;  %s20702_s16 = sphi %s20776_s16, %s23763_s16   ;;  %s20698_s15 = sphi %s20774_s15, %s23762_s15   ;;  %s20694_s14 = sphi %s20772_s14, %s23761_s14   ;;  %s20690_s13 = sphi %s20770_s13, %s23760_s13   ;;  %s20686_s12 = sphi %s20768_s12, %s23759_s12  }
  0x11   : > { %23718 = sst [smem:[#allocation14_spill]] %s20726_s22  ;;  %s34_s27 = sadd.s32 1, %s20734_s24 }
  0x12   : > { %23719 = sst [smem:[#allocation15_spill]] %s20730_s23  ;;  %p32_p0 = scmp.ge.s32.totalorder %s31_s26, 2 }
  0x13   : > { %p23707_p1 = scmp.eq.s32.totalorder %s20738_s25, 0  ;;  %s69_s28 = sadd.s32 1, %s20706_s17 }
  0x14   : > { %p76_p2 = scmp.ne.s32.totalorder %s20706_s17, %s20702_s16  ;;  %s23771_s26 = smov (%p32_p0, %s31_s26), 0 }
  0x15   : > { %23720 = sst [smem:[#allocation16_spill]] %s23771_s26  ;;  %s23773_s27 = smov (!%p32_p0, %s34_s27), %s20734_s24 }
  0x16   : > { %s20849_s29 = ssub.s32 %s20730_s23, %s23771_s26  ;;  %p20853_p3 = por %p76_p2, %p23707_p1 }
  0x17   : > { %p36_p4 = scmp.ge.s32.totalorder %s23773_s27, 2  ;;  %p23706_p7 = scmp.lt.s32.totalorder %s20738_s25, 4 }
  0x18   : > { %s17201_s4 = smul.u32 3840, %s20730_s23  ;;  %s177_s6 = sand.u32 1, %s20738_s25  }
  0x19   : > { %s23775_s27 = smov (%p36_p4, %s23773_s27), 0  ;;  %s179_s8 = sand.u32 1, %s20706_s17  }
  0x1a   : > { %23722 = sst [smem:[#allocation17_spill]] %s23775_s27  ;;  %s20866_s5 = ssub.s32 %s20734_s24, %s23775_s27 }
  0x1b   : > { %s66_s7 = sor.u32 %s20866_s5, %s20849_s29  ;;  %s17441_s9 = smul.u32 7680, %s20734_s24 }
  0x1c   : > { %p67_p9 = scmp.eq.s32.totalorder %s66_s7, 0  ;;  %s17440_s11 = smul.u32 15360, %s179_s8 }
  0x1d   : > { %s188_s26 = sadd.s32 %s17441_s9, %s17201_s4  ;;  %p20883_p10 = pnand %p23706_p7, %p20853_p3 }
  0x1e   : > { %s20875_s10 = scalar_select %p67_p9, %s20706_s17, %s69_s28  }
  0x1f   : > { %s15267_s3 = sshll.u32 %s188_s26, 6  ;;  %s23724_s1 = sld [smem:[#allocation20_spill]] }
  0x20   : > { %s181_s28 = scalar_lea.vmem [#allocation5], %s17440_s11  ;;  %p15271_p11 = scmp.ge.s32.totalorder %s20738_s25, 1 }
  0x21   : > { %s191_s8 = sshll.u32 %s181_s28, 4  ;;  %s20895_s26 = scalar_lea.sflag [#allocation6], %s177_s6  ;;  %s20892_s8 = int_to_ptr.vmem [resolvable:$true] %s191_s8 }
  0x22   : > { %p20496_p13 = pneg %p20883_p10 }
  0x25   : > { %s20890_s7 = scalar_lea.hbm %s23724_s1, %s15267_s3  ;;  %s20499_s22 = scalar_lea.hbm %s23724_s1, 983040 }
  0x26   : > { %s20494_s30 = scalar_lea.hbm %s20890_s7, 245760  ;;  %p20500_p3 = scmp.lt.u32.totalorder %s20890_s7, %s23724_s1 }
  0x27   : > { %p20495_p12 = scmp.ne.s32.totalorder %s20890_s7, %s20494_s30  ;;  %p20501_p4 = scmp.lt.u32.totalorder %s20499_s22, %s20494_s30 }
  0x28   : > { %p20503_p8 = scmp.lt.u32.totalorder %s20494_s30, %s20890_s7 }
  0x29   : > { %p20497_p0 = pnand %p20496_p13, %p20495_p12  ;;  %p20502_p9 = por %p20501_p4, %p20500_p3 }
  0x2b   : > { %p20498_p2 = pneg %p20497_p0  ;;  %p20504_p7 = por %p20503_p8, %p20502_p9 }
  0x2d   : > { %p20505_p6 = pnand %p20504_p7, %p20498_p2 }
  0x2f   : > { %20508 = shalt.err (!%p20505_p6)
}
  0x30   : > { %s20509_s6 = scalar_lea.vmem %s20892_s8, 245760  ;;  %s20740_s28 = smov [#allocation5]  }
  0x31   : > { %p20510_p12 = scmp.ne.s32.totalorder %s20892_s8, %s20509_s6  ;;  %s20514_s3 = sshll.u32 %s20740_s28, 4  ;;  %s20515_s3 = int_to_ptr.vmem [resolvable:$false] %s20514_s3 }
  0x32   : > { %s20516_s21 = scalar_lea.vmem %s20515_s3, 491520  ;;  %p20517_p5 = scmp.lt.s32.totalorder %s20892_s8, %s20515_s3 }
  0x33   : > { %p20512_p0 = pnand %p20510_p12, %p20496_p13  ;;  %p20518_p3 = scmp.lt.s32.totalorder %s20516_s21, %s20509_s6 }
  0x35   : > { %p20513_p1 = pneg %p20512_p0  ;;  %p20519_p4 = por %p20518_p3, %p20517_p5 }
  0x37   : > { %p20520_p8 = pnand %p20519_p4, %p20513_p1 }
  0x39   : > { %20523 = shalt.err (!%p20520_p8)
}
  0x3a   : > { %s20741_s30 = smov 128   ;;  %s20742_s22 = smov 8  }
  0x3b   : > { %17458 = dma.hbm_to_vmem [thread:$0]  (!%p20883_p10), %s20890_s7, 245760, %s20892_s8, %s20895_s26, %s20741_s30, %s20741_s30, %s20742_s22  }
  0x3c   : > { %p218_p1 = scmp.lt.s32.totalorder %s20738_s25, 5  ;;  %s20931_s11 = sadd.s32 4294967295, %s20738_s25  }
  0x3d   : > { %s41_s6 = sadd.s32 1, %s20718_s20  ;;  %p23726_p6 = scmp.eq.s32.totalorder %s20849_s29, 0 }
  0x3e   : > { %p20926_p5 = pnand %p15271_p11, %p218_p1  ;;  %p48_p7 = scmp.ne.s32.totalorder %s20718_s20, %s20714_s19 }
  0x3f   : > { %s20937_s28 = scalar_select %p23726_p6, %s20718_s20, %s41_s6  }
  0x40   : > { %s23725_s9 = scalar_select %p20926_p5, 1, 0 }
  0x41   : > { %23727 = sst [smem:[#allocation18_spill]] %s20937_s28  ;;  %p54_p13 = scmp.ne.s32.totalorder %s20714_s19, %s20710_s18 }
  0x42   : > { %p23709_p2 = scmp.eq.s32.totalorder %s20931_s11, 0  ;;  %s158_s27 = sand.u32 1, %s20718_s20  }
  0x43   : > { %p23728_p10 = scmp.eq.s32.totalorder %s20738_s25, 0  ;;  %p23730_p12 = scmp.ne.s32.totalorder %s20702_s16, %s20698_s15 }
  0x44   : > { %p20949_p11 = por %p23709_p2, %p54_p13  ;;  %s17439_s29 = smul.u32 240, %s158_s27 }
  0x45   : > { %p50_p9 = por %p23728_p10, %p48_p7  ;;  %p20958_p0 = por %p23730_p12, %p23709_p2 }
  0x46   : > { %s23729_s7 = scalar_select %p20949_p11, 1, 0 }
  0x47   : > { %s23731_s8 = scalar_select %p20958_p0, 1, 0 }
  0x48   : > { %s23732_s0 = sld [smem:[#allocation19_spill]]  ;;  %p23733_p3 = scmp.lt.s32.totalorder %s20738_s25, 4 }
  0x49   : > { %s162_s15 = scalar_lea.vmem [#allocation2], %s17439_s29  ;;  %s159_s6 = scalar_lea.sflag [#allocation3], %s158_s27 }
  0x4a   : > { %p20971_p4 = pnand %p23733_p3, %p50_p9  ;;  %s170_s22 = sshll.u32 %s162_s15, 4  ;;  %s20975_s22 = int_to_ptr.vmem [resolvable:$true] %s170_s22 }
  0x4c   : > { %p20526_p1 = pneg %p20971_p4 }
  0x4e   : > { %s20967_s18 = scalar_lea.hbm %s23732_s0, %s17201_s4  ;;  %s20529_s21 = scalar_lea.hbm %s23732_s0, 7680 }
  0x4f   : > { %s20524_s1 = scalar_lea.hbm %s20967_s18, 3840  ;;  %p20530_p13 = scmp.lt.u32.totalorder %s20967_s18, %s23732_s0 }
  0x50   : > { %p20525_p8 = scmp.ne.s32.totalorder %s20967_s18, %s20524_s1  ;;  %p20531_p10 = scmp.lt.u32.totalorder %s20529_s21, %s20524_s1 }
  0x51   : > { %p20533_p12 = scmp.lt.u32.totalorder %s20524_s1, %s20967_s18 }
  0x52   : > { %p20527_p6 = pnand %p20526_p1, %p20525_p8  ;;  %p20532_p9 = por %p20531_p10, %p20530_p13 }
  0x54   : > { %p20528_p7 = pneg %p20527_p6  ;;  %p20534_p3 = por %p20533_p12, %p20532_p9 }
  0x56   : > { %p20535_p2 = pnand %p20534_p3, %p20528_p7 }
  0x58   : > { %20538 = shalt.err (!%p20535_p2)
}
  0x59   : > { %s20539_s27 = scalar_lea.vmem %s20975_s22, 3840  ;;  %s20743_s29 = smov [#allocation2]  }
  0x5a   : > { %p20540_p8 = scmp.ne.s32.totalorder %s20975_s22, %s20539_s27  ;;  %s20544_s15 = sshll.u32 %s20743_s29, 4  ;;  %s20545_s15 = int_to_ptr.vmem [resolvable:$false] %s20544_s15 }
  0x5b   : > { %s20546_s23 = scalar_lea.vmem %s20545_s15, 7680  ;;  %p20547_p11 = scmp.lt.s32.totalorder %s20975_s22, %s20545_s15 }
  0x5c   : > { %p20542_p6 = pnand %p20540_p8, %p20526_p1  ;;  %p20548_p13 = scmp.lt.s32.totalorder %s20546_s23, %s20539_s27 }
  0x5e   : > { %p20543_p0 = pneg %p20542_p6  ;;  %p20549_p10 = por %p20548_p13, %p20547_p11 }
  0x60   : > { %p20550_p9 = pnand %p20549_p10, %p20543_p0 }
  0x62   : > { %20553 = shalt.err (!%p20550_p9)
}
  0x63   : > { %17455 = dma.hbm_to_vmem [thread:$0]  (!%p20971_p4), %s20967_s18, 3840, %s20975_s22, %s159_s6  }
  0x64   : > { %s15262_s1 = sadd.s32 4294967294, %s20738_s25   ;;  %s95_s28 = sadd.s32 1, %s20694_s14 }
  0x65   : > { %p102_p2 = scmp.ne.s32.totalorder %s20694_s14, %s20690_s13  ;;  %p23735_p11 = scmp.eq.s32.totalorder %s20866_s5, 0 }
  0x66   : > { %p23736_p0 = scmp.eq.s32.totalorder %s20738_s25, 0  ;;  %p108_p7 = scmp.ne.s32.totalorder %s20690_s13, %s20686_s12 }
  0x67   : > { %s21009_s30 = scalar_select %p23735_p11, %s20694_s14, %s95_s28  }
  0x68   : > { %p21013_p1 = por %p102_p2, %p23736_p0  ;;  %p132_p12 = scmp.eq.s32.totalorder %s20931_s11, 3 }
  0x69   : > { %p138_p3 = scmp.eq.s32.totalorder %s15262_s1, 3  ;;  %p23738_p8 = scmp.eq.s32.totalorder %s20931_s11, 0 }
  0x6a   : > { %s203_s18 = sand.u32 1, %s20694_s14   ;;  %p21027_p4 = por %p132_p12, %p102_p2 }
  0x6b   : > { %p21022_p6 = por %p108_p7, %p23738_p8  ;;  %p21031_p13 = por %p138_p3, %p108_p7 }
  0x6c   : > { %s23740_s22 = scalar_select %p21027_p4, 1, 0 }
  0x6d   : > { %s23739_s3 = scalar_select %p21022_p6, 1, 0 }
  0x6e   : > { %s23741_s5 = scalar_select %p21031_p13, 1, 0 }
  0x6f   : > { %s15268_s6 = sshll.u32 %s203_s18, 1  ;;  %s17203_s21 = sshll.u32 %s20734_s24, 5 }
  0x70   : > { %s21039_s15 = scalar_lea.hbm %s23701_s2, %s17203_s21  ;;  %s205_s23 = scalar_lea.vmem [#allocation7], %s15268_s6 }
  0x71   : > { %s213_s1 = sshll.u32 %s205_s23, 4  ;;  %p23742_p10 = scmp.lt.s32.totalorder %s20738_s25, 4  ;;  %s214_s1 = int_to_ptr.vmem [resolvable:$true] %s213_s1 }
  0x72   : > { %s20554_s18 = scalar_lea.hbm %s21039_s15, 32  ;;  %s20559_s4 = scalar_lea.hbm %s23701_s2, 64 }
  0x73   : > { %p21045_p9 = pnand %p23742_p10, %p21013_p1  ;;  %p20555_p2 = scmp.ne.s32.totalorder %s21039_s15, %s20554_s18 }
  0x74   : > { %p20560_p1 = scmp.lt.u32.totalorder %s21039_s15, %s23701_s2  ;;  %p20561_p12 = scmp.lt.u32.totalorder %s20559_s4, %s20554_s18 }
  0x75   : > { %p20556_p11 = pneg %p21045_p9  ;;  %p20563_p8 = scmp.lt.u32.totalorder %s20554_s18, %s21039_s15 }
  0x76   : > { %p20562_p3 = por %p20561_p12, %p20560_p1 }
  0x77   : > { %p20557_p0 = pnand %p20556_p11, %p20555_p2 }
  0x78   : > { %p20564_p10 = por %p20563_p8, %p20562_p3 }
  0x79   : > { %p20558_p7 = pneg %p20557_p0 }
  0x7b   : > { %p20565_p13 = pnand %p20564_p10, %p20558_p7 }
  0x7d   : > { %20568 = shalt.err (!%p20565_p13)
}
  0x7e   : > { %s20569_s23 = scalar_lea.vmem %s214_s1, 32  ;;  %s20744_s0 = smov [#allocation7]  }
  0x7f   : > { %p20570_p4 = scmp.ne.s32.totalorder %s214_s1, %s20569_s23  ;;  %s20574_s21 = sshll.u32 %s20744_s0, 4  ;;  %s20575_s21 = int_to_ptr.vmem [resolvable:$false] %s20574_s21 }
  0x80   : > { %s20576_s6 = scalar_lea.vmem %s20575_s21, 64  ;;  %p20577_p6 = scmp.lt.s32.totalorder %s214_s1, %s20575_s21 }
  0x81   : > { %p20572_p2 = pnand %p20570_p4, %p20556_p11  ;;  %p20578_p5 = scmp.lt.s32.totalorder %s20576_s6, %s20569_s23 }
  0x83   : > { %p20573_p0 = pneg %p20572_p2  ;;  %p20579_p1 = por %p20578_p5, %p20577_p6 }
  0x85   : > { %p20580_p12 = pnand %p20579_p1, %p20573_p0 }
  0x87   : > { %20583 = shalt.err (!%p20580_p12)
}
  0x88   : > { %17461 = dma.hbm_to_vmem [thread:$0]  (!%p21045_p9), %s21039_s15, 32, %s214_s1, %s20895_s26  }
  0x89   : > { %p23744_p13 = scmp.ne.s32.totalorder %s23725_s9, 0 }
  0x8a   : > { %s224_s18 = sand.u32 (!%p23744_p13), 1, %s20714_s19   ;;  %p23745_p4 = scmp.ne.s32.totalorder (!%p23744_p13), %s23729_s7, 0 }
  0x8b   : > { %222 = sbr.rel (%p23744_p13) target bundleno = 2354 (0x932), region = 32  ;;  %s225_s0 = scalar_lea.sflag (!%p23744_p13), [#allocation3], %s224_s18 }
  0x8c   : > { %s17442_s4 = smul.u32 (!%p23744_p13), 240, %s224_s18 }
  0x8e   : > { %s21074_s27 = scalar_lea.vmem (!%p23744_p13), [#allocation2], %s17442_s4 }
  0x92   : > { %20669 = dma.done.wait (%p23745_p4), %s225_s0, 3840  }
  0x93   : > { %20671 = vsyncadd (%p23745_p4), %s225_s0, 4294963456  ;;  %s233_s28 = sand.u32 1, %s20931_s11   ;;  %s235_s26 = sand.u32 1, %s20702_s16  }
  0x94   : > { %s17443_s15 = smul.u32 15360, %s235_s26  ;;  %s234_s9 = scalar_lea.sflag [#allocation6], %s233_s28 }
  0x95   : > { %p23746_p5 = scmp.ne.s32.totalorder %s23731_s8, 0 }
  0x96   : > { %s21082_s1 = scalar_lea.vmem [#allocation5], %s17443_s15 }
  0x97   : > { %20673 = dma.done.wait (%p23746_p5), %s234_s9, 245760  }
  0x98   : > { %20675 = vsyncadd (%p23746_p5), %s234_s9, 4294721536  ;;  %s21089_s29 = sand.u32 1, %s20690_s13   ;;  %p23747_p6 = scmp.ne.s32.totalorder %s23739_s3, 0 }
  0x99   : > { %s15272_s7 = sshll.u32 %s21089_s29, 1 }
  0x9a   : > { %s21092_s23 = scalar_lea.vmem [#allocation7], %s15272_s7 }
  0x9b   : > { %20677 = dma.done.wait (%p23747_p6), %s234_s9, 32  }
  0x9c   : > { %20679 = vsyncadd (%p23747_p6), %s234_s9, 4294967264  ;;  %s15273_s11 = sshll.u32 %s21089_s29, 2  ;;  %s23748_s6 = sld [smem:[#allocation13_spill]] }
  0x9d   : > { %s21099_s21 = scalar_lea.vmem [#allocation8], %s15273_s11 }
  0xa2   : > { %p15274_p9 = scmp.ne.s32.totalorder %s23748_s6, 0 }
  0xa3   : > { %v20745_v0 = vmov (!%p15274_p9), 0.0  }
  0xa4   : > { %286 = sbr.rel (%p15274_p9) target bundleno = 171 (0xab), region = 48  ;;  %287 = vst [vmem:[%s21099_s21] sm:$0xf] (!%p15274_p9), %v20745_v0 }
  0xab PF: > { %v17584_v1 = vld [vmem:[%s21082_s1 + $0x4] ss:$8 sps:$4 sm:$0xff]   ;;  %v17588_v3 = vld [vmem:[%s21082_s1] ss:$8 sps:$4 sm:$0xff]   ;;  %v17590_v5 = vld [vmem:[%s21082_s1 + $0x14] ss:$8 sps:$4 sm:$0xff]   ;;  %v352_v39 = vlaneseq }
  0xac   : > { %v17586_v2 = vld [vmem:[%s21082_s1 + $0x1e04] ss:$8 sps:$4 sm:$0xff]   ;;  %12619 = vmatprep.subr.bf16.mxu1 %v17584_v1  ;;  %v17589_v4 = vld [vmem:[%s21082_s1 + $0x1e00] ss:$8 sps:$4 sm:$0xff]   ;;  %v17592_v6 = vld [vmem:[%s21082_s1 + $0x1e14] ss:$8 sps:$4 sm:$0xff]  }
  0xad   : > { %13849 = vmatprep.subr.bf16.mxu0 %v17586_v2  ;;  %12620 = vmatpush1.bf16.msra.mxu1 %v17588_v3  ;;  %v17594_v7 = vld [vmem:[%s21082_s1 + $0x10] ss:$8 sps:$4 sm:$0xff]   ;;  %v17596_v9 = vld [vmem:[%s21082_s1 + $0x24] ss:$8 sps:$4 sm:$0xff]   ;;  %v17600_v11 = vld [vmem:[%s21082_s1 + $0x20] ss:$8 sps:$4 sm:$0xff]  }
  0xae   : > { %13850 = vmatpush1.bf16.msra.mxu0 %v17589_v4  ;;  %12621 = vmatprep.subr.bf16.mxu1 %v17590_v5  ;;  %v17595_v8 = vld [vmem:[%s21082_s1 + $0x1e10] ss:$8 sps:$4 sm:$0xff]   ;;  %v17598_v10 = vld [vmem:[%s21082_s1 + $0x1e24] ss:$8 sps:$4 sm:$0xff]   ;;  %v17601_v12 = vld [vmem:[%s21082_s1 + $0x1e20] ss:$8 sps:$4 sm:$0xff]  }
  0xaf   : > { %13851 = vmatprep.subr.bf16.mxu0 %v17592_v6  ;;  %v17602_v13 = vld [vmem:[%s21082_s1 + $0x34] ss:$8 sps:$4 sm:$0xff]   ;;  %v17606_v15 = vld [vmem:[%s21082_s1 + $0x30] ss:$8 sps:$4 sm:$0xff]   ;;  %v17608_v17 = vld [vmem:[%s21082_s1 + $0x44] ss:$8 sps:$4 sm:$0xff]  }
  0xb0   : > { %v17604_v14 = vld [vmem:[%s21082_s1 + $0x1e34] ss:$8 sps:$4 sm:$0xff]   ;;  %v17607_v16 = vld [vmem:[%s21082_s1 + $0x1e30] ss:$8 sps:$4 sm:$0xff]   ;;  %v17610_v18 = vld [vmem:[%s21082_s1 + $0x1e44] ss:$8 sps:$4 sm:$0xff]  }
  0xb1   : > { %12622 = vmatpush1.bf16.msra.mxu1 %v17594_v7  ;;  %v17612_v19 = vld [vmem:[%s21082_s1 + $0x40] ss:$8 sps:$4 sm:$0xff]   ;;  %v17614_v21 = vld [vmem:[%s21082_s1 + $0x54] ss:$8 sps:$4 sm:$0xff]   ;;  %v17618_v23 = vld [vmem:[%s21082_s1 + $0x50] ss:$8 sps:$4 sm:$0xff]  }
  0xb2   : > { %13852 = vmatpush1.bf16.msra.mxu0 %v17595_v8  ;;  %12623 = vmatprep.subr.bf16.mxu1 %v17596_v9  ;;  %v17613_v20 = vld [vmem:[%s21082_s1 + $0x1e40] ss:$8 sps:$4 sm:$0xff]   ;;  %v17616_v22 = vld [vmem:[%s21082_s1 + $0x1e54] ss:$8 sps:$4 sm:$0xff]   ;;  %v17619_v24 = vld [vmem:[%s21082_s1 + $0x1e50] ss:$8 sps:$4 sm:$0xff]  }
  0xb3   : > { %13853 = vmatprep.subr.bf16.mxu0 %v17598_v10  ;;  %v17620_v25 = vld [vmem:[%s21082_s1 + $0x64] ss:$8 sps:$4 sm:$0xff]   ;;  %v17624_v27 = vld [vmem:[%s21082_s1 + $0x60] ss:$8 sps:$4 sm:$0xff]   ;;  %v17626_v29 = vld [vmem:[%s21082_s1 + $0x74] ss:$8 sps:$4 sm:$0xff]  }
  0xb4   : > { %v17622_v26 = vld [vmem:[%s21082_s1 + $0x1e64] ss:$8 sps:$4 sm:$0xff]   ;;  %v17625_v28 = vld [vmem:[%s21082_s1 + $0x1e60] ss:$8 sps:$4 sm:$0xff]   ;;  %v17628_v30 = vld [vmem:[%s21082_s1 + $0x1e74] ss:$8 sps:$4 sm:$0xff]  }
  0xb5   : > { %12624 = vmatpush1.bf16.msra.mxu1 %v17600_v11  ;;  %v17630_v31 = vld [vmem:[%s21082_s1 + $0x70] ss:$8 sps:$4 sm:$0xff]   ;;  %v17632_v33 = vld [vmem:[%s21082_s1 + $0x84] ss:$8 sps:$4 sm:$0xff]   ;;  %v17636_v35 = vld [vmem:[%s21082_s1 + $0x80] ss:$8 sps:$4 sm:$0xff]  }
  0xb6   : > { %13854 = vmatpush1.bf16.msra.mxu0 %v17601_v12  ;;  %12625 = vmatprep.subr.bf16.mxu1 %v17602_v13  ;;  %v17631_v32 = vld [vmem:[%s21082_s1 + $0x1e70] ss:$8 sps:$4 sm:$0xff]   ;;  %v17634_v34 = vld [vmem:[%s21082_s1 + $0x1e84] ss:$8 sps:$4 sm:$0xff]   ;;  %v17637_v36 = vld [vmem:[%s21082_s1 + $0x1e80] ss:$8 sps:$4 sm:$0xff]  }
  0xb7   : > { %13855 = vmatprep.subr.bf16.mxu0 %v17604_v14  ;;  %v20746_v37 = vmov 1983009808   ;;  %v17638_v40 = vld [vmem:[%s21082_s1 + $0x94] ss:$8 sps:$4 sm:$0xff]   ;;  %v17642_v42 = vld [vmem:[%s21082_s1 + $0x90] ss:$8 sps:$4 sm:$0xff]  }
  0xb8   : > { %v350_v38 = vunpack.c.l.s4 %v20746_v37  ;;  %v17640_v41 = vld [vmem:[%s21082_s1 + $0x1e94] ss:$8 sps:$4 sm:$0xff]   ;;  %v21142_v44 = vshrl.u32 %v352_v39, 7  ;;  %v17643_v45 = vld [vmem:[%s21082_s1 + $0x1e90] ss:$8 sps:$4 sm:$0xff]   ;;  %s23749_s8 = sld [smem:[#allocation13_spill]] }
  0xb9   : > { %12626 = vmatpush1.bf16.msra.mxu1 %v17606_v15  ;;  %v17644_v46 = vld [vmem:[%s21082_s1 + $0xa4] ss:$8 sps:$4 sm:$0xff]   ;;  %v17648_v48 = vld [vmem:[%s21082_s1 + $0xa0] ss:$8 sps:$4 sm:$0xff]   ;;  %v17650_v51 = vld [vmem:[%s21082_s1 + $0xb4] ss:$8 sps:$4 sm:$0xff]  }
  0xba   : > { %13856 = vmatpush1.bf16.msra.mxu0 %v17607_v16  ;;  %12627 = vmatprep.subr.bf16.mxu1 %v17608_v17  ;;  %v351_v43 = vunpack.c.0.s8 %v350_v38  ;;  %v17646_v47 = vld [vmem:[%s21082_s1 + $0x1ea4] ss:$8 sps:$4 sm:$0xff]   ;;  %v17649_v49 = vld [vmem:[%s21082_s1 + $0x1ea0] ss:$8 sps:$4 sm:$0xff]   ;;  %v17652_v52 = vld [vmem:[%s21082_s1 + $0x1eb4] ss:$8 sps:$4 sm:$0xff]  }
  0xbb   : > { %13857 = vmatprep.subr.bf16.mxu0 %v17610_v18  ;;  %v288_v53 = vld [vmem:[%s21074_s27] sm:$0xff]  ;;  %v303_v57 = vld [vmem:[%s21074_s27 + $0x78] sm:$0xff] }
  0xbc   : > { %v21150_v50 = vsub.s32 %v351_v43, %v21142_v44  ;;  %v17654_v54 = vld [vmem:[%s21082_s1 + $0xb0] ss:$8 sps:$4 sm:$0xff]   ;;  %v17656_v58 = vld [vmem:[%s21082_s1 + $0xc4] ss:$8 sps:$4 sm:$0xff]   ;;  %v17660_v0 = vld [vmem:[%s21082_s1 + $0xc0] ss:$8 sps:$4 sm:$0xff]   ;;  %v348_v9 = vcombine.high %v288_v53, %v288_v53  ;;  %v603_v10 = vcombine.high %v303_v57, %v303_v57 }
  0xbd   : > { %12628 = vmatpush1.bf16.msra.mxu1 %v17612_v19  ;;  %v17655_v56 = vld [vmem:[%s21082_s1 + $0x1eb0] ss:$8 sps:$4 sm:$0xff]   ;;  %v17658_v59 = vld [vmem:[%s21082_s1 + $0x1ec4] ss:$8 sps:$4 sm:$0xff]   ;;  %v17661_v1 = vld [vmem:[%s21082_s1 + $0x1ec0] ss:$8 sps:$4 sm:$0xff]  }
  0xbe   : > { %13858 = vmatpush1.bf16.msra.mxu0 %v17613_v20  ;;  %12629 = vmatprep.subr.bf16.mxu1 %v17614_v21  ;;  %v21157_v55 = vrot.slane %v288_v53, %v21150_v50  ;;  %v610_v61 = vrot.slane %v303_v57, %v21150_v50  ;;  %v17662_v2 = vld [vmem:[%s21082_s1 + $0xd4] ss:$8 sps:$4 sm:$0xff]   ;;  %v17666_v5 = vld [vmem:[%s21082_s1 + $0xd0] ss:$8 sps:$4 sm:$0xff]   ;;  %v17668_v7 = vld [vmem:[%s21082_s1 + $0xe4] ss:$8 sps:$4 sm:$0xff]   ;;  %v21179_v15 = vrot.slane %v348_v9, %v21150_v50 }
  0xbf   : > { %13859 = vmatprep.subr.bf16.mxu0 %v17616_v22  ;;  %v17664_v3 = vld [vmem:[%s21082_s1 + $0x1ed4] ss:$8 sps:$4 sm:$0xff]   ;;  %v17667_v6 = vld [vmem:[%s21082_s1 + $0x1ed0] ss:$8 sps:$4 sm:$0xff]   ;;  %v17670_v8 = vld [vmem:[%s21082_s1 + $0x1ee4] ss:$8 sps:$4 sm:$0xff]   ;;  %v21182_v16 = vrot.slane %v603_v10, %v21150_v50 }
  0xc0   : > { %v363_v60 = vcombine.high %v21157_v55, %v21157_v55  ;;  %v618_v63 = vcombine.high %v610_v61, %v610_v61  ;;  %v17672_v11 = vld [vmem:[%s21082_s1 + $0xe0] ss:$8 sps:$4 sm:$0xff]   ;;  %v17674_v13 = vld [vmem:[%s21082_s1 + $0xf4] ss:$8 sps:$4 sm:$0xff]   ;;  %v17678_v17 = vld [vmem:[%s21082_s1 + $0xf0] ss:$8 sps:$4 sm:$0xff]   ;;  %v364_v21 = vcombine.high %v21179_v15, %v21179_v15 }
  0xc1   : > { %12630 = vmatpush1.bf16.msra.mxu1 %v17618_v23  ;;  %v17673_v12 = vld [vmem:[%s21082_s1 + $0x1ee0] ss:$8 sps:$4 sm:$0xff]   ;;  %v17676_v14 = vld [vmem:[%s21082_s1 + $0x1ef4] ss:$8 sps:$4 sm:$0xff]   ;;  %v17679_v18 = vld [vmem:[%s21082_s1 + $0x1ef0] ss:$8 sps:$4 sm:$0xff]   ;;  %v619_v22 = vcombine.high %v21182_v16, %v21182_v16  ;;  %v978_v23 = vpack.c.bf16 %v21157_v55, %v21157_v55 }
  0xc2   : > { %13860 = vmatpush1.bf16.msra.mxu0 %v17619_v24  ;;  %12631 = vmatprep.subr.bf16.mxu1 %v17620_v25  ;;  %v979_v62 = vpack.c.bf16 %v363_v60, %v363_v60  ;;  %v1039_v4 = vpack.c.bf16 %v618_v63, %v618_v63  ;;  %v17683_v19 = vld [vmem:[%s21082_s1 + $0x104] ss:$8 sps:$4 sm:$0xff]   ;;  %v1038_v24 = vpack.c.bf16 %v610_v61, %v610_v61  ;;  %v17681_v25 = vld [vmem:[%s21082_s1 + $0x100] ss:$8 sps:$4 sm:$0xff]   ;;  %v17702_v37 = vld [vmem:[%s21082_s1 + $0x134] ss:$8 sps:$4 sm:$0xff]  }
  0xc3   : > { %13861 = vmatprep.subr.bf16.mxu0 %v17622_v26  ;;  %v17687_v20 = vld [vmem:[%s21082_s1 + $0x1f04] ss:$8 sps:$4 sm:$0xff]   ;;  %v17685_v26 = vld [vmem:[%s21082_s1 + $0x1f00] ss:$8 sps:$4 sm:$0xff]   ;;  %v17705_v38 = vld [vmem:[%s21082_s1 + $0x1f34] ss:$8 sps:$4 sm:$0xff]  }
  0xc4   : > { %12651 = vmatprep.mubr.bf16.mxu1 %v979_v62  ;;  %13881 = vmatprep.mubr.bf16.mxu0 %v1039_v4  ;;  %v17700_v39 = vld [vmem:[%s21082_s1 + $0x130] ss:$8 sps:$4 sm:$0xff]   ;;  %v17706_v43 = vld [vmem:[%s21082_s1 + $0x140] ss:$8 sps:$4 sm:$0xff]   ;;  %v17726_v55 = vld [vmem:[%s21082_s1 + $0x174] ss:$8 sps:$4 sm:$0xff]  }
  0xc5   : > { %12632 = vmatpush1.bf16.msra.mxu1 %v17624_v27  ;;  %v17690_v27 = vld [vmem:[%s21082_s1 + $0x114] ss:$8 sps:$4 sm:$0xff]   ;;  %v17718_v53 = vld [vmem:[%s21082_s1 + $0x160] ss:$8 sps:$4 sm:$0xff]   ;;  %v17724_v57 = vld [vmem:[%s21082_s1 + $0x170] ss:$8 sps:$4 sm:$0xff]  }
  0xc6   : > { %13862 = vmatpush1.bf16.msra.mxu0 %v17625_v28  ;;  %12633 = vmatprep.subr.bf16.mxu1 %v17626_v29  ;;  %v17693_v28 = vld [vmem:[%s21082_s1 + $0x1f14] ss:$8 sps:$4 sm:$0xff]   ;;  %v981_v29 = vpack.c.bf16 %v364_v21, %v364_v21  ;;  %v17735_v60 = vld [vmem:[%s21082_s1 + $0x1f84] ss:$8 sps:$4 sm:$0xff]   ;;  %v17730_v61 = vld [vmem:[%s21082_s1 + $0x180] ss:$8 sps:$4 sm:$0xff]  }
  0xc7   : > { %13863 = vmatprep.subr.bf16.mxu0 %v17628_v30  ;;  %v1041_v30 = vpack.c.bf16 %v619_v22, %v619_v22  ;;  %v17733_v62 = vld [vmem:[%s21082_s1 + $0x1f80] ss:$8 sps:$4 sm:$0xff]   ;;  %v17738_v63 = vld [vmem:[%s21082_s1 + $0x194] ss:$8 sps:$4 sm:$0xff]   ;;  %v17747_v4 = vld [vmem:[%s21082_s1 + $0x1fa4] ss:$8 sps:$4 sm:$0xff]  }
  0xc8   : > { %v17748_v9 = vld [vmem:[%s21082_s1 + $0x1b0] ss:$8 sps:$4 sm:$0xff]   ;;  %v17768_v21 = vld [vmem:[%s21082_s1 + $0x1e4] ss:$8 sps:$4 sm:$0xff]   ;;  %p17195_p11 = scmp.ne.s32.totalorder %s23749_s8, 1 }
  0xc9   : > { %12634 = vmatpush1.bf16.msra.mxu1 %v17630_v31  ;;  %v17688_v31 = vld [vmem:[%s21082_s1 + $0x110] ss:$8 sps:$4 sm:$0xff]   ;;  %v17771_v22 = vld [vmem:[%s21082_s1 + $0x1fe4] ss:$8 sps:$4 sm:$0xff]  }
  0xca   : > { %13864 = vmatpush1.bf16.msra.mxu0 %v17631_v32  ;;  %12635 = vmatprep.subr.bf16.mxu1 %v17632_v33  ;;  %v17691_v32 = vld [vmem:[%s21082_s1 + $0x1f10] ss:$8 sps:$4 sm:$0xff]   ;;  %v17696_v33 = vld [vmem:[%s21082_s1 + $0x124] ss:$8 sps:$4 sm:$0xff]  }
  0xcb   : > { %13865 = vmatprep.subr.bf16.mxu0 %v17634_v34  ;;  %v17699_v34 = vld [vmem:[%s21082_s1 + $0x1f24] ss:$8 sps:$4 sm:$0xff]   ;;  %v17751_v10 = vld [vmem:[%s21082_s1 + $0x1fb0] ss:$8 sps:$4 sm:$0xff]  }
  0xcd   : > { %12636 = vmatpush1.bf16.msra.mxu1 %v17636_v35  ;;  %v17694_v35 = vld [vmem:[%s21082_s1 + $0x120] ss:$8 sps:$4 sm:$0xff]  }
  0xce   : > { %13866 = vmatpush1.bf16.msra.mxu0 %v17637_v36  ;;  %12637 = vmatprep.subr.bf16.mxu1 %v17638_v40  ;;  %v17697_v36 = vld [vmem:[%s21082_s1 + $0x1f20] ss:$8 sps:$4 sm:$0xff]   ;;  %v17703_v40 = vld [vmem:[%s21082_s1 + $0x1f30] ss:$8 sps:$4 sm:$0xff]  }
  0xcf   : > { %13867 = vmatprep.subr.bf16.mxu0 %v17640_v41  ;;  %v17708_v41 = vld [vmem:[%s21082_s1 + $0x144] ss:$8 sps:$4 sm:$0xff]  }
  0xd1   : > { %12638 = vmatpush1.bf16.msra.mxu1 %v17642_v42  ;;  %v17711_v42 = vld [vmem:[%s21082_s1 + $0x1f44] ss:$8 sps:$4 sm:$0xff]  }
  0xd2   : > { %13868 = vmatpush1.bf16.msra.mxu0 %v17643_v45  ;;  %12639 = vmatprep.subr.bf16.mxu1 %v17644_v46  ;;  %v17709_v45 = vld [vmem:[%s21082_s1 + $0x1f40] ss:$8 sps:$4 sm:$0xff]   ;;  %v17714_v46 = vld [vmem:[%s21082_s1 + $0x154] ss:$8 sps:$4 sm:$0xff]  }
  0xd3   : > { %13869 = vmatprep.subr.bf16.mxu0 %v17646_v47  ;;  %v17717_v47 = vld [vmem:[%s21082_s1 + $0x1f54] ss:$8 sps:$4 sm:$0xff]  }
  0xd5   : > { %12640 = vmatpush1.bf16.msra.mxu1 %v17648_v48  ;;  %v17712_v48 = vld [vmem:[%s21082_s1 + $0x150] ss:$8 sps:$4 sm:$0xff]  }
  0xd6   : > { %13870 = vmatpush1.bf16.msra.mxu0 %v17649_v49  ;;  %12641 = vmatprep.subr.bf16.mxu1 %v17650_v51  ;;  %v17715_v49 = vld [vmem:[%s21082_s1 + $0x1f50] ss:$8 sps:$4 sm:$0xff]   ;;  %v17720_v51 = vld [vmem:[%s21082_s1 + $0x164] ss:$8 sps:$4 sm:$0xff]  }
  0xd7   : > { %13871 = vmatprep.subr.bf16.mxu0 %v17652_v52  ;;  %v17723_v52 = vld [vmem:[%s21082_s1 + $0x1f64] ss:$8 sps:$4 sm:$0xff]  }
  0xd9   : > { %12642 = vmatpush1.bf16.msra.mxu1 %v17654_v54  ;;  %v17721_v54 = vld [vmem:[%s21082_s1 + $0x1f60] ss:$8 sps:$4 sm:$0xff]  }
  0xda   : > { %13872 = vmatpush1.bf16.msra.mxu0 %v17655_v56  ;;  %12643 = vmatprep.subr.bf16.mxu1 %v17656_v58  ;;  %v17729_v56 = vld [vmem:[%s21082_s1 + $0x1f74] ss:$8 sps:$4 sm:$0xff]   ;;  %v17727_v58 = vld [vmem:[%s21082_s1 + $0x1f70] ss:$8 sps:$4 sm:$0xff]  }
  0xdb   : > { %13873 = vmatprep.subr.bf16.mxu0 %v17658_v59  ;;  %v17732_v59 = vld [vmem:[%s21082_s1 + $0x184] ss:$8 sps:$4 sm:$0xff]  }
  0xdd   : > { %12644 = vmatpush1.bf16.msra.mxu1 %v17660_v0  ;;  %v17741_v0 = vld [vmem:[%s21082_s1 + $0x1f94] ss:$8 sps:$4 sm:$0xff]  }
  0xde   : > { %13874 = vmatpush1.bf16.msra.mxu0 %v17661_v1  ;;  %12645 = vmatprep.subr.bf16.mxu1 %v17662_v2  ;;  %v17736_v1 = vld [vmem:[%s21082_s1 + $0x190] ss:$8 sps:$4 sm:$0xff]  }
  0xdf   : > { %13875 = vmatprep.subr.bf16.mxu0 %v17664_v3  ;;  %v17739_v2 = vld [vmem:[%s21082_s1 + $0x1f90] ss:$8 sps:$4 sm:$0xff]   ;;  %v17744_v3 = vld [vmem:[%s21082_s1 + $0x1a4] ss:$8 sps:$4 sm:$0xff]  }
  0xe1   : > { %12646 = vmatpush1.bf16.msra.mxu1 %v17666_v5  ;;  %v17742_v5 = vld [vmem:[%s21082_s1 + $0x1a0] ss:$8 sps:$4 sm:$0xff]  }
  0xe2   : > { %13876 = vmatpush1.bf16.msra.mxu0 %v17667_v6  ;;  %12647 = vmatprep.subr.bf16.mxu1 %v17668_v7  ;;  %v17745_v6 = vld [vmem:[%s21082_s1 + $0x1fa0] ss:$8 sps:$4 sm:$0xff]   ;;  %v17750_v7 = vld [vmem:[%s21082_s1 + $0x1b4] ss:$8 sps:$4 sm:$0xff]  }
  0xe3   : > { %13877 = vmatprep.subr.bf16.mxu0 %v17670_v8  ;;  %v17753_v8 = vld [vmem:[%s21082_s1 + $0x1fb4] ss:$8 sps:$4 sm:$0xff]  }
  0xe5   : > { %12648 = vmatpush1.bf16.msra.mxu1 %v17672_v11  ;;  %v17756_v11 = vld [vmem:[%s21082_s1 + $0x1c4] ss:$8 sps:$4 sm:$0xff]  }
  0xe6   : > { %13878 = vmatpush1.bf16.msra.mxu0 %v17673_v12  ;;  %12649 = vmatprep.subr.bf16.mxu1 %v17674_v13  ;;  %v17759_v12 = vld [vmem:[%s21082_s1 + $0x1fc4] ss:$8 sps:$4 sm:$0xff]   ;;  %v17754_v13 = vld [vmem:[%s21082_s1 + $0x1c0] ss:$8 sps:$4 sm:$0xff]  }
  0xe7   : > { %13879 = vmatprep.subr.bf16.mxu0 %v17676_v14  ;;  %v17757_v14 = vld [vmem:[%s21082_s1 + $0x1fc0] ss:$8 sps:$4 sm:$0xff]  }
  0xe9   : > { %12650 = vmatpush1.bf16.msra.mxu1 %v17678_v17  ;;  %v17762_v17 = vld [vmem:[%s21082_s1 + $0x1d4] ss:$8 sps:$4 sm:$0xff]  }
  0xea   : > { %13880 = vmatpush1.bf16.msra.mxu0 %v17679_v18  ;;  %12660 = vmatprep.subr.bf16.mxu1 %v17683_v19  ;;  %v17765_v18 = vld [vmem:[%s21082_s1 + $0x1fd4] ss:$8 sps:$4 sm:$0xff]   ;;  %v17760_v19 = vld [vmem:[%s21082_s1 + $0x1d0] ss:$8 sps:$4 sm:$0xff]  }
  0xeb   : > { %13890 = vmatprep.subr.bf16.mxu0 %v17687_v20  ;;  %v17763_v20 = vld [vmem:[%s21082_s1 + $0x1fd0] ss:$8 sps:$4 sm:$0xff]  }
  0xec   : > { %12652 = vmatmul.mubr.bf16.vlgmr.msra.gmra.mrb[0].mxu1 %v978_v23  ;;  %v17766_v23 = vld [vmem:[%s21082_s1 + $0x1e0] ss:$8 sps:$4 sm:$0xff]  }
  0xed   : > { %13882 = vmatmul.mubr.bf16.vlgmr.msra.gmra.mrb[0].mxu0 %v1038_v24  ;;  %12661 = vmatpush1.bf16.msra.mxu1 %v17681_v25  ;;  %v17769_v24 = vld [vmem:[%s21082_s1 + $0x1fe0] ss:$8 sps:$4 sm:$0xff]   ;;  %v17774_v25 = vld [vmem:[%s21082_s1 + $0x1f4] ss:$8 sps:$4 sm:$0xff]  }
  0xee   : > { %13891 = vmatpush1.bf16.msra.mxu0 %v17685_v26  ;;  %12662 = vmatprep.subr.bf16.mxu1 %v17690_v27  ;;  %v17777_v26 = vld [vmem:[%s21082_s1 + $0x1ff4] ss:$8 sps:$4 sm:$0xff]   ;;  %v17772_v27 = vld [vmem:[%s21082_s1 + $0x1f0] ss:$8 sps:$4 sm:$0xff]  }
  0xef   : > { %13892 = vmatprep.subr.bf16.mxu0 %v17693_v28  ;;  %12692 = vmatprep.mubr.bf16.mxu1 %v981_v29  ;;  %v17775_v28 = vld [vmem:[%s21082_s1 + $0x1ff0] ss:$8 sps:$4 sm:$0xff]   ;;  %v17780_v29 = vld [vmem:[%s21082_s1 + $0x204] ss:$8 sps:$4 sm:$0xff]  }
  0xf0   : > { %13922 = vmatprep.mubr.bf16.mxu0 %v1041_v30  ;;  %v17783_v30 = vld [vmem:[%s21082_s1 + $0x2004] ss:$8 sps:$4 sm:$0xff]  }
  0xf1   : > { %12663 = vmatpush1.bf16.msra.mxu1 %v17688_v31  ;;  %v17778_v31 = vld [vmem:[%s21082_s1 + $0x200] ss:$8 sps:$4 sm:$0xff]  }
  0xf2   : > { %13893 = vmatpush1.bf16.msra.mxu0 %v17691_v32  ;;  %12664 = vmatprep.subr.bf16.mxu1 %v17696_v33  ;;  %v980_v32 = vpack.c.bf16 %v21179_v15, %v21179_v15  ;;  %v1040_v33 = vpack.c.bf16 %v21182_v16, %v21182_v16  ;;  %v21274_v15 = vld [vmem:[%s21074_s27 + $0x80] sm:$0xff] }
  0xf3   : > { %13894 = vmatprep.subr.bf16.mxu0 %v17699_v34  ;;  %v17781_v34 = vld [vmem:[%s21082_s1 + $0x2000] ss:$8 sps:$4 sm:$0xff]   ;;  %v17784_v16 = vld [vmem:[%s21082_s1 + $0x210] ss:$8 sps:$4 sm:$0xff]  }
  0xf5   : > { %12665 = vmatpush1.bf16.msra.mxu1 %v17694_v35  ;;  %v17786_v35 = vld [vmem:[%s21082_s1 + $0x214] ss:$8 sps:$4 sm:$0xff]  }
  0xf6   : > { %13895 = vmatpush1.bf16.msra.mxu0 %v17697_v36  ;;  %12666 = vmatprep.subr.bf16.mxu1 %v17702_v37  ;;  %v21266_v36 = vld [vmem:[%s21074_s27 + $0x8] sm:$0xff] }
  0xf7   : > { %13896 = vmatprep.subr.bf16.mxu0 %v17705_v38  ;;  %v17789_v37 = vld [vmem:[%s21082_s1 + $0x2014] ss:$8 sps:$4 sm:$0xff]   ;;  %v21271_v38 = vrot.slane %v21266_v36, %v21150_v50 }
  0xf9   : > { %12667 = vmatpush1.bf16.msra.mxu1 %v17700_v39  ;;  %v17787_v39 = vld [vmem:[%s21082_s1 + $0x2010] ss:$8 sps:$4 sm:$0xff]  }
  0xfa   : > { %13897 = vmatpush1.bf16.msra.mxu0 %v17703_v40  ;;  %12668 = vmatprep.subr.bf16.mxu1 %v17708_v41  ;;  %v380_v40 = vcombine.high %v21271_v38, %v21271_v38  ;;  %v21282_v41 = vrot.slane %v21274_v15, %v21150_v50 }
  0xfb   : > { %13898 = vmatprep.subr.bf16.mxu0 %v17711_v42  ;;  %v17792_v42 = vld [vmem:[%s21082_s1 + $0x224] ss:$8 sps:$4 sm:$0xff]  }
  0xfd   : > { %12669 = vmatpush1.bf16.msra.mxu1 %v17706_v43  ;;  %v17795_v43 = vld [vmem:[%s21082_s1 + $0x2024] ss:$8 sps:$4 sm:$0xff]  }
  0xfe   : > { %13899 = vmatpush1.bf16.msra.mxu0 %v17709_v45  ;;  %12670 = vmatprep.subr.bf16.mxu1 %v17714_v46  ;;  %v983_v45 = vpack.c.bf16 %v380_v40, %v380_v40  ;;  %v635_v46 = vcombine.high %v21282_v41, %v21282_v41  ;;  %v17870_v40 = vld [vmem:[%s21082_s1 + $0x2f4] ss:$8 sps:$4 sm:$0xff]  }
  0xff   : > { %13900 = vmatprep.subr.bf16.mxu0 %v17717_v47  ;;  %v17790_v47 = vld [vmem:[%s21082_s1 + $0x220] ss:$8 sps:$4 sm:$0xff]  }
 0x101   : > { %12671 = vmatpush1.bf16.msra.mxu1 %v17712_v48  ;;  %v17793_v48 = vld [vmem:[%s21082_s1 + $0x2020] ss:$8 sps:$4 sm:$0xff]  }
 0x102   : > { %13901 = vmatpush1.bf16.msra.mxu0 %v17715_v49  ;;  %12672 = vmatprep.subr.bf16.mxu1 %v17720_v51  ;;  %v1043_v49 = vpack.c.bf16 %v635_v46, %v635_v46  ;;  %v17798_v51 = vld [vmem:[%s21082_s1 + $0x234] ss:$8 sps:$4 sm:$0xff]   ;;  %v17876_v46 = vld [vmem:[%s21082_s1 + $0x304] ss:$8 sps:$4 sm:$0xff]  }
 0x103   : > { %13902 = vmatprep.subr.bf16.mxu0 %v17723_v52  ;;  %v17801_v52 = vld [vmem:[%s21082_s1 + $0x2034] ss:$8 sps:$4 sm:$0xff]  }
 0x105   : > { %12673 = vmatpush1.bf16.msra.mxu1 %v17718_v53  ;;  %v17796_v53 = vld [vmem:[%s21082_s1 + $0x230] ss:$8 sps:$4 sm:$0xff]  }
 0x106   : > { %13903 = vmatpush1.bf16.msra.mxu0 %v17721_v54  ;;  %12674 = vmatprep.subr.bf16.mxu1 %v17726_v55  ;;  %v17799_v54 = vld [vmem:[%s21082_s1 + $0x2030] ss:$8 sps:$4 sm:$0xff]   ;;  %v17804_v55 = vld [vmem:[%s21082_s1 + $0x244] ss:$8 sps:$4 sm:$0xff]  }
 0x107   : > { %13904 = vmatprep.subr.bf16.mxu0 %v17729_v56  ;;  %v17807_v56 = vld [vmem:[%s21082_s1 + $0x2044] ss:$8 sps:$4 sm:$0xff]  }
 0x109   : > { %12675 = vmatpush1.bf16.msra.mxu1 %v17724_v57  ;;  %v17802_v57 = vld [vmem:[%s21082_s1 + $0x240] ss:$8 sps:$4 sm:$0xff]  }
 0x10a   : > { %13905 = vmatpush1.bf16.msra.mxu0 %v17727_v58  ;;  %12676 = vmatprep.subr.bf16.mxu1 %v17732_v59  ;;  %v17805_v58 = vld [vmem:[%s21082_s1 + $0x2040] ss:$8 sps:$4 sm:$0xff]   ;;  %v17810_v59 = vld [vmem:[%s21082_s1 + $0x254] ss:$8 sps:$4 sm:$0xff]  }
 0x10b   : > { %13906 = vmatprep.subr.bf16.mxu0 %v17735_v60  ;;  %v17813_v60 = vld [vmem:[%s21082_s1 + $0x2054] ss:$8 sps:$4 sm:$0xff]  }
 0x10d   : > { %12677 = vmatpush1.bf16.msra.mxu1 %v17730_v61  ;;  %v17808_v61 = vld [vmem:[%s21082_s1 + $0x250] ss:$8 sps:$4 sm:$0xff]  }
 0x10e   : > { %13907 = vmatpush1.bf16.msra.mxu0 %v17733_v62  ;;  %12678 = vmatprep.subr.bf16.mxu1 %v17738_v63  ;;  %v17811_v62 = vld [vmem:[%s21082_s1 + $0x2050] ss:$8 sps:$4 sm:$0xff]   ;;  %v17816_v63 = vld [vmem:[%s21082_s1 + $0x264] ss:$8 sps:$4 sm:$0xff]  }
 0x10f   : > { %13908 = vmatprep.subr.bf16.mxu0 %v17741_v0  ;;  %v17819_v0 = vld [vmem:[%s21082_s1 + $0x2064] ss:$8 sps:$4 sm:$0xff]  }
 0x111   : > { %12679 = vmatpush1.bf16.msra.mxu1 %v17736_v1  ;;  %v17814_v1 = vld [vmem:[%s21082_s1 + $0x260] ss:$8 sps:$4 sm:$0xff]  }
 0x112   : > { %13909 = vmatpush1.bf16.msra.mxu0 %v17739_v2  ;;  %12680 = vmatprep.subr.bf16.mxu1 %v17744_v3  ;;  %v17817_v2 = vld [vmem:[%s21082_s1 + $0x2060] ss:$8 sps:$4 sm:$0xff]   ;;  %v17822_v3 = vld [vmem:[%s21082_s1 + $0x274] ss:$8 sps:$4 sm:$0xff]  }
 0x113   : > { %13910 = vmatprep.subr.bf16.mxu0 %v17747_v4  ;;  %v17825_v4 = vld [vmem:[%s21082_s1 + $0x2074] ss:$8 sps:$4 sm:$0xff]  }
 0x115   : > { %12681 = vmatpush1.bf16.msra.mxu1 %v17742_v5  ;;  %v17820_v5 = vld [vmem:[%s21082_s1 + $0x270] ss:$8 sps:$4 sm:$0xff]  }
 0x116   : > { %13911 = vmatpush1.bf16.msra.mxu0 %v17745_v6  ;;  %12682 = vmatprep.subr.bf16.mxu1 %v17750_v7  ;;  %v17823_v6 = vld [vmem:[%s21082_s1 + $0x2070] ss:$8 sps:$4 sm:$0xff]   ;;  %v17828_v7 = vld [vmem:[%s21082_s1 + $0x284] ss:$8 sps:$4 sm:$0xff]  }
 0x117   : > { %13912 = vmatprep.subr.bf16.mxu0 %v17753_v8  ;;  %v17831_v8 = vld [vmem:[%s21082_s1 + $0x2084] ss:$8 sps:$4 sm:$0xff]  }
 0x119   : > { %12683 = vmatpush1.bf16.msra.mxu1 %v17748_v9  ;;  %v17826_v9 = vld [vmem:[%s21082_s1 + $0x280] ss:$8 sps:$4 sm:$0xff]  }
 0x11a   : > { %13913 = vmatpush1.bf16.msra.mxu0 %v17751_v10  ;;  %12684 = vmatprep.subr.bf16.mxu1 %v17756_v11  ;;  %v17829_v10 = vld [vmem:[%s21082_s1 + $0x2080] ss:$8 sps:$4 sm:$0xff]   ;;  %v17834_v11 = vld [vmem:[%s21082_s1 + $0x294] ss:$8 sps:$4 sm:$0xff]  }
 0x11b   : > { %13914 = vmatprep.subr.bf16.mxu0 %v17759_v12  ;;  %v17837_v12 = vld [vmem:[%s21082_s1 + $0x2094] ss:$8 sps:$4 sm:$0xff]  }
 0x11d   : > { %12685 = vmatpush1.bf16.msra.mxu1 %v17754_v13  ;;  %v17832_v13 = vld [vmem:[%s21082_s1 + $0x290] ss:$8 sps:$4 sm:$0xff]  }
 0x11e   : > { %13915 = vmatpush1.bf16.msra.mxu0 %v17757_v14  ;;  %12686 = vmatprep.subr.bf16.mxu1 %v17762_v17  ;;  %v17835_v14 = vld [vmem:[%s21082_s1 + $0x2090] ss:$8 sps:$4 sm:$0xff]   ;;  %v17840_v17 = vld [vmem:[%s21082_s1 + $0x2a4] ss:$8 sps:$4 sm:$0xff]  }
 0x11f   : > { %13916 = vmatprep.subr.bf16.mxu0 %v17765_v18  ;;  %v17843_v18 = vld [vmem:[%s21082_s1 + $0x20a4] ss:$8 sps:$4 sm:$0xff]  }
 0x121   : > { %12687 = vmatpush1.bf16.msra.mxu1 %v17760_v19  ;;  %v17838_v19 = vld [vmem:[%s21082_s1 + $0x2a0] ss:$8 sps:$4 sm:$0xff]  }
 0x122   : > { %13917 = vmatpush1.bf16.msra.mxu0 %v17763_v20  ;;  %12688 = vmatprep.subr.bf16.mxu1 %v17768_v21  ;;  %v17841_v20 = vld [vmem:[%s21082_s1 + $0x20a0] ss:$8 sps:$4 sm:$0xff]   ;;  %v17846_v21 = vld [vmem:[%s21082_s1 + $0x2b4] ss:$8 sps:$4 sm:$0xff]  }
 0x123   : > { %13918 = vmatprep.subr.bf16.mxu0 %v17771_v22  ;;  %v17849_v22 = vld [vmem:[%s21082_s1 + $0x20b4] ss:$8 sps:$4 sm:$0xff]  }
 0x125   : > { %12689 = vmatpush1.bf16.msra.mxu1 %v17766_v23  ;;  %v17844_v23 = vld [vmem:[%s21082_s1 + $0x2b0] ss:$8 sps:$4 sm:$0xff]  }
 0x126   : > { %13919 = vmatpush1.bf16.msra.mxu0 %v17769_v24  ;;  %12690 = vmatprep.subr.bf16.mxu1 %v17774_v25  ;;  %v17847_v24 = vld [vmem:[%s21082_s1 + $0x20b0] ss:$8 sps:$4 sm:$0xff]   ;;  %v17852_v25 = vld [vmem:[%s21082_s1 + $0x2c4] ss:$8 sps:$4 sm:$0xff]  }
 0x127   : > { %13920 = vmatprep.subr.bf16.mxu0 %v17777_v26  ;;  %v17855_v26 = vld [vmem:[%s21082_s1 + $0x20c4] ss:$8 sps:$4 sm:$0xff]  }
 0x129   : > { %12691 = vmatpush1.bf16.msra.mxu1 %v17772_v27  ;;  %v17850_v27 = vld [vmem:[%s21082_s1 + $0x2c0] ss:$8 sps:$4 sm:$0xff]  }
 0x12a   : > { %13921 = vmatpush1.bf16.msra.mxu0 %v17775_v28  ;;  %12701 = vmatprep.subr.bf16.mxu1 %v17780_v29  ;;  %v17853_v28 = vld [vmem:[%s21082_s1 + $0x20c0] ss:$8 sps:$4 sm:$0xff]   ;;  %v17858_v29 = vld [vmem:[%s21082_s1 + $0x2d4] ss:$8 sps:$4 sm:$0xff]  }
 0x12b   : > { %13931 = vmatprep.subr.bf16.mxu0 %v17783_v30  ;;  %v17861_v30 = vld [vmem:[%s21082_s1 + $0x20d4] ss:$8 sps:$4 sm:$0xff]  }
 0x12c   : > { %12693 = vmatmul.mubr.bf16.vlgmr.msra.gmra.mrb[0].mxu1 %v980_v32  ;;  %v17859_v32 = vld [vmem:[%s21082_s1 + $0x20d0] ss:$8 sps:$4 sm:$0xff]  }
 0x12d   : > { %13923 = vmatmul.mubr.bf16.vlgmr.msra.gmra.mrb[0].mxu0 %v1040_v33  ;;  %12702 = vmatpush1.bf16.msra.mxu1 %v17778_v31  ;;  %v17856_v31 = vld [vmem:[%s21082_s1 + $0x2d0] ss:$8 sps:$4 sm:$0xff]   ;;  %v17864_v33 = vld [vmem:[%s21082_s1 + $0x2e4] ss:$8 sps:$4 sm:$0xff]  }
 0x12e   : > { %13932 = vmatpush1.bf16.msra.mxu0 %v17781_v34  ;;  %12703 = vmatprep.subr.bf16.mxu1 %v17786_v35  ;;  %v17867_v34 = vld [vmem:[%s21082_s1 + $0x20e4] ss:$8 sps:$4 sm:$0xff]   ;;  %v365_v35 = vcombine.high %v21266_v36, %v21266_v36 }
 0x12f   : > { %13933 = vmatprep.subr.bf16.mxu0 %v17789_v37  ;;  %12733 = vmatprep.mubr.bf16.mxu1 %v983_v45  ;;  %v620_v37 = vcombine.high %v21274_v15, %v21274_v15  ;;  %v17868_v45 = vld [vmem:[%s21082_s1 + $0x2f0] ss:$8 sps:$4 sm:$0xff]  }
 0x130   : > { %13963 = vmatprep.mubr.bf16.mxu0 %v1043_v49  ;;  %v17871_v15 = vld [vmem:[%s21082_s1 + $0x20f0] ss:$8 sps:$4 sm:$0xff]  }
 0x131   : > { %12704 = vmatpush1.bf16.msra.mxu1 %v17784_v16  ;;  %v17862_v16 = vld [vmem:[%s21082_s1 + $0x2e0] ss:$8 sps:$4 sm:$0xff]   ;;  %v21348_v36 = vrot.slane %v620_v37, %v21150_v50  ;;  %v17943_v37 = vld [vmem:[%s21082_s1 + $0x21b0] ss:$8 sps:$4 sm:$0xff]  }
 0x132   : > { %13934 = vmatpush1.bf16.msra.mxu0 %v17787_v39  ;;  %12705 = vmatprep.subr.bf16.mxu1 %v17792_v42  ;;  %v17865_v39 = vld [vmem:[%s21082_s1 + $0x20e0] ss:$8 sps:$4 sm:$0xff]   ;;  %v17873_v42 = vld [vmem:[%s21082_s1 + $0x20f4] ss:$8 sps:$4 sm:$0xff]  }
 0x133   : > { %13935 = vmatprep.subr.bf16.mxu0 %v17795_v43  ;;  %v21345_v43 = vrot.slane %v365_v35, %v21150_v50  ;;  %v636_v49 = vcombine.high %v21348_v36, %v21348_v36  ;;  %v17940_v35 = vld [vmem:[%s21082_s1 + $0x3b0] ss:$8 sps:$4 sm:$0xff]  }
 0x135   : > { %12706 = vmatpush1.bf16.msra.mxu1 %v17790_v47  ;;  %v17879_v47 = vld [vmem:[%s21082_s1 + $0x2104] ss:$8 sps:$4 sm:$0xff]  }
 0x136   : > { %13936 = vmatpush1.bf16.msra.mxu0 %v17793_v48  ;;  %12707 = vmatprep.subr.bf16.mxu1 %v17798_v51  ;;  %v381_v48 = vcombine.high %v21345_v43, %v21345_v43  ;;  %v17874_v51 = vld [vmem:[%s21082_s1 + $0x300] ss:$8 sps:$4 sm:$0xff]  }
 0x137   : > { %13937 = vmatprep.subr.bf16.mxu0 %v17801_v52  ;;  %v17877_v52 = vld [vmem:[%s21082_s1 + $0x2100] ss:$8 sps:$4 sm:$0xff]  }
 0x139   : > { %12708 = vmatpush1.bf16.msra.mxu1 %v17796_v53  ;;  %v982_v53 = vpack.c.bf16 %v21271_v38, %v21271_v38  ;;  %v17883_v38 = vld [vmem:[%s21082_s1 + $0x2110] ss:$8 sps:$4 sm:$0xff]  }
 0x13a   : > { %13938 = vmatpush1.bf16.msra.mxu0 %v17799_v54  ;;  %12709 = vmatprep.subr.bf16.mxu1 %v17804_v55  ;;  %v1042_v54 = vpack.c.bf16 %v21282_v41, %v21282_v41  ;;  %v17882_v55 = vld [vmem:[%s21082_s1 + $0x314] ss:$8 sps:$4 sm:$0xff]   ;;  %v17888_v41 = vld [vmem:[%s21082_s1 + $0x324] ss:$8 sps:$4 sm:$0xff]  }
 0x13b   : > { %13939 = vmatprep.subr.bf16.mxu0 %v17807_v56  ;;  %v17885_v56 = vld [vmem:[%s21082_s1 + $0x2114] ss:$8 sps:$4 sm:$0xff]  }
 0x13d   : > { %12710 = vmatpush1.bf16.msra.mxu1 %v17802_v57  ;;  %v985_v57 = vpack.c.bf16 %v381_v48, %v381_v48  ;;  %v17960_v48 = vld [vmem:[%s21082_s1 + $0x3e4] ss:$8 sps:$4 sm:$0xff]  }
 0x13e   : > { %13940 = vmatpush1.bf16.msra.mxu0 %v17805_v58  ;;  %12711 = vmatprep.subr.bf16.mxu1 %v17810_v59  ;;  %v1045_v58 = vpack.c.bf16 %v636_v49, %v636_v49  ;;  %v17880_v59 = vld [vmem:[%s21082_s1 + $0x310] ss:$8 sps:$4 sm:$0xff]   ;;  %v17963_v49 = vld [vmem:[%s21082_s1 + $0x21e4] ss:$8 sps:$4 sm:$0xff]  }
 0x13f   : > { %13941 = vmatprep.subr.bf16.mxu0 %v17813_v60  ;;  %v17891_v60 = vld [vmem:[%s21082_s1 + $0x2124] ss:$8 sps:$4 sm:$0xff]  }
 0x141   : > { %12712 = vmatpush1.bf16.msra.mxu1 %v17808_v61  ;;  %v17886_v61 = vld [vmem:[%s21082_s1 + $0x320] ss:$8 sps:$4 sm:$0xff]  }
 0x142   : > { %13942 = vmatpush1.bf16.msra.mxu0 %v17811_v62  ;;  %12713 = vmatprep.subr.bf16.mxu1 %v17816_v63  ;;  %v17889_v62 = vld [vmem:[%s21082_s1 + $0x2120] ss:$8 sps:$4 sm:$0xff]   ;;  %v17894_v63 = vld [vmem:[%s21082_s1 + $0x334] ss:$8 sps:$4 sm:$0xff]  }
 0x143   : > { %13943 = vmatprep.subr.bf16.mxu0 %v17819_v0  ;;  %v17897_v0 = vld [vmem:[%s21082_s1 + $0x2134] ss:$8 sps:$4 sm:$0xff]  }
 0x145   : > { %12714 = vmatpush1.bf16.msra.mxu1 %v17814_v1  ;;  %v17892_v1 = vld [vmem:[%s21082_s1 + $0x330] ss:$8 sps:$4 sm:$0xff]  }
 0x146   : > { %13944 = vmatpush1.bf16.msra.mxu0 %v17817_v2  ;;  %12715 = vmatprep.subr.bf16.mxu1 %v17822_v3  ;;  %v17895_v2 = vld [vmem:[%s21082_s1 + $0x2130] ss:$8 sps:$4 sm:$0xff]   ;;  %v17900_v3 = vld [vmem:[%s21082_s1 + $0x344] ss:$8 sps:$4 sm:$0xff]  }
 0x147   : > { %13945 = vmatprep.subr.bf16.mxu0 %v17825_v4  ;;  %v17903_v4 = vld [vmem:[%s21082_s1 + $0x2144] ss:$8 sps:$4 sm:$0xff]  }
 0x149   : > { %12716 = vmatpush1.bf16.msra.mxu1 %v17820_v5  ;;  %v17898_v5 = vld [vmem:[%s21082_s1 + $0x340] ss:$8 sps:$4 sm:$0xff]  }
 0x14a   : > { %13946 = vmatpush1.bf16.msra.mxu0 %v17823_v6  ;;  %12717 = vmatprep.subr.bf16.mxu1 %v17828_v7  ;;  %v17901_v6 = vld [vmem:[%s21082_s1 + $0x2140] ss:$8 sps:$4 sm:$0xff]   ;;  %v17906_v7 = vld [vmem:[%s21082_s1 + $0x354] ss:$8 sps:$4 sm:$0xff]  }
 0x14b   : > { %13947 = vmatprep.subr.bf16.mxu0 %v17831_v8  ;;  %v17909_v8 = vld [vmem:[%s21082_s1 + $0x2154] ss:$8 sps:$4 sm:$0xff]  }
 0x14d   : > { %12718 = vmatpush1.bf16.msra.mxu1 %v17826_v9  ;;  %v17904_v9 = vld [vmem:[%s21082_s1 + $0x350] ss:$8 sps:$4 sm:$0xff]  }
 0x14e   : > { %13948 = vmatpush1.bf16.msra.mxu0 %v17829_v10  ;;  %12719 = vmatprep.subr.bf16.mxu1 %v17834_v11  ;;  %v17907_v10 = vld [vmem:[%s21082_s1 + $0x2150] ss:$8 sps:$4 sm:$0xff]   ;;  %v17912_v11 = vld [vmem:[%s21082_s1 + $0x364] ss:$8 sps:$4 sm:$0xff]  }
 0x14f   : > { %13949 = vmatprep.subr.bf16.mxu0 %v17837_v12  ;;  %v17915_v12 = vld [vmem:[%s21082_s1 + $0x2164] ss:$8 sps:$4 sm:$0xff]  }
 0x151   : > { %12720 = vmatpush1.bf16.msra.mxu1 %v17832_v13  ;;  %v17910_v13 = vld [vmem:[%s21082_s1 + $0x360] ss:$8 sps:$4 sm:$0xff]  }
 0x152   : > { %13950 = vmatpush1.bf16.msra.mxu0 %v17835_v14  ;;  %12721 = vmatprep.subr.bf16.mxu1 %v17840_v17  ;;  %v17913_v14 = vld [vmem:[%s21082_s1 + $0x2160] ss:$8 sps:$4 sm:$0xff]   ;;  %v17918_v17 = vld [vmem:[%s21082_s1 + $0x374] ss:$8 sps:$4 sm:$0xff]  }
 0x153   : > { %13951 = vmatprep.subr.bf16.mxu0 %v17843_v18  ;;  %v17921_v18 = vld [vmem:[%s21082_s1 + $0x2174] ss:$8 sps:$4 sm:$0xff]  }
 0x155   : > { %12722 = vmatpush1.bf16.msra.mxu1 %v17838_v19  ;;  %v17916_v19 = vld [vmem:[%s21082_s1 + $0x370] ss:$8 sps:$4 sm:$0xff]  }
 0x156   : > { %13952 = vmatpush1.bf16.msra.mxu0 %v17841_v20  ;;  %12723 = vmatprep.subr.bf16.mxu1 %v17846_v21  ;;  %v17919_v20 = vld [vmem:[%s21082_s1 + $0x2170] ss:$8 sps:$4 sm:$0xff]   ;;  %v17924_v21 = vld [vmem:[%s21082_s1 + $0x384] ss:$8 sps:$4 sm:$0xff]  }
 0x157   : > { %13953 = vmatprep.subr.bf16.mxu0 %v17849_v22  ;;  %v17927_v22 = vld [vmem:[%s21082_s1 + $0x2184] ss:$8 sps:$4 sm:$0xff]  }
 0x159   : > { %12724 = vmatpush1.bf16.msra.mxu1 %v17844_v23  ;;  %v17922_v23 = vld [vmem:[%s21082_s1 + $0x380] ss:$8 sps:$4 sm:$0xff]  }
 0x15a   : > { %13954 = vmatpush1.bf16.msra.mxu0 %v17847_v24  ;;  %12725 = vmatprep.subr.bf16.mxu1 %v17852_v25  ;;  %v17925_v24 = vld [vmem:[%s21082_s1 + $0x2180] ss:$8 sps:$4 sm:$0xff]   ;;  %v17930_v25 = vld [vmem:[%s21082_s1 + $0x394] ss:$8 sps:$4 sm:$0xff]  }
 0x15b   : > { %13955 = vmatprep.subr.bf16.mxu0 %v17855_v26  ;;  %v17933_v26 = vld [vmem:[%s21082_s1 + $0x2194] ss:$8 sps:$4 sm:$0xff]  }
 0x15d   : > { %12726 = vmatpush1.bf16.msra.mxu1 %v17850_v27  ;;  %v17928_v27 = vld [vmem:[%s21082_s1 + $0x390] ss:$8 sps:$4 sm:$0xff]  }
 0x15e   : > { %13956 = vmatpush1.bf16.msra.mxu0 %v17853_v28  ;;  %12727 = vmatprep.subr.bf16.mxu1 %v17858_v29  ;;  %v17931_v28 = vld [vmem:[%s21082_s1 + $0x2190] ss:$8 sps:$4 sm:$0xff]   ;;  %v17936_v29 = vld [vmem:[%s21082_s1 + $0x3a4] ss:$8 sps:$4 sm:$0xff]  }
 0x15f   : > { %13957 = vmatprep.subr.bf16.mxu0 %v17861_v30  ;;  %v17939_v30 = vld [vmem:[%s21082_s1 + $0x21a4] ss:$8 sps:$4 sm:$0xff]  }
 0x161   : > { %12728 = vmatpush1.bf16.msra.mxu1 %v17856_v31  ;;  %v17934_v31 = vld [vmem:[%s21082_s1 + $0x3a0] ss:$8 sps:$4 sm:$0xff]  }
 0x162   : > { %13958 = vmatpush1.bf16.msra.mxu0 %v17859_v32  ;;  %12729 = vmatprep.subr.bf16.mxu1 %v17864_v33  ;;  %v17937_v32 = vld [vmem:[%s21082_s1 + $0x21a0] ss:$8 sps:$4 sm:$0xff]   ;;  %v17942_v33 = vld [vmem:[%s21082_s1 + $0x3b4] ss:$8 sps:$4 sm:$0xff]  }
 0x163   : > { %13959 = vmatprep.subr.bf16.mxu0 %v17867_v34  ;;  %v17945_v34 = vld [vmem:[%s21082_s1 + $0x21b4] ss:$8 sps:$4 sm:$0xff]  }
 0x165   : > { %12730 = vmatpush1.bf16.msra.mxu1 %v17862_v16  ;;  %v17948_v16 = vld [vmem:[%s21082_s1 + $0x3c4] ss:$8 sps:$4 sm:$0xff]  }
 0x166   : > { %13960 = vmatpush1.bf16.msra.mxu0 %v17865_v39  ;;  %12731 = vmatprep.subr.bf16.mxu1 %v17870_v40  ;;  %v17951_v39 = vld [vmem:[%s21082_s1 + $0x21c4] ss:$8 sps:$4 sm:$0xff]   ;;  %v17946_v40 = vld [vmem:[%s21082_s1 + $0x3c0] ss:$8 sps:$4 sm:$0xff]  }
 0x167   : > { %13961 = vmatprep.subr.bf16.mxu0 %v17873_v42  ;;  %v17949_v42 = vld [vmem:[%s21082_s1 + $0x21c0] ss:$8 sps:$4 sm:$0xff]  }
 0x169   : > { %12732 = vmatpush1.bf16.msra.mxu1 %v17868_v45  ;;  %v17954_v45 = vld [vmem:[%s21082_s1 + $0x3d4] ss:$8 sps:$4 sm:$0xff]  }
 0x16a   : > { %13962 = vmatpush1.bf16.msra.mxu0 %v17871_v15  ;;  %12742 = vmatprep.subr.bf16.mxu1 %v17876_v46  ;;  %v17957_v15 = vld [vmem:[%s21082_s1 + $0x21d4] ss:$8 sps:$4 sm:$0xff]   ;;  %v17952_v46 = vld [vmem:[%s21082_s1 + $0x3d0] ss:$8 sps:$4 sm:$0xff]  }
 0x16b   : > { %13972 = vmatprep.subr.bf16.mxu0 %v17879_v47  ;;  %v17955_v47 = vld [vmem:[%s21082_s1 + $0x21d0] ss:$8 sps:$4 sm:$0xff]  }
 0x16c   : > { %12734 = vmatmul.mubr.bf16.vlgmr.msra.gmra.mrb[0].mxu1 %v982_v53  ;;  %v17958_v53 = vld [vmem:[%s21082_s1 + $0x3e0] ss:$8 sps:$4 sm:$0xff]  }
 0x16d   : > { %13964 = vmatmul.mubr.bf16.vlgmr.msra.gmra.mrb[0].mxu0 %v1042_v54  ;;  %12743 = vmatpush1.bf16.msra.mxu1 %v17874_v51  ;;  %v21419_v51 = vld [vmem:[%s21074_s27 + $0x10] sm:$0xff] }
 0x16e   : > { %13973 = vmatpush1.bf16.msra.mxu0 %v17877_v52  ;;  %12744 = vmatprep.subr.bf16.mxu1 %v17882_v55  ;;  %v21422_v52 = vld [vmem:[%s21074_s27 + $0x88] sm:$0xff] }
 0x16f   : > { %13974 = vmatprep.subr.bf16.mxu0 %v17885_v56  ;;  %12774 = vmatprep.mubr.bf16.mxu1 %v985_v57  ;;  %v17961_v54 = vld [vmem:[%s21082_s1 + $0x21e0] ss:$8 sps:$4 sm:$0xff]   ;;  %v17966_v55 = vld [vmem:[%s21082_s1 + $0x3f4] ss:$8 sps:$4 sm:$0xff]   ;;  %v21430_v57 = vrot.slane %v21419_v51, %v21150_v50 }
 0x170   : > { %14004 = vmatprep.mubr.bf16.mxu0 %v1045_v58  ;;  %v17969_v56 = vld [vmem:[%s21082_s1 + $0x21f4] ss:$8 sps:$4 sm:$0xff]   ;;  %v21434_v58 = vrot.slane %v21422_v52, %v21150_v50 }
 0x171   : > { %12745 = vmatpush1.bf16.msra.mxu1 %v17880_v59  ;;  %v17964_v59 = vld [vmem:[%s21082_s1 + $0x3f0] ss:$8 sps:$4 sm:$0xff]  }
 0x172   : > { %13975 = vmatpush1.bf16.msra.mxu0 %v17883_v38  ;;  %12746 = vmatprep.subr.bf16.mxu1 %v17888_v41  ;;  %v17967_v38 = vld [vmem:[%s21082_s1 + $0x21f0] ss:$8 sps:$4 sm:$0xff]   ;;  %v17973_v41 = vld [vmem:[%s21082_s1 + $0x404] ss:$8 sps:$4 sm:$0xff]  }
 0x173   : > { %13976 = vmatprep.subr.bf16.mxu0 %v17891_v60  ;;  %v17977_v60 = vld [vmem:[%s21082_s1 + $0x2204] ss:$8 sps:$4 sm:$0xff]  }
 0x175   : > { %12747 = vmatpush1.bf16.msra.mxu1 %v17886_v61  ;;  %v397_v61 = vcombine.high %v21430_v57, %v21430_v57 }
 0x176   : > { %13977 = vmatpush1.bf16.msra.mxu0 %v17889_v62  ;;  %12748 = vmatprep.subr.bf16.mxu1 %v17894_v63  ;;  %v652_v62 = vcombine.high %v21434_v58, %v21434_v58  ;;  %v984_v63 = vpack.c.bf16 %v21345_v43, %v21345_v43  ;;  %v17978_v43 = vld [vmem:[%s21082_s1 + $0x410] ss:$8 sps:$4 sm:$0xff]  }
 0x177   : > { %13978 = vmatprep.subr.bf16.mxu0 %v17897_v0  ;;  %v1044_v0 = vpack.c.bf16 %v21348_v36, %v21348_v36  ;;  %v17981_v36 = vld [vmem:[%s21082_s1 + $0x2210] ss:$8 sps:$4 sm:$0xff]  }
 0x179   : > { %12749 = vmatpush1.bf16.msra.mxu1 %v17892_v1  ;;  %v17971_v1 = vld [vmem:[%s21082_s1 + $0x400] ss:$8 sps:$4 sm:$0xff]  }
 0x17a   : > { %13979 = vmatpush1.bf16.msra.mxu0 %v17895_v2  ;;  %12750 = vmatprep.subr.bf16.mxu1 %v17900_v3  ;;  %v17975_v2 = vld [vmem:[%s21082_s1 + $0x2200] ss:$8 sps:$4 sm:$0xff]   ;;  %v17980_v3 = vld [vmem:[%s21082_s1 + $0x414] ss:$8 sps:$4 sm:$0xff]  }
 0x17b   : > { %13980 = vmatprep.subr.bf16.mxu0 %v17903_v4  ;;  %v17983_v4 = vld [vmem:[%s21082_s1 + $0x2214] ss:$8 sps:$4 sm:$0xff]  }
 0x17d   : > { %12751 = vmatpush1.bf16.msra.mxu1 %v17898_v5  ;;  %v987_v5 = vpack.c.bf16 %v397_v61, %v397_v61  ;;  %v18050_v61 = vld [vmem:[%s21082_s1 + $0x4d0] ss:$8 sps:$4 sm:$0xff]  }
 0x17e   : > { %13981 = vmatpush1.bf16.msra.mxu0 %v17901_v6  ;;  %12752 = vmatprep.subr.bf16.mxu1 %v17906_v7  ;;  %v1047_v6 = vpack.c.bf16 %v652_v62, %v652_v62  ;;  %v17986_v7 = vld [vmem:[%s21082_s1 + $0x424] ss:$8 sps:$4 sm:$0xff]   ;;  %v18053_v62 = vld [vmem:[%s21082_s1 + $0x22d0] ss:$8 sps:$4 sm:$0xff]  }
 0x17f   : > { %13982 = vmatprep.subr.bf16.mxu0 %v17909_v8  ;;  %v17989_v8 = vld [vmem:[%s21082_s1 + $0x2224] ss:$8 sps:$4 sm:$0xff]  }
 0x181   : > { %12753 = vmatpush1.bf16.msra.mxu1 %v17904_v9  ;;  %v17984_v9 = vld [vmem:[%s21082_s1 + $0x420] ss:$8 sps:$4 sm:$0xff]  }
 0x182   : > { %13983 = vmatpush1.bf16.msra.mxu0 %v17907_v10  ;;  %12754 = vmatprep.subr.bf16.mxu1 %v17912_v11  ;;  %v17987_v10 = vld [vmem:[%s21082_s1 + $0x2220] ss:$8 sps:$4 sm:$0xff]   ;;  %v17992_v11 = vld [vmem:[%s21082_s1 + $0x434] ss:$8 sps:$4 sm:$0xff]  }
 0x183   : > { %13984 = vmatprep.subr.bf16.mxu0 %v17915_v12  ;;  %v17995_v12 = vld [vmem:[%s21082_s1 + $0x2234] ss:$8 sps:$4 sm:$0xff]  }
 0x185   : > { %12755 = vmatpush1.bf16.msra.mxu1 %v17910_v13  ;;  %v17990_v13 = vld [vmem:[%s21082_s1 + $0x430] ss:$8 sps:$4 sm:$0xff]  }
 0x186   : > { %13985 = vmatpush1.bf16.msra.mxu0 %v17913_v14  ;;  %12756 = vmatprep.subr.bf16.mxu1 %v17918_v17  ;;  %v17993_v14 = vld [vmem:[%s21082_s1 + $0x2230] ss:$8 sps:$4 sm:$0xff]   ;;  %v17998_v17 = vld [vmem:[%s21082_s1 + $0x444] ss:$8 sps:$4 sm:$0xff]  }
 0x187   : > { %13986 = vmatprep.subr.bf16.mxu0 %v17921_v18  ;;  %v18001_v18 = vld [vmem:[%s21082_s1 + $0x2244] ss:$8 sps:$4 sm:$0xff]  }
 0x189   : > { %12757 = vmatpush1.bf16.msra.mxu1 %v17916_v19  ;;  %v17996_v19 = vld [vmem:[%s21082_s1 + $0x440] ss:$8 sps:$4 sm:$0xff]  }
 0x18a   : > { %13987 = vmatpush1.bf16.msra.mxu0 %v17919_v20  ;;  %12758 = vmatprep.subr.bf16.mxu1 %v17924_v21  ;;  %v17999_v20 = vld [vmem:[%s21082_s1 + $0x2240] ss:$8 sps:$4 sm:$0xff]   ;;  %v18004_v21 = vld [vmem:[%s21082_s1 + $0x454] ss:$8 sps:$4 sm:$0xff]  }
 0x18b   : > { %13988 = vmatprep.subr.bf16.mxu0 %v17927_v22  ;;  %v18007_v22 = vld [vmem:[%s21082_s1 + $0x2254] ss:$8 sps:$4 sm:$0xff]  }
 0x18d   : > { %12759 = vmatpush1.bf16.msra.mxu1 %v17922_v23  ;;  %v18002_v23 = vld [vmem:[%s21082_s1 + $0x450] ss:$8 sps:$4 sm:$0xff]  }
 0x18e   : > { %13989 = vmatpush1.bf16.msra.mxu0 %v17925_v24  ;;  %12760 = vmatprep.subr.bf16.mxu1 %v17930_v25  ;;  %v18005_v24 = vld [vmem:[%s21082_s1 + $0x2250] ss:$8 sps:$4 sm:$0xff]   ;;  %v18010_v25 = vld [vmem:[%s21082_s1 + $0x464] ss:$8 sps:$4 sm:$0xff]  }
 0x18f   : > { %13990 = vmatprep.subr.bf16.mxu0 %v17933_v26  ;;  %v18013_v26 = vld [vmem:[%s21082_s1 + $0x2264] ss:$8 sps:$4 sm:$0xff]  }
 0x191   : > { %12761 = vmatpush1.bf16.msra.mxu1 %v17928_v27  ;;  %v18008_v27 = vld [vmem:[%s21082_s1 + $0x460] ss:$8 sps:$4 sm:$0xff]  }
 0x192   : > { %13991 = vmatpush1.bf16.msra.mxu0 %v17931_v28  ;;  %12762 = vmatprep.subr.bf16.mxu1 %v17936_v29  ;;  %v18011_v28 = vld [vmem:[%s21082_s1 + $0x2260] ss:$8 sps:$4 sm:$0xff]   ;;  %v18016_v29 = vld [vmem:[%s21082_s1 + $0x474] ss:$8 sps:$4 sm:$0xff]  }
 0x193   : > { %13992 = vmatprep.subr.bf16.mxu0 %v17939_v30  ;;  %v18019_v30 = vld [vmem:[%s21082_s1 + $0x2274] ss:$8 sps:$4 sm:$0xff]  }
 0x195   : > { %12763 = vmatpush1.bf16.msra.mxu1 %v17934_v31  ;;  %v18014_v31 = vld [vmem:[%s21082_s1 + $0x470] ss:$8 sps:$4 sm:$0xff]  }
 0x196   : > { %13993 = vmatpush1.bf16.msra.mxu0 %v17937_v32  ;;  %12764 = vmatprep.subr.bf16.mxu1 %v17942_v33  ;;  %v18017_v32 = vld [vmem:[%s21082_s1 + $0x2270] ss:$8 sps:$4 sm:$0xff]   ;;  %v18022_v33 = vld [vmem:[%s21082_s1 + $0x484] ss:$8 sps:$4 sm:$0xff]  }
 0x197   : > { %13994 = vmatprep.subr.bf16.mxu0 %v17945_v34  ;;  %v18025_v34 = vld [vmem:[%s21082_s1 + $0x2284] ss:$8 sps:$4 sm:$0xff]  }
 0x199   : > { %12765 = vmatpush1.bf16.msra.mxu1 %v17940_v35  ;;  %v18020_v35 = vld [vmem:[%s21082_s1 + $0x480] ss:$8 sps:$4 sm:$0xff]  }
 0x19a   : > { %13995 = vmatpush1.bf16.msra.mxu0 %v17943_v37  ;;  %12766 = vmatprep.subr.bf16.mxu1 %v17948_v16  ;;  %v18023_v37 = vld [vmem:[%s21082_s1 + $0x2280] ss:$8 sps:$4 sm:$0xff]   ;;  %v18028_v16 = vld [vmem:[%s21082_s1 + $0x494] ss:$8 sps:$4 sm:$0xff]  }
 0x19b   : > { %13996 = vmatprep.subr.bf16.mxu0 %v17951_v39  ;;  %v18031_v39 = vld [vmem:[%s21082_s1 + $0x2294] ss:$8 sps:$4 sm:$0xff]  }
 0x19d   : > { %12767 = vmatpush1.bf16.msra.mxu1 %v17946_v40  ;;  %v18026_v40 = vld [vmem:[%s21082_s1 + $0x490] ss:$8 sps:$4 sm:$0xff]  }
 0x19e   : > { %13997 = vmatpush1.bf16.msra.mxu0 %v17949_v42  ;;  %12768 = vmatprep.subr.bf16.mxu1 %v17954_v45  ;;  %v18029_v42 = vld [vmem:[%s21082_s1 + $0x2290] ss:$8 sps:$4 sm:$0xff]   ;;  %v18034_v45 = vld [vmem:[%s21082_s1 + $0x4a4] ss:$8 sps:$4 sm:$0xff]  }
 0x19f   : > { %13998 = vmatprep.subr.bf16.mxu0 %v17957_v15  ;;  %v18037_v15 = vld [vmem:[%s21082_s1 + $0x22a4] ss:$8 sps:$4 sm:$0xff]  }
 0x1a1   : > { %12769 = vmatpush1.bf16.msra.mxu1 %v17952_v46  ;;  %v18032_v46 = vld [vmem:[%s21082_s1 + $0x4a0] ss:$8 sps:$4 sm:$0xff]  }
 0x1a2   : > { %13999 = vmatpush1.bf16.msra.mxu0 %v17955_v47  ;;  %12770 = vmatprep.subr.bf16.mxu1 %v17960_v48  ;;  %v18035_v47 = vld [vmem:[%s21082_s1 + $0x22a0] ss:$8 sps:$4 sm:$0xff]   ;;  %v18040_v48 = vld [vmem:[%s21082_s1 + $0x4b4] ss:$8 sps:$4 sm:$0xff]  }
 0x1a3   : > { %14000 = vmatprep.subr.bf16.mxu0 %v17963_v49  ;;  %v18043_v49 = vld [vmem:[%s21082_s1 + $0x22b4] ss:$8 sps:$4 sm:$0xff]  }
 0x1a5   : > { %12771 = vmatpush1.bf16.msra.mxu1 %v17958_v53  ;;  %v18038_v53 = vld [vmem:[%s21082_s1 + $0x4b0] ss:$8 sps:$4 sm:$0xff]  }
 0x1a6   : > { %14001 = vmatpush1.bf16.msra.mxu0 %v17961_v54  ;;  %12772 = vmatprep.subr.bf16.mxu1 %v17966_v55  ;;  %v18041_v54 = vld [vmem:[%s21082_s1 + $0x22b0] ss:$8 sps:$4 sm:$0xff]   ;;  %v18046_v55 = vld [vmem:[%s21082_s1 + $0x4c4] ss:$8 sps:$4 sm:$0xff]  }
 0x1a7   : > { %14002 = vmatprep.subr.bf16.mxu0 %v17969_v56  ;;  %v18049_v56 = vld [vmem:[%s21082_s1 + $0x22c4] ss:$8 sps:$4 sm:$0xff]  }
 0x1a9   : > { %12773 = vmatpush1.bf16.msra.mxu1 %v17964_v59  ;;  %v18044_v59 = vld [vmem:[%s21082_s1 + $0x4c0] ss:$8 sps:$4 sm:$0xff]  }
 0x1aa   : > { %14003 = vmatpush1.bf16.msra.mxu0 %v17967_v38  ;;  %12783 = vmatprep.subr.bf16.mxu1 %v17973_v41  ;;  %v18047_v38 = vld [vmem:[%s21082_s1 + $0x22c0] ss:$8 sps:$4 sm:$0xff]   ;;  %v18052_v41 = vld [vmem:[%s21082_s1 + $0x4d4] ss:$8 sps:$4 sm:$0xff]  }
 0x1ab   : > { %14013 = vmatprep.subr.bf16.mxu0 %v17977_v60  ;;  %v18055_v60 = vld [vmem:[%s21082_s1 + $0x22d4] ss:$8 sps:$4 sm:$0xff]  }
 0x1ac   : > { %12775 = vmatmul.mubr.bf16.vlgmr.msra.gmra.mrb[0].mxu1 %v984_v63  ;;  %v18058_v63 = vld [vmem:[%s21082_s1 + $0x4e4] ss:$8 sps:$4 sm:$0xff]  }
 0x1ad   : > { %14005 = vmatmul.mubr.bf16.vlgmr.msra.gmra.mrb[0].mxu0 %v1044_v0  ;;  %12784 = vmatpush1.bf16.msra.mxu1 %v17971_v1  ;;  %v18061_v0 = vld [vmem:[%s21082_s1 + $0x22e4] ss:$8 sps:$4 sm:$0xff]   ;;  %v382_v1 = vcombine.high %v21419_v51, %v21419_v51  ;;  %v18062_v51 = vld [vmem:[%s21082_s1 + $0x4f0] ss:$8 sps:$4 sm:$0xff]  }
 0x1ae   : > { %14014 = vmatpush1.bf16.msra.mxu0 %v17975_v2  ;;  %12785 = vmatprep.subr.bf16.mxu1 %v17980_v3  ;;  %v637_v2 = vcombine.high %v21422_v52, %v21422_v52  ;;  %v18056_v3 = vld [vmem:[%s21082_s1 + $0x4e0] ss:$8 sps:$4 sm:$0xff]   ;;  %v18065_v52 = vld [vmem:[%s21082_s1 + $0x22f0] ss:$8 sps:$4 sm:$0xff]  }
 0x1af   : > { %14015 = vmatprep.subr.bf16.mxu0 %v17983_v4  ;;  %12815 = vmatprep.mubr.bf16.mxu1 %v987_v5  ;;  %v18059_v4 = vld [vmem:[%s21082_s1 + $0x22e0] ss:$8 sps:$4 sm:$0xff]   ;;  %v18064_v5 = vld [vmem:[%s21082_s1 + $0x4f4] ss:$8 sps:$4 sm:$0xff]  }
 0x1b0   : > { %14045 = vmatprep.mubr.bf16.mxu0 %v1047_v6  ;;  %v18067_v6 = vld [vmem:[%s21082_s1 + $0x22f4] ss:$8 sps:$4 sm:$0xff]  }
 0x1b1   : > { %12786 = vmatpush1.bf16.msra.mxu1 %v17978_v43  ;;  %v21513_v43 = vrot.slane %v382_v1, %v21150_v50  ;;  %v18134_v1 = vld [vmem:[%s21082_s1 + $0x5b0] ss:$8 sps:$4 sm:$0xff]  }
 0x1b2   : > { %14016 = vmatpush1.bf16.msra.mxu0 %v17981_v36  ;;  %12787 = vmatprep.subr.bf16.mxu1 %v17986_v7  ;;  %v21516_v36 = vrot.slane %v637_v2, %v21150_v50  ;;  %v18070_v7 = vld [vmem:[%s21082_s1 + $0x504] ss:$8 sps:$4 sm:$0xff]   ;;  %v18137_v2 = vld [vmem:[%s21082_s1 + $0x23b0] ss:$8 sps:$4 sm:$0xff]  }
 0x1b3   : > { %14017 = vmatprep.subr.bf16.mxu0 %v17989_v8  ;;  %v18073_v8 = vld [vmem:[%s21082_s1 + $0x2304] ss:$8 sps:$4 sm:$0xff]  }
 0x1b5   : > { %12788 = vmatpush1.bf16.msra.mxu1 %v17984_v9  ;;  %v398_v9 = vcombine.high %v21513_v43, %v21513_v43 }
 0x1b6   : > { %14018 = vmatpush1.bf16.msra.mxu0 %v17987_v10  ;;  %12789 = vmatprep.subr.bf16.mxu1 %v17992_v11  ;;  %v653_v10 = vcombine.high %v21516_v36, %v21516_v36  ;;  %v986_v11 = vpack.c.bf16 %v21430_v57, %v21430_v57  ;;  %v18074_v57 = vld [vmem:[%s21082_s1 + $0x510] ss:$8 sps:$4 sm:$0xff]  }
 0x1b7   : > { %14019 = vmatprep.subr.bf16.mxu0 %v17995_v12  ;;  %v1046_v12 = vpack.c.bf16 %v21434_v58, %v21434_v58  ;;  %v18077_v58 = vld [vmem:[%s21082_s1 + $0x2310] ss:$8 sps:$4 sm:$0xff]  }
 0x1b9   : > { %12790 = vmatpush1.bf16.msra.mxu1 %v17990_v13  ;;  %v18068_v13 = vld [vmem:[%s21082_s1 + $0x500] ss:$8 sps:$4 sm:$0xff]  }
 0x1ba   : > { %14020 = vmatpush1.bf16.msra.mxu0 %v17993_v14  ;;  %12791 = vmatprep.subr.bf16.mxu1 %v17998_v17  ;;  %v18071_v14 = vld [vmem:[%s21082_s1 + $0x2300] ss:$8 sps:$4 sm:$0xff]   ;;  %v18076_v17 = vld [vmem:[%s21082_s1 + $0x514] ss:$8 sps:$4 sm:$0xff]  }
 0x1bb   : > { %14021 = vmatprep.subr.bf16.mxu0 %v18001_v18  ;;  %v18079_v18 = vld [vmem:[%s21082_s1 + $0x2314] ss:$8 sps:$4 sm:$0xff]  }
 0x1bd   : > { %12792 = vmatpush1.bf16.msra.mxu1 %v17996_v19  ;;  %v989_v19 = vpack.c.bf16 %v398_v9, %v398_v9  ;;  %v18154_v9 = vld [vmem:[%s21082_s1 + $0x5e4] ss:$8 sps:$4 sm:$0xff]  }
 0x1be   : > { %14022 = vmatpush1.bf16.msra.mxu0 %v17999_v20  ;;  %12793 = vmatprep.subr.bf16.mxu1 %v18004_v21  ;;  %v1049_v20 = vpack.c.bf16 %v653_v10, %v653_v10  ;;  %v18082_v21 = vld [vmem:[%s21082_s1 + $0x524] ss:$8 sps:$4 sm:$0xff]  }
 0x1bf   : > { %14023 = vmatprep.subr.bf16.mxu0 %v18007_v22  ;;  %v18085_v22 = vld [vmem:[%s21082_s1 + $0x2324] ss:$8 sps:$4 sm:$0xff]  }
 0x1c0   : > { %v18157_v10 = vld [vmem:[%s21082_s1 + $0x23e4] ss:$8 sps:$4 sm:$0xff]  }
 0x1c1   : > { %12794 = vmatpush1.bf16.msra.mxu1 %v18002_v23  ;;  %v18080_v23 = vld [vmem:[%s21082_s1 + $0x520] ss:$8 sps:$4 sm:$0xff]  }
 0x1c2   : > { %14024 = vmatpush1.bf16.msra.mxu0 %v18005_v24  ;;  %12795 = vmatprep.subr.bf16.mxu1 %v18010_v25  ;;  %v18083_v24 = vld [vmem:[%s21082_s1 + $0x2320] ss:$8 sps:$4 sm:$0xff]   ;;  %v18088_v25 = vld [vmem:[%s21082_s1 + $0x534] ss:$8 sps:$4 sm:$0xff]  }
 0x1c3   : > { %14025 = vmatprep.subr.bf16.mxu0 %v18013_v26  ;;  %v18091_v26 = vld [vmem:[%s21082_s1 + $0x2334] ss:$8 sps:$4 sm:$0xff]  }
 0x1c5   : > { %12796 = vmatpush1.bf16.msra.mxu1 %v18008_v27  ;;  %v18086_v27 = vld [vmem:[%s21082_s1 + $0x530] ss:$8 sps:$4 sm:$0xff]  }
 0x1c6   : > { %14026 = vmatpush1.bf16.msra.mxu0 %v18011_v28  ;;  %12797 = vmatprep.subr.bf16.mxu1 %v18016_v29  ;;  %v18089_v28 = vld [vmem:[%s21082_s1 + $0x2330] ss:$8 sps:$4 sm:$0xff]   ;;  %v18094_v29 = vld [vmem:[%s21082_s1 + $0x544] ss:$8 sps:$4 sm:$0xff]  }
 0x1c7   : > { %14027 = vmatprep.subr.bf16.mxu0 %v18019_v30  ;;  %v18097_v30 = vld [vmem:[%s21082_s1 + $0x2344] ss:$8 sps:$4 sm:$0xff]  }
 0x1c9   : > { %12798 = vmatpush1.bf16.msra.mxu1 %v18014_v31  ;;  %v18092_v31 = vld [vmem:[%s21082_s1 + $0x540] ss:$8 sps:$4 sm:$0xff]  }
 0x1ca   : > { %14028 = vmatpush1.bf16.msra.mxu0 %v18017_v32  ;;  %12799 = vmatprep.subr.bf16.mxu1 %v18022_v33  ;;  %v18095_v32 = vld [vmem:[%s21082_s1 + $0x2340] ss:$8 sps:$4 sm:$0xff]   ;;  %v18100_v33 = vld [vmem:[%s21082_s1 + $0x554] ss:$8 sps:$4 sm:$0xff]  }
 0x1cb   : > { %14029 = vmatprep.subr.bf16.mxu0 %v18025_v34  ;;  %v18103_v34 = vld [vmem:[%s21082_s1 + $0x2354] ss:$8 sps:$4 sm:$0xff]  }
 0x1cd   : > { %12800 = vmatpush1.bf16.msra.mxu1 %v18020_v35  ;;  %v18098_v35 = vld [vmem:[%s21082_s1 + $0x550] ss:$8 sps:$4 sm:$0xff]  }
 0x1ce   : > { %14030 = vmatpush1.bf16.msra.mxu0 %v18023_v37  ;;  %12801 = vmatprep.subr.bf16.mxu1 %v18028_v16  ;;  %v18101_v37 = vld [vmem:[%s21082_s1 + $0x2350] ss:$8 sps:$4 sm:$0xff]   ;;  %v18106_v16 = vld [vmem:[%s21082_s1 + $0x564] ss:$8 sps:$4 sm:$0xff]  }
 0x1cf   : > { %14031 = vmatprep.subr.bf16.mxu0 %v18031_v39  ;;  %v18109_v39 = vld [vmem:[%s21082_s1 + $0x2364] ss:$8 sps:$4 sm:$0xff]  }
 0x1d1   : > { %12802 = vmatpush1.bf16.msra.mxu1 %v18026_v40  ;;  %v18104_v40 = vld [vmem:[%s21082_s1 + $0x560] ss:$8 sps:$4 sm:$0xff]  }
 0x1d2   : > { %14032 = vmatpush1.bf16.msra.mxu0 %v18029_v42  ;;  %12803 = vmatprep.subr.bf16.mxu1 %v18034_v45  ;;  %v18107_v42 = vld [vmem:[%s21082_s1 + $0x2360] ss:$8 sps:$4 sm:$0xff]   ;;  %v18112_v45 = vld [vmem:[%s21082_s1 + $0x574] ss:$8 sps:$4 sm:$0xff]  }
 0x1d3   : > { %14033 = vmatprep.subr.bf16.mxu0 %v18037_v15  ;;  %v18115_v15 = vld [vmem:[%s21082_s1 + $0x2374] ss:$8 sps:$4 sm:$0xff]  }
 0x1d5   : > { %12804 = vmatpush1.bf16.msra.mxu1 %v18032_v46  ;;  %v18110_v46 = vld [vmem:[%s21082_s1 + $0x570] ss:$8 sps:$4 sm:$0xff]  }
 0x1d6   : > { %14034 = vmatpush1.bf16.msra.mxu0 %v18035_v47  ;;  %12805 = vmatprep.subr.bf16.mxu1 %v18040_v48  ;;  %v18113_v47 = vld [vmem:[%s21082_s1 + $0x2370] ss:$8 sps:$4 sm:$0xff]   ;;  %v18118_v48 = vld [vmem:[%s21082_s1 + $0x584] ss:$8 sps:$4 sm:$0xff]  }
 0x1d7   : > { %14035 = vmatprep.subr.bf16.mxu0 %v18043_v49  ;;  %v18121_v49 = vld [vmem:[%s21082_s1 + $0x2384] ss:$8 sps:$4 sm:$0xff]  }
 0x1d9   : > { %12806 = vmatpush1.bf16.msra.mxu1 %v18038_v53  ;;  %v18116_v53 = vld [vmem:[%s21082_s1 + $0x580] ss:$8 sps:$4 sm:$0xff]  }
 0x1da   : > { %14036 = vmatpush1.bf16.msra.mxu0 %v18041_v54  ;;  %12807 = vmatprep.subr.bf16.mxu1 %v18046_v55  ;;  %v18119_v54 = vld [vmem:[%s21082_s1 + $0x2380] ss:$8 sps:$4 sm:$0xff]   ;;  %v18124_v55 = vld [vmem:[%s21082_s1 + $0x594] ss:$8 sps:$4 sm:$0xff]  }
 0x1db   : > { %14037 = vmatprep.subr.bf16.mxu0 %v18049_v56  ;;  %v18127_v56 = vld [vmem:[%s21082_s1 + $0x2394] ss:$8 sps:$4 sm:$0xff]  }
 0x1dd   : > { %12808 = vmatpush1.bf16.msra.mxu1 %v18044_v59  ;;  %v18122_v59 = vld [vmem:[%s21082_s1 + $0x590] ss:$8 sps:$4 sm:$0xff]  }
 0x1de   : > { %14038 = vmatpush1.bf16.msra.mxu0 %v18047_v38  ;;  %12809 = vmatprep.subr.bf16.mxu1 %v18052_v41  ;;  %v18125_v38 = vld [vmem:[%s21082_s1 + $0x2390] ss:$8 sps:$4 sm:$0xff]   ;;  %v18130_v41 = vld [vmem:[%s21082_s1 + $0x5a4] ss:$8 sps:$4 sm:$0xff]  }
 0x1df   : > { %14039 = vmatprep.subr.bf16.mxu0 %v18055_v60  ;;  %v18133_v60 = vld [vmem:[%s21082_s1 + $0x23a4] ss:$8 sps:$4 sm:$0xff]  }
 0x1e1   : > { %12810 = vmatpush1.bf16.msra.mxu1 %v18050_v61  ;;  %v18128_v61 = vld [vmem:[%s21082_s1 + $0x5a0] ss:$8 sps:$4 sm:$0xff]  }
 0x1e2   : > { %14040 = vmatpush1.bf16.msra.mxu0 %v18053_v62  ;;  %12811 = vmatprep.subr.bf16.mxu1 %v18058_v63  ;;  %v18131_v62 = vld [vmem:[%s21082_s1 + $0x23a0] ss:$8 sps:$4 sm:$0xff]   ;;  %v18136_v63 = vld [vmem:[%s21082_s1 + $0x5b4] ss:$8 sps:$4 sm:$0xff]  }
 0x1e3   : > { %14041 = vmatprep.subr.bf16.mxu0 %v18061_v0  ;;  %v18139_v0 = vld [vmem:[%s21082_s1 + $0x23b4] ss:$8 sps:$4 sm:$0xff]  }
 0x1e5   : > { %12812 = vmatpush1.bf16.msra.mxu1 %v18056_v3  ;;  %v18142_v3 = vld [vmem:[%s21082_s1 + $0x5c4] ss:$8 sps:$4 sm:$0xff]  }
 0x1e6   : > { %14042 = vmatpush1.bf16.msra.mxu0 %v18059_v4  ;;  %12813 = vmatprep.subr.bf16.mxu1 %v18064_v5  ;;  %v18145_v4 = vld [vmem:[%s21082_s1 + $0x23c4] ss:$8 sps:$4 sm:$0xff]   ;;  %v18140_v5 = vld [vmem:[%s21082_s1 + $0x5c0] ss:$8 sps:$4 sm:$0xff]  }
 0x1e7   : > { %14043 = vmatprep.subr.bf16.mxu0 %v18067_v6  ;;  %v18143_v6 = vld [vmem:[%s21082_s1 + $0x23c0] ss:$8 sps:$4 sm:$0xff]  }
 0x1e9   : > { %12814 = vmatpush1.bf16.msra.mxu1 %v18062_v51  ;;  %v18148_v51 = vld [vmem:[%s21082_s1 + $0x5d4] ss:$8 sps:$4 sm:$0xff]  }
 0x1ea   : > { %14044 = vmatpush1.bf16.msra.mxu0 %v18065_v52  ;;  %12824 = vmatprep.subr.bf16.mxu1 %v18070_v7  ;;  %v18151_v52 = vld [vmem:[%s21082_s1 + $0x23d4] ss:$8 sps:$4 sm:$0xff]   ;;  %v18146_v7 = vld [vmem:[%s21082_s1 + $0x5d0] ss:$8 sps:$4 sm:$0xff]  }
 0x1eb   : > { %14054 = vmatprep.subr.bf16.mxu0 %v18073_v8  ;;  %v18149_v8 = vld [vmem:[%s21082_s1 + $0x23d0] ss:$8 sps:$4 sm:$0xff]  }
 0x1ec   : > { %12816 = vmatmul.mubr.bf16.vlgmr.msra.gmra.mrb[0].mxu1 %v986_v11  ;;  %v21587_v11 = vld [vmem:[%s21074_s27 + $0x18] sm:$0xff] }
 0x1ed   : > { %14046 = vmatmul.mubr.bf16.vlgmr.msra.gmra.mrb[0].mxu0 %v1046_v12  ;;  %12825 = vmatpush1.bf16.msra.mxu1 %v18068_v13  ;;  %v21590_v12 = vld [vmem:[%s21074_s27 + $0x90] sm:$0xff] }
 0x1ee   : > { %14055 = vmatpush1.bf16.msra.mxu0 %v18071_v14  ;;  %12826 = vmatprep.subr.bf16.mxu1 %v18076_v17  ;;  %v18152_v13 = vld [vmem:[%s21082_s1 + $0x5e0] ss:$8 sps:$4 sm:$0xff]   ;;  %v18160_v17 = vld [vmem:[%s21082_s1 + $0x5f4] ss:$8 sps:$4 sm:$0xff]  }
 0x1ef   : > { %14056 = vmatprep.subr.bf16.mxu0 %v18079_v18  ;;  %12856 = vmatprep.mubr.bf16.mxu1 %v989_v19  ;;  %v18155_v14 = vld [vmem:[%s21082_s1 + $0x23e0] ss:$8 sps:$4 sm:$0xff]   ;;  %v18163_v18 = vld [vmem:[%s21082_s1 + $0x23f4] ss:$8 sps:$4 sm:$0xff]   ;;  %v21598_v19 = vrot.slane %v21587_v11, %v21150_v50 }
 0x1f0   : > { %14086 = vmatprep.mubr.bf16.mxu0 %v1049_v20  ;;  %v21602_v20 = vrot.slane %v21590_v12, %v21150_v50 }
 0x1f1   : > { %12827 = vmatpush1.bf16.msra.mxu1 %v18074_v57  ;;  %v18158_v57 = vld [vmem:[%s21082_s1 + $0x5f0] ss:$8 sps:$4 sm:$0xff]  }
 0x1f2   : > { %14057 = vmatpush1.bf16.msra.mxu0 %v18077_v58  ;;  %12828 = vmatprep.subr.bf16.mxu1 %v18082_v21  ;;  %v18161_v58 = vld [vmem:[%s21082_s1 + $0x23f0] ss:$8 sps:$4 sm:$0xff]   ;;  %v18167_v21 = vld [vmem:[%s21082_s1 + $0x604] ss:$8 sps:$4 sm:$0xff]  }
 0x1f3   : > { %14058 = vmatprep.subr.bf16.mxu0 %v18085_v22  ;;  %v18171_v22 = vld [vmem:[%s21082_s1 + $0x2404] ss:$8 sps:$4 sm:$0xff]  }
 0x1f5   : > { %12829 = vmatpush1.bf16.msra.mxu1 %v18080_v23  ;;  %v414_v23 = vcombine.high %v21598_v19, %v21598_v19 }
 0x1f6   : > { %14059 = vmatpush1.bf16.msra.mxu0 %v18083_v24  ;;  %12830 = vmatprep.subr.bf16.mxu1 %v18088_v25  ;;  %v669_v24 = vcombine.high %v21602_v20, %v21602_v20  ;;  %v988_v25 = vpack.c.bf16 %v21513_v43, %v21513_v43  ;;  %v18172_v43 = vld [vmem:[%s21082_s1 + $0x610] ss:$8 sps:$4 sm:$0xff]  }
 0x1f7   : > { %14060 = vmatprep.subr.bf16.mxu0 %v18091_v26  ;;  %v1048_v26 = vpack.c.bf16 %v21516_v36, %v21516_v36  ;;  %v18175_v36 = vld [vmem:[%s21082_s1 + $0x2410] ss:$8 sps:$4 sm:$0xff]  }
 0x1f9   : > { %12831 = vmatpush1.bf16.msra.mxu1 %v18086_v27  ;;  %v18165_v27 = vld [vmem:[%s21082_s1 + $0x600] ss:$8 sps:$4 sm:$0xff]  }
 0x1fa   : > { %14061 = vmatpush1.bf16.msra.mxu0 %v18089_v28  ;;  %12832 = vmatprep.subr.bf16.mxu1 %v18094_v29  ;;  %v18169_v28 = vld [vmem:[%s21082_s1 + $0x2400] ss:$8 sps:$4 sm:$0xff]   ;;  %v18174_v29 = vld [vmem:[%s21082_s1 + $0x614] ss:$8 sps:$4 sm:$0xff]  }
 0x1fb   : > { %14062 = vmatprep.subr.bf16.mxu0 %v18097_v30  ;;  %v18177_v30 = vld [vmem:[%s21082_s1 + $0x2414] ss:$8 sps:$4 sm:$0xff]  }
 0x1fd   : > { %12833 = vmatpush1.bf16.msra.mxu1 %v18092_v31  ;;  %v991_v31 = vpack.c.bf16 %v414_v23, %v414_v23  ;;  %v18244_v23 = vld [vmem:[%s21082_s1 + $0x6d0] ss:$8 sps:$4 sm:$0xff]  }
 0x1fe   : > { %14063 = vmatpush1.bf16.msra.mxu0 %v18095_v32  ;;  %12834 = vmatprep.subr.bf16.mxu1 %v18100_v33  ;;  %v1051_v32 = vpack.c.bf16 %v669_v24, %v669_v24  ;;  %v18180_v33 = vld [vmem:[%s21082_s1 + $0x624] ss:$8 sps:$4 sm:$0xff]   ;;  %v18247_v24 = vld [vmem:[%s21082_s1 + $0x24d0] ss:$8 sps:$4 sm:$0xff]  }
 0x1ff   : > { %14064 = vmatprep.subr.bf16.mxu0 %v18103_v34  ;;  %v18183_v34 = vld [vmem:[%s21082_s1 + $0x2424] ss:$8 sps:$4 sm:$0xff]  }
 0x201   : > { %12835 = vmatpush1.bf16.msra.mxu1 %v18098_v35  ;;  %v18178_v35 = vld [vmem:[%s21082_s1 + $0x620] ss:$8 sps:$4 sm:$0xff]  }
 0x202   : > { %14065 = vmatpush1.bf16.msra.mxu0 %v18101_v37  ;;  %12836 = vmatprep.subr.bf16.mxu1 %v18106_v16  ;;  %v18181_v37 = vld [vmem:[%s21082_s1 + $0x2420] ss:$8 sps:$4 sm:$0xff]   ;;  %v18186_v16 = vld [vmem:[%s21082_s1 + $0x634] ss:$8 sps:$4 sm:$0xff]  }
 0x203   : > { %14066 = vmatprep.subr.bf16.mxu0 %v18109_v39  ;;  %v18189_v39 = vld [vmem:[%s21082_s1 + $0x2434] ss:$8 sps:$4 sm:$0xff]  }
 0x205   : > { %12837 = vmatpush1.bf16.msra.mxu1 %v18104_v40  ;;  %v18184_v40 = vld [vmem:[%s21082_s1 + $0x630] ss:$8 sps:$4 sm:$0xff]  }
 0x206   : > { %14067 = vmatpush1.bf16.msra.mxu0 %v18107_v42  ;;  %12838 = vmatprep.subr.bf16.mxu1 %v18112_v45  ;;  %v18187_v42 = vld [vmem:[%s21082_s1 + $0x2430] ss:$8 sps:$4 sm:$0xff]   ;;  %v18192_v45 = vld [vmem:[%s21082_s1 + $0x644] ss:$8 sps:$4 sm:$0xff]  }
 0x207   : > { %14068 = vmatprep.subr.bf16.mxu0 %v18115_v15  ;;  %v18195_v15 = vld [vmem:[%s21082_s1 + $0x2444] ss:$8 sps:$4 sm:$0xff]  }
 0x209   : > { %12839 = vmatpush1.bf16.msra.mxu1 %v18110_v46  ;;  %v18190_v46 = vld [vmem:[%s21082_s1 + $0x640] ss:$8 sps:$4 sm:$0xff]  }
 0x20a   : > { %14069 = vmatpush1.bf16.msra.mxu0 %v18113_v47  ;;  %12840 = vmatprep.subr.bf16.mxu1 %v18118_v48  ;;  %v18193_v47 = vld [vmem:[%s21082_s1 + $0x2440] ss:$8 sps:$4 sm:$0xff]   ;;  %v18198_v48 = vld [vmem:[%s21082_s1 + $0x654] ss:$8 sps:$4 sm:$0xff]  }
 0x20b   : > { %14070 = vmatprep.subr.bf16.mxu0 %v18121_v49  ;;  %v18201_v49 = vld [vmem:[%s21082_s1 + $0x2454] ss:$8 sps:$4 sm:$0xff]  }
 0x20d   : > { %12841 = vmatpush1.bf16.msra.mxu1 %v18116_v53  ;;  %v18196_v53 = vld [vmem:[%s21082_s1 + $0x650] ss:$8 sps:$4 sm:$0xff]  }
 0x20e   : > { %14071 = vmatpush1.bf16.msra.mxu0 %v18119_v54  ;;  %12842 = vmatprep.subr.bf16.mxu1 %v18124_v55  ;;  %v18199_v54 = vld [vmem:[%s21082_s1 + $0x2450] ss:$8 sps:$4 sm:$0xff]   ;;  %v18204_v55 = vld [vmem:[%s21082_s1 + $0x664] ss:$8 sps:$4 sm:$0xff]  }
 0x20f   : > { %14072 = vmatprep.subr.bf16.mxu0 %v18127_v56  ;;  %v18207_v56 = vld [vmem:[%s21082_s1 + $0x2464] ss:$8 sps:$4 sm:$0xff]  }
 0x211   : > { %12843 = vmatpush1.bf16.msra.mxu1 %v18122_v59  ;;  %v18202_v59 = vld [vmem:[%s21082_s1 + $0x660] ss:$8 sps:$4 sm:$0xff]  }
 0x212   : > { %14073 = vmatpush1.bf16.msra.mxu0 %v18125_v38  ;;  %12844 = vmatprep.subr.bf16.mxu1 %v18130_v41  ;;  %v18205_v38 = vld [vmem:[%s21082_s1 + $0x2460] ss:$8 sps:$4 sm:$0xff]   ;;  %v18210_v41 = vld [vmem:[%s21082_s1 + $0x674] ss:$8 sps:$4 sm:$0xff]  }
 0x213   : > { %14074 = vmatprep.subr.bf16.mxu0 %v18133_v60  ;;  %v18213_v60 = vld [vmem:[%s21082_s1 + $0x2474] ss:$8 sps:$4 sm:$0xff]  }
 0x215   : > { %12845 = vmatpush1.bf16.msra.mxu1 %v18128_v61  ;;  %v18208_v61 = vld [vmem:[%s21082_s1 + $0x670] ss:$8 sps:$4 sm:$0xff]  }
 0x216   : > { %14075 = vmatpush1.bf16.msra.mxu0 %v18131_v62  ;;  %12846 = vmatprep.subr.bf16.mxu1 %v18136_v63  ;;  %v18211_v62 = vld [vmem:[%s21082_s1 + $0x2470] ss:$8 sps:$4 sm:$0xff]   ;;  %v18216_v63 = vld [vmem:[%s21082_s1 + $0x684] ss:$8 sps:$4 sm:$0xff]  }
 0x217   : > { %14076 = vmatprep.subr.bf16.mxu0 %v18139_v0  ;;  %v18219_v0 = vld [vmem:[%s21082_s1 + $0x2484] ss:$8 sps:$4 sm:$0xff]  }
 0x219   : > { %12847 = vmatpush1.bf16.msra.mxu1 %v18134_v1  ;;  %v18214_v1 = vld [vmem:[%s21082_s1 + $0x680] ss:$8 sps:$4 sm:$0xff]  }
 0x21a   : > { %14077 = vmatpush1.bf16.msra.mxu0 %v18137_v2  ;;  %12848 = vmatprep.subr.bf16.mxu1 %v18142_v3  ;;  %v18217_v2 = vld [vmem:[%s21082_s1 + $0x2480] ss:$8 sps:$4 sm:$0xff]   ;;  %v18222_v3 = vld [vmem:[%s21082_s1 + $0x694] ss:$8 sps:$4 sm:$0xff]  }
 0x21b   : > { %14078 = vmatprep.subr.bf16.mxu0 %v18145_v4  ;;  %v18225_v4 = vld [vmem:[%s21082_s1 + $0x2494] ss:$8 sps:$4 sm:$0xff]  }
 0x21d   : > { %12849 = vmatpush1.bf16.msra.mxu1 %v18140_v5  ;;  %v18220_v5 = vld [vmem:[%s21082_s1 + $0x690] ss:$8 sps:$4 sm:$0xff]  }
 0x21e   : > { %14079 = vmatpush1.bf16.msra.mxu0 %v18143_v6  ;;  %12850 = vmatprep.subr.bf16.mxu1 %v18148_v51  ;;  %v18223_v6 = vld [vmem:[%s21082_s1 + $0x2490] ss:$8 sps:$4 sm:$0xff]   ;;  %v18228_v51 = vld [vmem:[%s21082_s1 + $0x6a4] ss:$8 sps:$4 sm:$0xff]  }
 0x21f   : > { %14080 = vmatprep.subr.bf16.mxu0 %v18151_v52  ;;  %v18231_v52 = vld [vmem:[%s21082_s1 + $0x24a4] ss:$8 sps:$4 sm:$0xff]  }
 0x221   : > { %12851 = vmatpush1.bf16.msra.mxu1 %v18146_v7  ;;  %v18226_v7 = vld [vmem:[%s21082_s1 + $0x6a0] ss:$8 sps:$4 sm:$0xff]  }
 0x222   : > { %14081 = vmatpush1.bf16.msra.mxu0 %v18149_v8  ;;  %12852 = vmatprep.subr.bf16.mxu1 %v18154_v9  ;;  %v18229_v8 = vld [vmem:[%s21082_s1 + $0x24a0] ss:$8 sps:$4 sm:$0xff]   ;;  %v18234_v9 = vld [vmem:[%s21082_s1 + $0x6b4] ss:$8 sps:$4 sm:$0xff]  }
 0x223   : > { %14082 = vmatprep.subr.bf16.mxu0 %v18157_v10  ;;  %v18237_v10 = vld [vmem:[%s21082_s1 + $0x24b4] ss:$8 sps:$4 sm:$0xff]  }
 0x225   : > { %12853 = vmatpush1.bf16.msra.mxu1 %v18152_v13  ;;  %v18232_v13 = vld [vmem:[%s21082_s1 + $0x6b0] ss:$8 sps:$4 sm:$0xff]  }
 0x226   : > { %14083 = vmatpush1.bf16.msra.mxu0 %v18155_v14  ;;  %12854 = vmatprep.subr.bf16.mxu1 %v18160_v17  ;;  %v18235_v14 = vld [vmem:[%s21082_s1 + $0x24b0] ss:$8 sps:$4 sm:$0xff]   ;;  %v18240_v17 = vld [vmem:[%s21082_s1 + $0x6c4] ss:$8 sps:$4 sm:$0xff]  }
 0x227   : > { %14084 = vmatprep.subr.bf16.mxu0 %v18163_v18  ;;  %v18243_v18 = vld [vmem:[%s21082_s1 + $0x24c4] ss:$8 sps:$4 sm:$0xff]  }
 0x229   : > { %12855 = vmatpush1.bf16.msra.mxu1 %v18158_v57  ;;  %v18238_v57 = vld [vmem:[%s21082_s1 + $0x6c0] ss:$8 sps:$4 sm:$0xff]  }
 0x22a   : > { %14085 = vmatpush1.bf16.msra.mxu0 %v18161_v58  ;;  %12865 = vmatprep.subr.bf16.mxu1 %v18167_v21  ;;  %v18241_v58 = vld [vmem:[%s21082_s1 + $0x24c0] ss:$8 sps:$4 sm:$0xff]   ;;  %v18246_v21 = vld [vmem:[%s21082_s1 + $0x6d4] ss:$8 sps:$4 sm:$0xff]  }
 0x22b   : > { %14095 = vmatprep.subr.bf16.mxu0 %v18171_v22  ;;  %v18249_v22 = vld [vmem:[%s21082_s1 + $0x24d4] ss:$8 sps:$4 sm:$0xff]  }
 0x22c   : > { %12857 = vmatmul.mubr.bf16.vlgmr.msra.gmra.mrb[0].mxu1 %v988_v25  ;;  %v18252_v25 = vld [vmem:[%s21082_s1 + $0x6e4] ss:$8 sps:$4 sm:$0xff]  }
 0x22d   : > { %14087 = vmatmul.mubr.bf16.vlgmr.msra.gmra.mrb[0].mxu0 %v1048_v26  ;;  %12866 = vmatpush1.bf16.msra.mxu1 %v18165_v27  ;;  %v18255_v26 = vld [vmem:[%s21082_s1 + $0x24e4] ss:$8 sps:$4 sm:$0xff]   ;;  %v399_v27 = vcombine.high %v21587_v11, %v21587_v11  ;;  %v18256_v11 = vld [vmem:[%s21082_s1 + $0x6f0] ss:$8 sps:$4 sm:$0xff]  }
 0x22e   : > { %14096 = vmatpush1.bf16.msra.mxu0 %v18169_v28  ;;  %12867 = vmatprep.subr.bf16.mxu1 %v18174_v29  ;;  %v654_v28 = vcombine.high %v21590_v12, %v21590_v12  ;;  %v18250_v29 = vld [vmem:[%s21082_s1 + $0x6e0] ss:$8 sps:$4 sm:$0xff]   ;;  %v18259_v12 = vld [vmem:[%s21082_s1 + $0x24f0] ss:$8 sps:$4 sm:$0xff]  }
 0x22f   : > { %14097 = vmatprep.subr.bf16.mxu0 %v18177_v30  ;;  %12897 = vmatprep.mubr.bf16.mxu1 %v991_v31  ;;  %v18253_v30 = vld [vmem:[%s21082_s1 + $0x24e0] ss:$8 sps:$4 sm:$0xff]   ;;  %v18258_v31 = vld [vmem:[%s21082_s1 + $0x6f4] ss:$8 sps:$4 sm:$0xff]  }
 0x230   : > { %14127 = vmatprep.mubr.bf16.mxu0 %v1051_v32  ;;  %v18261_v32 = vld [vmem:[%s21082_s1 + $0x24f4] ss:$8 sps:$4 sm:$0xff]  }
 0x231   : > { %12868 = vmatpush1.bf16.msra.mxu1 %v18172_v43  ;;  %v21681_v43 = vrot.slane %v399_v27, %v21150_v50  ;;  %v18328_v27 = vld [vmem:[%s21082_s1 + $0x7b0] ss:$8 sps:$4 sm:$0xff]  }
 0x232   : > { %14098 = vmatpush1.bf16.msra.mxu0 %v18175_v36  ;;  %12869 = vmatprep.subr.bf16.mxu1 %v18180_v33  ;;  %v21684_v36 = vrot.slane %v654_v28, %v21150_v50  ;;  %v18264_v33 = vld [vmem:[%s21082_s1 + $0x704] ss:$8 sps:$4 sm:$0xff]   ;;  %v18331_v28 = vld [vmem:[%s21082_s1 + $0x25b0] ss:$8 sps:$4 sm:$0xff]  }
 0x233   : > { %14099 = vmatprep.subr.bf16.mxu0 %v18183_v34  ;;  %v18267_v34 = vld [vmem:[%s21082_s1 + $0x2504] ss:$8 sps:$4 sm:$0xff]  }
 0x235   : > { %12870 = vmatpush1.bf16.msra.mxu1 %v18178_v35  ;;  %v415_v35 = vcombine.high %v21681_v43, %v21681_v43 }
 0x236   : > { %14100 = vmatpush1.bf16.msra.mxu0 %v18181_v37  ;;  %12871 = vmatprep.subr.bf16.mxu1 %v18186_v16  ;;  %v670_v37 = vcombine.high %v21684_v36, %v21684_v36  ;;  %v990_v16 = vpack.c.bf16 %v21598_v19, %v21598_v19  ;;  %v18268_v19 = vld [vmem:[%s21082_s1 + $0x710] ss:$8 sps:$4 sm:$0xff]  }
 0x237   : > { %14101 = vmatprep.subr.bf16.mxu0 %v18189_v39  ;;  %v1050_v39 = vpack.c.bf16 %v21602_v20, %v21602_v20  ;;  %v18271_v20 = vld [vmem:[%s21082_s1 + $0x2510] ss:$8 sps:$4 sm:$0xff]  }
 0x239   : > { %12872 = vmatpush1.bf16.msra.mxu1 %v18184_v40  ;;  %v18262_v40 = vld [vmem:[%s21082_s1 + $0x700] ss:$8 sps:$4 sm:$0xff]  }
 0x23a   : > { %14102 = vmatpush1.bf16.msra.mxu0 %v18187_v42  ;;  %12873 = vmatprep.subr.bf16.mxu1 %v18192_v45  ;;  %v18265_v42 = vld [vmem:[%s21082_s1 + $0x2500] ss:$8 sps:$4 sm:$0xff]   ;;  %v18270_v45 = vld [vmem:[%s21082_s1 + $0x714] ss:$8 sps:$4 sm:$0xff]  }
 0x23b   : > { %14103 = vmatprep.subr.bf16.mxu0 %v18195_v15  ;;  %v18273_v15 = vld [vmem:[%s21082_s1 + $0x2514] ss:$8 sps:$4 sm:$0xff]  }
 0x23d   : > { %12874 = vmatpush1.bf16.msra.mxu1 %v18190_v46  ;;  %v993_v46 = vpack.c.bf16 %v415_v35, %v415_v35  ;;  %v18348_v35 = vld [vmem:[%s21082_s1 + $0x7e4] ss:$8 sps:$4 sm:$0xff]  }
 0x23e   : > { %14104 = vmatpush1.bf16.msra.mxu0 %v18193_v47  ;;  %12875 = vmatprep.subr.bf16.mxu1 %v18198_v48  ;;  %v1053_v47 = vpack.c.bf16 %v670_v37, %v670_v37  ;;  %v18276_v48 = vld [vmem:[%s21082_s1 + $0x724] ss:$8 sps:$4 sm:$0xff]  }
 0x23f   : > { %14105 = vmatprep.subr.bf16.mxu0 %v18201_v49  ;;  %v18279_v49 = vld [vmem:[%s21082_s1 + $0x2524] ss:$8 sps:$4 sm:$0xff]  }
 0x240   : > { %v18351_v37 = vld [vmem:[%s21082_s1 + $0x25e4] ss:$8 sps:$4 sm:$0xff]  }
 0x241   : > { %12876 = vmatpush1.bf16.msra.mxu1 %v18196_v53  ;;  %v18274_v53 = vld [vmem:[%s21082_s1 + $0x720] ss:$8 sps:$4 sm:$0xff]  }
 0x242   : > { %14106 = vmatpush1.bf16.msra.mxu0 %v18199_v54  ;;  %12877 = vmatprep.subr.bf16.mxu1 %v18204_v55  ;;  %v18277_v54 = vld [vmem:[%s21082_s1 + $0x2520] ss:$8 sps:$4 sm:$0xff]   ;;  %v18282_v55 = vld [vmem:[%s21082_s1 + $0x734] ss:$8 sps:$4 sm:$0xff]  }
 0x243   : > { %14107 = vmatprep.subr.bf16.mxu0 %v18207_v56  ;;  %v18285_v56 = vld [vmem:[%s21082_s1 + $0x2534] ss:$8 sps:$4 sm:$0xff]  }
 0x245   : > { %12878 = vmatpush1.bf16.msra.mxu1 %v18202_v59  ;;  %v18280_v59 = vld [vmem:[%s21082_s1 + $0x730] ss:$8 sps:$4 sm:$0xff]  }
 0x246   : > { %14108 = vmatpush1.bf16.msra.mxu0 %v18205_v38  ;;  %12879 = vmatprep.subr.bf16.mxu1 %v18210_v41  ;;  %v18283_v38 = vld [vmem:[%s21082_s1 + $0x2530] ss:$8 sps:$4 sm:$0xff]   ;;  %v18288_v41 = vld [vmem:[%s21082_s1 + $0x744] ss:$8 sps:$4 sm:$0xff]  }
 0x247   : > { %14109 = vmatprep.subr.bf16.mxu0 %v18213_v60  ;;  %v18291_v60 = vld [vmem:[%s21082_s1 + $0x2544] ss:$8 sps:$4 sm:$0xff]  }
 0x249   : > { %12880 = vmatpush1.bf16.msra.mxu1 %v18208_v61  ;;  %v18286_v61 = vld [vmem:[%s21082_s1 + $0x740] ss:$8 sps:$4 sm:$0xff]  }
 0x24a   : > { %14110 = vmatpush1.bf16.msra.mxu0 %v18211_v62  ;;  %12881 = vmatprep.subr.bf16.mxu1 %v18216_v63  ;;  %v18289_v62 = vld [vmem:[%s21082_s1 + $0x2540] ss:$8 sps:$4 sm:$0xff]   ;;  %v18294_v63 = vld [vmem:[%s21082_s1 + $0x754] ss:$8 sps:$4 sm:$0xff]  }
 0x24b   : > { %14111 = vmatprep.subr.bf16.mxu0 %v18219_v0  ;;  %v18297_v0 = vld [vmem:[%s21082_s1 + $0x2554] ss:$8 sps:$4 sm:$0xff]  }
 0x24d   : > { %12882 = vmatpush1.bf16.msra.mxu1 %v18214_v1  ;;  %v18292_v1 = vld [vmem:[%s21082_s1 + $0x750] ss:$8 sps:$4 sm:$0xff]  }
 0x24e   : > { %14112 = vmatpush1.bf16.msra.mxu0 %v18217_v2  ;;  %12883 = vmatprep.subr.bf16.mxu1 %v18222_v3  ;;  %v18295_v2 = vld [vmem:[%s21082_s1 + $0x2550] ss:$8 sps:$4 sm:$0xff]   ;;  %v18300_v3 = vld [vmem:[%s21082_s1 + $0x764] ss:$8 sps:$4 sm:$0xff]  }
 0x24f   : > { %14113 = vmatprep.subr.bf16.mxu0 %v18225_v4  ;;  %v18303_v4 = vld [vmem:[%s21082_s1 + $0x2564] ss:$8 sps:$4 sm:$0xff]  }
 0x251   : > { %12884 = vmatpush1.bf16.msra.mxu1 %v18220_v5  ;;  %v18298_v5 = vld [vmem:[%s21082_s1 + $0x760] ss:$8 sps:$4 sm:$0xff]  }
 0x252   : > { %14114 = vmatpush1.bf16.msra.mxu0 %v18223_v6  ;;  %12885 = vmatprep.subr.bf16.mxu1 %v18228_v51  ;;  %v18301_v6 = vld [vmem:[%s21082_s1 + $0x2560] ss:$8 sps:$4 sm:$0xff]   ;;  %v18306_v51 = vld [vmem:[%s21082_s1 + $0x774] ss:$8 sps:$4 sm:$0xff]  }
 0x253   : > { %14115 = vmatprep.subr.bf16.mxu0 %v18231_v52  ;;  %v18309_v52 = vld [vmem:[%s21082_s1 + $0x2574] ss:$8 sps:$4 sm:$0xff]  }
 0x255   : > { %12886 = vmatpush1.bf16.msra.mxu1 %v18226_v7  ;;  %v18304_v7 = vld [vmem:[%s21082_s1 + $0x770] ss:$8 sps:$4 sm:$0xff]  }
 0x256   : > { %14116 = vmatpush1.bf16.msra.mxu0 %v18229_v8  ;;  %12887 = vmatprep.subr.bf16.mxu1 %v18234_v9  ;;  %v18307_v8 = vld [vmem:[%s21082_s1 + $0x2570] ss:$8 sps:$4 sm:$0xff]   ;;  %v18312_v9 = vld [vmem:[%s21082_s1 + $0x784] ss:$8 sps:$4 sm:$0xff]  }
 0x257   : > { %14117 = vmatprep.subr.bf16.mxu0 %v18237_v10  ;;  %v18315_v10 = vld [vmem:[%s21082_s1 + $0x2584] ss:$8 sps:$4 sm:$0xff]  }
 0x259   : > { %12888 = vmatpush1.bf16.msra.mxu1 %v18232_v13  ;;  %v18310_v13 = vld [vmem:[%s21082_s1 + $0x780] ss:$8 sps:$4 sm:$0xff]  }
 0x25a   : > { %14118 = vmatpush1.bf16.msra.mxu0 %v18235_v14  ;;  %12889 = vmatprep.subr.bf16.mxu1 %v18240_v17  ;;  %v18313_v14 = vld [vmem:[%s21082_s1 + $0x2580] ss:$8 sps:$4 sm:$0xff]   ;;  %v18318_v17 = vld [vmem:[%s21082_s1 + $0x794] ss:$8 sps:$4 sm:$0xff]  }
 0x25b   : > { %14119 = vmatprep.subr.bf16.mxu0 %v18243_v18  ;;  %v18321_v18 = vld [vmem:[%s21082_s1 + $0x2594] ss:$8 sps:$4 sm:$0xff]  }
 0x25d   : > { %12890 = vmatpush1.bf16.msra.mxu1 %v18238_v57  ;;  %v18316_v57 = vld [vmem:[%s21082_s1 + $0x790] ss:$8 sps:$4 sm:$0xff]  }
 0x25e   : > { %14120 = vmatpush1.bf16.msra.mxu0 %v18241_v58  ;;  %12891 = vmatprep.subr.bf16.mxu1 %v18246_v21  ;;  %v18319_v58 = vld [vmem:[%s21082_s1 + $0x2590] ss:$8 sps:$4 sm:$0xff]   ;;  %v18324_v21 = vld [vmem:[%s21082_s1 + $0x7a4] ss:$8 sps:$4 sm:$0xff]  }
 0x25f   : > { %14121 = vmatprep.subr.bf16.mxu0 %v18249_v22  ;;  %v18327_v22 = vld [vmem:[%s21082_s1 + $0x25a4] ss:$8 sps:$4 sm:$0xff]  }
 0x261   : > { %12892 = vmatpush1.bf16.msra.mxu1 %v18244_v23  ;;  %v18322_v23 = vld [vmem:[%s21082_s1 + $0x7a0] ss:$8 sps:$4 sm:$0xff]  }
 0x262   : > { %14122 = vmatpush1.bf16.msra.mxu0 %v18247_v24  ;;  %12893 = vmatprep.subr.bf16.mxu1 %v18252_v25  ;;  %v18325_v24 = vld [vmem:[%s21082_s1 + $0x25a0] ss:$8 sps:$4 sm:$0xff]   ;;  %v18330_v25 = vld [vmem:[%s21082_s1 + $0x7b4] ss:$8 sps:$4 sm:$0xff]  }
 0x263   : > { %14123 = vmatprep.subr.bf16.mxu0 %v18255_v26  ;;  %v18333_v26 = vld [vmem:[%s21082_s1 + $0x25b4] ss:$8 sps:$4 sm:$0xff]  }
 0x265   : > { %12894 = vmatpush1.bf16.msra.mxu1 %v18250_v29  ;;  %v18336_v29 = vld [vmem:[%s21082_s1 + $0x7c4] ss:$8 sps:$4 sm:$0xff]  }
 0x266   : > { %14124 = vmatpush1.bf16.msra.mxu0 %v18253_v30  ;;  %12895 = vmatprep.subr.bf16.mxu1 %v18258_v31  ;;  %v18339_v30 = vld [vmem:[%s21082_s1 + $0x25c4] ss:$8 sps:$4 sm:$0xff]   ;;  %v18334_v31 = vld [vmem:[%s21082_s1 + $0x7c0] ss:$8 sps:$4 sm:$0xff]  }
 0x267   : > { %14125 = vmatprep.subr.bf16.mxu0 %v18261_v32  ;;  %v18337_v32 = vld [vmem:[%s21082_s1 + $0x25c0] ss:$8 sps:$4 sm:$0xff]  }
 0x269   : > { %12896 = vmatpush1.bf16.msra.mxu1 %v18256_v11  ;;  %v18342_v11 = vld [vmem:[%s21082_s1 + $0x7d4] ss:$8 sps:$4 sm:$0xff]  }
 0x26a   : > { %14126 = vmatpush1.bf16.msra.mxu0 %v18259_v12  ;;  %12906 = vmatprep.subr.bf16.mxu1 %v18264_v33  ;;  %v18345_v12 = vld [vmem:[%s21082_s1 + $0x25d4] ss:$8 sps:$4 sm:$0xff]   ;;  %v18340_v33 = vld [vmem:[%s21082_s1 + $0x7d0] ss:$8 sps:$4 sm:$0xff]  }
 0x26b   : > { %14136 = vmatprep.subr.bf16.mxu0 %v18267_v34  ;;  %v18343_v34 = vld [vmem:[%s21082_s1 + $0x25d0] ss:$8 sps:$4 sm:$0xff]  }
 0x26c   : > { %12898 = vmatmul.mubr.bf16.vlgmr.msra.gmra.mrb[0].mxu1 %v990_v16  ;;  %v21755_v16 = vld [vmem:[%s21074_s27 + $0x20] sm:$0xff] }
 0x26d   : > { %14128 = vmatmul.mubr.bf16.vlgmr.msra.gmra.mrb[0].mxu0 %v1050_v39  ;;  %12907 = vmatpush1.bf16.msra.mxu1 %v18262_v40  ;;  %v21758_v39 = vld [vmem:[%s21074_s27 + $0x98] sm:$0xff] }
 0x26e   : > { %14137 = vmatpush1.bf16.msra.mxu0 %v18265_v42  ;;  %12908 = vmatprep.subr.bf16.mxu1 %v18270_v45  ;;  %v18346_v40 = vld [vmem:[%s21082_s1 + $0x7e0] ss:$8 sps:$4 sm:$0xff]   ;;  %v18354_v45 = vld [vmem:[%s21082_s1 + $0x7f4] ss:$8 sps:$4 sm:$0xff]  }
 0x26f   : > { %14138 = vmatprep.subr.bf16.mxu0 %v18273_v15  ;;  %12938 = vmatprep.mubr.bf16.mxu1 %v993_v46  ;;  %v18349_v42 = vld [vmem:[%s21082_s1 + $0x25e0] ss:$8 sps:$4 sm:$0xff]   ;;  %v18357_v15 = vld [vmem:[%s21082_s1 + $0x25f4] ss:$8 sps:$4 sm:$0xff]   ;;  %v21766_v46 = vrot.slane %v21755_v16, %v21150_v50 }
 0x270   : > { %14168 = vmatprep.mubr.bf16.mxu0 %v1053_v47  ;;  %v21770_v47 = vrot.slane %v21758_v39, %v21150_v50 }
 0x271   : > { %12909 = vmatpush1.bf16.msra.mxu1 %v18268_v19  ;;  %v18352_v19 = vld [vmem:[%s21082_s1 + $0x7f0] ss:$8 sps:$4 sm:$0xff]  }
 0x272   : > { %14139 = vmatpush1.bf16.msra.mxu0 %v18271_v20  ;;  %12910 = vmatprep.subr.bf16.mxu1 %v18276_v48  ;;  %v18355_v20 = vld [vmem:[%s21082_s1 + $0x25f0] ss:$8 sps:$4 sm:$0xff]   ;;  %v18361_v48 = vld [vmem:[%s21082_s1 + $0x804] ss:$8 sps:$4 sm:$0xff]  }
 0x273   : > { %14140 = vmatprep.subr.bf16.mxu0 %v18279_v49  ;;  %v18365_v49 = vld [vmem:[%s21082_s1 + $0x2604] ss:$8 sps:$4 sm:$0xff]  }
 0x275   : > { %12911 = vmatpush1.bf16.msra.mxu1 %v18274_v53  ;;  %v431_v53 = vcombine.high %v21766_v46, %v21766_v46 }
 0x276   : > { %14141 = vmatpush1.bf16.msra.mxu0 %v18277_v54  ;;  %12912 = vmatprep.subr.bf16.mxu1 %v18282_v55  ;;  %v686_v54 = vcombine.high %v21770_v47, %v21770_v47  ;;  %v992_v55 = vpack.c.bf16 %v21681_v43, %v21681_v43  ;;  %v18366_v43 = vld [vmem:[%s21082_s1 + $0x810] ss:$8 sps:$4 sm:$0xff]  }
 0x277   : > { %14142 = vmatprep.subr.bf16.mxu0 %v18285_v56  ;;  %v1052_v56 = vpack.c.bf16 %v21684_v36, %v21684_v36  ;;  %v18369_v36 = vld [vmem:[%s21082_s1 + $0x2610] ss:$8 sps:$4 sm:$0xff]  }
 0x279   : > { %12913 = vmatpush1.bf16.msra.mxu1 %v18280_v59  ;;  %v18359_v59 = vld [vmem:[%s21082_s1 + $0x800] ss:$8 sps:$4 sm:$0xff]  }
 0x27a   : > { %14143 = vmatpush1.bf16.msra.mxu0 %v18283_v38  ;;  %12914 = vmatprep.subr.bf16.mxu1 %v18288_v41  ;;  %v18363_v38 = vld [vmem:[%s21082_s1 + $0x2600] ss:$8 sps:$4 sm:$0xff]   ;;  %v18368_v41 = vld [vmem:[%s21082_s1 + $0x814] ss:$8 sps:$4 sm:$0xff]  }
 0x27b   : > { %14144 = vmatprep.subr.bf16.mxu0 %v18291_v60  ;;  %v18371_v60 = vld [vmem:[%s21082_s1 + $0x2614] ss:$8 sps:$4 sm:$0xff]  }
 0x27d   : > { %12915 = vmatpush1.bf16.msra.mxu1 %v18286_v61  ;;  %v995_v61 = vpack.c.bf16 %v431_v53, %v431_v53  ;;  %v18438_v53 = vld [vmem:[%s21082_s1 + $0x8d0] ss:$8 sps:$4 sm:$0xff]  }
 0x27e   : > { %14145 = vmatpush1.bf16.msra.mxu0 %v18289_v62  ;;  %12916 = vmatprep.subr.bf16.mxu1 %v18294_v63  ;;  %v1055_v62 = vpack.c.bf16 %v686_v54, %v686_v54  ;;  %v18374_v63 = vld [vmem:[%s21082_s1 + $0x824] ss:$8 sps:$4 sm:$0xff]   ;;  %v18441_v54 = vld [vmem:[%s21082_s1 + $0x26d0] ss:$8 sps:$4 sm:$0xff]  }
 0x27f   : > { %14146 = vmatprep.subr.bf16.mxu0 %v18297_v0  ;;  %v18377_v0 = vld [vmem:[%s21082_s1 + $0x2624] ss:$8 sps:$4 sm:$0xff]  }
 0x281   : > { %12917 = vmatpush1.bf16.msra.mxu1 %v18292_v1  ;;  %v18372_v1 = vld [vmem:[%s21082_s1 + $0x820] ss:$8 sps:$4 sm:$0xff]  }
 0x282   : > { %14147 = vmatpush1.bf16.msra.mxu0 %v18295_v2  ;;  %12918 = vmatprep.subr.bf16.mxu1 %v18300_v3  ;;  %v18375_v2 = vld [vmem:[%s21082_s1 + $0x2620] ss:$8 sps:$4 sm:$0xff]   ;;  %v18380_v3 = vld [vmem:[%s21082_s1 + $0x834] ss:$8 sps:$4 sm:$0xff]  }
 0x283   : > { %14148 = vmatprep.subr.bf16.mxu0 %v18303_v4  ;;  %v18383_v4 = vld [vmem:[%s21082_s1 + $0x2634] ss:$8 sps:$4 sm:$0xff]  }
 0x285   : > { %12919 = vmatpush1.bf16.msra.mxu1 %v18298_v5  ;;  %v18378_v5 = vld [vmem:[%s21082_s1 + $0x830] ss:$8 sps:$4 sm:$0xff]  }
 0x286   : > { %14149 = vmatpush1.bf16.msra.mxu0 %v18301_v6  ;;  %12920 = vmatprep.subr.bf16.mxu1 %v18306_v51  ;;  %v18381_v6 = vld [vmem:[%s21082_s1 + $0x2630] ss:$8 sps:$4 sm:$0xff]   ;;  %v18386_v51 = vld [vmem:[%s21082_s1 + $0x844] ss:$8 sps:$4 sm:$0xff]  }
 0x287   : > { %14150 = vmatprep.subr.bf16.mxu0 %v18309_v52  ;;  %v18389_v52 = vld [vmem:[%s21082_s1 + $0x2644] ss:$8 sps:$4 sm:$0xff]  }
 0x289   : > { %12921 = vmatpush1.bf16.msra.mxu1 %v18304_v7  ;;  %v18384_v7 = vld [vmem:[%s21082_s1 + $0x840] ss:$8 sps:$4 sm:$0xff]  }
 0x28a   : > { %14151 = vmatpush1.bf16.msra.mxu0 %v18307_v8  ;;  %12922 = vmatprep.subr.bf16.mxu1 %v18312_v9  ;;  %v18387_v8 = vld [vmem:[%s21082_s1 + $0x2640] ss:$8 sps:$4 sm:$0xff]   ;;  %v18392_v9 = vld [vmem:[%s21082_s1 + $0x854] ss:$8 sps:$4 sm:$0xff]  }
 0x28b   : > { %14152 = vmatprep.subr.bf16.mxu0 %v18315_v10  ;;  %v18395_v10 = vld [vmem:[%s21082_s1 + $0x2654] ss:$8 sps:$4 sm:$0xff]  }
 0x28d   : > { %12923 = vmatpush1.bf16.msra.mxu1 %v18310_v13  ;;  %v18390_v13 = vld [vmem:[%s21082_s1 + $0x850] ss:$8 sps:$4 sm:$0xff]  }
 0x28e   : > { %14153 = vmatpush1.bf16.msra.mxu0 %v18313_v14  ;;  %12924 = vmatprep.subr.bf16.mxu1 %v18318_v17  ;;  %v18393_v14 = vld [vmem:[%s21082_s1 + $0x2650] ss:$8 sps:$4 sm:$0xff]   ;;  %v18398_v17 = vld [vmem:[%s21082_s1 + $0x864] ss:$8 sps:$4 sm:$0xff]  }
 0x28f   : > { %14154 = vmatprep.subr.bf16.mxu0 %v18321_v18  ;;  %v18401_v18 = vld [vmem:[%s21082_s1 + $0x2664] ss:$8 sps:$4 sm:$0xff]  }
 0x291   : > { %12925 = vmatpush1.bf16.msra.mxu1 %v18316_v57  ;;  %v18396_v57 = vld [vmem:[%s21082_s1 + $0x860] ss:$8 sps:$4 sm:$0xff]  }
 0x292   : > { %14155 = vmatpush1.bf16.msra.mxu0 %v18319_v58  ;;  %12926 = vmatprep.subr.bf16.mxu1 %v18324_v21  ;;  %v18399_v58 = vld [vmem:[%s21082_s1 + $0x2660] ss:$8 sps:$4 sm:$0xff]   ;;  %v18404_v21 = vld [vmem:[%s21082_s1 + $0x874] ss:$8 sps:$4 sm:$0xff]  }
 0x293   : > { %14156 = vmatprep.subr.bf16.mxu0 %v18327_v22  ;;  %v18407_v22 = vld [vmem:[%s21082_s1 + $0x2674] ss:$8 sps:$4 sm:$0xff]  }
 0x295   : > { %12927 = vmatpush1.bf16.msra.mxu1 %v18322_v23  ;;  %v18402_v23 = vld [vmem:[%s21082_s1 + $0x870] ss:$8 sps:$4 sm:$0xff]  }
 0x296   : > { %14157 = vmatpush1.bf16.msra.mxu0 %v18325_v24  ;;  %12928 = vmatprep.subr.bf16.mxu1 %v18330_v25  ;;  %v18405_v24 = vld [vmem:[%s21082_s1 + $0x2670] ss:$8 sps:$4 sm:$0xff]   ;;  %v18410_v25 = vld [vmem:[%s21082_s1 + $0x884] ss:$8 sps:$4 sm:$0xff]  }
 0x297   : > { %14158 = vmatprep.subr.bf16.mxu0 %v18333_v26  ;;  %v18413_v26 = vld [vmem:[%s21082_s1 + $0x2684] ss:$8 sps:$4 sm:$0xff]  }
 0x299   : > { %12929 = vmatpush1.bf16.msra.mxu1 %v18328_v27  ;;  %v18408_v27 = vld [vmem:[%s21082_s1 + $0x880] ss:$8 sps:$4 sm:$0xff]  }
 0x29a   : > { %14159 = vmatpush1.bf16.msra.mxu0 %v18331_v28  ;;  %12930 = vmatprep.subr.bf16.mxu1 %v18336_v29  ;;  %v18411_v28 = vld [vmem:[%s21082_s1 + $0x2680] ss:$8 sps:$4 sm:$0xff]   ;;  %v18416_v29 = vld [vmem:[%s21082_s1 + $0x894] ss:$8 sps:$4 sm:$0xff]  }
 0x29b   : > { %14160 = vmatprep.subr.bf16.mxu0 %v18339_v30  ;;  %v18419_v30 = vld [vmem:[%s21082_s1 + $0x2694] ss:$8 sps:$4 sm:$0xff]  }
 0x29d   : > { %12931 = vmatpush1.bf16.msra.mxu1 %v18334_v31  ;;  %v18414_v31 = vld [vmem:[%s21082_s1 + $0x890] ss:$8 sps:$4 sm:$0xff]  }
 0x29e   : > { %14161 = vmatpush1.bf16.msra.mxu0 %v18337_v32  ;;  %12932 = vmatprep.subr.bf16.mxu1 %v18342_v11  ;;  %v18417_v32 = vld [vmem:[%s21082_s1 + $0x2690] ss:$8 sps:$4 sm:$0xff]   ;;  %v18422_v11 = vld [vmem:[%s21082_s1 + $0x8a4] ss:$8 sps:$4 sm:$0xff]  }
 0x29f   : > { %14162 = vmatprep.subr.bf16.mxu0 %v18345_v12  ;;  %v18425_v12 = vld [vmem:[%s21082_s1 + $0x26a4] ss:$8 sps:$4 sm:$0xff]  }
 0x2a1   : > { %12933 = vmatpush1.bf16.msra.mxu1 %v18340_v33  ;;  %v18420_v33 = vld [vmem:[%s21082_s1 + $0x8a0] ss:$8 sps:$4 sm:$0xff]  }
 0x2a2   : > { %14163 = vmatpush1.bf16.msra.mxu0 %v18343_v34  ;;  %12934 = vmatprep.subr.bf16.mxu1 %v18348_v35  ;;  %v18423_v34 = vld [vmem:[%s21082_s1 + $0x26a0] ss:$8 sps:$4 sm:$0xff]   ;;  %v18428_v35 = vld [vmem:[%s21082_s1 + $0x8b4] ss:$8 sps:$4 sm:$0xff]  }
 0x2a3   : > { %14164 = vmatprep.subr.bf16.mxu0 %v18351_v37  ;;  %v18431_v37 = vld [vmem:[%s21082_s1 + $0x26b4] ss:$8 sps:$4 sm:$0xff]  }
 0x2a5   : > { %12935 = vmatpush1.bf16.msra.mxu1 %v18346_v40  ;;  %v18426_v40 = vld [vmem:[%s21082_s1 + $0x8b0] ss:$8 sps:$4 sm:$0xff]  }
 0x2a6   : > { %14165 = vmatpush1.bf16.msra.mxu0 %v18349_v42  ;;  %12936 = vmatprep.subr.bf16.mxu1 %v18354_v45  ;;  %v18429_v42 = vld [vmem:[%s21082_s1 + $0x26b0] ss:$8 sps:$4 sm:$0xff]   ;;  %v18434_v45 = vld [vmem:[%s21082_s1 + $0x8c4] ss:$8 sps:$4 sm:$0xff]  }
 0x2a7   : > { %14166 = vmatprep.subr.bf16.mxu0 %v18357_v15  ;;  %v18437_v15 = vld [vmem:[%s21082_s1 + $0x26c4] ss:$8 sps:$4 sm:$0xff]  }
 0x2a9   : > { %12937 = vmatpush1.bf16.msra.mxu1 %v18352_v19  ;;  %v18432_v19 = vld [vmem:[%s21082_s1 + $0x8c0] ss:$8 sps:$4 sm:$0xff]  }
 0x2aa   : > { %14167 = vmatpush1.bf16.msra.mxu0 %v18355_v20  ;;  %12947 = vmatprep.subr.bf16.mxu1 %v18361_v48  ;;  %v18435_v20 = vld [vmem:[%s21082_s1 + $0x26c0] ss:$8 sps:$4 sm:$0xff]   ;;  %v18440_v48 = vld [vmem:[%s21082_s1 + $0x8d4] ss:$8 sps:$4 sm:$0xff]  }
 0x2ab   : > { %14177 = vmatprep.subr.bf16.mxu0 %v18365_v49  ;;  %v18443_v49 = vld [vmem:[%s21082_s1 + $0x26d4] ss:$8 sps:$4 sm:$0xff]  }
 0x2ac   : > { %12939 = vmatmul.mubr.bf16.vlgmr.msra.gmra.mrb[0].mxu1 %v992_v55  ;;  %v18446_v55 = vld [vmem:[%s21082_s1 + $0x8e4] ss:$8 sps:$4 sm:$0xff]  }
 0x2ad   : > { %14169 = vmatmul.mubr.bf16.vlgmr.msra.gmra.mrb[0].mxu0 %v1052_v56  ;;  %12948 = vmatpush1.bf16.msra.mxu1 %v18359_v59  ;;  %v18449_v56 = vld [vmem:[%s21082_s1 + $0x26e4] ss:$8 sps:$4 sm:$0xff]   ;;  %v416_v59 = vcombine.high %v21755_v16, %v21755_v16  ;;  %v18450_v16 = vld [vmem:[%s21082_s1 + $0x8f0] ss:$8 sps:$4 sm:$0xff]  }
 0x2ae   : > { %14178 = vmatpush1.bf16.msra.mxu0 %v18363_v38  ;;  %12949 = vmatprep.subr.bf16.mxu1 %v18368_v41  ;;  %v671_v38 = vcombine.high %v21758_v39, %v21758_v39  ;;  %v18444_v41 = vld [vmem:[%s21082_s1 + $0x8e0] ss:$8 sps:$4 sm:$0xff]   ;;  %v18453_v39 = vld [vmem:[%s21082_s1 + $0x26f0] ss:$8 sps:$4 sm:$0xff]  }
 0x2af   : > { %14179 = vmatprep.subr.bf16.mxu0 %v18371_v60  ;;  %12979 = vmatprep.mubr.bf16.mxu1 %v995_v61  ;;  %v18447_v60 = vld [vmem:[%s21082_s1 + $0x26e0] ss:$8 sps:$4 sm:$0xff]   ;;  %v18452_v61 = vld [vmem:[%s21082_s1 + $0x8f4] ss:$8 sps:$4 sm:$0xff]  }
 0x2b0   : > { %14209 = vmatprep.mubr.bf16.mxu0 %v1055_v62  ;;  %v18455_v62 = vld [vmem:[%s21082_s1 + $0x26f4] ss:$8 sps:$4 sm:$0xff]  }
 0x2b1   : > { %12950 = vmatpush1.bf16.msra.mxu1 %v18366_v43  ;;  %v21849_v43 = vrot.slane %v416_v59, %v21150_v50  ;;  %v18522_v59 = vld [vmem:[%s21082_s1 + $0x9b0] ss:$8 sps:$4 sm:$0xff]  }
 0x2b2   : > { %14180 = vmatpush1.bf16.msra.mxu0 %v18369_v36  ;;  %12951 = vmatprep.subr.bf16.mxu1 %v18374_v63  ;;  %v21852_v36 = vrot.slane %v671_v38, %v21150_v50  ;;  %v18458_v63 = vld [vmem:[%s21082_s1 + $0x904] ss:$8 sps:$4 sm:$0xff]   ;;  %v18525_v38 = vld [vmem:[%s21082_s1 + $0x27b0] ss:$8 sps:$4 sm:$0xff]  }
 0x2b3   : > { %14181 = vmatprep.subr.bf16.mxu0 %v18377_v0  ;;  %v18461_v0 = vld [vmem:[%s21082_s1 + $0x2704] ss:$8 sps:$4 sm:$0xff]  }
 0x2b5   : > { %12952 = vmatpush1.bf16.msra.mxu1 %v18372_v1  ;;  %v432_v1 = vcombine.high %v21849_v43, %v21849_v43 }
 0x2b6   : > { %14182 = vmatpush1.bf16.msra.mxu0 %v18375_v2  ;;  %12953 = vmatprep.subr.bf16.mxu1 %v18380_v3  ;;  %v687_v2 = vcombine.high %v21852_v36, %v21852_v36  ;;  %v994_v3 = vpack.c.bf16 %v21766_v46, %v21766_v46  ;;  %v18462_v46 = vld [vmem:[%s21082_s1 + $0x910] ss:$8 sps:$4 sm:$0xff]  }
 0x2b7   : > { %14183 = vmatprep.subr.bf16.mxu0 %v18383_v4  ;;  %v1054_v4 = vpack.c.bf16 %v21770_v47, %v21770_v47  ;;  %v18465_v47 = vld [vmem:[%s21082_s1 + $0x2710] ss:$8 sps:$4 sm:$0xff]  }
 0x2b9   : > { %12954 = vmatpush1.bf16.msra.mxu1 %v18378_v5  ;;  %v18456_v5 = vld [vmem:[%s21082_s1 + $0x900] ss:$8 sps:$4 sm:$0xff]  }
 0x2ba   : > { %14184 = vmatpush1.bf16.msra.mxu0 %v18381_v6  ;;  %12955 = vmatprep.subr.bf16.mxu1 %v18386_v51  ;;  %v18459_v6 = vld [vmem:[%s21082_s1 + $0x2700] ss:$8 sps:$4 sm:$0xff]   ;;  %v18464_v51 = vld [vmem:[%s21082_s1 + $0x914] ss:$8 sps:$4 sm:$0xff]  }
 0x2bb   : > { %14185 = vmatprep.subr.bf16.mxu0 %v18389_v52  ;;  %v18467_v52 = vld [vmem:[%s21082_s1 + $0x2714] ss:$8 sps:$4 sm:$0xff]  }
 0x2bd   : > { %12956 = vmatpush1.bf16.msra.mxu1 %v18384_v7  ;;  %v997_v7 = vpack.c.bf16 %v432_v1, %v432_v1  ;;  %v18542_v1 = vld [vmem:[%s21082_s1 + $0x9e4] ss:$8 sps:$4 sm:$0xff]  }
 0x2be   : > { %14186 = vmatpush1.bf16.msra.mxu0 %v18387_v8  ;;  %12957 = vmatprep.subr.bf16.mxu1 %v18392_v9  ;;  %v1057_v8 = vpack.c.bf16 %v687_v2, %v687_v2  ;;  %v18470_v9 = vld [vmem:[%s21082_s1 + $0x924] ss:$8 sps:$4 sm:$0xff]  }
 0x2bf   : > { %14187 = vmatprep.subr.bf16.mxu0 %v18395_v10  ;;  %v18473_v10 = vld [vmem:[%s21082_s1 + $0x2724] ss:$8 sps:$4 sm:$0xff]  }
 0x2c0   : > { %v18545_v2 = vld [vmem:[%s21082_s1 + $0x27e4] ss:$8 sps:$4 sm:$0xff]  }
 0x2c1   : > { %12958 = vmatpush1.bf16.msra.mxu1 %v18390_v13  ;;  %v18468_v13 = vld [vmem:[%s21082_s1 + $0x920] ss:$8 sps:$4 sm:$0xff]  }
 0x2c2   : > { %14188 = vmatpush1.bf16.msra.mxu0 %v18393_v14  ;;  %12959 = vmatprep.subr.bf16.mxu1 %v18398_v17  ;;  %v18471_v14 = vld [vmem:[%s21082_s1 + $0x2720] ss:$8 sps:$4 sm:$0xff]   ;;  %v18476_v17 = vld [vmem:[%s21082_s1 + $0x934] ss:$8 sps:$4 sm:$0xff]  }
 0x2c3   : > { %14189 = vmatprep.subr.bf16.mxu0 %v18401_v18  ;;  %v18479_v18 = vld [vmem:[%s21082_s1 + $0x2734] ss:$8 sps:$4 sm:$0xff]  }
 0x2c5   : > { %12960 = vmatpush1.bf16.msra.mxu1 %v18396_v57  ;;  %v18474_v57 = vld [vmem:[%s21082_s1 + $0x930] ss:$8 sps:$4 sm:$0xff]  }
 0x2c6   : > { %14190 = vmatpush1.bf16.msra.mxu0 %v18399_v58  ;;  %12961 = vmatprep.subr.bf16.mxu1 %v18404_v21  ;;  %v18477_v58 = vld [vmem:[%s21082_s1 + $0x2730] ss:$8 sps:$4 sm:$0xff]   ;;  %v18482_v21 = vld [vmem:[%s21082_s1 + $0x944] ss:$8 sps:$4 sm:$0xff]  }
 0x2c7   : > { %14191 = vmatprep.subr.bf16.mxu0 %v18407_v22  ;;  %v18485_v22 = vld [vmem:[%s21082_s1 + $0x2744] ss:$8 sps:$4 sm:$0xff]  }
 0x2c9   : > { %12962 = vmatpush1.bf16.msra.mxu1 %v18402_v23  ;;  %v18480_v23 = vld [vmem:[%s21082_s1 + $0x940] ss:$8 sps:$4 sm:$0xff]  }
 0x2ca   : > { %14192 = vmatpush1.bf16.msra.mxu0 %v18405_v24  ;;  %12963 = vmatprep.subr.bf16.mxu1 %v18410_v25  ;;  %v18483_v24 = vld [vmem:[%s21082_s1 + $0x2740] ss:$8 sps:$4 sm:$0xff]   ;;  %v18488_v25 = vld [vmem:[%s21082_s1 + $0x954] ss:$8 sps:$4 sm:$0xff]  }
 0x2cb   : > { %14193 = vmatprep.subr.bf16.mxu0 %v18413_v26  ;;  %v18491_v26 = vld [vmem:[%s21082_s1 + $0x2754] ss:$8 sps:$4 sm:$0xff]  }
 0x2cd   : > { %12964 = vmatpush1.bf16.msra.mxu1 %v18408_v27  ;;  %v18486_v27 = vld [vmem:[%s21082_s1 + $0x950] ss:$8 sps:$4 sm:$0xff]  }
 0x2ce   : > { %14194 = vmatpush1.bf16.msra.mxu0 %v18411_v28  ;;  %12965 = vmatprep.subr.bf16.mxu1 %v18416_v29  ;;  %v18489_v28 = vld [vmem:[%s21082_s1 + $0x2750] ss:$8 sps:$4 sm:$0xff]   ;;  %v18494_v29 = vld [vmem:[%s21082_s1 + $0x964] ss:$8 sps:$4 sm:$0xff]  }
 0x2cf   : > { %14195 = vmatprep.subr.bf16.mxu0 %v18419_v30  ;;  %v18497_v30 = vld [vmem:[%s21082_s1 + $0x2764] ss:$8 sps:$4 sm:$0xff]  }
 0x2d1   : > { %12966 = vmatpush1.bf16.msra.mxu1 %v18414_v31  ;;  %v18492_v31 = vld [vmem:[%s21082_s1 + $0x960] ss:$8 sps:$4 sm:$0xff]  }
 0x2d2   : > { %14196 = vmatpush1.bf16.msra.mxu0 %v18417_v32  ;;  %12967 = vmatprep.subr.bf16.mxu1 %v18422_v11  ;;  %v18495_v32 = vld [vmem:[%s21082_s1 + $0x2760] ss:$8 sps:$4 sm:$0xff]   ;;  %v18500_v11 = vld [vmem:[%s21082_s1 + $0x974] ss:$8 sps:$4 sm:$0xff]  }
 0x2d3   : > { %14197 = vmatprep.subr.bf16.mxu0 %v18425_v12  ;;  %v18503_v12 = vld [vmem:[%s21082_s1 + $0x2774] ss:$8 sps:$4 sm:$0xff]  }
 0x2d5   : > { %12968 = vmatpush1.bf16.msra.mxu1 %v18420_v33  ;;  %v18498_v33 = vld [vmem:[%s21082_s1 + $0x970] ss:$8 sps:$4 sm:$0xff]  }
 0x2d6   : > { %14198 = vmatpush1.bf16.msra.mxu0 %v18423_v34  ;;  %12969 = vmatprep.subr.bf16.mxu1 %v18428_v35  ;;  %v18501_v34 = vld [vmem:[%s21082_s1 + $0x2770] ss:$8 sps:$4 sm:$0xff]   ;;  %v18506_v35 = vld [vmem:[%s21082_s1 + $0x984] ss:$8 sps:$4 sm:$0xff]  }
 0x2d7   : > { %14199 = vmatprep.subr.bf16.mxu0 %v18431_v37  ;;  %v18509_v37 = vld [vmem:[%s21082_s1 + $0x2784] ss:$8 sps:$4 sm:$0xff]  }
 0x2d9   : > { %12970 = vmatpush1.bf16.msra.mxu1 %v18426_v40  ;;  %v18504_v40 = vld [vmem:[%s21082_s1 + $0x980] ss:$8 sps:$4 sm:$0xff]  }
 0x2da   : > { %14200 = vmatpush1.bf16.msra.mxu0 %v18429_v42  ;;  %12971 = vmatprep.subr.bf16.mxu1 %v18434_v45  ;;  %v18507_v42 = vld [vmem:[%s21082_s1 + $0x2780] ss:$8 sps:$4 sm:$0xff]   ;;  %v18512_v45 = vld [vmem:[%s21082_s1 + $0x994] ss:$8 sps:$4 sm:$0xff]  }
 0x2db   : > { %14201 = vmatprep.subr.bf16.mxu0 %v18437_v15  ;;  %v18515_v15 = vld [vmem:[%s21082_s1 + $0x2794] ss:$8 sps:$4 sm:$0xff]  }
 0x2dd   : > { %12972 = vmatpush1.bf16.msra.mxu1 %v18432_v19  ;;  %v18510_v19 = vld [vmem:[%s21082_s1 + $0x990] ss:$8 sps:$4 sm:$0xff]  }
 0x2de   : > { %14202 = vmatpush1.bf16.msra.mxu0 %v18435_v20  ;;  %12973 = vmatprep.subr.bf16.mxu1 %v18440_v48  ;;  %v18513_v20 = vld [vmem:[%s21082_s1 + $0x2790] ss:$8 sps:$4 sm:$0xff]   ;;  %v18518_v48 = vld [vmem:[%s21082_s1 + $0x9a4] ss:$8 sps:$4 sm:$0xff]  }
 0x2df   : > { %14203 = vmatprep.subr.bf16.mxu0 %v18443_v49  ;;  %v18521_v49 = vld [vmem:[%s21082_s1 + $0x27a4] ss:$8 sps:$4 sm:$0xff]  }
 0x2e1   : > { %12974 = vmatpush1.bf16.msra.mxu1 %v18438_v53  ;;  %v18516_v53 = vld [vmem:[%s21082_s1 + $0x9a0] ss:$8 sps:$4 sm:$0xff]  }
 0x2e2   : > { %14204 = vmatpush1.bf16.msra.mxu0 %v18441_v54  ;;  %12975 = vmatprep.subr.bf16.mxu1 %v18446_v55  ;;  %v18519_v54 = vld [vmem:[%s21082_s1 + $0x27a0] ss:$8 sps:$4 sm:$0xff]   ;;  %v18524_v55 = vld [vmem:[%s21082_s1 + $0x9b4] ss:$8 sps:$4 sm:$0xff]  }
 0x2e3   : > { %14205 = vmatprep.subr.bf16.mxu0 %v18449_v56  ;;  %v18527_v56 = vld [vmem:[%s21082_s1 + $0x27b4] ss:$8 sps:$4 sm:$0xff]  }
 0x2e5   : > { %12976 = vmatpush1.bf16.msra.mxu1 %v18444_v41  ;;  %v18530_v41 = vld [vmem:[%s21082_s1 + $0x9c4] ss:$8 sps:$4 sm:$0xff]  }
 0x2e6   : > { %14206 = vmatpush1.bf16.msra.mxu0 %v18447_v60  ;;  %12977 = vmatprep.subr.bf16.mxu1 %v18452_v61  ;;  %v18533_v60 = vld [vmem:[%s21082_s1 + $0x27c4] ss:$8 sps:$4 sm:$0xff]   ;;  %v18528_v61 = vld [vmem:[%s21082_s1 + $0x9c0] ss:$8 sps:$4 sm:$0xff]  }
 0x2e7   : > { %14207 = vmatprep.subr.bf16.mxu0 %v18455_v62  ;;  %v18531_v62 = vld [vmem:[%s21082_s1 + $0x27c0] ss:$8 sps:$4 sm:$0xff]  }
 0x2e9   : > { %12978 = vmatpush1.bf16.msra.mxu1 %v18450_v16  ;;  %v18536_v16 = vld [vmem:[%s21082_s1 + $0x9d4] ss:$8 sps:$4 sm:$0xff]  }
 0x2ea   : > { %14208 = vmatpush1.bf16.msra.mxu0 %v18453_v39  ;;  %12988 = vmatprep.subr.bf16.mxu1 %v18458_v63  ;;  %v18539_v39 = vld [vmem:[%s21082_s1 + $0x27d4] ss:$8 sps:$4 sm:$0xff]   ;;  %v18534_v63 = vld [vmem:[%s21082_s1 + $0x9d0] ss:$8 sps:$4 sm:$0xff]  }
 0x2eb   : > { %14218 = vmatprep.subr.bf16.mxu0 %v18461_v0  ;;  %v18537_v0 = vld [vmem:[%s21082_s1 + $0x27d0] ss:$8 sps:$4 sm:$0xff]  }
 0x2ec   : > { %12980 = vmatmul.mubr.bf16.vlgmr.msra.gmra.mrb[0].mxu1 %v994_v3  ;;  %v21923_v3 = vld [vmem:[%s21074_s27 + $0x28] sm:$0xff] }
 0x2ed   : > { %14210 = vmatmul.mubr.bf16.vlgmr.msra.gmra.mrb[0].mxu0 %v1054_v4  ;;  %12989 = vmatpush1.bf16.msra.mxu1 %v18456_v5  ;;  %v21926_v4 = vld [vmem:[%s21074_s27 + $0xa0] sm:$0xff] }
 0x2ee   : > { %14219 = vmatpush1.bf16.msra.mxu0 %v18459_v6  ;;  %12990 = vmatprep.subr.bf16.mxu1 %v18464_v51  ;;  %v18540_v5 = vld [vmem:[%s21082_s1 + $0x9e0] ss:$8 sps:$4 sm:$0xff]   ;;  %v18548_v51 = vld [vmem:[%s21082_s1 + $0x9f4] ss:$8 sps:$4 sm:$0xff]  }
 0x2ef   : > { %14220 = vmatprep.subr.bf16.mxu0 %v18467_v52  ;;  %13020 = vmatprep.mubr.bf16.mxu1 %v997_v7  ;;  %v18543_v6 = vld [vmem:[%s21082_s1 + $0x27e0] ss:$8 sps:$4 sm:$0xff]   ;;  %v18551_v52 = vld [vmem:[%s21082_s1 + $0x27f4] ss:$8 sps:$4 sm:$0xff]   ;;  %v21934_v7 = vrot.slane %v21923_v3, %v21150_v50 }
 0x2f0   : > { %14250 = vmatprep.mubr.bf16.mxu0 %v1057_v8  ;;  %v21938_v8 = vrot.slane %v21926_v4, %v21150_v50 }
 0x2f1   : > { %12991 = vmatpush1.bf16.msra.mxu1 %v18462_v46  ;;  %v18546_v46 = vld [vmem:[%s21082_s1 + $0x9f0] ss:$8 sps:$4 sm:$0xff]  }
 0x2f2   : > { %14221 = vmatpush1.bf16.msra.mxu0 %v18465_v47  ;;  %12992 = vmatprep.subr.bf16.mxu1 %v18470_v9  ;;  %v18549_v47 = vld [vmem:[%s21082_s1 + $0x27f0] ss:$8 sps:$4 sm:$0xff]   ;;  %v18555_v9 = vld [vmem:[%s21082_s1 + $0xa04] ss:$8 sps:$4 sm:$0xff]  }
 0x2f3   : > { %14222 = vmatprep.subr.bf16.mxu0 %v18473_v10  ;;  %v18559_v10 = vld [vmem:[%s21082_s1 + $0x2804] ss:$8 sps:$4 sm:$0xff]  }
 0x2f5   : > { %12993 = vmatpush1.bf16.msra.mxu1 %v18468_v13  ;;  %v448_v13 = vcombine.high %v21934_v7, %v21934_v7 }
 0x2f6   : > { %14223 = vmatpush1.bf16.msra.mxu0 %v18471_v14  ;;  %12994 = vmatprep.subr.bf16.mxu1 %v18476_v17  ;;  %v703_v14 = vcombine.high %v21938_v8, %v21938_v8  ;;  %v996_v17 = vpack.c.bf16 %v21849_v43, %v21849_v43  ;;  %v18560_v43 = vld [vmem:[%s21082_s1 + $0xa10] ss:$8 sps:$4 sm:$0xff]  }
 0x2f7   : > { %14224 = vmatprep.subr.bf16.mxu0 %v18479_v18  ;;  %v1056_v18 = vpack.c.bf16 %v21852_v36, %v21852_v36  ;;  %v18563_v36 = vld [vmem:[%s21082_s1 + $0x2810] ss:$8 sps:$4 sm:$0xff]  }
 0x2f9   : > { %12995 = vmatpush1.bf16.msra.mxu1 %v18474_v57  ;;  %v18553_v57 = vld [vmem:[%s21082_s1 + $0xa00] ss:$8 sps:$4 sm:$0xff]  }
 0x2fa   : > { %14225 = vmatpush1.bf16.msra.mxu0 %v18477_v58  ;;  %12996 = vmatprep.subr.bf16.mxu1 %v18482_v21  ;;  %v18557_v58 = vld [vmem:[%s21082_s1 + $0x2800] ss:$8 sps:$4 sm:$0xff]   ;;  %v18562_v21 = vld [vmem:[%s21082_s1 + $0xa14] ss:$8 sps:$4 sm:$0xff]  }
 0x2fb   : > { %14226 = vmatprep.subr.bf16.mxu0 %v18485_v22  ;;  %v18565_v22 = vld [vmem:[%s21082_s1 + $0x2814] ss:$8 sps:$4 sm:$0xff]  }
 0x2fd   : > { %12997 = vmatpush1.bf16.msra.mxu1 %v18480_v23  ;;  %v999_v23 = vpack.c.bf16 %v448_v13, %v448_v13  ;;  %v18632_v13 = vld [vmem:[%s21082_s1 + $0xad0] ss:$8 sps:$4 sm:$0xff]  }
 0x2fe   : > { %14227 = vmatpush1.bf16.msra.mxu0 %v18483_v24  ;;  %12998 = vmatprep.subr.bf16.mxu1 %v18488_v25  ;;  %v1059_v24 = vpack.c.bf16 %v703_v14, %v703_v14  ;;  %v18568_v25 = vld [vmem:[%s21082_s1 + $0xa24] ss:$8 sps:$4 sm:$0xff]   ;;  %v18635_v14 = vld [vmem:[%s21082_s1 + $0x28d0] ss:$8 sps:$4 sm:$0xff]  }
 0x2ff   : > { %14228 = vmatprep.subr.bf16.mxu0 %v18491_v26  ;;  %v18571_v26 = vld [vmem:[%s21082_s1 + $0x2824] ss:$8 sps:$4 sm:$0xff]  }
 0x301   : > { %12999 = vmatpush1.bf16.msra.mxu1 %v18486_v27  ;;  %v18566_v27 = vld [vmem:[%s21082_s1 + $0xa20] ss:$8 sps:$4 sm:$0xff]  }
 0x302   : > { %14229 = vmatpush1.bf16.msra.mxu0 %v18489_v28  ;;  %13000 = vmatprep.subr.bf16.mxu1 %v18494_v29  ;;  %v18569_v28 = vld [vmem:[%s21082_s1 + $0x2820] ss:$8 sps:$4 sm:$0xff]   ;;  %v18574_v29 = vld [vmem:[%s21082_s1 + $0xa34] ss:$8 sps:$4 sm:$0xff]  }
 0x303   : > { %14230 = vmatprep.subr.bf16.mxu0 %v18497_v30  ;;  %v18577_v30 = vld [vmem:[%s21082_s1 + $0x2834] ss:$8 sps:$4 sm:$0xff]  }
 0x305   : > { %13001 = vmatpush1.bf16.msra.mxu1 %v18492_v31  ;;  %v18572_v31 = vld [vmem:[%s21082_s1 + $0xa30] ss:$8 sps:$4 sm:$0xff]  }
 0x306   : > { %14231 = vmatpush1.bf16.msra.mxu0 %v18495_v32  ;;  %13002 = vmatprep.subr.bf16.mxu1 %v18500_v11  ;;  %v18575_v32 = vld [vmem:[%s21082_s1 + $0x2830] ss:$8 sps:$4 sm:$0xff]   ;;  %v18580_v11 = vld [vmem:[%s21082_s1 + $0xa44] ss:$8 sps:$4 sm:$0xff]  }
 0x307   : > { %14232 = vmatprep.subr.bf16.mxu0 %v18503_v12  ;;  %v18583_v12 = vld [vmem:[%s21082_s1 + $0x2844] ss:$8 sps:$4 sm:$0xff]  }
 0x309   : > { %13003 = vmatpush1.bf16.msra.mxu1 %v18498_v33  ;;  %v18578_v33 = vld [vmem:[%s21082_s1 + $0xa40] ss:$8 sps:$4 sm:$0xff]  }
 0x30a   : > { %14233 = vmatpush1.bf16.msra.mxu0 %v18501_v34  ;;  %13004 = vmatprep.subr.bf16.mxu1 %v18506_v35  ;;  %v18581_v34 = vld [vmem:[%s21082_s1 + $0x2840] ss:$8 sps:$4 sm:$0xff]   ;;  %v18586_v35 = vld [vmem:[%s21082_s1 + $0xa54] ss:$8 sps:$4 sm:$0xff]  }
 0x30b   : > { %14234 = vmatprep.subr.bf16.mxu0 %v18509_v37  ;;  %v18589_v37 = vld [vmem:[%s21082_s1 + $0x2854] ss:$8 sps:$4 sm:$0xff]  }
 0x30d   : > { %13005 = vmatpush1.bf16.msra.mxu1 %v18504_v40  ;;  %v18584_v40 = vld [vmem:[%s21082_s1 + $0xa50] ss:$8 sps:$4 sm:$0xff]  }
 0x30e   : > { %14235 = vmatpush1.bf16.msra.mxu0 %v18507_v42  ;;  %13006 = vmatprep.subr.bf16.mxu1 %v18512_v45  ;;  %v18587_v42 = vld [vmem:[%s21082_s1 + $0x2850] ss:$8 sps:$4 sm:$0xff]   ;;  %v18592_v45 = vld [vmem:[%s21082_s1 + $0xa64] ss:$8 sps:$4 sm:$0xff]  }
 0x30f   : > { %14236 = vmatprep.subr.bf16.mxu0 %v18515_v15  ;;  %v18595_v15 = vld [vmem:[%s21082_s1 + $0x2864] ss:$8 sps:$4 sm:$0xff]  }
 0x311   : > { %13007 = vmatpush1.bf16.msra.mxu1 %v18510_v19  ;;  %v18590_v19 = vld [vmem:[%s21082_s1 + $0xa60] ss:$8 sps:$4 sm:$0xff]  }
 0x312   : > { %14237 = vmatpush1.bf16.msra.mxu0 %v18513_v20  ;;  %13008 = vmatprep.subr.bf16.mxu1 %v18518_v48  ;;  %v18593_v20 = vld [vmem:[%s21082_s1 + $0x2860] ss:$8 sps:$4 sm:$0xff]   ;;  %v18598_v48 = vld [vmem:[%s21082_s1 + $0xa74] ss:$8 sps:$4 sm:$0xff]  }
 0x313   : > { %14238 = vmatprep.subr.bf16.mxu0 %v18521_v49  ;;  %v18601_v49 = vld [vmem:[%s21082_s1 + $0x2874] ss:$8 sps:$4 sm:$0xff]  }
 0x315   : > { %13009 = vmatpush1.bf16.msra.mxu1 %v18516_v53  ;;  %v18596_v53 = vld [vmem:[%s21082_s1 + $0xa70] ss:$8 sps:$4 sm:$0xff]  }
 0x316   : > { %14239 = vmatpush1.bf16.msra.mxu0 %v18519_v54  ;;  %13010 = vmatprep.subr.bf16.mxu1 %v18524_v55  ;;  %v18599_v54 = vld [vmem:[%s21082_s1 + $0x2870] ss:$8 sps:$4 sm:$0xff]   ;;  %v18604_v55 = vld [vmem:[%s21082_s1 + $0xa84] ss:$8 sps:$4 sm:$0xff]  }
 0x317   : > { %14240 = vmatprep.subr.bf16.mxu0 %v18527_v56  ;;  %v18607_v56 = vld [vmem:[%s21082_s1 + $0x2884] ss:$8 sps:$4 sm:$0xff]  }
 0x319   : > { %13011 = vmatpush1.bf16.msra.mxu1 %v18522_v59  ;;  %v18602_v59 = vld [vmem:[%s21082_s1 + $0xa80] ss:$8 sps:$4 sm:$0xff]  }
 0x31a   : > { %14241 = vmatpush1.bf16.msra.mxu0 %v18525_v38  ;;  %13012 = vmatprep.subr.bf16.mxu1 %v18530_v41  ;;  %v18605_v38 = vld [vmem:[%s21082_s1 + $0x2880] ss:$8 sps:$4 sm:$0xff]   ;;  %v18610_v41 = vld [vmem:[%s21082_s1 + $0xa94] ss:$8 sps:$4 sm:$0xff]  }
 0x31b   : > { %14242 = vmatprep.subr.bf16.mxu0 %v18533_v60  ;;  %v18613_v60 = vld [vmem:[%s21082_s1 + $0x2894] ss:$8 sps:$4 sm:$0xff]  }
 0x31d   : > { %13013 = vmatpush1.bf16.msra.mxu1 %v18528_v61  ;;  %v18608_v61 = vld [vmem:[%s21082_s1 + $0xa90] ss:$8 sps:$4 sm:$0xff]  }
 0x31e   : > { %14243 = vmatpush1.bf16.msra.mxu0 %v18531_v62  ;;  %13014 = vmatprep.subr.bf16.mxu1 %v18536_v16  ;;  %v18611_v62 = vld [vmem:[%s21082_s1 + $0x2890] ss:$8 sps:$4 sm:$0xff]   ;;  %v18616_v16 = vld [vmem:[%s21082_s1 + $0xaa4] ss:$8 sps:$4 sm:$0xff]  }
 0x31f   : > { %14244 = vmatprep.subr.bf16.mxu0 %v18539_v39  ;;  %v18619_v39 = vld [vmem:[%s21082_s1 + $0x28a4] ss:$8 sps:$4 sm:$0xff]  }
 0x321   : > { %13015 = vmatpush1.bf16.msra.mxu1 %v18534_v63  ;;  %v18614_v63 = vld [vmem:[%s21082_s1 + $0xaa0] ss:$8 sps:$4 sm:$0xff]  }
 0x322   : > { %14245 = vmatpush1.bf16.msra.mxu0 %v18537_v0  ;;  %13016 = vmatprep.subr.bf16.mxu1 %v18542_v1  ;;  %v18617_v0 = vld [vmem:[%s21082_s1 + $0x28a0] ss:$8 sps:$4 sm:$0xff]   ;;  %v18622_v1 = vld [vmem:[%s21082_s1 + $0xab4] ss:$8 sps:$4 sm:$0xff]  }
 0x323   : > { %14246 = vmatprep.subr.bf16.mxu0 %v18545_v2  ;;  %v18625_v2 = vld [vmem:[%s21082_s1 + $0x28b4] ss:$8 sps:$4 sm:$0xff]  }
 0x325   : > { %13017 = vmatpush1.bf16.msra.mxu1 %v18540_v5  ;;  %v18620_v5 = vld [vmem:[%s21082_s1 + $0xab0] ss:$8 sps:$4 sm:$0xff]  }
 0x326   : > { %14247 = vmatpush1.bf16.msra.mxu0 %v18543_v6  ;;  %13018 = vmatprep.subr.bf16.mxu1 %v18548_v51  ;;  %v18623_v6 = vld [vmem:[%s21082_s1 + $0x28b0] ss:$8 sps:$4 sm:$0xff]   ;;  %v18628_v51 = vld [vmem:[%s21082_s1 + $0xac4] ss:$8 sps:$4 sm:$0xff]  }
 0x327   : > { %14248 = vmatprep.subr.bf16.mxu0 %v18551_v52  ;;  %v18631_v52 = vld [vmem:[%s21082_s1 + $0x28c4] ss:$8 sps:$4 sm:$0xff]  }
 0x329   : > { %13019 = vmatpush1.bf16.msra.mxu1 %v18546_v46  ;;  %v18626_v46 = vld [vmem:[%s21082_s1 + $0xac0] ss:$8 sps:$4 sm:$0xff]  }
 0x32a   : > { %14249 = vmatpush1.bf16.msra.mxu0 %v18549_v47  ;;  %13029 = vmatprep.subr.bf16.mxu1 %v18555_v9  ;;  %v18629_v47 = vld [vmem:[%s21082_s1 + $0x28c0] ss:$8 sps:$4 sm:$0xff]   ;;  %v18634_v9 = vld [vmem:[%s21082_s1 + $0xad4] ss:$8 sps:$4 sm:$0xff]  }
 0x32b   : > { %14259 = vmatprep.subr.bf16.mxu0 %v18559_v10  ;;  %v18637_v10 = vld [vmem:[%s21082_s1 + $0x28d4] ss:$8 sps:$4 sm:$0xff]  }
 0x32c   : > { %13021 = vmatmul.mubr.bf16.vlgmr.msra.gmra.mrb[0].mxu1 %v996_v17  ;;  %v18640_v17 = vld [vmem:[%s21082_s1 + $0xae4] ss:$8 sps:$4 sm:$0xff]  }
 0x32d   : > { %14251 = vmatmul.mubr.bf16.vlgmr.msra.gmra.mrb[0].mxu0 %v1056_v18  ;;  %13030 = vmatpush1.bf16.msra.mxu1 %v18553_v57  ;;  %v18643_v18 = vld [vmem:[%s21082_s1 + $0x28e4] ss:$8 sps:$4 sm:$0xff]   ;;  %v433_v57 = vcombine.high %v21923_v3, %v21923_v3  ;;  %v18644_v3 = vld [vmem:[%s21082_s1 + $0xaf0] ss:$8 sps:$4 sm:$0xff]  }
 0x32e   : > { %14260 = vmatpush1.bf16.msra.mxu0 %v18557_v58  ;;  %13031 = vmatprep.subr.bf16.mxu1 %v18562_v21  ;;  %v688_v58 = vcombine.high %v21926_v4, %v21926_v4  ;;  %v18638_v21 = vld [vmem:[%s21082_s1 + $0xae0] ss:$8 sps:$4 sm:$0xff]   ;;  %v18647_v4 = vld [vmem:[%s21082_s1 + $0x28f0] ss:$8 sps:$4 sm:$0xff]  }
 0x32f   : > { %14261 = vmatprep.subr.bf16.mxu0 %v18565_v22  ;;  %13061 = vmatprep.mubr.bf16.mxu1 %v999_v23  ;;  %v18641_v22 = vld [vmem:[%s21082_s1 + $0x28e0] ss:$8 sps:$4 sm:$0xff]   ;;  %v18646_v23 = vld [vmem:[%s21082_s1 + $0xaf4] ss:$8 sps:$4 sm:$0xff]  }
 0x330   : > { %14291 = vmatprep.mubr.bf16.mxu0 %v1059_v24  ;;  %v18649_v24 = vld [vmem:[%s21082_s1 + $0x28f4] ss:$8 sps:$4 sm:$0xff]  }
 0x331   : > { %13032 = vmatpush1.bf16.msra.mxu1 %v18560_v43  ;;  %v22017_v43 = vrot.slane %v433_v57, %v21150_v50  ;;  %v18716_v57 = vld [vmem:[%s21082_s1 + $0xbb0] ss:$8 sps:$4 sm:$0xff]  }
 0x332   : > { %14262 = vmatpush1.bf16.msra.mxu0 %v18563_v36  ;;  %13033 = vmatprep.subr.bf16.mxu1 %v18568_v25  ;;  %v22020_v36 = vrot.slane %v688_v58, %v21150_v50  ;;  %v18652_v25 = vld [vmem:[%s21082_s1 + $0xb04] ss:$8 sps:$4 sm:$0xff]   ;;  %v18719_v58 = vld [vmem:[%s21082_s1 + $0x29b0] ss:$8 sps:$4 sm:$0xff]  }
 0x333   : > { %14263 = vmatprep.subr.bf16.mxu0 %v18571_v26  ;;  %v18655_v26 = vld [vmem:[%s21082_s1 + $0x2904] ss:$8 sps:$4 sm:$0xff]  }
 0x335   : > { %13034 = vmatpush1.bf16.msra.mxu1 %v18566_v27  ;;  %v449_v27 = vcombine.high %v22017_v43, %v22017_v43 }
 0x336   : > { %14264 = vmatpush1.bf16.msra.mxu0 %v18569_v28  ;;  %13035 = vmatprep.subr.bf16.mxu1 %v18574_v29  ;;  %v704_v28 = vcombine.high %v22020_v36, %v22020_v36  ;;  %v998_v29 = vpack.c.bf16 %v21934_v7, %v21934_v7  ;;  %v18656_v7 = vld [vmem:[%s21082_s1 + $0xb10] ss:$8 sps:$4 sm:$0xff]  }
 0x337   : > { %14265 = vmatprep.subr.bf16.mxu0 %v18577_v30  ;;  %v1058_v30 = vpack.c.bf16 %v21938_v8, %v21938_v8  ;;  %v18659_v8 = vld [vmem:[%s21082_s1 + $0x2910] ss:$8 sps:$4 sm:$0xff]  }
 0x339   : > { %13036 = vmatpush1.bf16.msra.mxu1 %v18572_v31  ;;  %v18650_v31 = vld [vmem:[%s21082_s1 + $0xb00] ss:$8 sps:$4 sm:$0xff]  }
 0x33a   : > { %14266 = vmatpush1.bf16.msra.mxu0 %v18575_v32  ;;  %13037 = vmatprep.subr.bf16.mxu1 %v18580_v11  ;;  %v18653_v32 = vld [vmem:[%s21082_s1 + $0x2900] ss:$8 sps:$4 sm:$0xff]   ;;  %v18658_v11 = vld [vmem:[%s21082_s1 + $0xb14] ss:$8 sps:$4 sm:$0xff]  }
 0x33b   : > { %14267 = vmatprep.subr.bf16.mxu0 %v18583_v12  ;;  %v18661_v12 = vld [vmem:[%s21082_s1 + $0x2914] ss:$8 sps:$4 sm:$0xff]  }
 0x33d   : > { %13038 = vmatpush1.bf16.msra.mxu1 %v18578_v33  ;;  %v1001_v33 = vpack.c.bf16 %v449_v27, %v449_v27  ;;  %v18736_v27 = vld [vmem:[%s21082_s1 + $0xbe4] ss:$8 sps:$4 sm:$0xff]  }
 0x33e   : > { %14268 = vmatpush1.bf16.msra.mxu0 %v18581_v34  ;;  %13039 = vmatprep.subr.bf16.mxu1 %v18586_v35  ;;  %v1061_v34 = vpack.c.bf16 %v704_v28, %v704_v28  ;;  %v18664_v35 = vld [vmem:[%s21082_s1 + $0xb24] ss:$8 sps:$4 sm:$0xff]  }
 0x33f   : > { %14269 = vmatprep.subr.bf16.mxu0 %v18589_v37  ;;  %v18667_v37 = vld [vmem:[%s21082_s1 + $0x2924] ss:$8 sps:$4 sm:$0xff]  }
 0x340   : > { %v18739_v28 = vld [vmem:[%s21082_s1 + $0x29e4] ss:$8 sps:$4 sm:$0xff]  }
 0x341   : > { %13040 = vmatpush1.bf16.msra.mxu1 %v18584_v40  ;;  %v18662_v40 = vld [vmem:[%s21082_s1 + $0xb20] ss:$8 sps:$4 sm:$0xff]  }
 0x342   : > { %14270 = vmatpush1.bf16.msra.mxu0 %v18587_v42  ;;  %13041 = vmatprep.subr.bf16.mxu1 %v18592_v45  ;;  %v18665_v42 = vld [vmem:[%s21082_s1 + $0x2920] ss:$8 sps:$4 sm:$0xff]   ;;  %v18670_v45 = vld [vmem:[%s21082_s1 + $0xb34] ss:$8 sps:$4 sm:$0xff]  }
 0x343   : > { %14271 = vmatprep.subr.bf16.mxu0 %v18595_v15  ;;  %v18673_v15 = vld [vmem:[%s21082_s1 + $0x2934] ss:$8 sps:$4 sm:$0xff]  }
 0x345   : > { %13042 = vmatpush1.bf16.msra.mxu1 %v18590_v19  ;;  %v18668_v19 = vld [vmem:[%s21082_s1 + $0xb30] ss:$8 sps:$4 sm:$0xff]  }
 0x346   : > { %14272 = vmatpush1.bf16.msra.mxu0 %v18593_v20  ;;  %13043 = vmatprep.subr.bf16.mxu1 %v18598_v48  ;;  %v18671_v20 = vld [vmem:[%s21082_s1 + $0x2930] ss:$8 sps:$4 sm:$0xff]   ;;  %v18676_v48 = vld [vmem:[%s21082_s1 + $0xb44] ss:$8 sps:$4 sm:$0xff]  }
 0x347   : > { %14273 = vmatprep.subr.bf16.mxu0 %v18601_v49  ;;  %v18679_v49 = vld [vmem:[%s21082_s1 + $0x2944] ss:$8 sps:$4 sm:$0xff]  }
 0x349   : > { %13044 = vmatpush1.bf16.msra.mxu1 %v18596_v53  ;;  %v18674_v53 = vld [vmem:[%s21082_s1 + $0xb40] ss:$8 sps:$4 sm:$0xff]  }
 0x34a   : > { %14274 = vmatpush1.bf16.msra.mxu0 %v18599_v54  ;;  %13045 = vmatprep.subr.bf16.mxu1 %v18604_v55  ;;  %v18677_v54 = vld [vmem:[%s21082_s1 + $0x2940] ss:$8 sps:$4 sm:$0xff]   ;;  %v18682_v55 = vld [vmem:[%s21082_s1 + $0xb54] ss:$8 sps:$4 sm:$0xff]  }
 0x34b   : > { %14275 = vmatprep.subr.bf16.mxu0 %v18607_v56  ;;  %v18685_v56 = vld [vmem:[%s21082_s1 + $0x2954] ss:$8 sps:$4 sm:$0xff]  }
 0x34d   : > { %13046 = vmatpush1.bf16.msra.mxu1 %v18602_v59  ;;  %v18680_v59 = vld [vmem:[%s21082_s1 + $0xb50] ss:$8 sps:$4 sm:$0xff]  }
 0x34e   : > { %14276 = vmatpush1.bf16.msra.mxu0 %v18605_v38  ;;  %13047 = vmatprep.subr.bf16.mxu1 %v18610_v41  ;;  %v18683_v38 = vld [vmem:[%s21082_s1 + $0x2950] ss:$8 sps:$4 sm:$0xff]   ;;  %v18688_v41 = vld [vmem:[%s21082_s1 + $0xb64] ss:$8 sps:$4 sm:$0xff]  }
 0x34f   : > { %14277 = vmatprep.subr.bf16.mxu0 %v18613_v60  ;;  %v18691_v60 = vld [vmem:[%s21082_s1 + $0x2964] ss:$8 sps:$4 sm:$0xff]  }
 0x351   : > { %13048 = vmatpush1.bf16.msra.mxu1 %v18608_v61  ;;  %v18686_v61 = vld [vmem:[%s21082_s1 + $0xb60] ss:$8 sps:$4 sm:$0xff]  }
 0x352   : > { %14278 = vmatpush1.bf16.msra.mxu0 %v18611_v62  ;;  %13049 = vmatprep.subr.bf16.mxu1 %v18616_v16  ;;  %v18689_v62 = vld [vmem:[%s21082_s1 + $0x2960] ss:$8 sps:$4 sm:$0xff]   ;;  %v18694_v16 = vld [vmem:[%s21082_s1 + $0xb74] ss:$8 sps:$4 sm:$0xff]  }
 0x353   : > { %14279 = vmatprep.subr.bf16.mxu0 %v18619_v39  ;;  %v18697_v39 = vld [vmem:[%s21082_s1 + $0x2974] ss:$8 sps:$4 sm:$0xff]  }
 0x355   : > { %13050 = vmatpush1.bf16.msra.mxu1 %v18614_v63  ;;  %v18692_v63 = vld [vmem:[%s21082_s1 + $0xb70] ss:$8 sps:$4 sm:$0xff]  }
 0x356   : > { %14280 = vmatpush1.bf16.msra.mxu0 %v18617_v0  ;;  %13051 = vmatprep.subr.bf16.mxu1 %v18622_v1  ;;  %v18695_v0 = vld [vmem:[%s21082_s1 + $0x2970] ss:$8 sps:$4 sm:$0xff]   ;;  %v18700_v1 = vld [vmem:[%s21082_s1 + $0xb84] ss:$8 sps:$4 sm:$0xff]  }
 0x357   : > { %14281 = vmatprep.subr.bf16.mxu0 %v18625_v2  ;;  %v18703_v2 = vld [vmem:[%s21082_s1 + $0x2984] ss:$8 sps:$4 sm:$0xff]  }
 0x359   : > { %13052 = vmatpush1.bf16.msra.mxu1 %v18620_v5  ;;  %v18698_v5 = vld [vmem:[%s21082_s1 + $0xb80] ss:$8 sps:$4 sm:$0xff]  }
 0x35a   : > { %14282 = vmatpush1.bf16.msra.mxu0 %v18623_v6  ;;  %13053 = vmatprep.subr.bf16.mxu1 %v18628_v51  ;;  %v18701_v6 = vld [vmem:[%s21082_s1 + $0x2980] ss:$8 sps:$4 sm:$0xff]   ;;  %v18706_v51 = vld [vmem:[%s21082_s1 + $0xb94] ss:$8 sps:$4 sm:$0xff]  }
 0x35b   : > { %14283 = vmatprep.subr.bf16.mxu0 %v18631_v52  ;;  %v18709_v52 = vld [vmem:[%s21082_s1 + $0x2994] ss:$8 sps:$4 sm:$0xff]  }
 0x35d   : > { %13054 = vmatpush1.bf16.msra.mxu1 %v18626_v46  ;;  %v18704_v46 = vld [vmem:[%s21082_s1 + $0xb90] ss:$8 sps:$4 sm:$0xff]  }
 0x35e   : > { %14284 = vmatpush1.bf16.msra.mxu0 %v18629_v47  ;;  %13055 = vmatprep.subr.bf16.mxu1 %v18634_v9  ;;  %v18707_v47 = vld [vmem:[%s21082_s1 + $0x2990] ss:$8 sps:$4 sm:$0xff]   ;;  %v18712_v9 = vld [vmem:[%s21082_s1 + $0xba4] ss:$8 sps:$4 sm:$0xff]  }
 0x35f   : > { %14285 = vmatprep.subr.bf16.mxu0 %v18637_v10  ;;  %v18715_v10 = vld [vmem:[%s21082_s1 + $0x29a4] ss:$8 sps:$4 sm:$0xff]  }
 0x361   : > { %13056 = vmatpush1.bf16.msra.mxu1 %v18632_v13  ;;  %v18710_v13 = vld [vmem:[%s21082_s1 + $0xba0] ss:$8 sps:$4 sm:$0xff]  }
 0x362   : > { %14286 = vmatpush1.bf16.msra.mxu0 %v18635_v14  ;;  %13057 = vmatprep.subr.bf16.mxu1 %v18640_v17  ;;  %v18713_v14 = vld [vmem:[%s21082_s1 + $0x29a0] ss:$8 sps:$4 sm:$0xff]   ;;  %v18718_v17 = vld [vmem:[%s21082_s1 + $0xbb4] ss:$8 sps:$4 sm:$0xff]  }
 0x363   : > { %14287 = vmatprep.subr.bf16.mxu0 %v18643_v18  ;;  %v18721_v18 = vld [vmem:[%s21082_s1 + $0x29b4] ss:$8 sps:$4 sm:$0xff]  }
 0x365   : > { %13058 = vmatpush1.bf16.msra.mxu1 %v18638_v21  ;;  %v18724_v21 = vld [vmem:[%s21082_s1 + $0xbc4] ss:$8 sps:$4 sm:$0xff]  }
 0x366   : > { %14288 = vmatpush1.bf16.msra.mxu0 %v18641_v22  ;;  %13059 = vmatprep.subr.bf16.mxu1 %v18646_v23  ;;  %v18727_v22 = vld [vmem:[%s21082_s1 + $0x29c4] ss:$8 sps:$4 sm:$0xff]   ;;  %v18722_v23 = vld [vmem:[%s21082_s1 + $0xbc0] ss:$8 sps:$4 sm:$0xff]  }
 0x367   : > { %14289 = vmatprep.subr.bf16.mxu0 %v18649_v24  ;;  %v18725_v24 = vld [vmem:[%s21082_s1 + $0x29c0] ss:$8 sps:$4 sm:$0xff]  }
 0x369   : > { %13060 = vmatpush1.bf16.msra.mxu1 %v18644_v3  ;;  %v18730_v3 = vld [vmem:[%s21082_s1 + $0xbd4] ss:$8 sps:$4 sm:$0xff]  }
 0x36a   : > { %14290 = vmatpush1.bf16.msra.mxu0 %v18647_v4  ;;  %13070 = vmatprep.subr.bf16.mxu1 %v18652_v25  ;;  %v18733_v4 = vld [vmem:[%s21082_s1 + $0x29d4] ss:$8 sps:$4 sm:$0xff]   ;;  %v18728_v25 = vld [vmem:[%s21082_s1 + $0xbd0] ss:$8 sps:$4 sm:$0xff]  }
 0x36b   : > { %14300 = vmatprep.subr.bf16.mxu0 %v18655_v26  ;;  %v18731_v26 = vld [vmem:[%s21082_s1 + $0x29d0] ss:$8 sps:$4 sm:$0xff]  }
 0x36c   : > { %13062 = vmatmul.mubr.bf16.vlgmr.msra.gmra.mrb[0].mxu1 %v998_v29  ;;  %v22091_v29 = vld [vmem:[%s21074_s27 + $0x30] sm:$0xff] }
 0x36d   : > { %14292 = vmatmul.mubr.bf16.vlgmr.msra.gmra.mrb[0].mxu0 %v1058_v30  ;;  %13071 = vmatpush1.bf16.msra.mxu1 %v18650_v31  ;;  %v22094_v30 = vld [vmem:[%s21074_s27 + $0xa8] sm:$0xff] }
 0x36e   : > { %14301 = vmatpush1.bf16.msra.mxu0 %v18653_v32  ;;  %13072 = vmatprep.subr.bf16.mxu1 %v18658_v11  ;;  %v18734_v31 = vld [vmem:[%s21082_s1 + $0xbe0] ss:$8 sps:$4 sm:$0xff]   ;;  %v18742_v11 = vld [vmem:[%s21082_s1 + $0xbf4] ss:$8 sps:$4 sm:$0xff]  }
 0x36f   : > { %14302 = vmatprep.subr.bf16.mxu0 %v18661_v12  ;;  %13102 = vmatprep.mubr.bf16.mxu1 %v1001_v33  ;;  %v18737_v32 = vld [vmem:[%s21082_s1 + $0x29e0] ss:$8 sps:$4 sm:$0xff]   ;;  %v18745_v12 = vld [vmem:[%s21082_s1 + $0x29f4] ss:$8 sps:$4 sm:$0xff]   ;;  %v22102_v33 = vrot.slane %v22091_v29, %v21150_v50 }
 0x370   : > { %14332 = vmatprep.mubr.bf16.mxu0 %v1061_v34  ;;  %v22106_v34 = vrot.slane %v22094_v30, %v21150_v50 }
 0x371   : > { %13073 = vmatpush1.bf16.msra.mxu1 %v18656_v7  ;;  %v18740_v7 = vld [vmem:[%s21082_s1 + $0xbf0] ss:$8 sps:$4 sm:$0xff]  }
 0x372   : > { %14303 = vmatpush1.bf16.msra.mxu0 %v18659_v8  ;;  %13074 = vmatprep.subr.bf16.mxu1 %v18664_v35  ;;  %v18743_v8 = vld [vmem:[%s21082_s1 + $0x29f0] ss:$8 sps:$4 sm:$0xff]   ;;  %v18749_v35 = vld [vmem:[%s21082_s1 + $0xc04] ss:$8 sps:$4 sm:$0xff]  }
 0x373   : > { %14304 = vmatprep.subr.bf16.mxu0 %v18667_v37  ;;  %v18753_v37 = vld [vmem:[%s21082_s1 + $0x2a04] ss:$8 sps:$4 sm:$0xff]  }
 0x375   : > { %13075 = vmatpush1.bf16.msra.mxu1 %v18662_v40  ;;  %v465_v40 = vcombine.high %v22102_v33, %v22102_v33 }
 0x376   : > { %14305 = vmatpush1.bf16.msra.mxu0 %v18665_v42  ;;  %13076 = vmatprep.subr.bf16.mxu1 %v18670_v45  ;;  %v720_v42 = vcombine.high %v22106_v34, %v22106_v34  ;;  %v1000_v45 = vpack.c.bf16 %v22017_v43, %v22017_v43  ;;  %v18754_v43 = vld [vmem:[%s21082_s1 + $0xc10] ss:$8 sps:$4 sm:$0xff]  }
 0x377   : > { %14306 = vmatprep.subr.bf16.mxu0 %v18673_v15  ;;  %v1060_v15 = vpack.c.bf16 %v22020_v36, %v22020_v36  ;;  %v18757_v36 = vld [vmem:[%s21082_s1 + $0x2a10] ss:$8 sps:$4 sm:$0xff]  }
 0x379   : > { %13077 = vmatpush1.bf16.msra.mxu1 %v18668_v19  ;;  %v18747_v19 = vld [vmem:[%s21082_s1 + $0xc00] ss:$8 sps:$4 sm:$0xff]  }
 0x37a   : > { %14307 = vmatpush1.bf16.msra.mxu0 %v18671_v20  ;;  %13078 = vmatprep.subr.bf16.mxu1 %v18676_v48  ;;  %v18751_v20 = vld [vmem:[%s21082_s1 + $0x2a00] ss:$8 sps:$4 sm:$0xff]   ;;  %v18756_v48 = vld [vmem:[%s21082_s1 + $0xc14] ss:$8 sps:$4 sm:$0xff]  }
 0x37b   : > { %14308 = vmatprep.subr.bf16.mxu0 %v18679_v49  ;;  %v18759_v49 = vld [vmem:[%s21082_s1 + $0x2a14] ss:$8 sps:$4 sm:$0xff]  }
 0x37d   : > { %13079 = vmatpush1.bf16.msra.mxu1 %v18674_v53  ;;  %v1003_v53 = vpack.c.bf16 %v465_v40, %v465_v40  ;;  %v18826_v40 = vld [vmem:[%s21082_s1 + $0xcd0] ss:$8 sps:$4 sm:$0xff]  }
 0x37e   : > { %14309 = vmatpush1.bf16.msra.mxu0 %v18677_v54  ;;  %13080 = vmatprep.subr.bf16.mxu1 %v18682_v55  ;;  %v1063_v54 = vpack.c.bf16 %v720_v42, %v720_v42  ;;  %v18762_v55 = vld [vmem:[%s21082_s1 + $0xc24] ss:$8 sps:$4 sm:$0xff]   ;;  %v18829_v42 = vld [vmem:[%s21082_s1 + $0x2ad0] ss:$8 sps:$4 sm:$0xff]  }
 0x37f   : > { %14310 = vmatprep.subr.bf16.mxu0 %v18685_v56  ;;  %v18765_v56 = vld [vmem:[%s21082_s1 + $0x2a24] ss:$8 sps:$4 sm:$0xff]  }
 0x381   : > { %13081 = vmatpush1.bf16.msra.mxu1 %v18680_v59  ;;  %v18760_v59 = vld [vmem:[%s21082_s1 + $0xc20] ss:$8 sps:$4 sm:$0xff]  }
 0x382   : > { %14311 = vmatpush1.bf16.msra.mxu0 %v18683_v38  ;;  %13082 = vmatprep.subr.bf16.mxu1 %v18688_v41  ;;  %v18763_v38 = vld [vmem:[%s21082_s1 + $0x2a20] ss:$8 sps:$4 sm:$0xff]   ;;  %v18768_v41 = vld [vmem:[%s21082_s1 + $0xc34] ss:$8 sps:$4 sm:$0xff]  }
 0x383   : > { %14312 = vmatprep.subr.bf16.mxu0 %v18691_v60  ;;  %v18771_v60 = vld [vmem:[%s21082_s1 + $0x2a34] ss:$8 sps:$4 sm:$0xff]  }
 0x385   : > { %13083 = vmatpush1.bf16.msra.mxu1 %v18686_v61  ;;  %v18766_v61 = vld [vmem:[%s21082_s1 + $0xc30] ss:$8 sps:$4 sm:$0xff]  }
 0x386   : > { %14313 = vmatpush1.bf16.msra.mxu0 %v18689_v62  ;;  %13084 = vmatprep.subr.bf16.mxu1 %v18694_v16  ;;  %v18769_v62 = vld [vmem:[%s21082_s1 + $0x2a30] ss:$8 sps:$4 sm:$0xff]   ;;  %v18774_v16 = vld [vmem:[%s21082_s1 + $0xc44] ss:$8 sps:$4 sm:$0xff]  }
 0x387   : > { %14314 = vmatprep.subr.bf16.mxu0 %v18697_v39  ;;  %v18777_v39 = vld [vmem:[%s21082_s1 + $0x2a44] ss:$8 sps:$4 sm:$0xff]  }
 0x389   : > { %13085 = vmatpush1.bf16.msra.mxu1 %v18692_v63  ;;  %v18772_v63 = vld [vmem:[%s21082_s1 + $0xc40] ss:$8 sps:$4 sm:$0xff]  }
 0x38a   : > { %14315 = vmatpush1.bf16.msra.mxu0 %v18695_v0  ;;  %13086 = vmatprep.subr.bf16.mxu1 %v18700_v1  ;;  %v18775_v0 = vld [vmem:[%s21082_s1 + $0x2a40] ss:$8 sps:$4 sm:$0xff]   ;;  %v18780_v1 = vld [vmem:[%s21082_s1 + $0xc54] ss:$8 sps:$4 sm:$0xff]  }
 0x38b   : > { %14316 = vmatprep.subr.bf16.mxu0 %v18703_v2  ;;  %v18783_v2 = vld [vmem:[%s21082_s1 + $0x2a54] ss:$8 sps:$4 sm:$0xff]  }
 0x38d   : > { %13087 = vmatpush1.bf16.msra.mxu1 %v18698_v5  ;;  %v18778_v5 = vld [vmem:[%s21082_s1 + $0xc50] ss:$8 sps:$4 sm:$0xff]  }
 0x38e   : > { %14317 = vmatpush1.bf16.msra.mxu0 %v18701_v6  ;;  %13088 = vmatprep.subr.bf16.mxu1 %v18706_v51  ;;  %v18781_v6 = vld [vmem:[%s21082_s1 + $0x2a50] ss:$8 sps:$4 sm:$0xff]   ;;  %v18786_v51 = vld [vmem:[%s21082_s1 + $0xc64] ss:$8 sps:$4 sm:$0xff]  }
 0x38f   : > { %14318 = vmatprep.subr.bf16.mxu0 %v18709_v52  ;;  %v18789_v52 = vld [vmem:[%s21082_s1 + $0x2a64] ss:$8 sps:$4 sm:$0xff]  }
 0x391   : > { %13089 = vmatpush1.bf16.msra.mxu1 %v18704_v46  ;;  %v18784_v46 = vld [vmem:[%s21082_s1 + $0xc60] ss:$8 sps:$4 sm:$0xff]  }
 0x392   : > { %14319 = vmatpush1.bf16.msra.mxu0 %v18707_v47  ;;  %13090 = vmatprep.subr.bf16.mxu1 %v18712_v9  ;;  %v18787_v47 = vld [vmem:[%s21082_s1 + $0x2a60] ss:$8 sps:$4 sm:$0xff]   ;;  %v18792_v9 = vld [vmem:[%s21082_s1 + $0xc74] ss:$8 sps:$4 sm:$0xff]  }
 0x393   : > { %14320 = vmatprep.subr.bf16.mxu0 %v18715_v10  ;;  %v18795_v10 = vld [vmem:[%s21082_s1 + $0x2a74] ss:$8 sps:$4 sm:$0xff]  }
 0x395   : > { %13091 = vmatpush1.bf16.msra.mxu1 %v18710_v13  ;;  %v18790_v13 = vld [vmem:[%s21082_s1 + $0xc70] ss:$8 sps:$4 sm:$0xff]  }
 0x396   : > { %14321 = vmatpush1.bf16.msra.mxu0 %v18713_v14  ;;  %13092 = vmatprep.subr.bf16.mxu1 %v18718_v17  ;;  %v18793_v14 = vld [vmem:[%s21082_s1 + $0x2a70] ss:$8 sps:$4 sm:$0xff]   ;;  %v18798_v17 = vld [vmem:[%s21082_s1 + $0xc84] ss:$8 sps:$4 sm:$0xff]  }
 0x397   : > { %14322 = vmatprep.subr.bf16.mxu0 %v18721_v18  ;;  %v18801_v18 = vld [vmem:[%s21082_s1 + $0x2a84] ss:$8 sps:$4 sm:$0xff]  }
 0x399   : > { %13093 = vmatpush1.bf16.msra.mxu1 %v18716_v57  ;;  %v18796_v57 = vld [vmem:[%s21082_s1 + $0xc80] ss:$8 sps:$4 sm:$0xff]  }
 0x39a   : > { %14323 = vmatpush1.bf16.msra.mxu0 %v18719_v58  ;;  %13094 = vmatprep.subr.bf16.mxu1 %v18724_v21  ;;  %v18799_v58 = vld [vmem:[%s21082_s1 + $0x2a80] ss:$8 sps:$4 sm:$0xff]   ;;  %v18804_v21 = vld [vmem:[%s21082_s1 + $0xc94] ss:$8 sps:$4 sm:$0xff]  }
 0x39b   : > { %14324 = vmatprep.subr.bf16.mxu0 %v18727_v22  ;;  %v18807_v22 = vld [vmem:[%s21082_s1 + $0x2a94] ss:$8 sps:$4 sm:$0xff]  }
 0x39d   : > { %13095 = vmatpush1.bf16.msra.mxu1 %v18722_v23  ;;  %v18802_v23 = vld [vmem:[%s21082_s1 + $0xc90] ss:$8 sps:$4 sm:$0xff]  }
 0x39e   : > { %14325 = vmatpush1.bf16.msra.mxu0 %v18725_v24  ;;  %13096 = vmatprep.subr.bf16.mxu1 %v18730_v3  ;;  %v18805_v24 = vld [vmem:[%s21082_s1 + $0x2a90] ss:$8 sps:$4 sm:$0xff]   ;;  %v18810_v3 = vld [vmem:[%s21082_s1 + $0xca4] ss:$8 sps:$4 sm:$0xff]  }
 0x39f   : > { %14326 = vmatprep.subr.bf16.mxu0 %v18733_v4  ;;  %v18813_v4 = vld [vmem:[%s21082_s1 + $0x2aa4] ss:$8 sps:$4 sm:$0xff]  }
 0x3a1   : > { %13097 = vmatpush1.bf16.msra.mxu1 %v18728_v25  ;;  %v18808_v25 = vld [vmem:[%s21082_s1 + $0xca0] ss:$8 sps:$4 sm:$0xff]  }
 0x3a2   : > { %14327 = vmatpush1.bf16.msra.mxu0 %v18731_v26  ;;  %13098 = vmatprep.subr.bf16.mxu1 %v18736_v27  ;;  %v18811_v26 = vld [vmem:[%s21082_s1 + $0x2aa0] ss:$8 sps:$4 sm:$0xff]   ;;  %v18816_v27 = vld [vmem:[%s21082_s1 + $0xcb4] ss:$8 sps:$4 sm:$0xff]  }
 0x3a3   : > { %14328 = vmatprep.subr.bf16.mxu0 %v18739_v28  ;;  %v18819_v28 = vld [vmem:[%s21082_s1 + $0x2ab4] ss:$8 sps:$4 sm:$0xff]  }
 0x3a5   : > { %13099 = vmatpush1.bf16.msra.mxu1 %v18734_v31  ;;  %v18814_v31 = vld [vmem:[%s21082_s1 + $0xcb0] ss:$8 sps:$4 sm:$0xff]  }
 0x3a6   : > { %14329 = vmatpush1.bf16.msra.mxu0 %v18737_v32  ;;  %13100 = vmatprep.subr.bf16.mxu1 %v18742_v11  ;;  %v18817_v32 = vld [vmem:[%s21082_s1 + $0x2ab0] ss:$8 sps:$4 sm:$0xff]   ;;  %v18822_v11 = vld [vmem:[%s21082_s1 + $0xcc4] ss:$8 sps:$4 sm:$0xff]  }
 0x3a7   : > { %14330 = vmatprep.subr.bf16.mxu0 %v18745_v12  ;;  %v18825_v12 = vld [vmem:[%s21082_s1 + $0x2ac4] ss:$8 sps:$4 sm:$0xff]  }
 0x3a9   : > { %13101 = vmatpush1.bf16.msra.mxu1 %v18740_v7  ;;  %v18820_v7 = vld [vmem:[%s21082_s1 + $0xcc0] ss:$8 sps:$4 sm:$0xff]  }
 0x3aa   : > { %14331 = vmatpush1.bf16.msra.mxu0 %v18743_v8  ;;  %13111 = vmatprep.subr.bf16.mxu1 %v18749_v35  ;;  %v18823_v8 = vld [vmem:[%s21082_s1 + $0x2ac0] ss:$8 sps:$4 sm:$0xff]   ;;  %v18828_v35 = vld [vmem:[%s21082_s1 + $0xcd4] ss:$8 sps:$4 sm:$0xff]  }
 0x3ab   : > { %14341 = vmatprep.subr.bf16.mxu0 %v18753_v37  ;;  %v18831_v37 = vld [vmem:[%s21082_s1 + $0x2ad4] ss:$8 sps:$4 sm:$0xff]  }
 0x3ac   : > { %13103 = vmatmul.mubr.bf16.vlgmr.msra.gmra.mrb[0].mxu1 %v1000_v45  ;;  %v18834_v45 = vld [vmem:[%s21082_s1 + $0xce4] ss:$8 sps:$4 sm:$0xff]  }
 0x3ad   : > { %14333 = vmatmul.mubr.bf16.vlgmr.msra.gmra.mrb[0].mxu0 %v1060_v15  ;;  %13112 = vmatpush1.bf16.msra.mxu1 %v18747_v19  ;;  %v18837_v15 = vld [vmem:[%s21082_s1 + $0x2ae4] ss:$8 sps:$4 sm:$0xff]   ;;  %v450_v19 = vcombine.high %v22091_v29, %v22091_v29  ;;  %v18838_v29 = vld [vmem:[%s21082_s1 + $0xcf0] ss:$8 sps:$4 sm:$0xff]  }
 0x3ae   : > { %14342 = vmatpush1.bf16.msra.mxu0 %v18751_v20  ;;  %13113 = vmatprep.subr.bf16.mxu1 %v18756_v48  ;;  %v705_v20 = vcombine.high %v22094_v30, %v22094_v30  ;;  %v18832_v48 = vld [vmem:[%s21082_s1 + $0xce0] ss:$8 sps:$4 sm:$0xff]   ;;  %v18841_v30 = vld [vmem:[%s21082_s1 + $0x2af0] ss:$8 sps:$4 sm:$0xff]  }
 0x3af   : > { %14343 = vmatprep.subr.bf16.mxu0 %v18759_v49  ;;  %13143 = vmatprep.mubr.bf16.mxu1 %v1003_v53  ;;  %v18835_v49 = vld [vmem:[%s21082_s1 + $0x2ae0] ss:$8 sps:$4 sm:$0xff]   ;;  %v18840_v53 = vld [vmem:[%s21082_s1 + $0xcf4] ss:$8 sps:$4 sm:$0xff]  }
 0x3b0   : > { %14373 = vmatprep.mubr.bf16.mxu0 %v1063_v54  ;;  %v18843_v54 = vld [vmem:[%s21082_s1 + $0x2af4] ss:$8 sps:$4 sm:$0xff]  }
 0x3b1   : > { %13114 = vmatpush1.bf16.msra.mxu1 %v18754_v43  ;;  %v22185_v43 = vrot.slane %v450_v19, %v21150_v50  ;;  %v18910_v19 = vld [vmem:[%s21082_s1 + $0xdb0] ss:$8 sps:$4 sm:$0xff]  }
 0x3b2   : > { %14344 = vmatpush1.bf16.msra.mxu0 %v18757_v36  ;;  %13115 = vmatprep.subr.bf16.mxu1 %v18762_v55  ;;  %v22188_v36 = vrot.slane %v705_v20, %v21150_v50  ;;  %v18846_v55 = vld [vmem:[%s21082_s1 + $0xd04] ss:$8 sps:$4 sm:$0xff]   ;;  %v18913_v20 = vld [vmem:[%s21082_s1 + $0x2bb0] ss:$8 sps:$4 sm:$0xff]  }
 0x3b3   : > { %14345 = vmatprep.subr.bf16.mxu0 %v18765_v56  ;;  %v18849_v56 = vld [vmem:[%s21082_s1 + $0x2b04] ss:$8 sps:$4 sm:$0xff]  }
 0x3b5   : > { %13116 = vmatpush1.bf16.msra.mxu1 %v18760_v59  ;;  %v466_v59 = vcombine.high %v22185_v43, %v22185_v43 }
 0x3b6   : > { %14346 = vmatpush1.bf16.msra.mxu0 %v18763_v38  ;;  %13117 = vmatprep.subr.bf16.mxu1 %v18768_v41  ;;  %v721_v38 = vcombine.high %v22188_v36, %v22188_v36  ;;  %v1002_v41 = vpack.c.bf16 %v22102_v33, %v22102_v33  ;;  %v18850_v33 = vld [vmem:[%s21082_s1 + $0xd10] ss:$8 sps:$4 sm:$0xff]  }
 0x3b7   : > { %14347 = vmatprep.subr.bf16.mxu0 %v18771_v60  ;;  %v1062_v60 = vpack.c.bf16 %v22106_v34, %v22106_v34  ;;  %v18853_v34 = vld [vmem:[%s21082_s1 + $0x2b10] ss:$8 sps:$4 sm:$0xff]  }
 0x3b9   : > { %13118 = vmatpush1.bf16.msra.mxu1 %v18766_v61  ;;  %v18844_v61 = vld [vmem:[%s21082_s1 + $0xd00] ss:$8 sps:$4 sm:$0xff]  }
 0x3ba   : > { %14348 = vmatpush1.bf16.msra.mxu0 %v18769_v62  ;;  %13119 = vmatprep.subr.bf16.mxu1 %v18774_v16  ;;  %v18847_v62 = vld [vmem:[%s21082_s1 + $0x2b00] ss:$8 sps:$4 sm:$0xff]   ;;  %v18852_v16 = vld [vmem:[%s21082_s1 + $0xd14] ss:$8 sps:$4 sm:$0xff]  }
 0x3bb   : > { %14349 = vmatprep.subr.bf16.mxu0 %v18777_v39  ;;  %v18855_v39 = vld [vmem:[%s21082_s1 + $0x2b14] ss:$8 sps:$4 sm:$0xff]  }
 0x3bd   : > { %13120 = vmatpush1.bf16.msra.mxu1 %v18772_v63  ;;  %v1005_v63 = vpack.c.bf16 %v466_v59, %v466_v59  ;;  %v18930_v59 = vld [vmem:[%s21082_s1 + $0xde4] ss:$8 sps:$4 sm:$0xff]  }
 0x3be   : > { %14350 = vmatpush1.bf16.msra.mxu0 %v18775_v0  ;;  %13121 = vmatprep.subr.bf16.mxu1 %v18780_v1  ;;  %v1065_v0 = vpack.c.bf16 %v721_v38, %v721_v38  ;;  %v18858_v1 = vld [vmem:[%s21082_s1 + $0xd24] ss:$8 sps:$4 sm:$0xff]  }
 0x3bf   : > { %14351 = vmatprep.subr.bf16.mxu0 %v18783_v2  ;;  %v18861_v2 = vld [vmem:[%s21082_s1 + $0x2b24] ss:$8 sps:$4 sm:$0xff]  }
 0x3c0   : > { %v18933_v38 = vld [vmem:[%s21082_s1 + $0x2be4] ss:$8 sps:$4 sm:$0xff]  }
 0x3c1   : > { %13122 = vmatpush1.bf16.msra.mxu1 %v18778_v5  ;;  %v18856_v5 = vld [vmem:[%s21082_s1 + $0xd20] ss:$8 sps:$4 sm:$0xff]  }
 0x3c2   : > { %14352 = vmatpush1.bf16.msra.mxu0 %v18781_v6  ;;  %13123 = vmatprep.subr.bf16.mxu1 %v18786_v51  ;;  %v18859_v6 = vld [vmem:[%s21082_s1 + $0x2b20] ss:$8 sps:$4 sm:$0xff]   ;;  %v18864_v51 = vld [vmem:[%s21082_s1 + $0xd34] ss:$8 sps:$4 sm:$0xff]  }
 0x3c3   : > { %14353 = vmatprep.subr.bf16.mxu0 %v18789_v52  ;;  %v18867_v52 = vld [vmem:[%s21082_s1 + $0x2b34] ss:$8 sps:$4 sm:$0xff]  }
 0x3c5   : > { %13124 = vmatpush1.bf16.msra.mxu1 %v18784_v46  ;;  %v18862_v46 = vld [vmem:[%s21082_s1 + $0xd30] ss:$8 sps:$4 sm:$0xff]  }
 0x3c6   : > { %14354 = vmatpush1.bf16.msra.mxu0 %v18787_v47  ;;  %13125 = vmatprep.subr.bf16.mxu1 %v18792_v9  ;;  %v18865_v47 = vld [vmem:[%s21082_s1 + $0x2b30] ss:$8 sps:$4 sm:$0xff]   ;;  %v18870_v9 = vld [vmem:[%s21082_s1 + $0xd44] ss:$8 sps:$4 sm:$0xff]  }
 0x3c7   : > { %14355 = vmatprep.subr.bf16.mxu0 %v18795_v10  ;;  %v18873_v10 = vld [vmem:[%s21082_s1 + $0x2b44] ss:$8 sps:$4 sm:$0xff]  }
 0x3c9   : > { %13126 = vmatpush1.bf16.msra.mxu1 %v18790_v13  ;;  %v18868_v13 = vld [vmem:[%s21082_s1 + $0xd40] ss:$8 sps:$4 sm:$0xff]  }
 0x3ca   : > { %14356 = vmatpush1.bf16.msra.mxu0 %v18793_v14  ;;  %13127 = vmatprep.subr.bf16.mxu1 %v18798_v17  ;;  %v18871_v14 = vld [vmem:[%s21082_s1 + $0x2b40] ss:$8 sps:$4 sm:$0xff]   ;;  %v18876_v17 = vld [vmem:[%s21082_s1 + $0xd54] ss:$8 sps:$4 sm:$0xff]  }
 0x3cb   : > { %14357 = vmatprep.subr.bf16.mxu0 %v18801_v18  ;;  %v18879_v18 = vld [vmem:[%s21082_s1 + $0x2b54] ss:$8 sps:$4 sm:$0xff]  }
 0x3cd   : > { %13128 = vmatpush1.bf16.msra.mxu1 %v18796_v57  ;;  %v18874_v57 = vld [vmem:[%s21082_s1 + $0xd50] ss:$8 sps:$4 sm:$0xff]  }
 0x3ce   : > { %14358 = vmatpush1.bf16.msra.mxu0 %v18799_v58  ;;  %13129 = vmatprep.subr.bf16.mxu1 %v18804_v21  ;;  %v18877_v58 = vld [vmem:[%s21082_s1 + $0x2b50] ss:$8 sps:$4 sm:$0xff]   ;;  %v18882_v21 = vld [vmem:[%s21082_s1 + $0xd64] ss:$8 sps:$4 sm:$0xff]  }
 0x3cf   : > { %14359 = vmatprep.subr.bf16.mxu0 %v18807_v22  ;;  %v18885_v22 = vld [vmem:[%s21082_s1 + $0x2b64] ss:$8 sps:$4 sm:$0xff]  }
 0x3d1   : > { %13130 = vmatpush1.bf16.msra.mxu1 %v18802_v23  ;;  %v18880_v23 = vld [vmem:[%s21082_s1 + $0xd60] ss:$8 sps:$4 sm:$0xff]  }
 0x3d2   : > { %14360 = vmatpush1.bf16.msra.mxu0 %v18805_v24  ;;  %13131 = vmatprep.subr.bf16.mxu1 %v18810_v3  ;;  %v18883_v24 = vld [vmem:[%s21082_s1 + $0x2b60] ss:$8 sps:$4 sm:$0xff]   ;;  %v18888_v3 = vld [vmem:[%s21082_s1 + $0xd74] ss:$8 sps:$4 sm:$0xff]  }
 0x3d3   : > { %14361 = vmatprep.subr.bf16.mxu0 %v18813_v4  ;;  %v18891_v4 = vld [vmem:[%s21082_s1 + $0x2b74] ss:$8 sps:$4 sm:$0xff]  }
 0x3d5   : > { %13132 = vmatpush1.bf16.msra.mxu1 %v18808_v25  ;;  %v18886_v25 = vld [vmem:[%s21082_s1 + $0xd70] ss:$8 sps:$4 sm:$0xff]  }
 0x3d6   : > { %14362 = vmatpush1.bf16.msra.mxu0 %v18811_v26  ;;  %13133 = vmatprep.subr.bf16.mxu1 %v18816_v27  ;;  %v18889_v26 = vld [vmem:[%s21082_s1 + $0x2b70] ss:$8 sps:$4 sm:$0xff]   ;;  %v18894_v27 = vld [vmem:[%s21082_s1 + $0xd84] ss:$8 sps:$4 sm:$0xff]  }
 0x3d7   : > { %14363 = vmatprep.subr.bf16.mxu0 %v18819_v28  ;;  %v18897_v28 = vld [vmem:[%s21082_s1 + $0x2b84] ss:$8 sps:$4 sm:$0xff]  }
 0x3d9   : > { %13134 = vmatpush1.bf16.msra.mxu1 %v18814_v31  ;;  %v18892_v31 = vld [vmem:[%s21082_s1 + $0xd80] ss:$8 sps:$4 sm:$0xff]  }
 0x3da   : > { %14364 = vmatpush1.bf16.msra.mxu0 %v18817_v32  ;;  %13135 = vmatprep.subr.bf16.mxu1 %v18822_v11  ;;  %v18895_v32 = vld [vmem:[%s21082_s1 + $0x2b80] ss:$8 sps:$4 sm:$0xff]   ;;  %v18900_v11 = vld [vmem:[%s21082_s1 + $0xd94] ss:$8 sps:$4 sm:$0xff]  }
 0x3db   : > { %14365 = vmatprep.subr.bf16.mxu0 %v18825_v12  ;;  %v18903_v12 = vld [vmem:[%s21082_s1 + $0x2b94] ss:$8 sps:$4 sm:$0xff]  }
 0x3dd   : > { %13136 = vmatpush1.bf16.msra.mxu1 %v18820_v7  ;;  %v18898_v7 = vld [vmem:[%s21082_s1 + $0xd90] ss:$8 sps:$4 sm:$0xff]  }
 0x3de   : > { %14366 = vmatpush1.bf16.msra.mxu0 %v18823_v8  ;;  %13137 = vmatprep.subr.bf16.mxu1 %v18828_v35  ;;  %v18901_v8 = vld [vmem:[%s21082_s1 + $0x2b90] ss:$8 sps:$4 sm:$0xff]   ;;  %v18906_v35 = vld [vmem:[%s21082_s1 + $0xda4] ss:$8 sps:$4 sm:$0xff]  }
 0x3df   : > { %14367 = vmatprep.subr.bf16.mxu0 %v18831_v37  ;;  %v18909_v37 = vld [vmem:[%s21082_s1 + $0x2ba4] ss:$8 sps:$4 sm:$0xff]  }
 0x3e1   : > { %13138 = vmatpush1.bf16.msra.mxu1 %v18826_v40  ;;  %v18904_v40 = vld [vmem:[%s21082_s1 + $0xda0] ss:$8 sps:$4 sm:$0xff]  }
 0x3e2   : > { %14368 = vmatpush1.bf16.msra.mxu0 %v18829_v42  ;;  %13139 = vmatprep.subr.bf16.mxu1 %v18834_v45  ;;  %v18907_v42 = vld [vmem:[%s21082_s1 + $0x2ba0] ss:$8 sps:$4 sm:$0xff]   ;;  %v18912_v45 = vld [vmem:[%s21082_s1 + $0xdb4] ss:$8 sps:$4 sm:$0xff]  }
 0x3e3   : > { %14369 = vmatprep.subr.bf16.mxu0 %v18837_v15  ;;  %v18915_v15 = vld [vmem:[%s21082_s1 + $0x2bb4] ss:$8 sps:$4 sm:$0xff]  }
 0x3e5   : > { %13140 = vmatpush1.bf16.msra.mxu1 %v18832_v48  ;;  %v18918_v48 = vld [vmem:[%s21082_s1 + $0xdc4] ss:$8 sps:$4 sm:$0xff]  }
 0x3e6   : > { %14370 = vmatpush1.bf16.msra.mxu0 %v18835_v49  ;;  %13141 = vmatprep.subr.bf16.mxu1 %v18840_v53  ;;  %v18921_v49 = vld [vmem:[%s21082_s1 + $0x2bc4] ss:$8 sps:$4 sm:$0xff]   ;;  %v18916_v53 = vld [vmem:[%s21082_s1 + $0xdc0] ss:$8 sps:$4 sm:$0xff]  }
 0x3e7   : > { %14371 = vmatprep.subr.bf16.mxu0 %v18843_v54  ;;  %v18919_v54 = vld [vmem:[%s21082_s1 + $0x2bc0] ss:$8 sps:$4 sm:$0xff]  }
 0x3e9   : > { %13142 = vmatpush1.bf16.msra.mxu1 %v18838_v29  ;;  %v18924_v29 = vld [vmem:[%s21082_s1 + $0xdd4] ss:$8 sps:$4 sm:$0xff]  }
 0x3ea   : > { %14372 = vmatpush1.bf16.msra.mxu0 %v18841_v30  ;;  %13152 = vmatprep.subr.bf16.mxu1 %v18846_v55  ;;  %v18927_v30 = vld [vmem:[%s21082_s1 + $0x2bd4] ss:$8 sps:$4 sm:$0xff]   ;;  %v18922_v55 = vld [vmem:[%s21082_s1 + $0xdd0] ss:$8 sps:$4 sm:$0xff]  }
 0x3eb   : > { %14382 = vmatprep.subr.bf16.mxu0 %v18849_v56  ;;  %v18925_v56 = vld [vmem:[%s21082_s1 + $0x2bd0] ss:$8 sps:$4 sm:$0xff]  }
 0x3ec   : > { %13144 = vmatmul.mubr.bf16.vlgmr.msra.gmra.mrb[0].mxu1 %v1002_v41  ;;  %v22259_v41 = vld [vmem:[%s21074_s27 + $0x38] sm:$0xff] }
 0x3ed   : > { %14374 = vmatmul.mubr.bf16.vlgmr.msra.gmra.mrb[0].mxu0 %v1062_v60  ;;  %13153 = vmatpush1.bf16.msra.mxu1 %v18844_v61  ;;  %v22262_v60 = vld [vmem:[%s21074_s27 + $0xb0] sm:$0xff] }
 0x3ee   : > { %14383 = vmatpush1.bf16.msra.mxu0 %v18847_v62  ;;  %13154 = vmatprep.subr.bf16.mxu1 %v18852_v16  ;;  %v18928_v61 = vld [vmem:[%s21082_s1 + $0xde0] ss:$8 sps:$4 sm:$0xff]   ;;  %v18936_v16 = vld [vmem:[%s21082_s1 + $0xdf4] ss:$8 sps:$4 sm:$0xff]  }
 0x3ef   : > { %14384 = vmatprep.subr.bf16.mxu0 %v18855_v39  ;;  %13184 = vmatprep.mubr.bf16.mxu1 %v1005_v63  ;;  %v18931_v62 = vld [vmem:[%s21082_s1 + $0x2be0] ss:$8 sps:$4 sm:$0xff]   ;;  %v18939_v39 = vld [vmem:[%s21082_s1 + $0x2bf4] ss:$8 sps:$4 sm:$0xff]   ;;  %v22270_v63 = vrot.slane %v22259_v41, %v21150_v50 }
 0x3f0   : > { %14414 = vmatprep.mubr.bf16.mxu0 %v1065_v0  ;;  %v22274_v0 = vrot.slane %v22262_v60, %v21150_v50 }
 0x3f1   : > { %13155 = vmatpush1.bf16.msra.mxu1 %v18850_v33  ;;  %v18934_v33 = vld [vmem:[%s21082_s1 + $0xdf0] ss:$8 sps:$4 sm:$0xff]  }
 0x3f2   : > { %14385 = vmatpush1.bf16.msra.mxu0 %v18853_v34  ;;  %13156 = vmatprep.subr.bf16.mxu1 %v18858_v1  ;;  %v18937_v34 = vld [vmem:[%s21082_s1 + $0x2bf0] ss:$8 sps:$4 sm:$0xff]   ;;  %v18943_v1 = vld [vmem:[%s21082_s1 + $0xe04] ss:$8 sps:$4 sm:$0xff]  }
 0x3f3   : > { %14386 = vmatprep.subr.bf16.mxu0 %v18861_v2  ;;  %v18947_v2 = vld [vmem:[%s21082_s1 + $0x2c04] ss:$8 sps:$4 sm:$0xff]  }
 0x3f5   : > { %13157 = vmatpush1.bf16.msra.mxu1 %v18856_v5  ;;  %v482_v5 = vcombine.high %v22270_v63, %v22270_v63 }
 0x3f6   : > { %14387 = vmatpush1.bf16.msra.mxu0 %v18859_v6  ;;  %13158 = vmatprep.subr.bf16.mxu1 %v18864_v51  ;;  %v737_v6 = vcombine.high %v22274_v0, %v22274_v0  ;;  %v1004_v51 = vpack.c.bf16 %v22185_v43, %v22185_v43  ;;  %v18948_v43 = vld [vmem:[%s21082_s1 + $0xe10] ss:$8 sps:$4 sm:$0xff]  }
 0x3f7   : > { %14388 = vmatprep.subr.bf16.mxu0 %v18867_v52  ;;  %v1064_v52 = vpack.c.bf16 %v22188_v36, %v22188_v36  ;;  %v18951_v36 = vld [vmem:[%s21082_s1 + $0x2c10] ss:$8 sps:$4 sm:$0xff]  }
 0x3f9   : > { %13159 = vmatpush1.bf16.msra.mxu1 %v18862_v46  ;;  %v18941_v46 = vld [vmem:[%s21082_s1 + $0xe00] ss:$8 sps:$4 sm:$0xff]  }
 0x3fa   : > { %14389 = vmatpush1.bf16.msra.mxu0 %v18865_v47  ;;  %13160 = vmatprep.subr.bf16.mxu1 %v18870_v9  ;;  %v18945_v47 = vld [vmem:[%s21082_s1 + $0x2c00] ss:$8 sps:$4 sm:$0xff]   ;;  %v18950_v9 = vld [vmem:[%s21082_s1 + $0xe14] ss:$8 sps:$4 sm:$0xff]  }
 0x3fb   : > { %14390 = vmatprep.subr.bf16.mxu0 %v18873_v10  ;;  %v18953_v10 = vld [vmem:[%s21082_s1 + $0x2c14] ss:$8 sps:$4 sm:$0xff]  }
 0x3fd   : > { %13161 = vmatpush1.bf16.msra.mxu1 %v18868_v13  ;;  %v1007_v13 = vpack.c.bf16 %v482_v5, %v482_v5  ;;  %v19020_v5 = vld [vmem:[%s21082_s1 + $0xed0] ss:$8 sps:$4 sm:$0xff]  }
 0x3fe   : > { %14391 = vmatpush1.bf16.msra.mxu0 %v18871_v14  ;;  %13162 = vmatprep.subr.bf16.mxu1 %v18876_v17  ;;  %v1067_v14 = vpack.c.bf16 %v737_v6, %v737_v6  ;;  %v18956_v17 = vld [vmem:[%s21082_s1 + $0xe24] ss:$8 sps:$4 sm:$0xff]   ;;  %v19023_v6 = vld [vmem:[%s21082_s1 + $0x2cd0] ss:$8 sps:$4 sm:$0xff]  }
 0x3ff   : > { %14392 = vmatprep.subr.bf16.mxu0 %v18879_v18  ;;  %v18959_v18 = vld [vmem:[%s21082_s1 + $0x2c24] ss:$8 sps:$4 sm:$0xff]  }
 0x401   : > { %13163 = vmatpush1.bf16.msra.mxu1 %v18874_v57  ;;  %v18954_v57 = vld [vmem:[%s21082_s1 + $0xe20] ss:$8 sps:$4 sm:$0xff]  }
 0x402   : > { %14393 = vmatpush1.bf16.msra.mxu0 %v18877_v58  ;;  %13164 = vmatprep.subr.bf16.mxu1 %v18882_v21  ;;  %v18957_v58 = vld [vmem:[%s21082_s1 + $0x2c20] ss:$8 sps:$4 sm:$0xff]   ;;  %v18962_v21 = vld [vmem:[%s21082_s1 + $0xe34] ss:$8 sps:$4 sm:$0xff]  }
 0x403   : > { %14394 = vmatprep.subr.bf16.mxu0 %v18885_v22  ;;  %v18965_v22 = vld [vmem:[%s21082_s1 + $0x2c34] ss:$8 sps:$4 sm:$0xff]  }
 0x405   : > { %13165 = vmatpush1.bf16.msra.mxu1 %v18880_v23  ;;  %v18960_v23 = vld [vmem:[%s21082_s1 + $0xe30] ss:$8 sps:$4 sm:$0xff]  }
 0x406   : > { %14395 = vmatpush1.bf16.msra.mxu0 %v18883_v24  ;;  %13166 = vmatprep.subr.bf16.mxu1 %v18888_v3  ;;  %v18963_v24 = vld [vmem:[%s21082_s1 + $0x2c30] ss:$8 sps:$4 sm:$0xff]   ;;  %v18968_v3 = vld [vmem:[%s21082_s1 + $0xe44] ss:$8 sps:$4 sm:$0xff]  }
 0x407   : > { %14396 = vmatprep.subr.bf16.mxu0 %v18891_v4  ;;  %v18971_v4 = vld [vmem:[%s21082_s1 + $0x2c44] ss:$8 sps:$4 sm:$0xff]  }
 0x409   : > { %13167 = vmatpush1.bf16.msra.mxu1 %v18886_v25  ;;  %v18966_v25 = vld [vmem:[%s21082_s1 + $0xe40] ss:$8 sps:$4 sm:$0xff]  }
 0x40a   : > { %14397 = vmatpush1.bf16.msra.mxu0 %v18889_v26  ;;  %13168 = vmatprep.subr.bf16.mxu1 %v18894_v27  ;;  %v18969_v26 = vld [vmem:[%s21082_s1 + $0x2c40] ss:$8 sps:$4 sm:$0xff]   ;;  %v18974_v27 = vld [vmem:[%s21082_s1 + $0xe54] ss:$8 sps:$4 sm:$0xff]  }
 0x40b   : > { %14398 = vmatprep.subr.bf16.mxu0 %v18897_v28  ;;  %v18977_v28 = vld [vmem:[%s21082_s1 + $0x2c54] ss:$8 sps:$4 sm:$0xff]  }
 0x40d   : > { %13169 = vmatpush1.bf16.msra.mxu1 %v18892_v31  ;;  %v18972_v31 = vld [vmem:[%s21082_s1 + $0xe50] ss:$8 sps:$4 sm:$0xff]  }
 0x40e   : > { %14399 = vmatpush1.bf16.msra.mxu0 %v18895_v32  ;;  %13170 = vmatprep.subr.bf16.mxu1 %v18900_v11  ;;  %v18975_v32 = vld [vmem:[%s21082_s1 + $0x2c50] ss:$8 sps:$4 sm:$0xff]   ;;  %v18980_v11 = vld [vmem:[%s21082_s1 + $0xe64] ss:$8 sps:$4 sm:$0xff]  }
 0x40f   : > { %14400 = vmatprep.subr.bf16.mxu0 %v18903_v12  ;;  %v18983_v12 = vld [vmem:[%s21082_s1 + $0x2c64] ss:$8 sps:$4 sm:$0xff]  }
 0x411   : > { %13171 = vmatpush1.bf16.msra.mxu1 %v18898_v7  ;;  %v18978_v7 = vld [vmem:[%s21082_s1 + $0xe60] ss:$8 sps:$4 sm:$0xff]  }
 0x412   : > { %14401 = vmatpush1.bf16.msra.mxu0 %v18901_v8  ;;  %13172 = vmatprep.subr.bf16.mxu1 %v18906_v35  ;;  %v18981_v8 = vld [vmem:[%s21082_s1 + $0x2c60] ss:$8 sps:$4 sm:$0xff]   ;;  %v18986_v35 = vld [vmem:[%s21082_s1 + $0xe74] ss:$8 sps:$4 sm:$0xff]  }
 0x413   : > { %14402 = vmatprep.subr.bf16.mxu0 %v18909_v37  ;;  %v18989_v37 = vld [vmem:[%s21082_s1 + $0x2c74] ss:$8 sps:$4 sm:$0xff]  }
 0x415   : > { %13173 = vmatpush1.bf16.msra.mxu1 %v18904_v40  ;;  %v18984_v40 = vld [vmem:[%s21082_s1 + $0xe70] ss:$8 sps:$4 sm:$0xff]  }
 0x416   : > { %14403 = vmatpush1.bf16.msra.mxu0 %v18907_v42  ;;  %13174 = vmatprep.subr.bf16.mxu1 %v18912_v45  ;;  %v18987_v42 = vld [vmem:[%s21082_s1 + $0x2c70] ss:$8 sps:$4 sm:$0xff]   ;;  %v18992_v45 = vld [vmem:[%s21082_s1 + $0xe84] ss:$8 sps:$4 sm:$0xff]  }
 0x417   : > { %14404 = vmatprep.subr.bf16.mxu0 %v18915_v15  ;;  %v18995_v15 = vld [vmem:[%s21082_s1 + $0x2c84] ss:$8 sps:$4 sm:$0xff]  }
 0x419   : > { %13175 = vmatpush1.bf16.msra.mxu1 %v18910_v19  ;;  %v18990_v19 = vld [vmem:[%s21082_s1 + $0xe80] ss:$8 sps:$4 sm:$0xff]  }
 0x41a   : > { %14405 = vmatpush1.bf16.msra.mxu0 %v18913_v20  ;;  %13176 = vmatprep.subr.bf16.mxu1 %v18918_v48  ;;  %v18993_v20 = vld [vmem:[%s21082_s1 + $0x2c80] ss:$8 sps:$4 sm:$0xff]   ;;  %v18998_v48 = vld [vmem:[%s21082_s1 + $0xe94] ss:$8 sps:$4 sm:$0xff]  }
 0x41b   : > { %14406 = vmatprep.subr.bf16.mxu0 %v18921_v49  ;;  %v19001_v49 = vld [vmem:[%s21082_s1 + $0x2c94] ss:$8 sps:$4 sm:$0xff]  }
 0x41d   : > { %13177 = vmatpush1.bf16.msra.mxu1 %v18916_v53  ;;  %v18996_v53 = vld [vmem:[%s21082_s1 + $0xe90] ss:$8 sps:$4 sm:$0xff]  }
 0x41e   : > { %14407 = vmatpush1.bf16.msra.mxu0 %v18919_v54  ;;  %13178 = vmatprep.subr.bf16.mxu1 %v18924_v29  ;;  %v18999_v54 = vld [vmem:[%s21082_s1 + $0x2c90] ss:$8 sps:$4 sm:$0xff]   ;;  %v19004_v29 = vld [vmem:[%s21082_s1 + $0xea4] ss:$8 sps:$4 sm:$0xff]  }
 0x41f   : > { %14408 = vmatprep.subr.bf16.mxu0 %v18927_v30  ;;  %v19007_v30 = vld [vmem:[%s21082_s1 + $0x2ca4] ss:$8 sps:$4 sm:$0xff]  }
 0x421   : > { %13179 = vmatpush1.bf16.msra.mxu1 %v18922_v55  ;;  %v19002_v55 = vld [vmem:[%s21082_s1 + $0xea0] ss:$8 sps:$4 sm:$0xff]  }
 0x422   : > { %14409 = vmatpush1.bf16.msra.mxu0 %v18925_v56  ;;  %13180 = vmatprep.subr.bf16.mxu1 %v18930_v59  ;;  %v19005_v56 = vld [vmem:[%s21082_s1 + $0x2ca0] ss:$8 sps:$4 sm:$0xff]   ;;  %v19010_v59 = vld [vmem:[%s21082_s1 + $0xeb4] ss:$8 sps:$4 sm:$0xff]  }
 0x423   : > { %14410 = vmatprep.subr.bf16.mxu0 %v18933_v38  ;;  %v19013_v38 = vld [vmem:[%s21082_s1 + $0x2cb4] ss:$8 sps:$4 sm:$0xff]  }
 0x425   : > { %13181 = vmatpush1.bf16.msra.mxu1 %v18928_v61  ;;  %v19008_v61 = vld [vmem:[%s21082_s1 + $0xeb0] ss:$8 sps:$4 sm:$0xff]  }
 0x426   : > { %14411 = vmatpush1.bf16.msra.mxu0 %v18931_v62  ;;  %13182 = vmatprep.subr.bf16.mxu1 %v18936_v16  ;;  %v19011_v62 = vld [vmem:[%s21082_s1 + $0x2cb0] ss:$8 sps:$4 sm:$0xff]   ;;  %v19016_v16 = vld [vmem:[%s21082_s1 + $0xec4] ss:$8 sps:$4 sm:$0xff]  }
 0x427   : > { %14412 = vmatprep.subr.bf16.mxu0 %v18939_v39  ;;  %v19019_v39 = vld [vmem:[%s21082_s1 + $0x2cc4] ss:$8 sps:$4 sm:$0xff]  }
 0x429   : > { %13183 = vmatpush1.bf16.msra.mxu1 %v18934_v33  ;;  %v19014_v33 = vld [vmem:[%s21082_s1 + $0xec0] ss:$8 sps:$4 sm:$0xff]  }
 0x42a   : > { %14413 = vmatpush1.bf16.msra.mxu0 %v18937_v34  ;;  %13193 = vmatprep.subr.bf16.mxu1 %v18943_v1  ;;  %v19017_v34 = vld [vmem:[%s21082_s1 + $0x2cc0] ss:$8 sps:$4 sm:$0xff]   ;;  %v19022_v1 = vld [vmem:[%s21082_s1 + $0xed4] ss:$8 sps:$4 sm:$0xff]  }
 0x42b   : > { %14423 = vmatprep.subr.bf16.mxu0 %v18947_v2  ;;  %v19025_v2 = vld [vmem:[%s21082_s1 + $0x2cd4] ss:$8 sps:$4 sm:$0xff]  }
 0x42c   : > { %13185 = vmatmul.mubr.bf16.vlgmr.msra.gmra.mrb[0].mxu1 %v1004_v51  ;;  %v19028_v51 = vld [vmem:[%s21082_s1 + $0xee4] ss:$8 sps:$4 sm:$0xff]  }
 0x42d   : > { %14415 = vmatmul.mubr.bf16.vlgmr.msra.gmra.mrb[0].mxu0 %v1064_v52  ;;  %13194 = vmatpush1.bf16.msra.mxu1 %v18941_v46  ;;  %v19031_v52 = vld [vmem:[%s21082_s1 + $0x2ce4] ss:$8 sps:$4 sm:$0xff]   ;;  %v467_v46 = vcombine.high %v22259_v41, %v22259_v41  ;;  %v19032_v41 = vld [vmem:[%s21082_s1 + $0xef0] ss:$8 sps:$4 sm:$0xff]  }
 0x42e   : > { %14424 = vmatpush1.bf16.msra.mxu0 %v18945_v47  ;;  %13195 = vmatprep.subr.bf16.mxu1 %v18950_v9  ;;  %v722_v47 = vcombine.high %v22262_v60, %v22262_v60  ;;  %v19026_v9 = vld [vmem:[%s21082_s1 + $0xee0] ss:$8 sps:$4 sm:$0xff]   ;;  %v19035_v60 = vld [vmem:[%s21082_s1 + $0x2cf0] ss:$8 sps:$4 sm:$0xff]  }
 0x42f   : > { %14425 = vmatprep.subr.bf16.mxu0 %v18953_v10  ;;  %13225 = vmatprep.mubr.bf16.mxu1 %v1007_v13  ;;  %v19029_v10 = vld [vmem:[%s21082_s1 + $0x2ce0] ss:$8 sps:$4 sm:$0xff]   ;;  %v19034_v13 = vld [vmem:[%s21082_s1 + $0xef4] ss:$8 sps:$4 sm:$0xff]  }
 0x430   : > { %14455 = vmatprep.mubr.bf16.mxu0 %v1067_v14  ;;  %v19037_v14 = vld [vmem:[%s21082_s1 + $0x2cf4] ss:$8 sps:$4 sm:$0xff]  }
 0x431   : > { %13196 = vmatpush1.bf16.msra.mxu1 %v18948_v43  ;;  %v22353_v43 = vrot.slane %v467_v46, %v21150_v50  ;;  %v19104_v46 = vld [vmem:[%s21082_s1 + $0xfb0] ss:$8 sps:$4 sm:$0xff]  }
 0x432   : > { %14426 = vmatpush1.bf16.msra.mxu0 %v18951_v36  ;;  %13197 = vmatprep.subr.bf16.mxu1 %v18956_v17  ;;  %v22356_v36 = vrot.slane %v722_v47, %v21150_v50  ;;  %v19040_v17 = vld [vmem:[%s21082_s1 + $0xf04] ss:$8 sps:$4 sm:$0xff]   ;;  %v19107_v47 = vld [vmem:[%s21082_s1 + $0x2db0] ss:$8 sps:$4 sm:$0xff]  }
 0x433   : > { %14427 = vmatprep.subr.bf16.mxu0 %v18959_v18  ;;  %v19043_v18 = vld [vmem:[%s21082_s1 + $0x2d04] ss:$8 sps:$4 sm:$0xff]  }
 0x435   : > { %13198 = vmatpush1.bf16.msra.mxu1 %v18954_v57  ;;  %v483_v57 = vcombine.high %v22353_v43, %v22353_v43 }
 0x436   : > { %14428 = vmatpush1.bf16.msra.mxu0 %v18957_v58  ;;  %13199 = vmatprep.subr.bf16.mxu1 %v18962_v21  ;;  %v738_v58 = vcombine.high %v22356_v36, %v22356_v36  ;;  %v1006_v21 = vpack.c.bf16 %v22270_v63, %v22270_v63  ;;  %v19044_v63 = vld [vmem:[%s21082_s1 + $0xf10] ss:$8 sps:$4 sm:$0xff]  }
 0x437   : > { %14429 = vmatprep.subr.bf16.mxu0 %v18965_v22  ;;  %v1066_v22 = vpack.c.bf16 %v22274_v0, %v22274_v0  ;;  %v19047_v0 = vld [vmem:[%s21082_s1 + $0x2d10] ss:$8 sps:$4 sm:$0xff]  }
 0x439   : > { %13200 = vmatpush1.bf16.msra.mxu1 %v18960_v23  ;;  %v19038_v23 = vld [vmem:[%s21082_s1 + $0xf00] ss:$8 sps:$4 sm:$0xff]  }
 0x43a   : > { %14430 = vmatpush1.bf16.msra.mxu0 %v18963_v24  ;;  %13201 = vmatprep.subr.bf16.mxu1 %v18968_v3  ;;  %v19041_v24 = vld [vmem:[%s21082_s1 + $0x2d00] ss:$8 sps:$4 sm:$0xff]   ;;  %v19046_v3 = vld [vmem:[%s21082_s1 + $0xf14] ss:$8 sps:$4 sm:$0xff]  }
 0x43b   : > { %14431 = vmatprep.subr.bf16.mxu0 %v18971_v4  ;;  %v19049_v4 = vld [vmem:[%s21082_s1 + $0x2d14] ss:$8 sps:$4 sm:$0xff]  }
 0x43d   : > { %13202 = vmatpush1.bf16.msra.mxu1 %v18966_v25  ;;  %v1009_v25 = vpack.c.bf16 %v483_v57, %v483_v57  ;;  %v19124_v57 = vld [vmem:[%s21082_s1 + $0xfe4] ss:$8 sps:$4 sm:$0xff]  }
 0x43e   : > { %14432 = vmatpush1.bf16.msra.mxu0 %v18969_v26  ;;  %13203 = vmatprep.subr.bf16.mxu1 %v18974_v27  ;;  %v1069_v26 = vpack.c.bf16 %v738_v58, %v738_v58  ;;  %v19052_v27 = vld [vmem:[%s21082_s1 + $0xf24] ss:$8 sps:$4 sm:$0xff]  }
 0x43f   : > { %14433 = vmatprep.subr.bf16.mxu0 %v18977_v28  ;;  %v19055_v28 = vld [vmem:[%s21082_s1 + $0x2d24] ss:$8 sps:$4 sm:$0xff]  }
 0x440   : > { %v19127_v58 = vld [vmem:[%s21082_s1 + $0x2de4] ss:$8 sps:$4 sm:$0xff]  }
 0x441   : > { %13204 = vmatpush1.bf16.msra.mxu1 %v18972_v31  ;;  %v19050_v31 = vld [vmem:[%s21082_s1 + $0xf20] ss:$8 sps:$4 sm:$0xff]  }
 0x442   : > { %14434 = vmatpush1.bf16.msra.mxu0 %v18975_v32  ;;  %13205 = vmatprep.subr.bf16.mxu1 %v18980_v11  ;;  %v19053_v32 = vld [vmem:[%s21082_s1 + $0x2d20] ss:$8 sps:$4 sm:$0xff]   ;;  %v19058_v11 = vld [vmem:[%s21082_s1 + $0xf34] ss:$8 sps:$4 sm:$0xff]  }
 0x443   : > { %14435 = vmatprep.subr.bf16.mxu0 %v18983_v12  ;;  %v19061_v12 = vld [vmem:[%s21082_s1 + $0x2d34] ss:$8 sps:$4 sm:$0xff]  }
 0x445   : > { %13206 = vmatpush1.bf16.msra.mxu1 %v18978_v7  ;;  %v19056_v7 = vld [vmem:[%s21082_s1 + $0xf30] ss:$8 sps:$4 sm:$0xff]  }
 0x446   : > { %14436 = vmatpush1.bf16.msra.mxu0 %v18981_v8  ;;  %13207 = vmatprep.subr.bf16.mxu1 %v18986_v35  ;;  %v19059_v8 = vld [vmem:[%s21082_s1 + $0x2d30] ss:$8 sps:$4 sm:$0xff]   ;;  %v19064_v35 = vld [vmem:[%s21082_s1 + $0xf44] ss:$8 sps:$4 sm:$0xff]  }
 0x447   : > { %14437 = vmatprep.subr.bf16.mxu0 %v18989_v37  ;;  %v19067_v37 = vld [vmem:[%s21082_s1 + $0x2d44] ss:$8 sps:$4 sm:$0xff]  }
 0x449   : > { %13208 = vmatpush1.bf16.msra.mxu1 %v18984_v40  ;;  %v19062_v40 = vld [vmem:[%s21082_s1 + $0xf40] ss:$8 sps:$4 sm:$0xff]  }
 0x44a   : > { %14438 = vmatpush1.bf16.msra.mxu0 %v18987_v42  ;;  %13209 = vmatprep.subr.bf16.mxu1 %v18992_v45  ;;  %v19065_v42 = vld [vmem:[%s21082_s1 + $0x2d40] ss:$8 sps:$4 sm:$0xff]   ;;  %v19070_v45 = vld [vmem:[%s21082_s1 + $0xf54] ss:$8 sps:$4 sm:$0xff]  }
 0x44b   : > { %14439 = vmatprep.subr.bf16.mxu0 %v18995_v15  ;;  %v19073_v15 = vld [vmem:[%s21082_s1 + $0x2d54] ss:$8 sps:$4 sm:$0xff]  }
 0x44d   : > { %13210 = vmatpush1.bf16.msra.mxu1 %v18990_v19  ;;  %v19068_v19 = vld [vmem:[%s21082_s1 + $0xf50] ss:$8 sps:$4 sm:$0xff]  }
 0x44e   : > { %14440 = vmatpush1.bf16.msra.mxu0 %v18993_v20  ;;  %13211 = vmatprep.subr.bf16.mxu1 %v18998_v48  ;;  %v19071_v20 = vld [vmem:[%s21082_s1 + $0x2d50] ss:$8 sps:$4 sm:$0xff]   ;;  %v19076_v48 = vld [vmem:[%s21082_s1 + $0xf64] ss:$8 sps:$4 sm:$0xff]  }
 0x44f   : > { %14441 = vmatprep.subr.bf16.mxu0 %v19001_v49  ;;  %v19079_v49 = vld [vmem:[%s21082_s1 + $0x2d64] ss:$8 sps:$4 sm:$0xff]  }
 0x451   : > { %13212 = vmatpush1.bf16.msra.mxu1 %v18996_v53  ;;  %v19074_v53 = vld [vmem:[%s21082_s1 + $0xf60] ss:$8 sps:$4 sm:$0xff]  }
 0x452   : > { %14442 = vmatpush1.bf16.msra.mxu0 %v18999_v54  ;;  %13213 = vmatprep.subr.bf16.mxu1 %v19004_v29  ;;  %v19077_v54 = vld [vmem:[%s21082_s1 + $0x2d60] ss:$8 sps:$4 sm:$0xff]   ;;  %v19082_v29 = vld [vmem:[%s21082_s1 + $0xf74] ss:$8 sps:$4 sm:$0xff]  }
 0x453   : > { %14443 = vmatprep.subr.bf16.mxu0 %v19007_v30  ;;  %v19085_v30 = vld [vmem:[%s21082_s1 + $0x2d74] ss:$8 sps:$4 sm:$0xff]  }
 0x455   : > { %13214 = vmatpush1.bf16.msra.mxu1 %v19002_v55  ;;  %v19080_v55 = vld [vmem:[%s21082_s1 + $0xf70] ss:$8 sps:$4 sm:$0xff]  }
 0x456   : > { %14444 = vmatpush1.bf16.msra.mxu0 %v19005_v56  ;;  %13215 = vmatprep.subr.bf16.mxu1 %v19010_v59  ;;  %v19083_v56 = vld [vmem:[%s21082_s1 + $0x2d70] ss:$8 sps:$4 sm:$0xff]   ;;  %v19088_v59 = vld [vmem:[%s21082_s1 + $0xf84] ss:$8 sps:$4 sm:$0xff]  }
 0x457   : > { %14445 = vmatprep.subr.bf16.mxu0 %v19013_v38  ;;  %v19091_v38 = vld [vmem:[%s21082_s1 + $0x2d84] ss:$8 sps:$4 sm:$0xff]  }
 0x459   : > { %13216 = vmatpush1.bf16.msra.mxu1 %v19008_v61  ;;  %v19086_v61 = vld [vmem:[%s21082_s1 + $0xf80] ss:$8 sps:$4 sm:$0xff]  }
 0x45a   : > { %14446 = vmatpush1.bf16.msra.mxu0 %v19011_v62  ;;  %13217 = vmatprep.subr.bf16.mxu1 %v19016_v16  ;;  %v19089_v62 = vld [vmem:[%s21082_s1 + $0x2d80] ss:$8 sps:$4 sm:$0xff]   ;;  %v19094_v16 = vld [vmem:[%s21082_s1 + $0xf94] ss:$8 sps:$4 sm:$0xff]  }
 0x45b   : > { %14447 = vmatprep.subr.bf16.mxu0 %v19019_v39  ;;  %v19097_v39 = vld [vmem:[%s21082_s1 + $0x2d94] ss:$8 sps:$4 sm:$0xff]  }
 0x45d   : > { %13218 = vmatpush1.bf16.msra.mxu1 %v19014_v33  ;;  %v19092_v33 = vld [vmem:[%s21082_s1 + $0xf90] ss:$8 sps:$4 sm:$0xff]  }
 0x45e   : > { %14448 = vmatpush1.bf16.msra.mxu0 %v19017_v34  ;;  %13219 = vmatprep.subr.bf16.mxu1 %v19022_v1  ;;  %v19095_v34 = vld [vmem:[%s21082_s1 + $0x2d90] ss:$8 sps:$4 sm:$0xff]   ;;  %v19100_v1 = vld [vmem:[%s21082_s1 + $0xfa4] ss:$8 sps:$4 sm:$0xff]  }
 0x45f   : > { %14449 = vmatprep.subr.bf16.mxu0 %v19025_v2  ;;  %v19103_v2 = vld [vmem:[%s21082_s1 + $0x2da4] ss:$8 sps:$4 sm:$0xff]  }
 0x461   : > { %13220 = vmatpush1.bf16.msra.mxu1 %v19020_v5  ;;  %v19098_v5 = vld [vmem:[%s21082_s1 + $0xfa0] ss:$8 sps:$4 sm:$0xff]  }
 0x462   : > { %14450 = vmatpush1.bf16.msra.mxu0 %v19023_v6  ;;  %13221 = vmatprep.subr.bf16.mxu1 %v19028_v51  ;;  %v19101_v6 = vld [vmem:[%s21082_s1 + $0x2da0] ss:$8 sps:$4 sm:$0xff]   ;;  %v19106_v51 = vld [vmem:[%s21082_s1 + $0xfb4] ss:$8 sps:$4 sm:$0xff]  }
 0x463   : > { %14451 = vmatprep.subr.bf16.mxu0 %v19031_v52  ;;  %v19109_v52 = vld [vmem:[%s21082_s1 + $0x2db4] ss:$8 sps:$4 sm:$0xff]  }
 0x465   : > { %13222 = vmatpush1.bf16.msra.mxu1 %v19026_v9  ;;  %v19112_v9 = vld [vmem:[%s21082_s1 + $0xfc4] ss:$8 sps:$4 sm:$0xff]  }
 0x466   : > { %14452 = vmatpush1.bf16.msra.mxu0 %v19029_v10  ;;  %13223 = vmatprep.subr.bf16.mxu1 %v19034_v13  ;;  %v19115_v10 = vld [vmem:[%s21082_s1 + $0x2dc4] ss:$8 sps:$4 sm:$0xff]   ;;  %v19110_v13 = vld [vmem:[%s21082_s1 + $0xfc0] ss:$8 sps:$4 sm:$0xff]  }
 0x467   : > { %14453 = vmatprep.subr.bf16.mxu0 %v19037_v14  ;;  %v19113_v14 = vld [vmem:[%s21082_s1 + $0x2dc0] ss:$8 sps:$4 sm:$0xff]  }
 0x469   : > { %13224 = vmatpush1.bf16.msra.mxu1 %v19032_v41  ;;  %v19118_v41 = vld [vmem:[%s21082_s1 + $0xfd4] ss:$8 sps:$4 sm:$0xff]  }
 0x46a   : > { %14454 = vmatpush1.bf16.msra.mxu0 %v19035_v60  ;;  %13234 = vmatprep.subr.bf16.mxu1 %v19040_v17  ;;  %v19121_v60 = vld [vmem:[%s21082_s1 + $0x2dd4] ss:$8 sps:$4 sm:$0xff]   ;;  %v19116_v17 = vld [vmem:[%s21082_s1 + $0xfd0] ss:$8 sps:$4 sm:$0xff]  }
 0x46b   : > { %14464 = vmatprep.subr.bf16.mxu0 %v19043_v18  ;;  %v19119_v18 = vld [vmem:[%s21082_s1 + $0x2dd0] ss:$8 sps:$4 sm:$0xff]  }
 0x46c   : > { %13226 = vmatmul.mubr.bf16.vlgmr.msra.gmra.mrb[0].mxu1 %v1006_v21  ;;  %v22427_v21 = vld [vmem:[%s21074_s27 + $0x40] sm:$0xff] }
 0x46d   : > { %14456 = vmatmul.mubr.bf16.vlgmr.msra.gmra.mrb[0].mxu0 %v1066_v22  ;;  %13235 = vmatpush1.bf16.msra.mxu1 %v19038_v23  ;;  %v22430_v22 = vld [vmem:[%s21074_s27 + $0xb8] sm:$0xff] }
 0x46e   : > { %14465 = vmatpush1.bf16.msra.mxu0 %v19041_v24  ;;  %13236 = vmatprep.subr.bf16.mxu1 %v19046_v3  ;;  %v19122_v23 = vld [vmem:[%s21082_s1 + $0xfe0] ss:$8 sps:$4 sm:$0xff]   ;;  %v19130_v3 = vld [vmem:[%s21082_s1 + $0xff4] ss:$8 sps:$4 sm:$0xff]  }
 0x46f   : > { %14466 = vmatprep.subr.bf16.mxu0 %v19049_v4  ;;  %13266 = vmatprep.mubr.bf16.mxu1 %v1009_v25  ;;  %v19125_v24 = vld [vmem:[%s21082_s1 + $0x2de0] ss:$8 sps:$4 sm:$0xff]   ;;  %v19133_v4 = vld [vmem:[%s21082_s1 + $0x2df4] ss:$8 sps:$4 sm:$0xff]   ;;  %v22438_v25 = vrot.slane %v22427_v21, %v21150_v50 }
 0x470   : > { %14496 = vmatprep.mubr.bf16.mxu0 %v1069_v26  ;;  %v22442_v26 = vrot.slane %v22430_v22, %v21150_v50 }
 0x471   : > { %13237 = vmatpush1.bf16.msra.mxu1 %v19044_v63  ;;  %v19128_v63 = vld [vmem:[%s21082_s1 + $0xff0] ss:$8 sps:$4 sm:$0xff]  }
 0x472   : > { %14467 = vmatpush1.bf16.msra.mxu0 %v19047_v0  ;;  %13238 = vmatprep.subr.bf16.mxu1 %v19052_v27  ;;  %v19131_v0 = vld [vmem:[%s21082_s1 + $0x2df0] ss:$8 sps:$4 sm:$0xff]   ;;  %v19137_v27 = vld [vmem:[%s21082_s1 + $0x1004] ss:$8 sps:$4 sm:$0xff]  }
 0x473   : > { %14468 = vmatprep.subr.bf16.mxu0 %v19055_v28  ;;  %v19141_v28 = vld [vmem:[%s21082_s1 + $0x2e04] ss:$8 sps:$4 sm:$0xff]  }
 0x475   : > { %13239 = vmatpush1.bf16.msra.mxu1 %v19050_v31  ;;  %v499_v31 = vcombine.high %v22438_v25, %v22438_v25 }
 0x476   : > { %14469 = vmatpush1.bf16.msra.mxu0 %v19053_v32  ;;  %13240 = vmatprep.subr.bf16.mxu1 %v19058_v11  ;;  %v754_v32 = vcombine.high %v22442_v26, %v22442_v26  ;;  %v1008_v11 = vpack.c.bf16 %v22353_v43, %v22353_v43  ;;  %v19142_v43 = vld [vmem:[%s21082_s1 + $0x1010] ss:$8 sps:$4 sm:$0xff]  }
 0x477   : > { %14470 = vmatprep.subr.bf16.mxu0 %v19061_v12  ;;  %v1068_v12 = vpack.c.bf16 %v22356_v36, %v22356_v36  ;;  %v19145_v36 = vld [vmem:[%s21082_s1 + $0x2e10] ss:$8 sps:$4 sm:$0xff]  }
 0x479   : > { %13241 = vmatpush1.bf16.msra.mxu1 %v19056_v7  ;;  %v19135_v7 = vld [vmem:[%s21082_s1 + $0x1000] ss:$8 sps:$4 sm:$0xff]  }
 0x47a   : > { %14471 = vmatpush1.bf16.msra.mxu0 %v19059_v8  ;;  %13242 = vmatprep.subr.bf16.mxu1 %v19064_v35  ;;  %v19139_v8 = vld [vmem:[%s21082_s1 + $0x2e00] ss:$8 sps:$4 sm:$0xff]   ;;  %v19144_v35 = vld [vmem:[%s21082_s1 + $0x1014] ss:$8 sps:$4 sm:$0xff]  }
 0x47b   : > { %14472 = vmatprep.subr.bf16.mxu0 %v19067_v37  ;;  %v19147_v37 = vld [vmem:[%s21082_s1 + $0x2e14] ss:$8 sps:$4 sm:$0xff]  }
 0x47d   : > { %13243 = vmatpush1.bf16.msra.mxu1 %v19062_v40  ;;  %v1011_v40 = vpack.c.bf16 %v499_v31, %v499_v31  ;;  %v19214_v31 = vld [vmem:[%s21082_s1 + $0x10d0] ss:$8 sps:$4 sm:$0xff]  }
 0x47e   : > { %14473 = vmatpush1.bf16.msra.mxu0 %v19065_v42  ;;  %13244 = vmatprep.subr.bf16.mxu1 %v19070_v45  ;;  %v1071_v42 = vpack.c.bf16 %v754_v32, %v754_v32  ;;  %v19150_v45 = vld [vmem:[%s21082_s1 + $0x1024] ss:$8 sps:$4 sm:$0xff]   ;;  %v19217_v32 = vld [vmem:[%s21082_s1 + $0x2ed0] ss:$8 sps:$4 sm:$0xff]  }
 0x47f   : > { %14474 = vmatprep.subr.bf16.mxu0 %v19073_v15  ;;  %v19153_v15 = vld [vmem:[%s21082_s1 + $0x2e24] ss:$8 sps:$4 sm:$0xff]  }
 0x481   : > { %13245 = vmatpush1.bf16.msra.mxu1 %v19068_v19  ;;  %v19148_v19 = vld [vmem:[%s21082_s1 + $0x1020] ss:$8 sps:$4 sm:$0xff]  }
 0x482   : > { %14475 = vmatpush1.bf16.msra.mxu0 %v19071_v20  ;;  %13246 = vmatprep.subr.bf16.mxu1 %v19076_v48  ;;  %v19151_v20 = vld [vmem:[%s21082_s1 + $0x2e20] ss:$8 sps:$4 sm:$0xff]   ;;  %v19156_v48 = vld [vmem:[%s21082_s1 + $0x1034] ss:$8 sps:$4 sm:$0xff]  }
 0x483   : > { %14476 = vmatprep.subr.bf16.mxu0 %v19079_v49  ;;  %v19159_v49 = vld [vmem:[%s21082_s1 + $0x2e34] ss:$8 sps:$4 sm:$0xff]  }
 0x485   : > { %13247 = vmatpush1.bf16.msra.mxu1 %v19074_v53  ;;  %v19154_v53 = vld [vmem:[%s21082_s1 + $0x1030] ss:$8 sps:$4 sm:$0xff]  }
 0x486   : > { %14477 = vmatpush1.bf16.msra.mxu0 %v19077_v54  ;;  %13248 = vmatprep.subr.bf16.mxu1 %v19082_v29  ;;  %v19157_v54 = vld [vmem:[%s21082_s1 + $0x2e30] ss:$8 sps:$4 sm:$0xff]   ;;  %v19162_v29 = vld [vmem:[%s21082_s1 + $0x1044] ss:$8 sps:$4 sm:$0xff]  }
 0x487   : > { %14478 = vmatprep.subr.bf16.mxu0 %v19085_v30  ;;  %v19165_v30 = vld [vmem:[%s21082_s1 + $0x2e44] ss:$8 sps:$4 sm:$0xff]  }
 0x489   : > { %13249 = vmatpush1.bf16.msra.mxu1 %v19080_v55  ;;  %v19160_v55 = vld [vmem:[%s21082_s1 + $0x1040] ss:$8 sps:$4 sm:$0xff]  }
 0x48a   : > { %14479 = vmatpush1.bf16.msra.mxu0 %v19083_v56  ;;  %13250 = vmatprep.subr.bf16.mxu1 %v19088_v59  ;;  %v19163_v56 = vld [vmem:[%s21082_s1 + $0x2e40] ss:$8 sps:$4 sm:$0xff]   ;;  %v19168_v59 = vld [vmem:[%s21082_s1 + $0x1054] ss:$8 sps:$4 sm:$0xff]  }
 0x48b   : > { %14480 = vmatprep.subr.bf16.mxu0 %v19091_v38  ;;  %v19171_v38 = vld [vmem:[%s21082_s1 + $0x2e54] ss:$8 sps:$4 sm:$0xff]  }
 0x48d   : > { %13251 = vmatpush1.bf16.msra.mxu1 %v19086_v61  ;;  %v19166_v61 = vld [vmem:[%s21082_s1 + $0x1050] ss:$8 sps:$4 sm:$0xff]  }
 0x48e   : > { %14481 = vmatpush1.bf16.msra.mxu0 %v19089_v62  ;;  %13252 = vmatprep.subr.bf16.mxu1 %v19094_v16  ;;  %v19169_v62 = vld [vmem:[%s21082_s1 + $0x2e50] ss:$8 sps:$4 sm:$0xff]   ;;  %v19174_v16 = vld [vmem:[%s21082_s1 + $0x1064] ss:$8 sps:$4 sm:$0xff]  }
 0x48f   : > { %14482 = vmatprep.subr.bf16.mxu0 %v19097_v39  ;;  %v19177_v39 = vld [vmem:[%s21082_s1 + $0x2e64] ss:$8 sps:$4 sm:$0xff]  }
 0x491   : > { %13253 = vmatpush1.bf16.msra.mxu1 %v19092_v33  ;;  %v19172_v33 = vld [vmem:[%s21082_s1 + $0x1060] ss:$8 sps:$4 sm:$0xff]  }
 0x492   : > { %14483 = vmatpush1.bf16.msra.mxu0 %v19095_v34  ;;  %13254 = vmatprep.subr.bf16.mxu1 %v19100_v1  ;;  %v19175_v34 = vld [vmem:[%s21082_s1 + $0x2e60] ss:$8 sps:$4 sm:$0xff]   ;;  %v19180_v1 = vld [vmem:[%s21082_s1 + $0x1074] ss:$8 sps:$4 sm:$0xff]  }
 0x493   : > { %14484 = vmatprep.subr.bf16.mxu0 %v19103_v2  ;;  %v19183_v2 = vld [vmem:[%s21082_s1 + $0x2e74] ss:$8 sps:$4 sm:$0xff]  }
 0x495   : > { %13255 = vmatpush1.bf16.msra.mxu1 %v19098_v5  ;;  %v19178_v5 = vld [vmem:[%s21082_s1 + $0x1070] ss:$8 sps:$4 sm:$0xff]  }
 0x496   : > { %14485 = vmatpush1.bf16.msra.mxu0 %v19101_v6  ;;  %13256 = vmatprep.subr.bf16.mxu1 %v19106_v51  ;;  %v19181_v6 = vld [vmem:[%s21082_s1 + $0x2e70] ss:$8 sps:$4 sm:$0xff]   ;;  %v19186_v51 = vld [vmem:[%s21082_s1 + $0x1084] ss:$8 sps:$4 sm:$0xff]  }
 0x497   : > { %14486 = vmatprep.subr.bf16.mxu0 %v19109_v52  ;;  %v19189_v52 = vld [vmem:[%s21082_s1 + $0x2e84] ss:$8 sps:$4 sm:$0xff]  }
 0x499   : > { %13257 = vmatpush1.bf16.msra.mxu1 %v19104_v46  ;;  %v19184_v46 = vld [vmem:[%s21082_s1 + $0x1080] ss:$8 sps:$4 sm:$0xff]  }
 0x49a   : > { %14487 = vmatpush1.bf16.msra.mxu0 %v19107_v47  ;;  %13258 = vmatprep.subr.bf16.mxu1 %v19112_v9  ;;  %v19187_v47 = vld [vmem:[%s21082_s1 + $0x2e80] ss:$8 sps:$4 sm:$0xff]   ;;  %v19192_v9 = vld [vmem:[%s21082_s1 + $0x1094] ss:$8 sps:$4 sm:$0xff]  }
 0x49b   : > { %14488 = vmatprep.subr.bf16.mxu0 %v19115_v10  ;;  %v19195_v10 = vld [vmem:[%s21082_s1 + $0x2e94] ss:$8 sps:$4 sm:$0xff]  }
 0x49d   : > { %13259 = vmatpush1.bf16.msra.mxu1 %v19110_v13  ;;  %v19190_v13 = vld [vmem:[%s21082_s1 + $0x1090] ss:$8 sps:$4 sm:$0xff]  }
 0x49e   : > { %14489 = vmatpush1.bf16.msra.mxu0 %v19113_v14  ;;  %13260 = vmatprep.subr.bf16.mxu1 %v19118_v41  ;;  %v19193_v14 = vld [vmem:[%s21082_s1 + $0x2e90] ss:$8 sps:$4 sm:$0xff]   ;;  %v19198_v41 = vld [vmem:[%s21082_s1 + $0x10a4] ss:$8 sps:$4 sm:$0xff]  }
 0x49f   : > { %14490 = vmatprep.subr.bf16.mxu0 %v19121_v60  ;;  %v19201_v60 = vld [vmem:[%s21082_s1 + $0x2ea4] ss:$8 sps:$4 sm:$0xff]  }
 0x4a1   : > { %13261 = vmatpush1.bf16.msra.mxu1 %v19116_v17  ;;  %v19196_v17 = vld [vmem:[%s21082_s1 + $0x10a0] ss:$8 sps:$4 sm:$0xff]  }
 0x4a2   : > { %14491 = vmatpush1.bf16.msra.mxu0 %v19119_v18  ;;  %13262 = vmatprep.subr.bf16.mxu1 %v19124_v57  ;;  %v19199_v18 = vld [vmem:[%s21082_s1 + $0x2ea0] ss:$8 sps:$4 sm:$0xff]   ;;  %v19204_v57 = vld [vmem:[%s21082_s1 + $0x10b4] ss:$8 sps:$4 sm:$0xff]  }
 0x4a3   : > { %14492 = vmatprep.subr.bf16.mxu0 %v19127_v58  ;;  %v19207_v58 = vld [vmem:[%s21082_s1 + $0x2eb4] ss:$8 sps:$4 sm:$0xff]  }
 0x4a5   : > { %13263 = vmatpush1.bf16.msra.mxu1 %v19122_v23  ;;  %v19202_v23 = vld [vmem:[%s21082_s1 + $0x10b0] ss:$8 sps:$4 sm:$0xff]  }
 0x4a6   : > { %14493 = vmatpush1.bf16.msra.mxu0 %v19125_v24  ;;  %13264 = vmatprep.subr.bf16.mxu1 %v19130_v3  ;;  %v19205_v24 = vld [vmem:[%s21082_s1 + $0x2eb0] ss:$8 sps:$4 sm:$0xff]   ;;  %v19210_v3 = vld [vmem:[%s21082_s1 + $0x10c4] ss:$8 sps:$4 sm:$0xff]  }
 0x4a7   : > { %14494 = vmatprep.subr.bf16.mxu0 %v19133_v4  ;;  %v19213_v4 = vld [vmem:[%s21082_s1 + $0x2ec4] ss:$8 sps:$4 sm:$0xff]  }
 0x4a9   : > { %13265 = vmatpush1.bf16.msra.mxu1 %v19128_v63  ;;  %v19208_v63 = vld [vmem:[%s21082_s1 + $0x10c0] ss:$8 sps:$4 sm:$0xff]  }
 0x4aa   : > { %14495 = vmatpush1.bf16.msra.mxu0 %v19131_v0  ;;  %13275 = vmatprep.subr.bf16.mxu1 %v19137_v27  ;;  %v19211_v0 = vld [vmem:[%s21082_s1 + $0x2ec0] ss:$8 sps:$4 sm:$0xff]   ;;  %v19216_v27 = vld [vmem:[%s21082_s1 + $0x10d4] ss:$8 sps:$4 sm:$0xff]  }
 0x4ab   : > { %14505 = vmatprep.subr.bf16.mxu0 %v19141_v28  ;;  %v19219_v28 = vld [vmem:[%s21082_s1 + $0x2ed4] ss:$8 sps:$4 sm:$0xff]  }
 0x4ac   : > { %13267 = vmatmul.mubr.bf16.vlgmr.msra.gmra.mrb[0].mxu1 %v1008_v11  ;;  %v19222_v11 = vld [vmem:[%s21082_s1 + $0x10e4] ss:$8 sps:$4 sm:$0xff]  }
 0x4ad   : > { %14497 = vmatmul.mubr.bf16.vlgmr.msra.gmra.mrb[0].mxu0 %v1068_v12  ;;  %13276 = vmatpush1.bf16.msra.mxu1 %v19135_v7  ;;  %v19225_v12 = vld [vmem:[%s21082_s1 + $0x2ee4] ss:$8 sps:$4 sm:$0xff]   ;;  %v484_v7 = vcombine.high %v22427_v21, %v22427_v21  ;;  %v19226_v21 = vld [vmem:[%s21082_s1 + $0x10f0] ss:$8 sps:$4 sm:$0xff]  }
 0x4ae   : > { %14506 = vmatpush1.bf16.msra.mxu0 %v19139_v8  ;;  %13277 = vmatprep.subr.bf16.mxu1 %v19144_v35  ;;  %v739_v8 = vcombine.high %v22430_v22, %v22430_v22  ;;  %v19220_v35 = vld [vmem:[%s21082_s1 + $0x10e0] ss:$8 sps:$4 sm:$0xff]   ;;  %v19229_v22 = vld [vmem:[%s21082_s1 + $0x2ef0] ss:$8 sps:$4 sm:$0xff]  }
 0x4af   : > { %14507 = vmatprep.subr.bf16.mxu0 %v19147_v37  ;;  %13307 = vmatprep.mubr.bf16.mxu1 %v1011_v40  ;;  %v19223_v37 = vld [vmem:[%s21082_s1 + $0x2ee0] ss:$8 sps:$4 sm:$0xff]   ;;  %v19228_v40 = vld [vmem:[%s21082_s1 + $0x10f4] ss:$8 sps:$4 sm:$0xff]  }
 0x4b0   : > { %14537 = vmatprep.mubr.bf16.mxu0 %v1071_v42  ;;  %v19231_v42 = vld [vmem:[%s21082_s1 + $0x2ef4] ss:$8 sps:$4 sm:$0xff]  }
 0x4b1   : > { %13278 = vmatpush1.bf16.msra.mxu1 %v19142_v43  ;;  %v22521_v43 = vrot.slane %v484_v7, %v21150_v50  ;;  %v19298_v7 = vld [vmem:[%s21082_s1 + $0x11b0] ss:$8 sps:$4 sm:$0xff]  }
 0x4b2   : > { %14508 = vmatpush1.bf16.msra.mxu0 %v19145_v36  ;;  %13279 = vmatprep.subr.bf16.mxu1 %v19150_v45  ;;  %v22524_v36 = vrot.slane %v739_v8, %v21150_v50  ;;  %v19234_v45 = vld [vmem:[%s21082_s1 + $0x1104] ss:$8 sps:$4 sm:$0xff]   ;;  %v19301_v8 = vld [vmem:[%s21082_s1 + $0x2fb0] ss:$8 sps:$4 sm:$0xff]  }
 0x4b3   : > { %14509 = vmatprep.subr.bf16.mxu0 %v19153_v15  ;;  %v19237_v15 = vld [vmem:[%s21082_s1 + $0x2f04] ss:$8 sps:$4 sm:$0xff]  }
 0x4b5   : > { %13280 = vmatpush1.bf16.msra.mxu1 %v19148_v19  ;;  %v500_v19 = vcombine.high %v22521_v43, %v22521_v43 }
 0x4b6   : > { %14510 = vmatpush1.bf16.msra.mxu0 %v19151_v20  ;;  %13281 = vmatprep.subr.bf16.mxu1 %v19156_v48  ;;  %v755_v20 = vcombine.high %v22524_v36, %v22524_v36  ;;  %v1010_v48 = vpack.c.bf16 %v22438_v25, %v22438_v25  ;;  %v19238_v25 = vld [vmem:[%s21082_s1 + $0x1110] ss:$8 sps:$4 sm:$0xff]  }
 0x4b7   : > { %14511 = vmatprep.subr.bf16.mxu0 %v19159_v49  ;;  %v1070_v49 = vpack.c.bf16 %v22442_v26, %v22442_v26  ;;  %v19241_v26 = vld [vmem:[%s21082_s1 + $0x2f10] ss:$8 sps:$4 sm:$0xff]  }
 0x4b9   : > { %13282 = vmatpush1.bf16.msra.mxu1 %v19154_v53  ;;  %v19232_v53 = vld [vmem:[%s21082_s1 + $0x1100] ss:$8 sps:$4 sm:$0xff]  }
 0x4ba   : > { %14512 = vmatpush1.bf16.msra.mxu0 %v19157_v54  ;;  %13283 = vmatprep.subr.bf16.mxu1 %v19162_v29  ;;  %v19235_v54 = vld [vmem:[%s21082_s1 + $0x2f00] ss:$8 sps:$4 sm:$0xff]   ;;  %v19240_v29 = vld [vmem:[%s21082_s1 + $0x1114] ss:$8 sps:$4 sm:$0xff]  }
 0x4bb   : > { %14513 = vmatprep.subr.bf16.mxu0 %v19165_v30  ;;  %v19243_v30 = vld [vmem:[%s21082_s1 + $0x2f14] ss:$8 sps:$4 sm:$0xff]  }
 0x4bd   : > { %13284 = vmatpush1.bf16.msra.mxu1 %v19160_v55  ;;  %v1013_v55 = vpack.c.bf16 %v500_v19, %v500_v19  ;;  %v19318_v19 = vld [vmem:[%s21082_s1 + $0x11e4] ss:$8 sps:$4 sm:$0xff]  }
 0x4be   : > { %14514 = vmatpush1.bf16.msra.mxu0 %v19163_v56  ;;  %13285 = vmatprep.subr.bf16.mxu1 %v19168_v59  ;;  %v1073_v56 = vpack.c.bf16 %v755_v20, %v755_v20  ;;  %v19246_v59 = vld [vmem:[%s21082_s1 + $0x1124] ss:$8 sps:$4 sm:$0xff]  }
 0x4bf   : > { %14515 = vmatprep.subr.bf16.mxu0 %v19171_v38  ;;  %v19249_v38 = vld [vmem:[%s21082_s1 + $0x2f24] ss:$8 sps:$4 sm:$0xff]  }
 0x4c0   : > { %v19321_v20 = vld [vmem:[%s21082_s1 + $0x2fe4] ss:$8 sps:$4 sm:$0xff]  }
 0x4c1   : > { %13286 = vmatpush1.bf16.msra.mxu1 %v19166_v61  ;;  %v19244_v61 = vld [vmem:[%s21082_s1 + $0x1120] ss:$8 sps:$4 sm:$0xff]  }
 0x4c2   : > { %14516 = vmatpush1.bf16.msra.mxu0 %v19169_v62  ;;  %13287 = vmatprep.subr.bf16.mxu1 %v19174_v16  ;;  %v19247_v62 = vld [vmem:[%s21082_s1 + $0x2f20] ss:$8 sps:$4 sm:$0xff]   ;;  %v19252_v16 = vld [vmem:[%s21082_s1 + $0x1134] ss:$8 sps:$4 sm:$0xff]  }
 0x4c3   : > { %14517 = vmatprep.subr.bf16.mxu0 %v19177_v39  ;;  %v19255_v39 = vld [vmem:[%s21082_s1 + $0x2f34] ss:$8 sps:$4 sm:$0xff]  }
 0x4c5   : > { %13288 = vmatpush1.bf16.msra.mxu1 %v19172_v33  ;;  %v19250_v33 = vld [vmem:[%s21082_s1 + $0x1130] ss:$8 sps:$4 sm:$0xff]  }
 0x4c6   : > { %14518 = vmatpush1.bf16.msra.mxu0 %v19175_v34  ;;  %13289 = vmatprep.subr.bf16.mxu1 %v19180_v1  ;;  %v19253_v34 = vld [vmem:[%s21082_s1 + $0x2f30] ss:$8 sps:$4 sm:$0xff]   ;;  %v19258_v1 = vld [vmem:[%s21082_s1 + $0x1144] ss:$8 sps:$4 sm:$0xff]  }
 0x4c7   : > { %14519 = vmatprep.subr.bf16.mxu0 %v19183_v2  ;;  %v19261_v2 = vld [vmem:[%s21082_s1 + $0x2f44] ss:$8 sps:$4 sm:$0xff]  }
 0x4c9   : > { %13290 = vmatpush1.bf16.msra.mxu1 %v19178_v5  ;;  %v19256_v5 = vld [vmem:[%s21082_s1 + $0x1140] ss:$8 sps:$4 sm:$0xff]  }
 0x4ca   : > { %14520 = vmatpush1.bf16.msra.mxu0 %v19181_v6  ;;  %13291 = vmatprep.subr.bf16.mxu1 %v19186_v51  ;;  %v19259_v6 = vld [vmem:[%s21082_s1 + $0x2f40] ss:$8 sps:$4 sm:$0xff]   ;;  %v19264_v51 = vld [vmem:[%s21082_s1 + $0x1154] ss:$8 sps:$4 sm:$0xff]  }
 0x4cb   : > { %14521 = vmatprep.subr.bf16.mxu0 %v19189_v52  ;;  %v19267_v52 = vld [vmem:[%s21082_s1 + $0x2f54] ss:$8 sps:$4 sm:$0xff]  }
 0x4cd   : > { %13292 = vmatpush1.bf16.msra.mxu1 %v19184_v46  ;;  %v19262_v46 = vld [vmem:[%s21082_s1 + $0x1150] ss:$8 sps:$4 sm:$0xff]  }
 0x4ce   : > { %14522 = vmatpush1.bf16.msra.mxu0 %v19187_v47  ;;  %13293 = vmatprep.subr.bf16.mxu1 %v19192_v9  ;;  %v19265_v47 = vld [vmem:[%s21082_s1 + $0x2f50] ss:$8 sps:$4 sm:$0xff]   ;;  %v19270_v9 = vld [vmem:[%s21082_s1 + $0x1164] ss:$8 sps:$4 sm:$0xff]  }
 0x4cf   : > { %14523 = vmatprep.subr.bf16.mxu0 %v19195_v10  ;;  %v19273_v10 = vld [vmem:[%s21082_s1 + $0x2f64] ss:$8 sps:$4 sm:$0xff]  }
 0x4d1   : > { %13294 = vmatpush1.bf16.msra.mxu1 %v19190_v13  ;;  %v19268_v13 = vld [vmem:[%s21082_s1 + $0x1160] ss:$8 sps:$4 sm:$0xff]  }
 0x4d2   : > { %14524 = vmatpush1.bf16.msra.mxu0 %v19193_v14  ;;  %13295 = vmatprep.subr.bf16.mxu1 %v19198_v41  ;;  %v19271_v14 = vld [vmem:[%s21082_s1 + $0x2f60] ss:$8 sps:$4 sm:$0xff]   ;;  %v19276_v41 = vld [vmem:[%s21082_s1 + $0x1174] ss:$8 sps:$4 sm:$0xff]  }
 0x4d3   : > { %14525 = vmatprep.subr.bf16.mxu0 %v19201_v60  ;;  %v19279_v60 = vld [vmem:[%s21082_s1 + $0x2f74] ss:$8 sps:$4 sm:$0xff]  }
 0x4d5   : > { %13296 = vmatpush1.bf16.msra.mxu1 %v19196_v17  ;;  %v19274_v17 = vld [vmem:[%s21082_s1 + $0x1170] ss:$8 sps:$4 sm:$0xff]  }
 0x4d6   : > { %14526 = vmatpush1.bf16.msra.mxu0 %v19199_v18  ;;  %13297 = vmatprep.subr.bf16.mxu1 %v19204_v57  ;;  %v19277_v18 = vld [vmem:[%s21082_s1 + $0x2f70] ss:$8 sps:$4 sm:$0xff]   ;;  %v19282_v57 = vld [vmem:[%s21082_s1 + $0x1184] ss:$8 sps:$4 sm:$0xff]  }
 0x4d7   : > { %14527 = vmatprep.subr.bf16.mxu0 %v19207_v58  ;;  %v19285_v58 = vld [vmem:[%s21082_s1 + $0x2f84] ss:$8 sps:$4 sm:$0xff]  }
 0x4d9   : > { %13298 = vmatpush1.bf16.msra.mxu1 %v19202_v23  ;;  %v19280_v23 = vld [vmem:[%s21082_s1 + $0x1180] ss:$8 sps:$4 sm:$0xff]  }
 0x4da   : > { %14528 = vmatpush1.bf16.msra.mxu0 %v19205_v24  ;;  %13299 = vmatprep.subr.bf16.mxu1 %v19210_v3  ;;  %v19283_v24 = vld [vmem:[%s21082_s1 + $0x2f80] ss:$8 sps:$4 sm:$0xff]   ;;  %v19288_v3 = vld [vmem:[%s21082_s1 + $0x1194] ss:$8 sps:$4 sm:$0xff]  }
 0x4db   : > { %14529 = vmatprep.subr.bf16.mxu0 %v19213_v4  ;;  %v19291_v4 = vld [vmem:[%s21082_s1 + $0x2f94] ss:$8 sps:$4 sm:$0xff]  }
 0x4dd   : > { %13300 = vmatpush1.bf16.msra.mxu1 %v19208_v63  ;;  %v19286_v63 = vld [vmem:[%s21082_s1 + $0x1190] ss:$8 sps:$4 sm:$0xff]  }
 0x4de   : > { %14530 = vmatpush1.bf16.msra.mxu0 %v19211_v0  ;;  %13301 = vmatprep.subr.bf16.mxu1 %v19216_v27  ;;  %v19289_v0 = vld [vmem:[%s21082_s1 + $0x2f90] ss:$8 sps:$4 sm:$0xff]   ;;  %v19294_v27 = vld [vmem:[%s21082_s1 + $0x11a4] ss:$8 sps:$4 sm:$0xff]  }
 0x4df   : > { %14531 = vmatprep.subr.bf16.mxu0 %v19219_v28  ;;  %v19297_v28 = vld [vmem:[%s21082_s1 + $0x2fa4] ss:$8 sps:$4 sm:$0xff]  }
 0x4e1   : > { %13302 = vmatpush1.bf16.msra.mxu1 %v19214_v31  ;;  %v19292_v31 = vld [vmem:[%s21082_s1 + $0x11a0] ss:$8 sps:$4 sm:$0xff]  }
 0x4e2   : > { %14532 = vmatpush1.bf16.msra.mxu0 %v19217_v32  ;;  %13303 = vmatprep.subr.bf16.mxu1 %v19222_v11  ;;  %v19295_v32 = vld [vmem:[%s21082_s1 + $0x2fa0] ss:$8 sps:$4 sm:$0xff]   ;;  %v19300_v11 = vld [vmem:[%s21082_s1 + $0x11b4] ss:$8 sps:$4 sm:$0xff]  }
 0x4e3   : > { %14533 = vmatprep.subr.bf16.mxu0 %v19225_v12  ;;  %v19303_v12 = vld [vmem:[%s21082_s1 + $0x2fb4] ss:$8 sps:$4 sm:$0xff]  }
 0x4e5   : > { %13304 = vmatpush1.bf16.msra.mxu1 %v19220_v35  ;;  %v19306_v35 = vld [vmem:[%s21082_s1 + $0x11c4] ss:$8 sps:$4 sm:$0xff]  }
 0x4e6   : > { %14534 = vmatpush1.bf16.msra.mxu0 %v19223_v37  ;;  %13305 = vmatprep.subr.bf16.mxu1 %v19228_v40  ;;  %v19309_v37 = vld [vmem:[%s21082_s1 + $0x2fc4] ss:$8 sps:$4 sm:$0xff]   ;;  %v19304_v40 = vld [vmem:[%s21082_s1 + $0x11c0] ss:$8 sps:$4 sm:$0xff]  }
 0x4e7   : > { %14535 = vmatprep.subr.bf16.mxu0 %v19231_v42  ;;  %v19307_v42 = vld [vmem:[%s21082_s1 + $0x2fc0] ss:$8 sps:$4 sm:$0xff]  }
 0x4e9   : > { %13306 = vmatpush1.bf16.msra.mxu1 %v19226_v21  ;;  %v19312_v21 = vld [vmem:[%s21082_s1 + $0x11d4] ss:$8 sps:$4 sm:$0xff]  }
 0x4ea   : > { %14536 = vmatpush1.bf16.msra.mxu0 %v19229_v22  ;;  %13316 = vmatprep.subr.bf16.mxu1 %v19234_v45  ;;  %v19315_v22 = vld [vmem:[%s21082_s1 + $0x2fd4] ss:$8 sps:$4 sm:$0xff]   ;;  %v19310_v45 = vld [vmem:[%s21082_s1 + $0x11d0] ss:$8 sps:$4 sm:$0xff]  }
 0x4eb   : > { %14546 = vmatprep.subr.bf16.mxu0 %v19237_v15  ;;  %v19313_v15 = vld [vmem:[%s21082_s1 + $0x2fd0] ss:$8 sps:$4 sm:$0xff]  }
 0x4ec   : > { %13308 = vmatmul.mubr.bf16.vlgmr.msra.gmra.mrb[0].mxu1 %v1010_v48  ;;  %v22595_v48 = vld [vmem:[%s21074_s27 + $0x48] sm:$0xff] }
 0x4ed   : > { %14538 = vmatmul.mubr.bf16.vlgmr.msra.gmra.mrb[0].mxu0 %v1070_v49  ;;  %13317 = vmatpush1.bf16.msra.mxu1 %v19232_v53  ;;  %v22598_v49 = vld [vmem:[%s21074_s27 + $0xc0] sm:$0xff] }
 0x4ee   : > { %14547 = vmatpush1.bf16.msra.mxu0 %v19235_v54  ;;  %13318 = vmatprep.subr.bf16.mxu1 %v19240_v29  ;;  %v19316_v53 = vld [vmem:[%s21082_s1 + $0x11e0] ss:$8 sps:$4 sm:$0xff]   ;;  %v19324_v29 = vld [vmem:[%s21082_s1 + $0x11f4] ss:$8 sps:$4 sm:$0xff]  }
 0x4ef   : > { %14548 = vmatprep.subr.bf16.mxu0 %v19243_v30  ;;  %13348 = vmatprep.mubr.bf16.mxu1 %v1013_v55  ;;  %v19319_v54 = vld [vmem:[%s21082_s1 + $0x2fe0] ss:$8 sps:$4 sm:$0xff]   ;;  %v19327_v30 = vld [vmem:[%s21082_s1 + $0x2ff4] ss:$8 sps:$4 sm:$0xff]   ;;  %v22606_v55 = vrot.slane %v22595_v48, %v21150_v50 }
 0x4f0   : > { %14578 = vmatprep.mubr.bf16.mxu0 %v1073_v56  ;;  %v22610_v56 = vrot.slane %v22598_v49, %v21150_v50 }
 0x4f1   : > { %13319 = vmatpush1.bf16.msra.mxu1 %v19238_v25  ;;  %v19322_v25 = vld [vmem:[%s21082_s1 + $0x11f0] ss:$8 sps:$4 sm:$0xff]  }
 0x4f2   : > { %14549 = vmatpush1.bf16.msra.mxu0 %v19241_v26  ;;  %13320 = vmatprep.subr.bf16.mxu1 %v19246_v59  ;;  %v19325_v26 = vld [vmem:[%s21082_s1 + $0x2ff0] ss:$8 sps:$4 sm:$0xff]   ;;  %v19331_v59 = vld [vmem:[%s21082_s1 + $0x1204] ss:$8 sps:$4 sm:$0xff]  }
 0x4f3   : > { %14550 = vmatprep.subr.bf16.mxu0 %v19249_v38  ;;  %v19335_v38 = vld [vmem:[%s21082_s1 + $0x3004] ss:$8 sps:$4 sm:$0xff]  }
 0x4f5   : > { %13321 = vmatpush1.bf16.msra.mxu1 %v19244_v61  ;;  %v516_v61 = vcombine.high %v22606_v55, %v22606_v55 }
 0x4f6   : > { %14551 = vmatpush1.bf16.msra.mxu0 %v19247_v62  ;;  %13322 = vmatprep.subr.bf16.mxu1 %v19252_v16  ;;  %v771_v62 = vcombine.high %v22610_v56, %v22610_v56  ;;  %v1012_v16 = vpack.c.bf16 %v22521_v43, %v22521_v43  ;;  %v19336_v43 = vld [vmem:[%s21082_s1 + $0x1210] ss:$8 sps:$4 sm:$0xff]  }
 0x4f7   : > { %14552 = vmatprep.subr.bf16.mxu0 %v19255_v39  ;;  %v1072_v39 = vpack.c.bf16 %v22524_v36, %v22524_v36  ;;  %v19339_v36 = vld [vmem:[%s21082_s1 + $0x3010] ss:$8 sps:$4 sm:$0xff]  }
 0x4f9   : > { %13323 = vmatpush1.bf16.msra.mxu1 %v19250_v33  ;;  %v19329_v33 = vld [vmem:[%s21082_s1 + $0x1200] ss:$8 sps:$4 sm:$0xff]  }
 0x4fa   : > { %14553 = vmatpush1.bf16.msra.mxu0 %v19253_v34  ;;  %13324 = vmatprep.subr.bf16.mxu1 %v19258_v1  ;;  %v19333_v34 = vld [vmem:[%s21082_s1 + $0x3000] ss:$8 sps:$4 sm:$0xff]   ;;  %v19338_v1 = vld [vmem:[%s21082_s1 + $0x1214] ss:$8 sps:$4 sm:$0xff]  }
 0x4fb   : > { %14554 = vmatprep.subr.bf16.mxu0 %v19261_v2  ;;  %v19341_v2 = vld [vmem:[%s21082_s1 + $0x3014] ss:$8 sps:$4 sm:$0xff]  }
 0x4fd   : > { %13325 = vmatpush1.bf16.msra.mxu1 %v19256_v5  ;;  %v1015_v5 = vpack.c.bf16 %v516_v61, %v516_v61  ;;  %v19408_v61 = vld [vmem:[%s21082_s1 + $0x12d0] ss:$8 sps:$4 sm:$0xff]  }
 0x4fe   : > { %14555 = vmatpush1.bf16.msra.mxu0 %v19259_v6  ;;  %13326 = vmatprep.subr.bf16.mxu1 %v19264_v51  ;;  %v1075_v6 = vpack.c.bf16 %v771_v62, %v771_v62  ;;  %v19344_v51 = vld [vmem:[%s21082_s1 + $0x1224] ss:$8 sps:$4 sm:$0xff]   ;;  %v19411_v62 = vld [vmem:[%s21082_s1 + $0x30d0] ss:$8 sps:$4 sm:$0xff]  }
 0x4ff   : > { %14556 = vmatprep.subr.bf16.mxu0 %v19267_v52  ;;  %v19347_v52 = vld [vmem:[%s21082_s1 + $0x3024] ss:$8 sps:$4 sm:$0xff]  }
 0x501   : > { %13327 = vmatpush1.bf16.msra.mxu1 %v19262_v46  ;;  %v19342_v46 = vld [vmem:[%s21082_s1 + $0x1220] ss:$8 sps:$4 sm:$0xff]  }
 0x502   : > { %14557 = vmatpush1.bf16.msra.mxu0 %v19265_v47  ;;  %13328 = vmatprep.subr.bf16.mxu1 %v19270_v9  ;;  %v19345_v47 = vld [vmem:[%s21082_s1 + $0x3020] ss:$8 sps:$4 sm:$0xff]   ;;  %v19350_v9 = vld [vmem:[%s21082_s1 + $0x1234] ss:$8 sps:$4 sm:$0xff]  }
 0x503   : > { %14558 = vmatprep.subr.bf16.mxu0 %v19273_v10  ;;  %v19353_v10 = vld [vmem:[%s21082_s1 + $0x3034] ss:$8 sps:$4 sm:$0xff]  }
 0x505   : > { %13329 = vmatpush1.bf16.msra.mxu1 %v19268_v13  ;;  %v19348_v13 = vld [vmem:[%s21082_s1 + $0x1230] ss:$8 sps:$4 sm:$0xff]  }
 0x506   : > { %14559 = vmatpush1.bf16.msra.mxu0 %v19271_v14  ;;  %13330 = vmatprep.subr.bf16.mxu1 %v19276_v41  ;;  %v19351_v14 = vld [vmem:[%s21082_s1 + $0x3030] ss:$8 sps:$4 sm:$0xff]   ;;  %v19356_v41 = vld [vmem:[%s21082_s1 + $0x1244] ss:$8 sps:$4 sm:$0xff]  }
 0x507   : > { %14560 = vmatprep.subr.bf16.mxu0 %v19279_v60  ;;  %v19359_v60 = vld [vmem:[%s21082_s1 + $0x3044] ss:$8 sps:$4 sm:$0xff]  }
 0x509   : > { %13331 = vmatpush1.bf16.msra.mxu1 %v19274_v17  ;;  %v19354_v17 = vld [vmem:[%s21082_s1 + $0x1240] ss:$8 sps:$4 sm:$0xff]  }
 0x50a   : > { %14561 = vmatpush1.bf16.msra.mxu0 %v19277_v18  ;;  %13332 = vmatprep.subr.bf16.mxu1 %v19282_v57  ;;  %v19357_v18 = vld [vmem:[%s21082_s1 + $0x3040] ss:$8 sps:$4 sm:$0xff]   ;;  %v19362_v57 = vld [vmem:[%s21082_s1 + $0x1254] ss:$8 sps:$4 sm:$0xff]  }
 0x50b   : > { %14562 = vmatprep.subr.bf16.mxu0 %v19285_v58  ;;  %v19365_v58 = vld [vmem:[%s21082_s1 + $0x3054] ss:$8 sps:$4 sm:$0xff]  }
 0x50d   : > { %13333 = vmatpush1.bf16.msra.mxu1 %v19280_v23  ;;  %v19360_v23 = vld [vmem:[%s21082_s1 + $0x1250] ss:$8 sps:$4 sm:$0xff]  }
 0x50e   : > { %14563 = vmatpush1.bf16.msra.mxu0 %v19283_v24  ;;  %13334 = vmatprep.subr.bf16.mxu1 %v19288_v3  ;;  %v19363_v24 = vld [vmem:[%s21082_s1 + $0x3050] ss:$8 sps:$4 sm:$0xff]   ;;  %v19368_v3 = vld [vmem:[%s21082_s1 + $0x1264] ss:$8 sps:$4 sm:$0xff]  }
 0x50f   : > { %14564 = vmatprep.subr.bf16.mxu0 %v19291_v4  ;;  %v19371_v4 = vld [vmem:[%s21082_s1 + $0x3064] ss:$8 sps:$4 sm:$0xff]  }
 0x511   : > { %13335 = vmatpush1.bf16.msra.mxu1 %v19286_v63  ;;  %v19366_v63 = vld [vmem:[%s21082_s1 + $0x1260] ss:$8 sps:$4 sm:$0xff]  }
 0x512   : > { %14565 = vmatpush1.bf16.msra.mxu0 %v19289_v0  ;;  %13336 = vmatprep.subr.bf16.mxu1 %v19294_v27  ;;  %v19369_v0 = vld [vmem:[%s21082_s1 + $0x3060] ss:$8 sps:$4 sm:$0xff]   ;;  %v19374_v27 = vld [vmem:[%s21082_s1 + $0x1274] ss:$8 sps:$4 sm:$0xff]  }
 0x513   : > { %14566 = vmatprep.subr.bf16.mxu0 %v19297_v28  ;;  %v19377_v28 = vld [vmem:[%s21082_s1 + $0x3074] ss:$8 sps:$4 sm:$0xff]  }
 0x515   : > { %13337 = vmatpush1.bf16.msra.mxu1 %v19292_v31  ;;  %v19372_v31 = vld [vmem:[%s21082_s1 + $0x1270] ss:$8 sps:$4 sm:$0xff]  }
 0x516   : > { %14567 = vmatpush1.bf16.msra.mxu0 %v19295_v32  ;;  %13338 = vmatprep.subr.bf16.mxu1 %v19300_v11  ;;  %v19375_v32 = vld [vmem:[%s21082_s1 + $0x3070] ss:$8 sps:$4 sm:$0xff]   ;;  %v19380_v11 = vld [vmem:[%s21082_s1 + $0x1284] ss:$8 sps:$4 sm:$0xff]  }
 0x517   : > { %14568 = vmatprep.subr.bf16.mxu0 %v19303_v12  ;;  %v19383_v12 = vld [vmem:[%s21082_s1 + $0x3084] ss:$8 sps:$4 sm:$0xff]  }
 0x519   : > { %13339 = vmatpush1.bf16.msra.mxu1 %v19298_v7  ;;  %v19378_v7 = vld [vmem:[%s21082_s1 + $0x1280] ss:$8 sps:$4 sm:$0xff]  }
 0x51a   : > { %14569 = vmatpush1.bf16.msra.mxu0 %v19301_v8  ;;  %13340 = vmatprep.subr.bf16.mxu1 %v19306_v35  ;;  %v19381_v8 = vld [vmem:[%s21082_s1 + $0x3080] ss:$8 sps:$4 sm:$0xff]   ;;  %v19386_v35 = vld [vmem:[%s21082_s1 + $0x1294] ss:$8 sps:$4 sm:$0xff]  }
 0x51b   : > { %14570 = vmatprep.subr.bf16.mxu0 %v19309_v37  ;;  %v19389_v37 = vld [vmem:[%s21082_s1 + $0x3094] ss:$8 sps:$4 sm:$0xff]  }
 0x51d   : > { %13341 = vmatpush1.bf16.msra.mxu1 %v19304_v40  ;;  %v19384_v40 = vld [vmem:[%s21082_s1 + $0x1290] ss:$8 sps:$4 sm:$0xff]  }
 0x51e   : > { %14571 = vmatpush1.bf16.msra.mxu0 %v19307_v42  ;;  %13342 = vmatprep.subr.bf16.mxu1 %v19312_v21  ;;  %v19387_v42 = vld [vmem:[%s21082_s1 + $0x3090] ss:$8 sps:$4 sm:$0xff]   ;;  %v19392_v21 = vld [vmem:[%s21082_s1 + $0x12a4] ss:$8 sps:$4 sm:$0xff]  }
 0x51f   : > { %14572 = vmatprep.subr.bf16.mxu0 %v19315_v22  ;;  %v19395_v22 = vld [vmem:[%s21082_s1 + $0x30a4] ss:$8 sps:$4 sm:$0xff]  }
 0x521   : > { %13343 = vmatpush1.bf16.msra.mxu1 %v19310_v45  ;;  %v19390_v45 = vld [vmem:[%s21082_s1 + $0x12a0] ss:$8 sps:$4 sm:$0xff]  }
 0x522   : > { %14573 = vmatpush1.bf16.msra.mxu0 %v19313_v15  ;;  %13344 = vmatprep.subr.bf16.mxu1 %v19318_v19  ;;  %v19393_v15 = vld [vmem:[%s21082_s1 + $0x30a0] ss:$8 sps:$4 sm:$0xff]   ;;  %v19398_v19 = vld [vmem:[%s21082_s1 + $0x12b4] ss:$8 sps:$4 sm:$0xff]  }
 0x523   : > { %14574 = vmatprep.subr.bf16.mxu0 %v19321_v20  ;;  %v19401_v20 = vld [vmem:[%s21082_s1 + $0x30b4] ss:$8 sps:$4 sm:$0xff]  }
 0x525   : > { %13345 = vmatpush1.bf16.msra.mxu1 %v19316_v53  ;;  %v19396_v53 = vld [vmem:[%s21082_s1 + $0x12b0] ss:$8 sps:$4 sm:$0xff]  }
 0x526   : > { %14575 = vmatpush1.bf16.msra.mxu0 %v19319_v54  ;;  %13346 = vmatprep.subr.bf16.mxu1 %v19324_v29  ;;  %v19399_v54 = vld [vmem:[%s21082_s1 + $0x30b0] ss:$8 sps:$4 sm:$0xff]   ;;  %v19404_v29 = vld [vmem:[%s21082_s1 + $0x12c4] ss:$8 sps:$4 sm:$0xff]  }
 0x527   : > { %14576 = vmatprep.subr.bf16.mxu0 %v19327_v30  ;;  %v19407_v30 = vld [vmem:[%s21082_s1 + $0x30c4] ss:$8 sps:$4 sm:$0xff]  }
 0x529   : > { %13347 = vmatpush1.bf16.msra.mxu1 %v19322_v25  ;;  %v19402_v25 = vld [vmem:[%s21082_s1 + $0x12c0] ss:$8 sps:$4 sm:$0xff]  }
 0x52a   : > { %14577 = vmatpush1.bf16.msra.mxu0 %v19325_v26  ;;  %13357 = vmatprep.subr.bf16.mxu1 %v19331_v59  ;;  %v19405_v26 = vld [vmem:[%s21082_s1 + $0x30c0] ss:$8 sps:$4 sm:$0xff]   ;;  %v19410_v59 = vld [vmem:[%s21082_s1 + $0x12d4] ss:$8 sps:$4 sm:$0xff]  }
 0x52b   : > { %14587 = vmatprep.subr.bf16.mxu0 %v19335_v38  ;;  %v19413_v38 = vld [vmem:[%s21082_s1 + $0x30d4] ss:$8 sps:$4 sm:$0xff]  }
 0x52c   : > { %13349 = vmatmul.mubr.bf16.vlgmr.msra.gmra.mrb[0].mxu1 %v1012_v16  ;;  %v19416_v16 = vld [vmem:[%s21082_s1 + $0x12e4] ss:$8 sps:$4 sm:$0xff]  }
 0x52d   : > { %14579 = vmatmul.mubr.bf16.vlgmr.msra.gmra.mrb[0].mxu0 %v1072_v39  ;;  %13358 = vmatpush1.bf16.msra.mxu1 %v19329_v33  ;;  %v19419_v39 = vld [vmem:[%s21082_s1 + $0x30e4] ss:$8 sps:$4 sm:$0xff]   ;;  %v501_v33 = vcombine.high %v22595_v48, %v22595_v48  ;;  %v19420_v48 = vld [vmem:[%s21082_s1 + $0x12f0] ss:$8 sps:$4 sm:$0xff]  }
 0x52e   : > { %14588 = vmatpush1.bf16.msra.mxu0 %v19333_v34  ;;  %13359 = vmatprep.subr.bf16.mxu1 %v19338_v1  ;;  %v756_v34 = vcombine.high %v22598_v49, %v22598_v49  ;;  %v19414_v1 = vld [vmem:[%s21082_s1 + $0x12e0] ss:$8 sps:$4 sm:$0xff]   ;;  %v19423_v49 = vld [vmem:[%s21082_s1 + $0x30f0] ss:$8 sps:$4 sm:$0xff]  }
 0x52f   : > { %14589 = vmatprep.subr.bf16.mxu0 %v19341_v2  ;;  %13389 = vmatprep.mubr.bf16.mxu1 %v1015_v5  ;;  %v19417_v2 = vld [vmem:[%s21082_s1 + $0x30e0] ss:$8 sps:$4 sm:$0xff]   ;;  %v19422_v5 = vld [vmem:[%s21082_s1 + $0x12f4] ss:$8 sps:$4 sm:$0xff]  }
 0x530   : > { %14619 = vmatprep.mubr.bf16.mxu0 %v1075_v6  ;;  %v19425_v6 = vld [vmem:[%s21082_s1 + $0x30f4] ss:$8 sps:$4 sm:$0xff]  }
 0x531   : > { %13360 = vmatpush1.bf16.msra.mxu1 %v19336_v43  ;;  %v22689_v43 = vrot.slane %v501_v33, %v21150_v50  ;;  %v19492_v33 = vld [vmem:[%s21082_s1 + $0x13b0] ss:$8 sps:$4 sm:$0xff]  }
 0x532   : > { %14590 = vmatpush1.bf16.msra.mxu0 %v19339_v36  ;;  %13361 = vmatprep.subr.bf16.mxu1 %v19344_v51  ;;  %v22692_v36 = vrot.slane %v756_v34, %v21150_v50  ;;  %v19428_v51 = vld [vmem:[%s21082_s1 + $0x1304] ss:$8 sps:$4 sm:$0xff]   ;;  %v19495_v34 = vld [vmem:[%s21082_s1 + $0x31b0] ss:$8 sps:$4 sm:$0xff]  }
 0x533   : > { %14591 = vmatprep.subr.bf16.mxu0 %v19347_v52  ;;  %v19431_v52 = vld [vmem:[%s21082_s1 + $0x3104] ss:$8 sps:$4 sm:$0xff]  }
 0x535   : > { %13362 = vmatpush1.bf16.msra.mxu1 %v19342_v46  ;;  %v517_v46 = vcombine.high %v22689_v43, %v22689_v43 }
 0x536   : > { %14592 = vmatpush1.bf16.msra.mxu0 %v19345_v47  ;;  %13363 = vmatprep.subr.bf16.mxu1 %v19350_v9  ;;  %v772_v47 = vcombine.high %v22692_v36, %v22692_v36  ;;  %v1014_v9 = vpack.c.bf16 %v22606_v55, %v22606_v55  ;;  %v19432_v55 = vld [vmem:[%s21082_s1 + $0x1310] ss:$8 sps:$4 sm:$0xff]  }
 0x537   : > { %14593 = vmatprep.subr.bf16.mxu0 %v19353_v10  ;;  %v1074_v10 = vpack.c.bf16 %v22610_v56, %v22610_v56  ;;  %v19435_v56 = vld [vmem:[%s21082_s1 + $0x3110] ss:$8 sps:$4 sm:$0xff]  }
 0x539   : > { %13364 = vmatpush1.bf16.msra.mxu1 %v19348_v13  ;;  %v19426_v13 = vld [vmem:[%s21082_s1 + $0x1300] ss:$8 sps:$4 sm:$0xff]  }
 0x53a   : > { %14594 = vmatpush1.bf16.msra.mxu0 %v19351_v14  ;;  %13365 = vmatprep.subr.bf16.mxu1 %v19356_v41  ;;  %v19429_v14 = vld [vmem:[%s21082_s1 + $0x3100] ss:$8 sps:$4 sm:$0xff]   ;;  %v19434_v41 = vld [vmem:[%s21082_s1 + $0x1314] ss:$8 sps:$4 sm:$0xff]  }
 0x53b   : > { %14595 = vmatprep.subr.bf16.mxu0 %v19359_v60  ;;  %v19437_v60 = vld [vmem:[%s21082_s1 + $0x3114] ss:$8 sps:$4 sm:$0xff]  }
 0x53d   : > { %13366 = vmatpush1.bf16.msra.mxu1 %v19354_v17  ;;  %v1017_v17 = vpack.c.bf16 %v517_v46, %v517_v46  ;;  %v19512_v46 = vld [vmem:[%s21082_s1 + $0x13e4] ss:$8 sps:$4 sm:$0xff]  }
 0x53e   : > { %14596 = vmatpush1.bf16.msra.mxu0 %v19357_v18  ;;  %13367 = vmatprep.subr.bf16.mxu1 %v19362_v57  ;;  %v1077_v18 = vpack.c.bf16 %v772_v47, %v772_v47  ;;  %v19440_v57 = vld [vmem:[%s21082_s1 + $0x1324] ss:$8 sps:$4 sm:$0xff]  }
 0x53f   : > { %14597 = vmatprep.subr.bf16.mxu0 %v19365_v58  ;;  %v19443_v58 = vld [vmem:[%s21082_s1 + $0x3124] ss:$8 sps:$4 sm:$0xff]  }
 0x540   : > { %v19515_v47 = vld [vmem:[%s21082_s1 + $0x31e4] ss:$8 sps:$4 sm:$0xff]  }
 0x541   : > { %13368 = vmatpush1.bf16.msra.mxu1 %v19360_v23  ;;  %v19438_v23 = vld [vmem:[%s21082_s1 + $0x1320] ss:$8 sps:$4 sm:$0xff]  }
 0x542   : > { %14598 = vmatpush1.bf16.msra.mxu0 %v19363_v24  ;;  %13369 = vmatprep.subr.bf16.mxu1 %v19368_v3  ;;  %v19441_v24 = vld [vmem:[%s21082_s1 + $0x3120] ss:$8 sps:$4 sm:$0xff]   ;;  %v19446_v3 = vld [vmem:[%s21082_s1 + $0x1334] ss:$8 sps:$4 sm:$0xff]  }
 0x543   : > { %14599 = vmatprep.subr.bf16.mxu0 %v19371_v4  ;;  %v19449_v4 = vld [vmem:[%s21082_s1 + $0x3134] ss:$8 sps:$4 sm:$0xff]  }
 0x545   : > { %13370 = vmatpush1.bf16.msra.mxu1 %v19366_v63  ;;  %v19444_v63 = vld [vmem:[%s21082_s1 + $0x1330] ss:$8 sps:$4 sm:$0xff]  }
 0x546   : > { %14600 = vmatpush1.bf16.msra.mxu0 %v19369_v0  ;;  %13371 = vmatprep.subr.bf16.mxu1 %v19374_v27  ;;  %v19447_v0 = vld [vmem:[%s21082_s1 + $0x3130] ss:$8 sps:$4 sm:$0xff]   ;;  %v19452_v27 = vld [vmem:[%s21082_s1 + $0x1344] ss:$8 sps:$4 sm:$0xff]  }
 0x547   : > { %14601 = vmatprep.subr.bf16.mxu0 %v19377_v28  ;;  %v19455_v28 = vld [vmem:[%s21082_s1 + $0x3144] ss:$8 sps:$4 sm:$0xff]  }
 0x549   : > { %13372 = vmatpush1.bf16.msra.mxu1 %v19372_v31  ;;  %v19450_v31 = vld [vmem:[%s21082_s1 + $0x1340] ss:$8 sps:$4 sm:$0xff]  }
 0x54a   : > { %14602 = vmatpush1.bf16.msra.mxu0 %v19375_v32  ;;  %13373 = vmatprep.subr.bf16.mxu1 %v19380_v11  ;;  %v19453_v32 = vld [vmem:[%s21082_s1 + $0x3140] ss:$8 sps:$4 sm:$0xff]   ;;  %v19458_v11 = vld [vmem:[%s21082_s1 + $0x1354] ss:$8 sps:$4 sm:$0xff]  }
 0x54b   : > { %14603 = vmatprep.subr.bf16.mxu0 %v19383_v12  ;;  %v19461_v12 = vld [vmem:[%s21082_s1 + $0x3154] ss:$8 sps:$4 sm:$0xff]  }
 0x54d   : > { %13374 = vmatpush1.bf16.msra.mxu1 %v19378_v7  ;;  %v19456_v7 = vld [vmem:[%s21082_s1 + $0x1350] ss:$8 sps:$4 sm:$0xff]  }
 0x54e   : > { %14604 = vmatpush1.bf16.msra.mxu0 %v19381_v8  ;;  %13375 = vmatprep.subr.bf16.mxu1 %v19386_v35  ;;  %v19459_v8 = vld [vmem:[%s21082_s1 + $0x3150] ss:$8 sps:$4 sm:$0xff]   ;;  %v19464_v35 = vld [vmem:[%s21082_s1 + $0x1364] ss:$8 sps:$4 sm:$0xff]  }
 0x54f   : > { %14605 = vmatprep.subr.bf16.mxu0 %v19389_v37  ;;  %v19467_v37 = vld [vmem:[%s21082_s1 + $0x3164] ss:$8 sps:$4 sm:$0xff]  }
 0x551   : > { %13376 = vmatpush1.bf16.msra.mxu1 %v19384_v40  ;;  %v19462_v40 = vld [vmem:[%s21082_s1 + $0x1360] ss:$8 sps:$4 sm:$0xff]  }
 0x552   : > { %14606 = vmatpush1.bf16.msra.mxu0 %v19387_v42  ;;  %13377 = vmatprep.subr.bf16.mxu1 %v19392_v21  ;;  %v19465_v42 = vld [vmem:[%s21082_s1 + $0x3160] ss:$8 sps:$4 sm:$0xff]   ;;  %v19470_v21 = vld [vmem:[%s21082_s1 + $0x1374] ss:$8 sps:$4 sm:$0xff]  }
 0x553   : > { %14607 = vmatprep.subr.bf16.mxu0 %v19395_v22  ;;  %v19473_v22 = vld [vmem:[%s21082_s1 + $0x3174] ss:$8 sps:$4 sm:$0xff]  }
 0x555   : > { %13378 = vmatpush1.bf16.msra.mxu1 %v19390_v45  ;;  %v19468_v45 = vld [vmem:[%s21082_s1 + $0x1370] ss:$8 sps:$4 sm:$0xff]  }
 0x556   : > { %14608 = vmatpush1.bf16.msra.mxu0 %v19393_v15  ;;  %13379 = vmatprep.subr.bf16.mxu1 %v19398_v19  ;;  %v19471_v15 = vld [vmem:[%s21082_s1 + $0x3170] ss:$8 sps:$4 sm:$0xff]   ;;  %v19476_v19 = vld [vmem:[%s21082_s1 + $0x1384] ss:$8 sps:$4 sm:$0xff]  }
 0x557   : > { %14609 = vmatprep.subr.bf16.mxu0 %v19401_v20  ;;  %v19479_v20 = vld [vmem:[%s21082_s1 + $0x3184] ss:$8 sps:$4 sm:$0xff]  }
 0x559   : > { %13380 = vmatpush1.bf16.msra.mxu1 %v19396_v53  ;;  %v19474_v53 = vld [vmem:[%s21082_s1 + $0x1380] ss:$8 sps:$4 sm:$0xff]  }
 0x55a   : > { %14610 = vmatpush1.bf16.msra.mxu0 %v19399_v54  ;;  %13381 = vmatprep.subr.bf16.mxu1 %v19404_v29  ;;  %v19477_v54 = vld [vmem:[%s21082_s1 + $0x3180] ss:$8 sps:$4 sm:$0xff]   ;;  %v19482_v29 = vld [vmem:[%s21082_s1 + $0x1394] ss:$8 sps:$4 sm:$0xff]  }
 0x55b   : > { %14611 = vmatprep.subr.bf16.mxu0 %v19407_v30  ;;  %v19485_v30 = vld [vmem:[%s21082_s1 + $0x3194] ss:$8 sps:$4 sm:$0xff]  }
 0x55d   : > { %13382 = vmatpush1.bf16.msra.mxu1 %v19402_v25  ;;  %v19480_v25 = vld [vmem:[%s21082_s1 + $0x1390] ss:$8 sps:$4 sm:$0xff]  }
 0x55e   : > { %14612 = vmatpush1.bf16.msra.mxu0 %v19405_v26  ;;  %13383 = vmatprep.subr.bf16.mxu1 %v19410_v59  ;;  %v19483_v26 = vld [vmem:[%s21082_s1 + $0x3190] ss:$8 sps:$4 sm:$0xff]   ;;  %v19488_v59 = vld [vmem:[%s21082_s1 + $0x13a4] ss:$8 sps:$4 sm:$0xff]  }
 0x55f   : > { %14613 = vmatprep.subr.bf16.mxu0 %v19413_v38  ;;  %v19491_v38 = vld [vmem:[%s21082_s1 + $0x31a4] ss:$8 sps:$4 sm:$0xff]  }
 0x561   : > { %13384 = vmatpush1.bf16.msra.mxu1 %v19408_v61  ;;  %v19486_v61 = vld [vmem:[%s21082_s1 + $0x13a0] ss:$8 sps:$4 sm:$0xff]  }
 0x562   : > { %14614 = vmatpush1.bf16.msra.mxu0 %v19411_v62  ;;  %13385 = vmatprep.subr.bf16.mxu1 %v19416_v16  ;;  %v19489_v62 = vld [vmem:[%s21082_s1 + $0x31a0] ss:$8 sps:$4 sm:$0xff]   ;;  %v19494_v16 = vld [vmem:[%s21082_s1 + $0x13b4] ss:$8 sps:$4 sm:$0xff]  }
 0x563   : > { %14615 = vmatprep.subr.bf16.mxu0 %v19419_v39  ;;  %v19497_v39 = vld [vmem:[%s21082_s1 + $0x31b4] ss:$8 sps:$4 sm:$0xff]  }
 0x565   : > { %13386 = vmatpush1.bf16.msra.mxu1 %v19414_v1  ;;  %v19500_v1 = vld [vmem:[%s21082_s1 + $0x13c4] ss:$8 sps:$4 sm:$0xff]  }
 0x566   : > { %14616 = vmatpush1.bf16.msra.mxu0 %v19417_v2  ;;  %13387 = vmatprep.subr.bf16.mxu1 %v19422_v5  ;;  %v19503_v2 = vld [vmem:[%s21082_s1 + $0x31c4] ss:$8 sps:$4 sm:$0xff]   ;;  %v19498_v5 = vld [vmem:[%s21082_s1 + $0x13c0] ss:$8 sps:$4 sm:$0xff]  }
 0x567   : > { %14617 = vmatprep.subr.bf16.mxu0 %v19425_v6  ;;  %v19501_v6 = vld [vmem:[%s21082_s1 + $0x31c0] ss:$8 sps:$4 sm:$0xff]  }
 0x569   : > { %13388 = vmatpush1.bf16.msra.mxu1 %v19420_v48  ;;  %v19506_v48 = vld [vmem:[%s21082_s1 + $0x13d4] ss:$8 sps:$4 sm:$0xff]  }
 0x56a   : > { %14618 = vmatpush1.bf16.msra.mxu0 %v19423_v49  ;;  %13398 = vmatprep.subr.bf16.mxu1 %v19428_v51  ;;  %v19509_v49 = vld [vmem:[%s21082_s1 + $0x31d4] ss:$8 sps:$4 sm:$0xff]   ;;  %v19504_v51 = vld [vmem:[%s21082_s1 + $0x13d0] ss:$8 sps:$4 sm:$0xff]  }
 0x56b   : > { %14628 = vmatprep.subr.bf16.mxu0 %v19431_v52  ;;  %v19507_v52 = vld [vmem:[%s21082_s1 + $0x31d0] ss:$8 sps:$4 sm:$0xff]  }
 0x56c   : > { %13390 = vmatmul.mubr.bf16.vlgmr.msra.gmra.mrb[0].mxu1 %v1014_v9  ;;  %v22763_v9 = vld [vmem:[%s21074_s27 + $0x50] sm:$0xff] }
 0x56d   : > { %14620 = vmatmul.mubr.bf16.vlgmr.msra.gmra.mrb[0].mxu0 %v1074_v10  ;;  %13399 = vmatpush1.bf16.msra.mxu1 %v19426_v13  ;;  %v22766_v10 = vld [vmem:[%s21074_s27 + $0xc8] sm:$0xff] }
 0x56e   : > { %14629 = vmatpush1.bf16.msra.mxu0 %v19429_v14  ;;  %13400 = vmatprep.subr.bf16.mxu1 %v19434_v41  ;;  %v19510_v13 = vld [vmem:[%s21082_s1 + $0x13e0] ss:$8 sps:$4 sm:$0xff]   ;;  %v19518_v41 = vld [vmem:[%s21082_s1 + $0x13f4] ss:$8 sps:$4 sm:$0xff]  }
 0x56f   : > { %14630 = vmatprep.subr.bf16.mxu0 %v19437_v60  ;;  %13430 = vmatprep.mubr.bf16.mxu1 %v1017_v17  ;;  %v19513_v14 = vld [vmem:[%s21082_s1 + $0x31e0] ss:$8 sps:$4 sm:$0xff]   ;;  %v19521_v60 = vld [vmem:[%s21082_s1 + $0x31f4] ss:$8 sps:$4 sm:$0xff]   ;;  %v22774_v17 = vrot.slane %v22763_v9, %v21150_v50 }
 0x570   : > { %14660 = vmatprep.mubr.bf16.mxu0 %v1077_v18  ;;  %v22778_v18 = vrot.slane %v22766_v10, %v21150_v50 }
 0x571   : > { %13401 = vmatpush1.bf16.msra.mxu1 %v19432_v55  ;;  %v19516_v55 = vld [vmem:[%s21082_s1 + $0x13f0] ss:$8 sps:$4 sm:$0xff]  }
 0x572   : > { %14631 = vmatpush1.bf16.msra.mxu0 %v19435_v56  ;;  %13402 = vmatprep.subr.bf16.mxu1 %v19440_v57  ;;  %v19519_v56 = vld [vmem:[%s21082_s1 + $0x31f0] ss:$8 sps:$4 sm:$0xff]   ;;  %v19525_v57 = vld [vmem:[%s21082_s1 + $0x1404] ss:$8 sps:$4 sm:$0xff]  }
 0x573   : > { %14632 = vmatprep.subr.bf16.mxu0 %v19443_v58  ;;  %v19529_v58 = vld [vmem:[%s21082_s1 + $0x3204] ss:$8 sps:$4 sm:$0xff]  }
 0x575   : > { %13403 = vmatpush1.bf16.msra.mxu1 %v19438_v23  ;;  %v533_v23 = vcombine.high %v22774_v17, %v22774_v17 }
 0x576   : > { %14633 = vmatpush1.bf16.msra.mxu0 %v19441_v24  ;;  %13404 = vmatprep.subr.bf16.mxu1 %v19446_v3  ;;  %v788_v24 = vcombine.high %v22778_v18, %v22778_v18  ;;  %v1016_v3 = vpack.c.bf16 %v22689_v43, %v22689_v43  ;;  %v19530_v43 = vld [vmem:[%s21082_s1 + $0x1410] ss:$8 sps:$4 sm:$0xff]  }
 0x577   : > { %14634 = vmatprep.subr.bf16.mxu0 %v19449_v4  ;;  %v1076_v4 = vpack.c.bf16 %v22692_v36, %v22692_v36  ;;  %v19533_v36 = vld [vmem:[%s21082_s1 + $0x3210] ss:$8 sps:$4 sm:$0xff]  }
 0x579   : > { %13405 = vmatpush1.bf16.msra.mxu1 %v19444_v63  ;;  %v19523_v63 = vld [vmem:[%s21082_s1 + $0x1400] ss:$8 sps:$4 sm:$0xff]  }
 0x57a   : > { %14635 = vmatpush1.bf16.msra.mxu0 %v19447_v0  ;;  %13406 = vmatprep.subr.bf16.mxu1 %v19452_v27  ;;  %v19527_v0 = vld [vmem:[%s21082_s1 + $0x3200] ss:$8 sps:$4 sm:$0xff]   ;;  %v19532_v27 = vld [vmem:[%s21082_s1 + $0x1414] ss:$8 sps:$4 sm:$0xff]  }
 0x57b   : > { %14636 = vmatprep.subr.bf16.mxu0 %v19455_v28  ;;  %v19535_v28 = vld [vmem:[%s21082_s1 + $0x3214] ss:$8 sps:$4 sm:$0xff]  }
 0x57d   : > { %13407 = vmatpush1.bf16.msra.mxu1 %v19450_v31  ;;  %v1019_v31 = vpack.c.bf16 %v533_v23, %v533_v23  ;;  %v19602_v23 = vld [vmem:[%s21082_s1 + $0x14d0] ss:$8 sps:$4 sm:$0xff]  }
 0x57e   : > { %14637 = vmatpush1.bf16.msra.mxu0 %v19453_v32  ;;  %13408 = vmatprep.subr.bf16.mxu1 %v19458_v11  ;;  %v1079_v32 = vpack.c.bf16 %v788_v24, %v788_v24  ;;  %v19538_v11 = vld [vmem:[%s21082_s1 + $0x1424] ss:$8 sps:$4 sm:$0xff]   ;;  %v19605_v24 = vld [vmem:[%s21082_s1 + $0x32d0] ss:$8 sps:$4 sm:$0xff]  }
 0x57f   : > { %14638 = vmatprep.subr.bf16.mxu0 %v19461_v12  ;;  %v19541_v12 = vld [vmem:[%s21082_s1 + $0x3224] ss:$8 sps:$4 sm:$0xff]  }
 0x581   : > { %13409 = vmatpush1.bf16.msra.mxu1 %v19456_v7  ;;  %v19536_v7 = vld [vmem:[%s21082_s1 + $0x1420] ss:$8 sps:$4 sm:$0xff]  }
 0x582   : > { %14639 = vmatpush1.bf16.msra.mxu0 %v19459_v8  ;;  %13410 = vmatprep.subr.bf16.mxu1 %v19464_v35  ;;  %v19539_v8 = vld [vmem:[%s21082_s1 + $0x3220] ss:$8 sps:$4 sm:$0xff]   ;;  %v19544_v35 = vld [vmem:[%s21082_s1 + $0x1434] ss:$8 sps:$4 sm:$0xff]  }
 0x583   : > { %14640 = vmatprep.subr.bf16.mxu0 %v19467_v37  ;;  %v19547_v37 = vld [vmem:[%s21082_s1 + $0x3234] ss:$8 sps:$4 sm:$0xff]  }
 0x585   : > { %13411 = vmatpush1.bf16.msra.mxu1 %v19462_v40  ;;  %v19542_v40 = vld [vmem:[%s21082_s1 + $0x1430] ss:$8 sps:$4 sm:$0xff]  }
 0x586   : > { %14641 = vmatpush1.bf16.msra.mxu0 %v19465_v42  ;;  %13412 = vmatprep.subr.bf16.mxu1 %v19470_v21  ;;  %v19545_v42 = vld [vmem:[%s21082_s1 + $0x3230] ss:$8 sps:$4 sm:$0xff]   ;;  %v19550_v21 = vld [vmem:[%s21082_s1 + $0x1444] ss:$8 sps:$4 sm:$0xff]  }
 0x587   : > { %14642 = vmatprep.subr.bf16.mxu0 %v19473_v22  ;;  %v19553_v22 = vld [vmem:[%s21082_s1 + $0x3244] ss:$8 sps:$4 sm:$0xff]  }
 0x589   : > { %13413 = vmatpush1.bf16.msra.mxu1 %v19468_v45  ;;  %v19548_v45 = vld [vmem:[%s21082_s1 + $0x1440] ss:$8 sps:$4 sm:$0xff]  }
 0x58a   : > { %14643 = vmatpush1.bf16.msra.mxu0 %v19471_v15  ;;  %13414 = vmatprep.subr.bf16.mxu1 %v19476_v19  ;;  %v19551_v15 = vld [vmem:[%s21082_s1 + $0x3240] ss:$8 sps:$4 sm:$0xff]   ;;  %v19556_v19 = vld [vmem:[%s21082_s1 + $0x1454] ss:$8 sps:$4 sm:$0xff]  }
 0x58b   : > { %14644 = vmatprep.subr.bf16.mxu0 %v19479_v20  ;;  %v19559_v20 = vld [vmem:[%s21082_s1 + $0x3254] ss:$8 sps:$4 sm:$0xff]  }
 0x58d   : > { %13415 = vmatpush1.bf16.msra.mxu1 %v19474_v53  ;;  %v19554_v53 = vld [vmem:[%s21082_s1 + $0x1450] ss:$8 sps:$4 sm:$0xff]  }
 0x58e   : > { %14645 = vmatpush1.bf16.msra.mxu0 %v19477_v54  ;;  %13416 = vmatprep.subr.bf16.mxu1 %v19482_v29  ;;  %v19557_v54 = vld [vmem:[%s21082_s1 + $0x3250] ss:$8 sps:$4 sm:$0xff]   ;;  %v19562_v29 = vld [vmem:[%s21082_s1 + $0x1464] ss:$8 sps:$4 sm:$0xff]  }
 0x58f   : > { %14646 = vmatprep.subr.bf16.mxu0 %v19485_v30  ;;  %v19565_v30 = vld [vmem:[%s21082_s1 + $0x3264] ss:$8 sps:$4 sm:$0xff]  }
 0x591   : > { %13417 = vmatpush1.bf16.msra.mxu1 %v19480_v25  ;;  %v19560_v25 = vld [vmem:[%s21082_s1 + $0x1460] ss:$8 sps:$4 sm:$0xff]  }
 0x592   : > { %14647 = vmatpush1.bf16.msra.mxu0 %v19483_v26  ;;  %13418 = vmatprep.subr.bf16.mxu1 %v19488_v59  ;;  %v19563_v26 = vld [vmem:[%s21082_s1 + $0x3260] ss:$8 sps:$4 sm:$0xff]   ;;  %v19568_v59 = vld [vmem:[%s21082_s1 + $0x1474] ss:$8 sps:$4 sm:$0xff]  }
 0x593   : > { %14648 = vmatprep.subr.bf16.mxu0 %v19491_v38  ;;  %v19571_v38 = vld [vmem:[%s21082_s1 + $0x3274] ss:$8 sps:$4 sm:$0xff]  }
 0x595   : > { %13419 = vmatpush1.bf16.msra.mxu1 %v19486_v61  ;;  %v19566_v61 = vld [vmem:[%s21082_s1 + $0x1470] ss:$8 sps:$4 sm:$0xff]  }
 0x596   : > { %14649 = vmatpush1.bf16.msra.mxu0 %v19489_v62  ;;  %13420 = vmatprep.subr.bf16.mxu1 %v19494_v16  ;;  %v19569_v62 = vld [vmem:[%s21082_s1 + $0x3270] ss:$8 sps:$4 sm:$0xff]   ;;  %v19574_v16 = vld [vmem:[%s21082_s1 + $0x1484] ss:$8 sps:$4 sm:$0xff]  }
 0x597   : > { %14650 = vmatprep.subr.bf16.mxu0 %v19497_v39  ;;  %v19577_v39 = vld [vmem:[%s21082_s1 + $0x3284] ss:$8 sps:$4 sm:$0xff]  }
 0x599   : > { %13421 = vmatpush1.bf16.msra.mxu1 %v19492_v33  ;;  %v19572_v33 = vld [vmem:[%s21082_s1 + $0x1480] ss:$8 sps:$4 sm:$0xff]  }
 0x59a   : > { %14651 = vmatpush1.bf16.msra.mxu0 %v19495_v34  ;;  %13422 = vmatprep.subr.bf16.mxu1 %v19500_v1  ;;  %v19575_v34 = vld [vmem:[%s21082_s1 + $0x3280] ss:$8 sps:$4 sm:$0xff]   ;;  %v19580_v1 = vld [vmem:[%s21082_s1 + $0x1494] ss:$8 sps:$4 sm:$0xff]  }
 0x59b   : > { %14652 = vmatprep.subr.bf16.mxu0 %v19503_v2  ;;  %v19583_v2 = vld [vmem:[%s21082_s1 + $0x3294] ss:$8 sps:$4 sm:$0xff]  }
 0x59d   : > { %13423 = vmatpush1.bf16.msra.mxu1 %v19498_v5  ;;  %v19578_v5 = vld [vmem:[%s21082_s1 + $0x1490] ss:$8 sps:$4 sm:$0xff]  }
 0x59e   : > { %14653 = vmatpush1.bf16.msra.mxu0 %v19501_v6  ;;  %13424 = vmatprep.subr.bf16.mxu1 %v19506_v48  ;;  %v19581_v6 = vld [vmem:[%s21082_s1 + $0x3290] ss:$8 sps:$4 sm:$0xff]   ;;  %v19586_v48 = vld [vmem:[%s21082_s1 + $0x14a4] ss:$8 sps:$4 sm:$0xff]  }
 0x59f   : > { %14654 = vmatprep.subr.bf16.mxu0 %v19509_v49  ;;  %v19589_v49 = vld [vmem:[%s21082_s1 + $0x32a4] ss:$8 sps:$4 sm:$0xff]  }
 0x5a1   : > { %13425 = vmatpush1.bf16.msra.mxu1 %v19504_v51  ;;  %v19584_v51 = vld [vmem:[%s21082_s1 + $0x14a0] ss:$8 sps:$4 sm:$0xff]  }
 0x5a2   : > { %14655 = vmatpush1.bf16.msra.mxu0 %v19507_v52  ;;  %13426 = vmatprep.subr.bf16.mxu1 %v19512_v46  ;;  %v19587_v52 = vld [vmem:[%s21082_s1 + $0x32a0] ss:$8 sps:$4 sm:$0xff]   ;;  %v19592_v46 = vld [vmem:[%s21082_s1 + $0x14b4] ss:$8 sps:$4 sm:$0xff]  }
 0x5a3   : > { %14656 = vmatprep.subr.bf16.mxu0 %v19515_v47  ;;  %v19595_v47 = vld [vmem:[%s21082_s1 + $0x32b4] ss:$8 sps:$4 sm:$0xff]  }
 0x5a5   : > { %13427 = vmatpush1.bf16.msra.mxu1 %v19510_v13  ;;  %v19590_v13 = vld [vmem:[%s21082_s1 + $0x14b0] ss:$8 sps:$4 sm:$0xff]  }
 0x5a6   : > { %14657 = vmatpush1.bf16.msra.mxu0 %v19513_v14  ;;  %13428 = vmatprep.subr.bf16.mxu1 %v19518_v41  ;;  %v19593_v14 = vld [vmem:[%s21082_s1 + $0x32b0] ss:$8 sps:$4 sm:$0xff]   ;;  %v19598_v41 = vld [vmem:[%s21082_s1 + $0x14c4] ss:$8 sps:$4 sm:$0xff]  }
 0x5a7   : > { %14658 = vmatprep.subr.bf16.mxu0 %v19521_v60  ;;  %v19601_v60 = vld [vmem:[%s21082_s1 + $0x32c4] ss:$8 sps:$4 sm:$0xff]  }
 0x5a9   : > { %13429 = vmatpush1.bf16.msra.mxu1 %v19516_v55  ;;  %v19596_v55 = vld [vmem:[%s21082_s1 + $0x14c0] ss:$8 sps:$4 sm:$0xff]  }
 0x5aa   : > { %14659 = vmatpush1.bf16.msra.mxu0 %v19519_v56  ;;  %13439 = vmatprep.subr.bf16.mxu1 %v19525_v57  ;;  %v19599_v56 = vld [vmem:[%s21082_s1 + $0x32c0] ss:$8 sps:$4 sm:$0xff]   ;;  %v19604_v57 = vld [vmem:[%s21082_s1 + $0x14d4] ss:$8 sps:$4 sm:$0xff]  }
 0x5ab   : > { %14669 = vmatprep.subr.bf16.mxu0 %v19529_v58  ;;  %v19607_v58 = vld [vmem:[%s21082_s1 + $0x32d4] ss:$8 sps:$4 sm:$0xff]  }
 0x5ac   : > { %13431 = vmatmul.mubr.bf16.vlgmr.msra.gmra.mrb[0].mxu1 %v1016_v3  ;;  %v19610_v3 = vld [vmem:[%s21082_s1 + $0x14e4] ss:$8 sps:$4 sm:$0xff]  }
 0x5ad   : > { %14661 = vmatmul.mubr.bf16.vlgmr.msra.gmra.mrb[0].mxu0 %v1076_v4  ;;  %13440 = vmatpush1.bf16.msra.mxu1 %v19523_v63  ;;  %v19613_v4 = vld [vmem:[%s21082_s1 + $0x32e4] ss:$8 sps:$4 sm:$0xff]   ;;  %v518_v63 = vcombine.high %v22763_v9, %v22763_v9  ;;  %v19614_v9 = vld [vmem:[%s21082_s1 + $0x14f0] ss:$8 sps:$4 sm:$0xff]  }
 0x5ae   : > { %14670 = vmatpush1.bf16.msra.mxu0 %v19527_v0  ;;  %13441 = vmatprep.subr.bf16.mxu1 %v19532_v27  ;;  %v773_v0 = vcombine.high %v22766_v10, %v22766_v10  ;;  %v19608_v27 = vld [vmem:[%s21082_s1 + $0x14e0] ss:$8 sps:$4 sm:$0xff]   ;;  %v19617_v10 = vld [vmem:[%s21082_s1 + $0x32f0] ss:$8 sps:$4 sm:$0xff]  }
 0x5af   : > { %14671 = vmatprep.subr.bf16.mxu0 %v19535_v28  ;;  %13471 = vmatprep.mubr.bf16.mxu1 %v1019_v31  ;;  %v19611_v28 = vld [vmem:[%s21082_s1 + $0x32e0] ss:$8 sps:$4 sm:$0xff]   ;;  %v19616_v31 = vld [vmem:[%s21082_s1 + $0x14f4] ss:$8 sps:$4 sm:$0xff]  }
 0x5b0   : > { %14701 = vmatprep.mubr.bf16.mxu0 %v1079_v32  ;;  %v19619_v32 = vld [vmem:[%s21082_s1 + $0x32f4] ss:$8 sps:$4 sm:$0xff]  }
 0x5b1   : > { %13442 = vmatpush1.bf16.msra.mxu1 %v19530_v43  ;;  %v22857_v43 = vrot.slane %v518_v63, %v21150_v50  ;;  %v19686_v63 = vld [vmem:[%s21082_s1 + $0x15b0] ss:$8 sps:$4 sm:$0xff]  }
 0x5b2   : > { %14672 = vmatpush1.bf16.msra.mxu0 %v19533_v36  ;;  %13443 = vmatprep.subr.bf16.mxu1 %v19538_v11  ;;  %v22860_v36 = vrot.slane %v773_v0, %v21150_v50  ;;  %v19622_v11 = vld [vmem:[%s21082_s1 + $0x1504] ss:$8 sps:$4 sm:$0xff]   ;;  %v19689_v0 = vld [vmem:[%s21082_s1 + $0x33b0] ss:$8 sps:$4 sm:$0xff]  }
 0x5b3   : > { %14673 = vmatprep.subr.bf16.mxu0 %v19541_v12  ;;  %v19625_v12 = vld [vmem:[%s21082_s1 + $0x3304] ss:$8 sps:$4 sm:$0xff]  }
 0x5b5   : > { %13444 = vmatpush1.bf16.msra.mxu1 %v19536_v7  ;;  %v534_v7 = vcombine.high %v22857_v43, %v22857_v43 }
 0x5b6   : > { %14674 = vmatpush1.bf16.msra.mxu0 %v19539_v8  ;;  %13445 = vmatprep.subr.bf16.mxu1 %v19544_v35  ;;  %v789_v8 = vcombine.high %v22860_v36, %v22860_v36  ;;  %v1018_v35 = vpack.c.bf16 %v22774_v17, %v22774_v17  ;;  %v19626_v17 = vld [vmem:[%s21082_s1 + $0x1510] ss:$8 sps:$4 sm:$0xff]  }
 0x5b7   : > { %14675 = vmatprep.subr.bf16.mxu0 %v19547_v37  ;;  %v1078_v37 = vpack.c.bf16 %v22778_v18, %v22778_v18  ;;  %v19629_v18 = vld [vmem:[%s21082_s1 + $0x3310] ss:$8 sps:$4 sm:$0xff]  }
 0x5b9   : > { %13446 = vmatpush1.bf16.msra.mxu1 %v19542_v40  ;;  %v19620_v40 = vld [vmem:[%s21082_s1 + $0x1500] ss:$8 sps:$4 sm:$0xff]  }
 0x5ba   : > { %14676 = vmatpush1.bf16.msra.mxu0 %v19545_v42  ;;  %13447 = vmatprep.subr.bf16.mxu1 %v19550_v21  ;;  %v19623_v42 = vld [vmem:[%s21082_s1 + $0x3300] ss:$8 sps:$4 sm:$0xff]   ;;  %v19628_v21 = vld [vmem:[%s21082_s1 + $0x1514] ss:$8 sps:$4 sm:$0xff]  }
 0x5bb   : > { %14677 = vmatprep.subr.bf16.mxu0 %v19553_v22  ;;  %v19631_v22 = vld [vmem:[%s21082_s1 + $0x3314] ss:$8 sps:$4 sm:$0xff]  }
 0x5bd   : > { %13448 = vmatpush1.bf16.msra.mxu1 %v19548_v45  ;;  %v1021_v45 = vpack.c.bf16 %v534_v7, %v534_v7  ;;  %v19706_v7 = vld [vmem:[%s21082_s1 + $0x15e4] ss:$8 sps:$4 sm:$0xff]  }
 0x5be   : > { %14678 = vmatpush1.bf16.msra.mxu0 %v19551_v15  ;;  %13449 = vmatprep.subr.bf16.mxu1 %v19556_v19  ;;  %v1081_v15 = vpack.c.bf16 %v789_v8, %v789_v8  ;;  %v19634_v19 = vld [vmem:[%s21082_s1 + $0x1524] ss:$8 sps:$4 sm:$0xff]  }
 0x5bf   : > { %14679 = vmatprep.subr.bf16.mxu0 %v19559_v20  ;;  %v19637_v20 = vld [vmem:[%s21082_s1 + $0x3324] ss:$8 sps:$4 sm:$0xff]  }
 0x5c0   : > { %v19709_v8 = vld [vmem:[%s21082_s1 + $0x33e4] ss:$8 sps:$4 sm:$0xff]  }
 0x5c1   : > { %13450 = vmatpush1.bf16.msra.mxu1 %v19554_v53  ;;  %v19632_v53 = vld [vmem:[%s21082_s1 + $0x1520] ss:$8 sps:$4 sm:$0xff]  }
 0x5c2   : > { %14680 = vmatpush1.bf16.msra.mxu0 %v19557_v54  ;;  %13451 = vmatprep.subr.bf16.mxu1 %v19562_v29  ;;  %v19635_v54 = vld [vmem:[%s21082_s1 + $0x3320] ss:$8 sps:$4 sm:$0xff]   ;;  %v19640_v29 = vld [vmem:[%s21082_s1 + $0x1534] ss:$8 sps:$4 sm:$0xff]  }
 0x5c3   : > { %14681 = vmatprep.subr.bf16.mxu0 %v19565_v30  ;;  %v19643_v30 = vld [vmem:[%s21082_s1 + $0x3334] ss:$8 sps:$4 sm:$0xff]  }
 0x5c5   : > { %13452 = vmatpush1.bf16.msra.mxu1 %v19560_v25  ;;  %v19638_v25 = vld [vmem:[%s21082_s1 + $0x1530] ss:$8 sps:$4 sm:$0xff]  }
 0x5c6   : > { %14682 = vmatpush1.bf16.msra.mxu0 %v19563_v26  ;;  %13453 = vmatprep.subr.bf16.mxu1 %v19568_v59  ;;  %v19641_v26 = vld [vmem:[%s21082_s1 + $0x3330] ss:$8 sps:$4 sm:$0xff]   ;;  %v19646_v59 = vld [vmem:[%s21082_s1 + $0x1544] ss:$8 sps:$4 sm:$0xff]  }
 0x5c7   : > { %14683 = vmatprep.subr.bf16.mxu0 %v19571_v38  ;;  %v19649_v38 = vld [vmem:[%s21082_s1 + $0x3344] ss:$8 sps:$4 sm:$0xff]  }
 0x5c9   : > { %13454 = vmatpush1.bf16.msra.mxu1 %v19566_v61  ;;  %v19644_v61 = vld [vmem:[%s21082_s1 + $0x1540] ss:$8 sps:$4 sm:$0xff]  }
 0x5ca   : > { %14684 = vmatpush1.bf16.msra.mxu0 %v19569_v62  ;;  %13455 = vmatprep.subr.bf16.mxu1 %v19574_v16  ;;  %v19647_v62 = vld [vmem:[%s21082_s1 + $0x3340] ss:$8 sps:$4 sm:$0xff]   ;;  %v19652_v16 = vld [vmem:[%s21082_s1 + $0x1554] ss:$8 sps:$4 sm:$0xff]  }
 0x5cb   : > { %14685 = vmatprep.subr.bf16.mxu0 %v19577_v39  ;;  %v19655_v39 = vld [vmem:[%s21082_s1 + $0x3354] ss:$8 sps:$4 sm:$0xff]  }
 0x5cd   : > { %13456 = vmatpush1.bf16.msra.mxu1 %v19572_v33  ;;  %v19650_v33 = vld [vmem:[%s21082_s1 + $0x1550] ss:$8 sps:$4 sm:$0xff]  }
 0x5ce   : > { %14686 = vmatpush1.bf16.msra.mxu0 %v19575_v34  ;;  %13457 = vmatprep.subr.bf16.mxu1 %v19580_v1  ;;  %v19653_v34 = vld [vmem:[%s21082_s1 + $0x3350] ss:$8 sps:$4 sm:$0xff]   ;;  %v19658_v1 = vld [vmem:[%s21082_s1 + $0x1564] ss:$8 sps:$4 sm:$0xff]  }
 0x5cf   : > { %14687 = vmatprep.subr.bf16.mxu0 %v19583_v2  ;;  %v19661_v2 = vld [vmem:[%s21082_s1 + $0x3364] ss:$8 sps:$4 sm:$0xff]  }
 0x5d1   : > { %13458 = vmatpush1.bf16.msra.mxu1 %v19578_v5  ;;  %v19656_v5 = vld [vmem:[%s21082_s1 + $0x1560] ss:$8 sps:$4 sm:$0xff]  }
 0x5d2   : > { %14688 = vmatpush1.bf16.msra.mxu0 %v19581_v6  ;;  %13459 = vmatprep.subr.bf16.mxu1 %v19586_v48  ;;  %v19659_v6 = vld [vmem:[%s21082_s1 + $0x3360] ss:$8 sps:$4 sm:$0xff]   ;;  %v19664_v48 = vld [vmem:[%s21082_s1 + $0x1574] ss:$8 sps:$4 sm:$0xff]  }
 0x5d3   : > { %14689 = vmatprep.subr.bf16.mxu0 %v19589_v49  ;;  %v19667_v49 = vld [vmem:[%s21082_s1 + $0x3374] ss:$8 sps:$4 sm:$0xff]  }
 0x5d5   : > { %13460 = vmatpush1.bf16.msra.mxu1 %v19584_v51  ;;  %v19662_v51 = vld [vmem:[%s21082_s1 + $0x1570] ss:$8 sps:$4 sm:$0xff]  }
 0x5d6   : > { %14690 = vmatpush1.bf16.msra.mxu0 %v19587_v52  ;;  %13461 = vmatprep.subr.bf16.mxu1 %v19592_v46  ;;  %v19665_v52 = vld [vmem:[%s21082_s1 + $0x3370] ss:$8 sps:$4 sm:$0xff]   ;;  %v19670_v46 = vld [vmem:[%s21082_s1 + $0x1584] ss:$8 sps:$4 sm:$0xff]  }
 0x5d7   : > { %14691 = vmatprep.subr.bf16.mxu0 %v19595_v47  ;;  %v19673_v47 = vld [vmem:[%s21082_s1 + $0x3384] ss:$8 sps:$4 sm:$0xff]  }
 0x5d9   : > { %13462 = vmatpush1.bf16.msra.mxu1 %v19590_v13  ;;  %v19668_v13 = vld [vmem:[%s21082_s1 + $0x1580] ss:$8 sps:$4 sm:$0xff]  }
 0x5da   : > { %14692 = vmatpush1.bf16.msra.mxu0 %v19593_v14  ;;  %13463 = vmatprep.subr.bf16.mxu1 %v19598_v41  ;;  %v19671_v14 = vld [vmem:[%s21082_s1 + $0x3380] ss:$8 sps:$4 sm:$0xff]   ;;  %v19676_v41 = vld [vmem:[%s21082_s1 + $0x1594] ss:$8 sps:$4 sm:$0xff]  }
 0x5db   : > { %14693 = vmatprep.subr.bf16.mxu0 %v19601_v60  ;;  %v19679_v60 = vld [vmem:[%s21082_s1 + $0x3394] ss:$8 sps:$4 sm:$0xff]  }
 0x5dd   : > { %13464 = vmatpush1.bf16.msra.mxu1 %v19596_v55  ;;  %v19674_v55 = vld [vmem:[%s21082_s1 + $0x1590] ss:$8 sps:$4 sm:$0xff]  }
 0x5de   : > { %14694 = vmatpush1.bf16.msra.mxu0 %v19599_v56  ;;  %13465 = vmatprep.subr.bf16.mxu1 %v19604_v57  ;;  %v19677_v56 = vld [vmem:[%s21082_s1 + $0x3390] ss:$8 sps:$4 sm:$0xff]   ;;  %v19682_v57 = vld [vmem:[%s21082_s1 + $0x15a4] ss:$8 sps:$4 sm:$0xff]  }
 0x5df   : > { %14695 = vmatprep.subr.bf16.mxu0 %v19607_v58  ;;  %v19685_v58 = vld [vmem:[%s21082_s1 + $0x33a4] ss:$8 sps:$4 sm:$0xff]  }
 0x5e1   : > { %13466 = vmatpush1.bf16.msra.mxu1 %v19602_v23  ;;  %v19680_v23 = vld [vmem:[%s21082_s1 + $0x15a0] ss:$8 sps:$4 sm:$0xff]  }
 0x5e2   : > { %14696 = vmatpush1.bf16.msra.mxu0 %v19605_v24  ;;  %13467 = vmatprep.subr.bf16.mxu1 %v19610_v3  ;;  %v19683_v24 = vld [vmem:[%s21082_s1 + $0x33a0] ss:$8 sps:$4 sm:$0xff]   ;;  %v19688_v3 = vld [vmem:[%s21082_s1 + $0x15b4] ss:$8 sps:$4 sm:$0xff]  }
 0x5e3   : > { %14697 = vmatprep.subr.bf16.mxu0 %v19613_v4  ;;  %v19691_v4 = vld [vmem:[%s21082_s1 + $0x33b4] ss:$8 sps:$4 sm:$0xff]  }
 0x5e5   : > { %13468 = vmatpush1.bf16.msra.mxu1 %v19608_v27  ;;  %v19694_v27 = vld [vmem:[%s21082_s1 + $0x15c4] ss:$8 sps:$4 sm:$0xff]  }
 0x5e6   : > { %14698 = vmatpush1.bf16.msra.mxu0 %v19611_v28  ;;  %13469 = vmatprep.subr.bf16.mxu1 %v19616_v31  ;;  %v19697_v28 = vld [vmem:[%s21082_s1 + $0x33c4] ss:$8 sps:$4 sm:$0xff]   ;;  %v19692_v31 = vld [vmem:[%s21082_s1 + $0x15c0] ss:$8 sps:$4 sm:$0xff]  }
 0x5e7   : > { %14699 = vmatprep.subr.bf16.mxu0 %v19619_v32  ;;  %v19695_v32 = vld [vmem:[%s21082_s1 + $0x33c0] ss:$8 sps:$4 sm:$0xff]  }
 0x5e9   : > { %13470 = vmatpush1.bf16.msra.mxu1 %v19614_v9  ;;  %v19700_v9 = vld [vmem:[%s21082_s1 + $0x15d4] ss:$8 sps:$4 sm:$0xff]  }
 0x5ea   : > { %14700 = vmatpush1.bf16.msra.mxu0 %v19617_v10  ;;  %13480 = vmatprep.subr.bf16.mxu1 %v19622_v11  ;;  %v19703_v10 = vld [vmem:[%s21082_s1 + $0x33d4] ss:$8 sps:$4 sm:$0xff]   ;;  %v19698_v11 = vld [vmem:[%s21082_s1 + $0x15d0] ss:$8 sps:$4 sm:$0xff]  }
 0x5eb   : > { %14710 = vmatprep.subr.bf16.mxu0 %v19625_v12  ;;  %v19701_v12 = vld [vmem:[%s21082_s1 + $0x33d0] ss:$8 sps:$4 sm:$0xff]  }
 0x5ec   : > { %13472 = vmatmul.mubr.bf16.vlgmr.msra.gmra.mrb[0].mxu1 %v1018_v35  ;;  %v22931_v35 = vld [vmem:[%s21074_s27 + $0x58] sm:$0xff] }
 0x5ed   : > { %14702 = vmatmul.mubr.bf16.vlgmr.msra.gmra.mrb[0].mxu0 %v1078_v37  ;;  %13481 = vmatpush1.bf16.msra.mxu1 %v19620_v40  ;;  %v22934_v37 = vld [vmem:[%s21074_s27 + $0xd0] sm:$0xff] }
 0x5ee   : > { %14711 = vmatpush1.bf16.msra.mxu0 %v19623_v42  ;;  %13482 = vmatprep.subr.bf16.mxu1 %v19628_v21  ;;  %v19704_v40 = vld [vmem:[%s21082_s1 + $0x15e0] ss:$8 sps:$4 sm:$0xff]   ;;  %v19712_v21 = vld [vmem:[%s21082_s1 + $0x15f4] ss:$8 sps:$4 sm:$0xff]  }
 0x5ef   : > { %14712 = vmatprep.subr.bf16.mxu0 %v19631_v22  ;;  %13512 = vmatprep.mubr.bf16.mxu1 %v1021_v45  ;;  %v19707_v42 = vld [vmem:[%s21082_s1 + $0x33e0] ss:$8 sps:$4 sm:$0xff]   ;;  %v19715_v22 = vld [vmem:[%s21082_s1 + $0x33f4] ss:$8 sps:$4 sm:$0xff]   ;;  %v22942_v45 = vrot.slane %v22931_v35, %v21150_v50 }
 0x5f0   : > { %14742 = vmatprep.mubr.bf16.mxu0 %v1081_v15  ;;  %v22946_v15 = vrot.slane %v22934_v37, %v21150_v50 }
 0x5f1   : > { %13483 = vmatpush1.bf16.msra.mxu1 %v19626_v17  ;;  %v19710_v17 = vld [vmem:[%s21082_s1 + $0x15f0] ss:$8 sps:$4 sm:$0xff]  }
 0x5f2   : > { %14713 = vmatpush1.bf16.msra.mxu0 %v19629_v18  ;;  %13484 = vmatprep.subr.bf16.mxu1 %v19634_v19  ;;  %v19713_v18 = vld [vmem:[%s21082_s1 + $0x33f0] ss:$8 sps:$4 sm:$0xff]   ;;  %v19719_v19 = vld [vmem:[%s21082_s1 + $0x1604] ss:$8 sps:$4 sm:$0xff]  }
 0x5f3   : > { %14714 = vmatprep.subr.bf16.mxu0 %v19637_v20  ;;  %v19723_v20 = vld [vmem:[%s21082_s1 + $0x3404] ss:$8 sps:$4 sm:$0xff]  }
 0x5f5   : > { %13485 = vmatpush1.bf16.msra.mxu1 %v19632_v53  ;;  %v550_v53 = vcombine.high %v22942_v45, %v22942_v45 }
 0x5f6   : > { %14715 = vmatpush1.bf16.msra.mxu0 %v19635_v54  ;;  %13486 = vmatprep.subr.bf16.mxu1 %v19640_v29  ;;  %v805_v54 = vcombine.high %v22946_v15, %v22946_v15  ;;  %v1020_v29 = vpack.c.bf16 %v22857_v43, %v22857_v43  ;;  %v19724_v43 = vld [vmem:[%s21082_s1 + $0x1610] ss:$8 sps:$4 sm:$0xff]  }
 0x5f7   : > { %14716 = vmatprep.subr.bf16.mxu0 %v19643_v30  ;;  %v1080_v30 = vpack.c.bf16 %v22860_v36, %v22860_v36  ;;  %v19727_v36 = vld [vmem:[%s21082_s1 + $0x3410] ss:$8 sps:$4 sm:$0xff]  }
 0x5f9   : > { %13487 = vmatpush1.bf16.msra.mxu1 %v19638_v25  ;;  %v19717_v25 = vld [vmem:[%s21082_s1 + $0x1600] ss:$8 sps:$4 sm:$0xff]  }
 0x5fa   : > { %14717 = vmatpush1.bf16.msra.mxu0 %v19641_v26  ;;  %13488 = vmatprep.subr.bf16.mxu1 %v19646_v59  ;;  %v19721_v26 = vld [vmem:[%s21082_s1 + $0x3400] ss:$8 sps:$4 sm:$0xff]   ;;  %v19726_v59 = vld [vmem:[%s21082_s1 + $0x1614] ss:$8 sps:$4 sm:$0xff]  }
 0x5fb   : > { %14718 = vmatprep.subr.bf16.mxu0 %v19649_v38  ;;  %v19729_v38 = vld [vmem:[%s21082_s1 + $0x3414] ss:$8 sps:$4 sm:$0xff]  }
 0x5fd   : > { %13489 = vmatpush1.bf16.msra.mxu1 %v19644_v61  ;;  %v1023_v61 = vpack.c.bf16 %v550_v53, %v550_v53  ;;  %v19796_v53 = vld [vmem:[%s21082_s1 + $0x16d0] ss:$8 sps:$4 sm:$0xff]  }
 0x5fe   : > { %14719 = vmatpush1.bf16.msra.mxu0 %v19647_v62  ;;  %13490 = vmatprep.subr.bf16.mxu1 %v19652_v16  ;;  %v1083_v62 = vpack.c.bf16 %v805_v54, %v805_v54  ;;  %v19732_v16 = vld [vmem:[%s21082_s1 + $0x1624] ss:$8 sps:$4 sm:$0xff]   ;;  %v19799_v54 = vld [vmem:[%s21082_s1 + $0x34d0] ss:$8 sps:$4 sm:$0xff]  }
 0x5ff   : > { %14720 = vmatprep.subr.bf16.mxu0 %v19655_v39  ;;  %v19735_v39 = vld [vmem:[%s21082_s1 + $0x3424] ss:$8 sps:$4 sm:$0xff]  }
 0x601   : > { %13491 = vmatpush1.bf16.msra.mxu1 %v19650_v33  ;;  %v19730_v33 = vld [vmem:[%s21082_s1 + $0x1620] ss:$8 sps:$4 sm:$0xff]  }
 0x602   : > { %14721 = vmatpush1.bf16.msra.mxu0 %v19653_v34  ;;  %13492 = vmatprep.subr.bf16.mxu1 %v19658_v1  ;;  %v19733_v34 = vld [vmem:[%s21082_s1 + $0x3420] ss:$8 sps:$4 sm:$0xff]   ;;  %v19738_v1 = vld [vmem:[%s21082_s1 + $0x1634] ss:$8 sps:$4 sm:$0xff]  }
 0x603   : > { %14722 = vmatprep.subr.bf16.mxu0 %v19661_v2  ;;  %v19741_v2 = vld [vmem:[%s21082_s1 + $0x3434] ss:$8 sps:$4 sm:$0xff]  }
 0x605   : > { %13493 = vmatpush1.bf16.msra.mxu1 %v19656_v5  ;;  %v19736_v5 = vld [vmem:[%s21082_s1 + $0x1630] ss:$8 sps:$4 sm:$0xff]  }
 0x606   : > { %14723 = vmatpush1.bf16.msra.mxu0 %v19659_v6  ;;  %13494 = vmatprep.subr.bf16.mxu1 %v19664_v48  ;;  %v19739_v6 = vld [vmem:[%s21082_s1 + $0x3430] ss:$8 sps:$4 sm:$0xff]   ;;  %v19744_v48 = vld [vmem:[%s21082_s1 + $0x1644] ss:$8 sps:$4 sm:$0xff]  }
 0x607   : > { %14724 = vmatprep.subr.bf16.mxu0 %v19667_v49  ;;  %v19747_v49 = vld [vmem:[%s21082_s1 + $0x3444] ss:$8 sps:$4 sm:$0xff]  }
 0x609   : > { %13495 = vmatpush1.bf16.msra.mxu1 %v19662_v51  ;;  %v19742_v51 = vld [vmem:[%s21082_s1 + $0x1640] ss:$8 sps:$4 sm:$0xff]  }
 0x60a   : > { %14725 = vmatpush1.bf16.msra.mxu0 %v19665_v52  ;;  %13496 = vmatprep.subr.bf16.mxu1 %v19670_v46  ;;  %v19745_v52 = vld [vmem:[%s21082_s1 + $0x3440] ss:$8 sps:$4 sm:$0xff]   ;;  %v19750_v46 = vld [vmem:[%s21082_s1 + $0x1654] ss:$8 sps:$4 sm:$0xff]  }
 0x60b   : > { %14726 = vmatprep.subr.bf16.mxu0 %v19673_v47  ;;  %v19753_v47 = vld [vmem:[%s21082_s1 + $0x3454] ss:$8 sps:$4 sm:$0xff]  }
 0x60d   : > { %13497 = vmatpush1.bf16.msra.mxu1 %v19668_v13  ;;  %v19748_v13 = vld [vmem:[%s21082_s1 + $0x1650] ss:$8 sps:$4 sm:$0xff]  }
 0x60e   : > { %14727 = vmatpush1.bf16.msra.mxu0 %v19671_v14  ;;  %13498 = vmatprep.subr.bf16.mxu1 %v19676_v41  ;;  %v19751_v14 = vld [vmem:[%s21082_s1 + $0x3450] ss:$8 sps:$4 sm:$0xff]   ;;  %v19756_v41 = vld [vmem:[%s21082_s1 + $0x1664] ss:$8 sps:$4 sm:$0xff]  }
 0x60f   : > { %14728 = vmatprep.subr.bf16.mxu0 %v19679_v60  ;;  %v19759_v60 = vld [vmem:[%s21082_s1 + $0x3464] ss:$8 sps:$4 sm:$0xff]  }
 0x611   : > { %13499 = vmatpush1.bf16.msra.mxu1 %v19674_v55  ;;  %v19754_v55 = vld [vmem:[%s21082_s1 + $0x1660] ss:$8 sps:$4 sm:$0xff]  }
 0x612   : > { %14729 = vmatpush1.bf16.msra.mxu0 %v19677_v56  ;;  %13500 = vmatprep.subr.bf16.mxu1 %v19682_v57  ;;  %v19757_v56 = vld [vmem:[%s21082_s1 + $0x3460] ss:$8 sps:$4 sm:$0xff]   ;;  %v19762_v57 = vld [vmem:[%s21082_s1 + $0x1674] ss:$8 sps:$4 sm:$0xff]  }
 0x613   : > { %14730 = vmatprep.subr.bf16.mxu0 %v19685_v58  ;;  %v19765_v58 = vld [vmem:[%s21082_s1 + $0x3474] ss:$8 sps:$4 sm:$0xff]  }
 0x615   : > { %13501 = vmatpush1.bf16.msra.mxu1 %v19680_v23  ;;  %v19760_v23 = vld [vmem:[%s21082_s1 + $0x1670] ss:$8 sps:$4 sm:$0xff]  }
 0x616   : > { %14731 = vmatpush1.bf16.msra.mxu0 %v19683_v24  ;;  %13502 = vmatprep.subr.bf16.mxu1 %v19688_v3  ;;  %v19763_v24 = vld [vmem:[%s21082_s1 + $0x3470] ss:$8 sps:$4 sm:$0xff]   ;;  %v19768_v3 = vld [vmem:[%s21082_s1 + $0x1684] ss:$8 sps:$4 sm:$0xff]  }
 0x617   : > { %14732 = vmatprep.subr.bf16.mxu0 %v19691_v4  ;;  %v19771_v4 = vld [vmem:[%s21082_s1 + $0x3484] ss:$8 sps:$4 sm:$0xff]  }
 0x619   : > { %13503 = vmatpush1.bf16.msra.mxu1 %v19686_v63  ;;  %v19766_v63 = vld [vmem:[%s21082_s1 + $0x1680] ss:$8 sps:$4 sm:$0xff]  }
 0x61a   : > { %14733 = vmatpush1.bf16.msra.mxu0 %v19689_v0  ;;  %13504 = vmatprep.subr.bf16.mxu1 %v19694_v27  ;;  %v19769_v0 = vld [vmem:[%s21082_s1 + $0x3480] ss:$8 sps:$4 sm:$0xff]   ;;  %v19774_v27 = vld [vmem:[%s21082_s1 + $0x1694] ss:$8 sps:$4 sm:$0xff]  }
 0x61b   : > { %14734 = vmatprep.subr.bf16.mxu0 %v19697_v28  ;;  %v19777_v28 = vld [vmem:[%s21082_s1 + $0x3494] ss:$8 sps:$4 sm:$0xff]  }
 0x61d   : > { %13505 = vmatpush1.bf16.msra.mxu1 %v19692_v31  ;;  %v19772_v31 = vld [vmem:[%s21082_s1 + $0x1690] ss:$8 sps:$4 sm:$0xff]  }
 0x61e   : > { %14735 = vmatpush1.bf16.msra.mxu0 %v19695_v32  ;;  %13506 = vmatprep.subr.bf16.mxu1 %v19700_v9  ;;  %v19775_v32 = vld [vmem:[%s21082_s1 + $0x3490] ss:$8 sps:$4 sm:$0xff]   ;;  %v19780_v9 = vld [vmem:[%s21082_s1 + $0x16a4] ss:$8 sps:$4 sm:$0xff]  }
 0x61f   : > { %14736 = vmatprep.subr.bf16.mxu0 %v19703_v10  ;;  %v19783_v10 = vld [vmem:[%s21082_s1 + $0x34a4] ss:$8 sps:$4 sm:$0xff]  }
 0x621   : > { %13507 = vmatpush1.bf16.msra.mxu1 %v19698_v11  ;;  %v19778_v11 = vld [vmem:[%s21082_s1 + $0x16a0] ss:$8 sps:$4 sm:$0xff]  }
 0x622   : > { %14737 = vmatpush1.bf16.msra.mxu0 %v19701_v12  ;;  %13508 = vmatprep.subr.bf16.mxu1 %v19706_v7  ;;  %v19781_v12 = vld [vmem:[%s21082_s1 + $0x34a0] ss:$8 sps:$4 sm:$0xff]   ;;  %v19786_v7 = vld [vmem:[%s21082_s1 + $0x16b4] ss:$8 sps:$4 sm:$0xff]  }
 0x623   : > { %14738 = vmatprep.subr.bf16.mxu0 %v19709_v8  ;;  %v19789_v8 = vld [vmem:[%s21082_s1 + $0x34b4] ss:$8 sps:$4 sm:$0xff]  }
 0x625   : > { %13509 = vmatpush1.bf16.msra.mxu1 %v19704_v40  ;;  %v19784_v40 = vld [vmem:[%s21082_s1 + $0x16b0] ss:$8 sps:$4 sm:$0xff]  }
 0x626   : > { %14739 = vmatpush1.bf16.msra.mxu0 %v19707_v42  ;;  %13510 = vmatprep.subr.bf16.mxu1 %v19712_v21  ;;  %v19787_v42 = vld [vmem:[%s21082_s1 + $0x34b0] ss:$8 sps:$4 sm:$0xff]   ;;  %v19792_v21 = vld [vmem:[%s21082_s1 + $0x16c4] ss:$8 sps:$4 sm:$0xff]  }
 0x627   : > { %14740 = vmatprep.subr.bf16.mxu0 %v19715_v22  ;;  %v19795_v22 = vld [vmem:[%s21082_s1 + $0x34c4] ss:$8 sps:$4 sm:$0xff]  }
 0x629   : > { %13511 = vmatpush1.bf16.msra.mxu1 %v19710_v17  ;;  %v19790_v17 = vld [vmem:[%s21082_s1 + $0x16c0] ss:$8 sps:$4 sm:$0xff]  }
 0x62a   : > { %14741 = vmatpush1.bf16.msra.mxu0 %v19713_v18  ;;  %13521 = vmatprep.subr.bf16.mxu1 %v19719_v19  ;;  %v19793_v18 = vld [vmem:[%s21082_s1 + $0x34c0] ss:$8 sps:$4 sm:$0xff]   ;;  %v19798_v19 = vld [vmem:[%s21082_s1 + $0x16d4] ss:$8 sps:$4 sm:$0xff]  }
 0x62b   : > { %14751 = vmatprep.subr.bf16.mxu0 %v19723_v20  ;;  %v19801_v20 = vld [vmem:[%s21082_s1 + $0x34d4] ss:$8 sps:$4 sm:$0xff]  }
 0x62c   : > { %13513 = vmatmul.mubr.bf16.vlgmr.msra.gmra.mrb[0].mxu1 %v1020_v29  ;;  %v19804_v29 = vld [vmem:[%s21082_s1 + $0x16e4] ss:$8 sps:$4 sm:$0xff]  }
 0x62d   : > { %14743 = vmatmul.mubr.bf16.vlgmr.msra.gmra.mrb[0].mxu0 %v1080_v30  ;;  %13522 = vmatpush1.bf16.msra.mxu1 %v19717_v25  ;;  %v19807_v30 = vld [vmem:[%s21082_s1 + $0x34e4] ss:$8 sps:$4 sm:$0xff]   ;;  %v535_v25 = vcombine.high %v22931_v35, %v22931_v35  ;;  %v19808_v35 = vld [vmem:[%s21082_s1 + $0x16f0] ss:$8 sps:$4 sm:$0xff]  }
 0x62e   : > { %14752 = vmatpush1.bf16.msra.mxu0 %v19721_v26  ;;  %13523 = vmatprep.subr.bf16.mxu1 %v19726_v59  ;;  %v790_v26 = vcombine.high %v22934_v37, %v22934_v37  ;;  %v19802_v59 = vld [vmem:[%s21082_s1 + $0x16e0] ss:$8 sps:$4 sm:$0xff]   ;;  %v19811_v37 = vld [vmem:[%s21082_s1 + $0x34f0] ss:$8 sps:$4 sm:$0xff]  }
 0x62f   : > { %14753 = vmatprep.subr.bf16.mxu0 %v19729_v38  ;;  %13553 = vmatprep.mubr.bf16.mxu1 %v1023_v61  ;;  %v19805_v38 = vld [vmem:[%s21082_s1 + $0x34e0] ss:$8 sps:$4 sm:$0xff]   ;;  %v19810_v61 = vld [vmem:[%s21082_s1 + $0x16f4] ss:$8 sps:$4 sm:$0xff]  }
 0x630   : > { %14783 = vmatprep.mubr.bf16.mxu0 %v1083_v62  ;;  %v19813_v62 = vld [vmem:[%s21082_s1 + $0x34f4] ss:$8 sps:$4 sm:$0xff]  }
 0x631   : > { %13524 = vmatpush1.bf16.msra.mxu1 %v19724_v43  ;;  %v23025_v43 = vrot.slane %v535_v25, %v21150_v50  ;;  %v19880_v25 = vld [vmem:[%s21082_s1 + $0x17b0] ss:$8 sps:$4 sm:$0xff]  }
 0x632   : > { %14754 = vmatpush1.bf16.msra.mxu0 %v19727_v36  ;;  %13525 = vmatprep.subr.bf16.mxu1 %v19732_v16  ;;  %v23028_v36 = vrot.slane %v790_v26, %v21150_v50  ;;  %v19816_v16 = vld [vmem:[%s21082_s1 + $0x1704] ss:$8 sps:$4 sm:$0xff]   ;;  %v19883_v26 = vld [vmem:[%s21082_s1 + $0x35b0] ss:$8 sps:$4 sm:$0xff]  }
 0x633   : > { %14755 = vmatprep.subr.bf16.mxu0 %v19735_v39  ;;  %v19819_v39 = vld [vmem:[%s21082_s1 + $0x3504] ss:$8 sps:$4 sm:$0xff]  }
 0x635   : > { %13526 = vmatpush1.bf16.msra.mxu1 %v19730_v33  ;;  %v551_v33 = vcombine.high %v23025_v43, %v23025_v43 }
 0x636   : > { %14756 = vmatpush1.bf16.msra.mxu0 %v19733_v34  ;;  %13527 = vmatprep.subr.bf16.mxu1 %v19738_v1  ;;  %v806_v34 = vcombine.high %v23028_v36, %v23028_v36  ;;  %v1022_v1 = vpack.c.bf16 %v22942_v45, %v22942_v45  ;;  %v19820_v45 = vld [vmem:[%s21082_s1 + $0x1710] ss:$8 sps:$4 sm:$0xff]  }
 0x637   : > { %14757 = vmatprep.subr.bf16.mxu0 %v19741_v2  ;;  %v1082_v2 = vpack.c.bf16 %v22946_v15, %v22946_v15  ;;  %v19823_v15 = vld [vmem:[%s21082_s1 + $0x3510] ss:$8 sps:$4 sm:$0xff]  }
 0x639   : > { %13528 = vmatpush1.bf16.msra.mxu1 %v19736_v5  ;;  %v19814_v5 = vld [vmem:[%s21082_s1 + $0x1700] ss:$8 sps:$4 sm:$0xff]  }
 0x63a   : > { %14758 = vmatpush1.bf16.msra.mxu0 %v19739_v6  ;;  %13529 = vmatprep.subr.bf16.mxu1 %v19744_v48  ;;  %v19817_v6 = vld [vmem:[%s21082_s1 + $0x3500] ss:$8 sps:$4 sm:$0xff]   ;;  %v19822_v48 = vld [vmem:[%s21082_s1 + $0x1714] ss:$8 sps:$4 sm:$0xff]  }
 0x63b   : > { %14759 = vmatprep.subr.bf16.mxu0 %v19747_v49  ;;  %v19825_v49 = vld [vmem:[%s21082_s1 + $0x3514] ss:$8 sps:$4 sm:$0xff]  }
 0x63d   : > { %13530 = vmatpush1.bf16.msra.mxu1 %v19742_v51  ;;  %v1025_v51 = vpack.c.bf16 %v551_v33, %v551_v33  ;;  %v19900_v33 = vld [vmem:[%s21082_s1 + $0x17e4] ss:$8 sps:$4 sm:$0xff]  }
 0x63e   : > { %14760 = vmatpush1.bf16.msra.mxu0 %v19745_v52  ;;  %13531 = vmatprep.subr.bf16.mxu1 %v19750_v46  ;;  %v1085_v52 = vpack.c.bf16 %v806_v34, %v806_v34  ;;  %v19828_v46 = vld [vmem:[%s21082_s1 + $0x1724] ss:$8 sps:$4 sm:$0xff]  }
 0x63f   : > { %14761 = vmatprep.subr.bf16.mxu0 %v19753_v47  ;;  %v19831_v47 = vld [vmem:[%s21082_s1 + $0x3524] ss:$8 sps:$4 sm:$0xff]  }
 0x640   : > { %v19903_v34 = vld [vmem:[%s21082_s1 + $0x35e4] ss:$8 sps:$4 sm:$0xff]  }
 0x641   : > { %13532 = vmatpush1.bf16.msra.mxu1 %v19748_v13  ;;  %v19826_v13 = vld [vmem:[%s21082_s1 + $0x1720] ss:$8 sps:$4 sm:$0xff]  }
 0x642   : > { %14762 = vmatpush1.bf16.msra.mxu0 %v19751_v14  ;;  %13533 = vmatprep.subr.bf16.mxu1 %v19756_v41  ;;  %v19829_v14 = vld [vmem:[%s21082_s1 + $0x3520] ss:$8 sps:$4 sm:$0xff]   ;;  %v19834_v41 = vld [vmem:[%s21082_s1 + $0x1734] ss:$8 sps:$4 sm:$0xff]  }
 0x643   : > { %14763 = vmatprep.subr.bf16.mxu0 %v19759_v60  ;;  %v19837_v60 = vld [vmem:[%s21082_s1 + $0x3534] ss:$8 sps:$4 sm:$0xff]  }
 0x645   : > { %13534 = vmatpush1.bf16.msra.mxu1 %v19754_v55  ;;  %v19832_v55 = vld [vmem:[%s21082_s1 + $0x1730] ss:$8 sps:$4 sm:$0xff]  }
 0x646   : > { %14764 = vmatpush1.bf16.msra.mxu0 %v19757_v56  ;;  %13535 = vmatprep.subr.bf16.mxu1 %v19762_v57  ;;  %v19835_v56 = vld [vmem:[%s21082_s1 + $0x3530] ss:$8 sps:$4 sm:$0xff]   ;;  %v19840_v57 = vld [vmem:[%s21082_s1 + $0x1744] ss:$8 sps:$4 sm:$0xff]  }
 0x647   : > { %14765 = vmatprep.subr.bf16.mxu0 %v19765_v58  ;;  %v19843_v58 = vld [vmem:[%s21082_s1 + $0x3544] ss:$8 sps:$4 sm:$0xff]  }
 0x649   : > { %13536 = vmatpush1.bf16.msra.mxu1 %v19760_v23  ;;  %v19838_v23 = vld [vmem:[%s21082_s1 + $0x1740] ss:$8 sps:$4 sm:$0xff]  }
 0x64a   : > { %14766 = vmatpush1.bf16.msra.mxu0 %v19763_v24  ;;  %13537 = vmatprep.subr.bf16.mxu1 %v19768_v3  ;;  %v19841_v24 = vld [vmem:[%s21082_s1 + $0x3540] ss:$8 sps:$4 sm:$0xff]   ;;  %v19846_v3 = vld [vmem:[%s21082_s1 + $0x1754] ss:$8 sps:$4 sm:$0xff]  }
 0x64b   : > { %14767 = vmatprep.subr.bf16.mxu0 %v19771_v4  ;;  %v19849_v4 = vld [vmem:[%s21082_s1 + $0x3554] ss:$8 sps:$4 sm:$0xff]  }
 0x64d   : > { %13538 = vmatpush1.bf16.msra.mxu1 %v19766_v63  ;;  %v19844_v63 = vld [vmem:[%s21082_s1 + $0x1750] ss:$8 sps:$4 sm:$0xff]  }
 0x64e   : > { %14768 = vmatpush1.bf16.msra.mxu0 %v19769_v0  ;;  %13539 = vmatprep.subr.bf16.mxu1 %v19774_v27  ;;  %v19847_v0 = vld [vmem:[%s21082_s1 + $0x3550] ss:$8 sps:$4 sm:$0xff]   ;;  %v19852_v27 = vld [vmem:[%s21082_s1 + $0x1764] ss:$8 sps:$4 sm:$0xff]  }
 0x64f   : > { %14769 = vmatprep.subr.bf16.mxu0 %v19777_v28  ;;  %v19855_v28 = vld [vmem:[%s21082_s1 + $0x3564] ss:$8 sps:$4 sm:$0xff]  }
 0x651   : > { %13540 = vmatpush1.bf16.msra.mxu1 %v19772_v31  ;;  %v19850_v31 = vld [vmem:[%s21082_s1 + $0x1760] ss:$8 sps:$4 sm:$0xff]  }
 0x652   : > { %14770 = vmatpush1.bf16.msra.mxu0 %v19775_v32  ;;  %13541 = vmatprep.subr.bf16.mxu1 %v19780_v9  ;;  %v19853_v32 = vld [vmem:[%s21082_s1 + $0x3560] ss:$8 sps:$4 sm:$0xff]   ;;  %v19858_v9 = vld [vmem:[%s21082_s1 + $0x1774] ss:$8 sps:$4 sm:$0xff]  }
 0x653   : > { %14771 = vmatprep.subr.bf16.mxu0 %v19783_v10  ;;  %v19861_v10 = vld [vmem:[%s21082_s1 + $0x3574] ss:$8 sps:$4 sm:$0xff]  }
 0x655   : > { %13542 = vmatpush1.bf16.msra.mxu1 %v19778_v11  ;;  %v19856_v11 = vld [vmem:[%s21082_s1 + $0x1770] ss:$8 sps:$4 sm:$0xff]  }
 0x656   : > { %14772 = vmatpush1.bf16.msra.mxu0 %v19781_v12  ;;  %13543 = vmatprep.subr.bf16.mxu1 %v19786_v7  ;;  %v19859_v12 = vld [vmem:[%s21082_s1 + $0x3570] ss:$8 sps:$4 sm:$0xff]   ;;  %v19864_v7 = vld [vmem:[%s21082_s1 + $0x1784] ss:$8 sps:$4 sm:$0xff]  }
 0x657   : > { %14773 = vmatprep.subr.bf16.mxu0 %v19789_v8  ;;  %v19867_v8 = vld [vmem:[%s21082_s1 + $0x3584] ss:$8 sps:$4 sm:$0xff]  }
 0x659   : > { %13544 = vmatpush1.bf16.msra.mxu1 %v19784_v40  ;;  %v19862_v40 = vld [vmem:[%s21082_s1 + $0x1780] ss:$8 sps:$4 sm:$0xff]  }
 0x65a   : > { %14774 = vmatpush1.bf16.msra.mxu0 %v19787_v42  ;;  %13545 = vmatprep.subr.bf16.mxu1 %v19792_v21  ;;  %v19865_v42 = vld [vmem:[%s21082_s1 + $0x3580] ss:$8 sps:$4 sm:$0xff]   ;;  %v19870_v21 = vld [vmem:[%s21082_s1 + $0x1794] ss:$8 sps:$4 sm:$0xff]  }
 0x65b   : > { %14775 = vmatprep.subr.bf16.mxu0 %v19795_v22  ;;  %v19873_v22 = vld [vmem:[%s21082_s1 + $0x3594] ss:$8 sps:$4 sm:$0xff]  }
 0x65d   : > { %13546 = vmatpush1.bf16.msra.mxu1 %v19790_v17  ;;  %v19868_v17 = vld [vmem:[%s21082_s1 + $0x1790] ss:$8 sps:$4 sm:$0xff]  }
 0x65e   : > { %14776 = vmatpush1.bf16.msra.mxu0 %v19793_v18  ;;  %13547 = vmatprep.subr.bf16.mxu1 %v19798_v19  ;;  %v19871_v18 = vld [vmem:[%s21082_s1 + $0x3590] ss:$8 sps:$4 sm:$0xff]   ;;  %v19876_v19 = vld [vmem:[%s21082_s1 + $0x17a4] ss:$8 sps:$4 sm:$0xff]  }
 0x65f   : > { %14777 = vmatprep.subr.bf16.mxu0 %v19801_v20  ;;  %v19879_v20 = vld [vmem:[%s21082_s1 + $0x35a4] ss:$8 sps:$4 sm:$0xff]  }
 0x661   : > { %13548 = vmatpush1.bf16.msra.mxu1 %v19796_v53  ;;  %v19874_v53 = vld [vmem:[%s21082_s1 + $0x17a0] ss:$8 sps:$4 sm:$0xff]  }
 0x662   : > { %14778 = vmatpush1.bf16.msra.mxu0 %v19799_v54  ;;  %13549 = vmatprep.subr.bf16.mxu1 %v19804_v29  ;;  %v19877_v54 = vld [vmem:[%s21082_s1 + $0x35a0] ss:$8 sps:$4 sm:$0xff]   ;;  %v19882_v29 = vld [vmem:[%s21082_s1 + $0x17b4] ss:$8 sps:$4 sm:$0xff]  }
 0x663   : > { %14779 = vmatprep.subr.bf16.mxu0 %v19807_v30  ;;  %v19885_v30 = vld [vmem:[%s21082_s1 + $0x35b4] ss:$8 sps:$4 sm:$0xff]  }
 0x665   : > { %13550 = vmatpush1.bf16.msra.mxu1 %v19802_v59  ;;  %v19888_v59 = vld [vmem:[%s21082_s1 + $0x17c4] ss:$8 sps:$4 sm:$0xff]  }
 0x666   : > { %14780 = vmatpush1.bf16.msra.mxu0 %v19805_v38  ;;  %13551 = vmatprep.subr.bf16.mxu1 %v19810_v61  ;;  %v19891_v38 = vld [vmem:[%s21082_s1 + $0x35c4] ss:$8 sps:$4 sm:$0xff]   ;;  %v19886_v61 = vld [vmem:[%s21082_s1 + $0x17c0] ss:$8 sps:$4 sm:$0xff]  }
 0x667   : > { %14781 = vmatprep.subr.bf16.mxu0 %v19813_v62  ;;  %v19889_v62 = vld [vmem:[%s21082_s1 + $0x35c0] ss:$8 sps:$4 sm:$0xff]  }
 0x669   : > { %13552 = vmatpush1.bf16.msra.mxu1 %v19808_v35  ;;  %v19894_v35 = vld [vmem:[%s21082_s1 + $0x17d4] ss:$8 sps:$4 sm:$0xff]  }
 0x66a   : > { %14782 = vmatpush1.bf16.msra.mxu0 %v19811_v37  ;;  %13562 = vmatprep.subr.bf16.mxu1 %v19816_v16  ;;  %v19897_v37 = vld [vmem:[%s21082_s1 + $0x35d4] ss:$8 sps:$4 sm:$0xff]   ;;  %v19892_v16 = vld [vmem:[%s21082_s1 + $0x17d0] ss:$8 sps:$4 sm:$0xff]  }
 0x66b   : > { %14792 = vmatprep.subr.bf16.mxu0 %v19819_v39  ;;  %v19895_v39 = vld [vmem:[%s21082_s1 + $0x35d0] ss:$8 sps:$4 sm:$0xff]  }
 0x66c   : > { %13554 = vmatmul.mubr.bf16.vlgmr.msra.gmra.mrb[0].mxu1 %v1022_v1  ;;  %v23099_v1 = vld [vmem:[%s21074_s27 + $0x60] sm:$0xff] }
 0x66d   : > { %14784 = vmatmul.mubr.bf16.vlgmr.msra.gmra.mrb[0].mxu0 %v1082_v2  ;;  %13563 = vmatpush1.bf16.msra.mxu1 %v19814_v5  ;;  %v23102_v2 = vld [vmem:[%s21074_s27 + $0xd8] sm:$0xff] }
 0x66e   : > { %14793 = vmatpush1.bf16.msra.mxu0 %v19817_v6  ;;  %13564 = vmatprep.subr.bf16.mxu1 %v19822_v48  ;;  %v19898_v5 = vld [vmem:[%s21082_s1 + $0x17e0] ss:$8 sps:$4 sm:$0xff]   ;;  %v19906_v48 = vld [vmem:[%s21082_s1 + $0x17f4] ss:$8 sps:$4 sm:$0xff]  }
 0x66f   : > { %14794 = vmatprep.subr.bf16.mxu0 %v19825_v49  ;;  %13594 = vmatprep.mubr.bf16.mxu1 %v1025_v51  ;;  %v19901_v6 = vld [vmem:[%s21082_s1 + $0x35e0] ss:$8 sps:$4 sm:$0xff]   ;;  %v19909_v49 = vld [vmem:[%s21082_s1 + $0x35f4] ss:$8 sps:$4 sm:$0xff]   ;;  %v23110_v51 = vrot.slane %v23099_v1, %v21150_v50 }
 0x670   : > { %14824 = vmatprep.mubr.bf16.mxu0 %v1085_v52  ;;  %v23114_v52 = vrot.slane %v23102_v2, %v21150_v50 }
 0x671   : > { %13565 = vmatpush1.bf16.msra.mxu1 %v19820_v45  ;;  %v19904_v45 = vld [vmem:[%s21082_s1 + $0x17f0] ss:$8 sps:$4 sm:$0xff]  }
 0x672   : > { %14795 = vmatpush1.bf16.msra.mxu0 %v19823_v15  ;;  %13566 = vmatprep.subr.bf16.mxu1 %v19828_v46  ;;  %v19907_v15 = vld [vmem:[%s21082_s1 + $0x35f0] ss:$8 sps:$4 sm:$0xff]   ;;  %v19913_v46 = vld [vmem:[%s21082_s1 + $0x1804] ss:$8 sps:$4 sm:$0xff]  }
 0x673   : > { %14796 = vmatprep.subr.bf16.mxu0 %v19831_v47  ;;  %v19917_v47 = vld [vmem:[%s21082_s1 + $0x3604] ss:$8 sps:$4 sm:$0xff]  }
 0x675   : > { %13567 = vmatpush1.bf16.msra.mxu1 %v19826_v13  ;;  %v567_v13 = vcombine.high %v23110_v51, %v23110_v51 }
 0x676   : > { %14797 = vmatpush1.bf16.msra.mxu0 %v19829_v14  ;;  %13568 = vmatprep.subr.bf16.mxu1 %v19834_v41  ;;  %v822_v14 = vcombine.high %v23114_v52, %v23114_v52  ;;  %v1024_v41 = vpack.c.bf16 %v23025_v43, %v23025_v43  ;;  %v19918_v43 = vld [vmem:[%s21082_s1 + $0x1810] ss:$8 sps:$4 sm:$0xff]  }
 0x677   : > { %14798 = vmatprep.subr.bf16.mxu0 %v19837_v60  ;;  %v1084_v60 = vpack.c.bf16 %v23028_v36, %v23028_v36  ;;  %v19921_v36 = vld [vmem:[%s21082_s1 + $0x3610] ss:$8 sps:$4 sm:$0xff]  }
 0x679   : > { %13569 = vmatpush1.bf16.msra.mxu1 %v19832_v55  ;;  %v19911_v55 = vld [vmem:[%s21082_s1 + $0x1800] ss:$8 sps:$4 sm:$0xff]  }
 0x67a   : > { %14799 = vmatpush1.bf16.msra.mxu0 %v19835_v56  ;;  %13570 = vmatprep.subr.bf16.mxu1 %v19840_v57  ;;  %v19915_v56 = vld [vmem:[%s21082_s1 + $0x3600] ss:$8 sps:$4 sm:$0xff]   ;;  %v19920_v57 = vld [vmem:[%s21082_s1 + $0x1814] ss:$8 sps:$4 sm:$0xff]  }
 0x67b   : > { %14800 = vmatprep.subr.bf16.mxu0 %v19843_v58  ;;  %v19923_v58 = vld [vmem:[%s21082_s1 + $0x3614] ss:$8 sps:$4 sm:$0xff]  }
 0x67d   : > { %13571 = vmatpush1.bf16.msra.mxu1 %v19838_v23  ;;  %v1027_v23 = vpack.c.bf16 %v567_v13, %v567_v13  ;;  %v19990_v13 = vld [vmem:[%s21082_s1 + $0x18d0] ss:$8 sps:$4 sm:$0xff]  }
 0x67e   : > { %14801 = vmatpush1.bf16.msra.mxu0 %v19841_v24  ;;  %13572 = vmatprep.subr.bf16.mxu1 %v19846_v3  ;;  %v1087_v24 = vpack.c.bf16 %v822_v14, %v822_v14  ;;  %v19926_v3 = vld [vmem:[%s21082_s1 + $0x1824] ss:$8 sps:$4 sm:$0xff]   ;;  %v19993_v14 = vld [vmem:[%s21082_s1 + $0x36d0] ss:$8 sps:$4 sm:$0xff]  }
 0x67f   : > { %14802 = vmatprep.subr.bf16.mxu0 %v19849_v4  ;;  %v19929_v4 = vld [vmem:[%s21082_s1 + $0x3624] ss:$8 sps:$4 sm:$0xff]  }
 0x681   : > { %13573 = vmatpush1.bf16.msra.mxu1 %v19844_v63  ;;  %v19924_v63 = vld [vmem:[%s21082_s1 + $0x1820] ss:$8 sps:$4 sm:$0xff]  }
 0x682   : > { %14803 = vmatpush1.bf16.msra.mxu0 %v19847_v0  ;;  %13574 = vmatprep.subr.bf16.mxu1 %v19852_v27  ;;  %v19927_v0 = vld [vmem:[%s21082_s1 + $0x3620] ss:$8 sps:$4 sm:$0xff]   ;;  %v19932_v27 = vld [vmem:[%s21082_s1 + $0x1834] ss:$8 sps:$4 sm:$0xff]  }
 0x683   : > { %14804 = vmatprep.subr.bf16.mxu0 %v19855_v28  ;;  %v19935_v28 = vld [vmem:[%s21082_s1 + $0x3634] ss:$8 sps:$4 sm:$0xff]  }
 0x685   : > { %13575 = vmatpush1.bf16.msra.mxu1 %v19850_v31  ;;  %v19930_v31 = vld [vmem:[%s21082_s1 + $0x1830] ss:$8 sps:$4 sm:$0xff]  }
 0x686   : > { %14805 = vmatpush1.bf16.msra.mxu0 %v19853_v32  ;;  %13576 = vmatprep.subr.bf16.mxu1 %v19858_v9  ;;  %v19933_v32 = vld [vmem:[%s21082_s1 + $0x3630] ss:$8 sps:$4 sm:$0xff]   ;;  %v19938_v9 = vld [vmem:[%s21082_s1 + $0x1844] ss:$8 sps:$4 sm:$0xff]  }
 0x687   : > { %14806 = vmatprep.subr.bf16.mxu0 %v19861_v10  ;;  %v19941_v10 = vld [vmem:[%s21082_s1 + $0x3644] ss:$8 sps:$4 sm:$0xff]  }
 0x689   : > { %13577 = vmatpush1.bf16.msra.mxu1 %v19856_v11  ;;  %v19936_v11 = vld [vmem:[%s21082_s1 + $0x1840] ss:$8 sps:$4 sm:$0xff]  }
 0x68a   : > { %14807 = vmatpush1.bf16.msra.mxu0 %v19859_v12  ;;  %13578 = vmatprep.subr.bf16.mxu1 %v19864_v7  ;;  %v19939_v12 = vld [vmem:[%s21082_s1 + $0x3640] ss:$8 sps:$4 sm:$0xff]   ;;  %v19944_v7 = vld [vmem:[%s21082_s1 + $0x1854] ss:$8 sps:$4 sm:$0xff]  }
 0x68b   : > { %14808 = vmatprep.subr.bf16.mxu0 %v19867_v8  ;;  %v19947_v8 = vld [vmem:[%s21082_s1 + $0x3654] ss:$8 sps:$4 sm:$0xff]  }
 0x68d   : > { %13579 = vmatpush1.bf16.msra.mxu1 %v19862_v40  ;;  %v19942_v40 = vld [vmem:[%s21082_s1 + $0x1850] ss:$8 sps:$4 sm:$0xff]  }
 0x68e   : > { %14809 = vmatpush1.bf16.msra.mxu0 %v19865_v42  ;;  %13580 = vmatprep.subr.bf16.mxu1 %v19870_v21  ;;  %v19945_v42 = vld [vmem:[%s21082_s1 + $0x3650] ss:$8 sps:$4 sm:$0xff]   ;;  %v19950_v21 = vld [vmem:[%s21082_s1 + $0x1864] ss:$8 sps:$4 sm:$0xff]  }
 0x68f   : > { %14810 = vmatprep.subr.bf16.mxu0 %v19873_v22  ;;  %v19953_v22 = vld [vmem:[%s21082_s1 + $0x3664] ss:$8 sps:$4 sm:$0xff]  }
 0x691   : > { %13581 = vmatpush1.bf16.msra.mxu1 %v19868_v17  ;;  %v19948_v17 = vld [vmem:[%s21082_s1 + $0x1860] ss:$8 sps:$4 sm:$0xff]  }
 0x692   : > { %14811 = vmatpush1.bf16.msra.mxu0 %v19871_v18  ;;  %13582 = vmatprep.subr.bf16.mxu1 %v19876_v19  ;;  %v19951_v18 = vld [vmem:[%s21082_s1 + $0x3660] ss:$8 sps:$4 sm:$0xff]   ;;  %v19956_v19 = vld [vmem:[%s21082_s1 + $0x1874] ss:$8 sps:$4 sm:$0xff]  }
 0x693   : > { %14812 = vmatprep.subr.bf16.mxu0 %v19879_v20  ;;  %v19959_v20 = vld [vmem:[%s21082_s1 + $0x3674] ss:$8 sps:$4 sm:$0xff]  }
 0x695   : > { %13583 = vmatpush1.bf16.msra.mxu1 %v19874_v53  ;;  %v19954_v53 = vld [vmem:[%s21082_s1 + $0x1870] ss:$8 sps:$4 sm:$0xff]  }
 0x696   : > { %14813 = vmatpush1.bf16.msra.mxu0 %v19877_v54  ;;  %13584 = vmatprep.subr.bf16.mxu1 %v19882_v29  ;;  %v19957_v54 = vld [vmem:[%s21082_s1 + $0x3670] ss:$8 sps:$4 sm:$0xff]   ;;  %v19962_v29 = vld [vmem:[%s21082_s1 + $0x1884] ss:$8 sps:$4 sm:$0xff]  }
 0x697   : > { %14814 = vmatprep.subr.bf16.mxu0 %v19885_v30  ;;  %v19965_v30 = vld [vmem:[%s21082_s1 + $0x3684] ss:$8 sps:$4 sm:$0xff]  }
 0x699   : > { %13585 = vmatpush1.bf16.msra.mxu1 %v19880_v25  ;;  %v19960_v25 = vld [vmem:[%s21082_s1 + $0x1880] ss:$8 sps:$4 sm:$0xff]  }
 0x69a   : > { %14815 = vmatpush1.bf16.msra.mxu0 %v19883_v26  ;;  %13586 = vmatprep.subr.bf16.mxu1 %v19888_v59  ;;  %v19963_v26 = vld [vmem:[%s21082_s1 + $0x3680] ss:$8 sps:$4 sm:$0xff]   ;;  %v19968_v59 = vld [vmem:[%s21082_s1 + $0x1894] ss:$8 sps:$4 sm:$0xff]  }
 0x69b   : > { %14816 = vmatprep.subr.bf16.mxu0 %v19891_v38  ;;  %v19971_v38 = vld [vmem:[%s21082_s1 + $0x3694] ss:$8 sps:$4 sm:$0xff]  }
 0x69d   : > { %13587 = vmatpush1.bf16.msra.mxu1 %v19886_v61  ;;  %v19966_v61 = vld [vmem:[%s21082_s1 + $0x1890] ss:$8 sps:$4 sm:$0xff]  }
 0x69e   : > { %14817 = vmatpush1.bf16.msra.mxu0 %v19889_v62  ;;  %13588 = vmatprep.subr.bf16.mxu1 %v19894_v35  ;;  %v19969_v62 = vld [vmem:[%s21082_s1 + $0x3690] ss:$8 sps:$4 sm:$0xff]   ;;  %v19974_v35 = vld [vmem:[%s21082_s1 + $0x18a4] ss:$8 sps:$4 sm:$0xff]  }
 0x69f   : > { %14818 = vmatprep.subr.bf16.mxu0 %v19897_v37  ;;  %v19977_v37 = vld [vmem:[%s21082_s1 + $0x36a4] ss:$8 sps:$4 sm:$0xff]  }
 0x6a1   : > { %13589 = vmatpush1.bf16.msra.mxu1 %v19892_v16  ;;  %v19972_v16 = vld [vmem:[%s21082_s1 + $0x18a0] ss:$8 sps:$4 sm:$0xff]  }
 0x6a2   : > { %14819 = vmatpush1.bf16.msra.mxu0 %v19895_v39  ;;  %13590 = vmatprep.subr.bf16.mxu1 %v19900_v33  ;;  %v19975_v39 = vld [vmem:[%s21082_s1 + $0x36a0] ss:$8 sps:$4 sm:$0xff]   ;;  %v19980_v33 = vld [vmem:[%s21082_s1 + $0x18b4] ss:$8 sps:$4 sm:$0xff]  }
 0x6a3   : > { %14820 = vmatprep.subr.bf16.mxu0 %v19903_v34  ;;  %v19983_v34 = vld [vmem:[%s21082_s1 + $0x36b4] ss:$8 sps:$4 sm:$0xff]  }
 0x6a5   : > { %13591 = vmatpush1.bf16.msra.mxu1 %v19898_v5  ;;  %v19978_v5 = vld [vmem:[%s21082_s1 + $0x18b0] ss:$8 sps:$4 sm:$0xff]  }
 0x6a6   : > { %14821 = vmatpush1.bf16.msra.mxu0 %v19901_v6  ;;  %13592 = vmatprep.subr.bf16.mxu1 %v19906_v48  ;;  %v19981_v6 = vld [vmem:[%s21082_s1 + $0x36b0] ss:$8 sps:$4 sm:$0xff]   ;;  %v19986_v48 = vld [vmem:[%s21082_s1 + $0x18c4] ss:$8 sps:$4 sm:$0xff]  }
 0x6a7   : > { %14822 = vmatprep.subr.bf16.mxu0 %v19909_v49  ;;  %v19989_v49 = vld [vmem:[%s21082_s1 + $0x36c4] ss:$8 sps:$4 sm:$0xff]  }
 0x6a9   : > { %13593 = vmatpush1.bf16.msra.mxu1 %v19904_v45  ;;  %v19984_v45 = vld [vmem:[%s21082_s1 + $0x18c0] ss:$8 sps:$4 sm:$0xff]  }
 0x6aa   : > { %14823 = vmatpush1.bf16.msra.mxu0 %v19907_v15  ;;  %13603 = vmatprep.subr.bf16.mxu1 %v19913_v46  ;;  %v19987_v15 = vld [vmem:[%s21082_s1 + $0x36c0] ss:$8 sps:$4 sm:$0xff]   ;;  %v19992_v46 = vld [vmem:[%s21082_s1 + $0x18d4] ss:$8 sps:$4 sm:$0xff]  }
 0x6ab   : > { %14833 = vmatprep.subr.bf16.mxu0 %v19917_v47  ;;  %v19995_v47 = vld [vmem:[%s21082_s1 + $0x36d4] ss:$8 sps:$4 sm:$0xff]  }
 0x6ac   : > { %13595 = vmatmul.mubr.bf16.vlgmr.msra.gmra.mrb[0].mxu1 %v1024_v41  ;;  %v19998_v41 = vld [vmem:[%s21082_s1 + $0x18e4] ss:$8 sps:$4 sm:$0xff]  }
 0x6ad   : > { %14825 = vmatmul.mubr.bf16.vlgmr.msra.gmra.mrb[0].mxu0 %v1084_v60  ;;  %13604 = vmatpush1.bf16.msra.mxu1 %v19911_v55  ;;  %v20001_v60 = vld [vmem:[%s21082_s1 + $0x36e4] ss:$8 sps:$4 sm:$0xff]   ;;  %v552_v55 = vcombine.high %v23099_v1, %v23099_v1  ;;  %v20002_v1 = vld [vmem:[%s21082_s1 + $0x18f0] ss:$8 sps:$4 sm:$0xff]  }
 0x6ae   : > { %14834 = vmatpush1.bf16.msra.mxu0 %v19915_v56  ;;  %13605 = vmatprep.subr.bf16.mxu1 %v19920_v57  ;;  %v807_v56 = vcombine.high %v23102_v2, %v23102_v2  ;;  %v19996_v57 = vld [vmem:[%s21082_s1 + $0x18e0] ss:$8 sps:$4 sm:$0xff]   ;;  %v20005_v2 = vld [vmem:[%s21082_s1 + $0x36f0] ss:$8 sps:$4 sm:$0xff]  }
 0x6af   : > { %14835 = vmatprep.subr.bf16.mxu0 %v19923_v58  ;;  %13635 = vmatprep.mubr.bf16.mxu1 %v1027_v23  ;;  %v19999_v58 = vld [vmem:[%s21082_s1 + $0x36e0] ss:$8 sps:$4 sm:$0xff]   ;;  %v20004_v23 = vld [vmem:[%s21082_s1 + $0x18f4] ss:$8 sps:$4 sm:$0xff]  }
 0x6b0   : > { %14865 = vmatprep.mubr.bf16.mxu0 %v1087_v24  ;;  %v20007_v24 = vld [vmem:[%s21082_s1 + $0x36f4] ss:$8 sps:$4 sm:$0xff]  }
 0x6b1   : > { %13606 = vmatpush1.bf16.msra.mxu1 %v19918_v43  ;;  %v23193_v43 = vrot.slane %v552_v55, %v21150_v50  ;;  %v20074_v55 = vld [vmem:[%s21082_s1 + $0x19b0] ss:$8 sps:$4 sm:$0xff]  }
 0x6b2   : > { %14836 = vmatpush1.bf16.msra.mxu0 %v19921_v36  ;;  %13607 = vmatprep.subr.bf16.mxu1 %v19926_v3  ;;  %v23196_v36 = vrot.slane %v807_v56, %v21150_v50  ;;  %v20010_v3 = vld [vmem:[%s21082_s1 + $0x1904] ss:$8 sps:$4 sm:$0xff]   ;;  %v20077_v56 = vld [vmem:[%s21082_s1 + $0x37b0] ss:$8 sps:$4 sm:$0xff]  }
 0x6b3   : > { %14837 = vmatprep.subr.bf16.mxu0 %v19929_v4  ;;  %v20013_v4 = vld [vmem:[%s21082_s1 + $0x3704] ss:$8 sps:$4 sm:$0xff]  }
 0x6b5   : > { %13608 = vmatpush1.bf16.msra.mxu1 %v19924_v63  ;;  %v568_v63 = vcombine.high %v23193_v43, %v23193_v43 }
 0x6b6   : > { %14838 = vmatpush1.bf16.msra.mxu0 %v19927_v0  ;;  %13609 = vmatprep.subr.bf16.mxu1 %v19932_v27  ;;  %v823_v0 = vcombine.high %v23196_v36, %v23196_v36  ;;  %v1026_v27 = vpack.c.bf16 %v23110_v51, %v23110_v51  ;;  %v20014_v51 = vld [vmem:[%s21082_s1 + $0x1910] ss:$8 sps:$4 sm:$0xff]  }
 0x6b7   : > { %14839 = vmatprep.subr.bf16.mxu0 %v19935_v28  ;;  %v1086_v28 = vpack.c.bf16 %v23114_v52, %v23114_v52  ;;  %v20017_v52 = vld [vmem:[%s21082_s1 + $0x3710] ss:$8 sps:$4 sm:$0xff]  }
 0x6b9   : > { %13610 = vmatpush1.bf16.msra.mxu1 %v19930_v31  ;;  %v20008_v31 = vld [vmem:[%s21082_s1 + $0x1900] ss:$8 sps:$4 sm:$0xff]  }
 0x6ba   : > { %14840 = vmatpush1.bf16.msra.mxu0 %v19933_v32  ;;  %13611 = vmatprep.subr.bf16.mxu1 %v19938_v9  ;;  %v20011_v32 = vld [vmem:[%s21082_s1 + $0x3700] ss:$8 sps:$4 sm:$0xff]   ;;  %v20016_v9 = vld [vmem:[%s21082_s1 + $0x1914] ss:$8 sps:$4 sm:$0xff]  }
 0x6bb   : > { %14841 = vmatprep.subr.bf16.mxu0 %v19941_v10  ;;  %v20019_v10 = vld [vmem:[%s21082_s1 + $0x3714] ss:$8 sps:$4 sm:$0xff]  }
 0x6bd   : > { %13612 = vmatpush1.bf16.msra.mxu1 %v19936_v11  ;;  %v1029_v11 = vpack.c.bf16 %v568_v63, %v568_v63  ;;  %v20094_v63 = vld [vmem:[%s21082_s1 + $0x19e4] ss:$8 sps:$4 sm:$0xff]  }
 0x6be   : > { %14842 = vmatpush1.bf16.msra.mxu0 %v19939_v12  ;;  %13613 = vmatprep.subr.bf16.mxu1 %v19944_v7  ;;  %v1089_v12 = vpack.c.bf16 %v823_v0, %v823_v0  ;;  %v20022_v7 = vld [vmem:[%s21082_s1 + $0x1924] ss:$8 sps:$4 sm:$0xff]  }
 0x6bf   : > { %14843 = vmatprep.subr.bf16.mxu0 %v19947_v8  ;;  %v20025_v8 = vld [vmem:[%s21082_s1 + $0x3724] ss:$8 sps:$4 sm:$0xff]  }
 0x6c0   : > { %v20097_v0 = vld [vmem:[%s21082_s1 + $0x37e4] ss:$8 sps:$4 sm:$0xff]  }
 0x6c1   : > { %13614 = vmatpush1.bf16.msra.mxu1 %v19942_v40  ;;  %v20020_v40 = vld [vmem:[%s21082_s1 + $0x1920] ss:$8 sps:$4 sm:$0xff]  }
 0x6c2   : > { %14844 = vmatpush1.bf16.msra.mxu0 %v19945_v42  ;;  %13615 = vmatprep.subr.bf16.mxu1 %v19950_v21  ;;  %v20023_v42 = vld [vmem:[%s21082_s1 + $0x3720] ss:$8 sps:$4 sm:$0xff]   ;;  %v20028_v21 = vld [vmem:[%s21082_s1 + $0x1934] ss:$8 sps:$4 sm:$0xff]  }
 0x6c3   : > { %14845 = vmatprep.subr.bf16.mxu0 %v19953_v22  ;;  %v20031_v22 = vld [vmem:[%s21082_s1 + $0x3734] ss:$8 sps:$4 sm:$0xff]  }
 0x6c5   : > { %13616 = vmatpush1.bf16.msra.mxu1 %v19948_v17  ;;  %v20026_v17 = vld [vmem:[%s21082_s1 + $0x1930] ss:$8 sps:$4 sm:$0xff]  }
 0x6c6   : > { %14846 = vmatpush1.bf16.msra.mxu0 %v19951_v18  ;;  %13617 = vmatprep.subr.bf16.mxu1 %v19956_v19  ;;  %v20029_v18 = vld [vmem:[%s21082_s1 + $0x3730] ss:$8 sps:$4 sm:$0xff]   ;;  %v20034_v19 = vld [vmem:[%s21082_s1 + $0x1944] ss:$8 sps:$4 sm:$0xff]  }
 0x6c7   : > { %14847 = vmatprep.subr.bf16.mxu0 %v19959_v20  ;;  %v20037_v20 = vld [vmem:[%s21082_s1 + $0x3744] ss:$8 sps:$4 sm:$0xff]  }
 0x6c9   : > { %13618 = vmatpush1.bf16.msra.mxu1 %v19954_v53  ;;  %v20032_v53 = vld [vmem:[%s21082_s1 + $0x1940] ss:$8 sps:$4 sm:$0xff]  }
 0x6ca   : > { %14848 = vmatpush1.bf16.msra.mxu0 %v19957_v54  ;;  %13619 = vmatprep.subr.bf16.mxu1 %v19962_v29  ;;  %v20035_v54 = vld [vmem:[%s21082_s1 + $0x3740] ss:$8 sps:$4 sm:$0xff]   ;;  %v20040_v29 = vld [vmem:[%s21082_s1 + $0x1954] ss:$8 sps:$4 sm:$0xff]  }
 0x6cb   : > { %14849 = vmatprep.subr.bf16.mxu0 %v19965_v30  ;;  %v20043_v30 = vld [vmem:[%s21082_s1 + $0x3754] ss:$8 sps:$4 sm:$0xff]  }
 0x6cd   : > { %13620 = vmatpush1.bf16.msra.mxu1 %v19960_v25  ;;  %v20038_v25 = vld [vmem:[%s21082_s1 + $0x1950] ss:$8 sps:$4 sm:$0xff]  }
 0x6ce   : > { %14850 = vmatpush1.bf16.msra.mxu0 %v19963_v26  ;;  %13621 = vmatprep.subr.bf16.mxu1 %v19968_v59  ;;  %v20041_v26 = vld [vmem:[%s21082_s1 + $0x3750] ss:$8 sps:$4 sm:$0xff]   ;;  %v20046_v59 = vld [vmem:[%s21082_s1 + $0x1964] ss:$8 sps:$4 sm:$0xff]  }
 0x6cf   : > { %14851 = vmatprep.subr.bf16.mxu0 %v19971_v38  ;;  %v20049_v38 = vld [vmem:[%s21082_s1 + $0x3764] ss:$8 sps:$4 sm:$0xff]  }
 0x6d1   : > { %13622 = vmatpush1.bf16.msra.mxu1 %v19966_v61  ;;  %v20044_v61 = vld [vmem:[%s21082_s1 + $0x1960] ss:$8 sps:$4 sm:$0xff]  }
 0x6d2   : > { %14852 = vmatpush1.bf16.msra.mxu0 %v19969_v62  ;;  %13623 = vmatprep.subr.bf16.mxu1 %v19974_v35  ;;  %v20047_v62 = vld [vmem:[%s21082_s1 + $0x3760] ss:$8 sps:$4 sm:$0xff]   ;;  %v20052_v35 = vld [vmem:[%s21082_s1 + $0x1974] ss:$8 sps:$4 sm:$0xff]  }
 0x6d3   : > { %14853 = vmatprep.subr.bf16.mxu0 %v19977_v37  ;;  %v20055_v37 = vld [vmem:[%s21082_s1 + $0x3774] ss:$8 sps:$4 sm:$0xff]  }
 0x6d5   : > { %13624 = vmatpush1.bf16.msra.mxu1 %v19972_v16  ;;  %v20050_v16 = vld [vmem:[%s21082_s1 + $0x1970] ss:$8 sps:$4 sm:$0xff]  }
 0x6d6   : > { %14854 = vmatpush1.bf16.msra.mxu0 %v19975_v39  ;;  %13625 = vmatprep.subr.bf16.mxu1 %v19980_v33  ;;  %v20053_v39 = vld [vmem:[%s21082_s1 + $0x3770] ss:$8 sps:$4 sm:$0xff]   ;;  %v20058_v33 = vld [vmem:[%s21082_s1 + $0x1984] ss:$8 sps:$4 sm:$0xff]  }
 0x6d7   : > { %14855 = vmatprep.subr.bf16.mxu0 %v19983_v34  ;;  %v20061_v34 = vld [vmem:[%s21082_s1 + $0x3784] ss:$8 sps:$4 sm:$0xff]  }
 0x6d9   : > { %13626 = vmatpush1.bf16.msra.mxu1 %v19978_v5  ;;  %v20056_v5 = vld [vmem:[%s21082_s1 + $0x1980] ss:$8 sps:$4 sm:$0xff]  }
 0x6da   : > { %14856 = vmatpush1.bf16.msra.mxu0 %v19981_v6  ;;  %13627 = vmatprep.subr.bf16.mxu1 %v19986_v48  ;;  %v20059_v6 = vld [vmem:[%s21082_s1 + $0x3780] ss:$8 sps:$4 sm:$0xff]   ;;  %v20064_v48 = vld [vmem:[%s21082_s1 + $0x1994] ss:$8 sps:$4 sm:$0xff]  }
 0x6db   : > { %14857 = vmatprep.subr.bf16.mxu0 %v19989_v49  ;;  %v20067_v49 = vld [vmem:[%s21082_s1 + $0x3794] ss:$8 sps:$4 sm:$0xff]  }
 0x6dd   : > { %13628 = vmatpush1.bf16.msra.mxu1 %v19984_v45  ;;  %v20062_v45 = vld [vmem:[%s21082_s1 + $0x1990] ss:$8 sps:$4 sm:$0xff]  }
 0x6de   : > { %14858 = vmatpush1.bf16.msra.mxu0 %v19987_v15  ;;  %13629 = vmatprep.subr.bf16.mxu1 %v19992_v46  ;;  %v20065_v15 = vld [vmem:[%s21082_s1 + $0x3790] ss:$8 sps:$4 sm:$0xff]   ;;  %v20070_v46 = vld [vmem:[%s21082_s1 + $0x19a4] ss:$8 sps:$4 sm:$0xff]  }
 0x6df   : > { %14859 = vmatprep.subr.bf16.mxu0 %v19995_v47  ;;  %v20073_v47 = vld [vmem:[%s21082_s1 + $0x37a4] ss:$8 sps:$4 sm:$0xff]  }
 0x6e1   : > { %13630 = vmatpush1.bf16.msra.mxu1 %v19990_v13  ;;  %v20068_v13 = vld [vmem:[%s21082_s1 + $0x19a0] ss:$8 sps:$4 sm:$0xff]  }
 0x6e2   : > { %14860 = vmatpush1.bf16.msra.mxu0 %v19993_v14  ;;  %13631 = vmatprep.subr.bf16.mxu1 %v19998_v41  ;;  %v20071_v14 = vld [vmem:[%s21082_s1 + $0x37a0] ss:$8 sps:$4 sm:$0xff]   ;;  %v20076_v41 = vld [vmem:[%s21082_s1 + $0x19b4] ss:$8 sps:$4 sm:$0xff]  }
 0x6e3   : > { %14861 = vmatprep.subr.bf16.mxu0 %v20001_v60  ;;  %v20079_v60 = vld [vmem:[%s21082_s1 + $0x37b4] ss:$8 sps:$4 sm:$0xff]  }
 0x6e5   : > { %13632 = vmatpush1.bf16.msra.mxu1 %v19996_v57  ;;  %v20082_v57 = vld [vmem:[%s21082_s1 + $0x19c4] ss:$8 sps:$4 sm:$0xff]  }
 0x6e6   : > { %14862 = vmatpush1.bf16.msra.mxu0 %v19999_v58  ;;  %13633 = vmatprep.subr.bf16.mxu1 %v20004_v23  ;;  %v20085_v58 = vld [vmem:[%s21082_s1 + $0x37c4] ss:$8 sps:$4 sm:$0xff]   ;;  %v20080_v23 = vld [vmem:[%s21082_s1 + $0x19c0] ss:$8 sps:$4 sm:$0xff]  }
 0x6e7   : > { %14863 = vmatprep.subr.bf16.mxu0 %v20007_v24  ;;  %v20083_v24 = vld [vmem:[%s21082_s1 + $0x37c0] ss:$8 sps:$4 sm:$0xff]  }
 0x6e9   : > { %13634 = vmatpush1.bf16.msra.mxu1 %v20002_v1  ;;  %v20088_v1 = vld [vmem:[%s21082_s1 + $0x19d4] ss:$8 sps:$4 sm:$0xff]  }
 0x6ea   : > { %14864 = vmatpush1.bf16.msra.mxu0 %v20005_v2  ;;  %13644 = vmatprep.subr.bf16.mxu1 %v20010_v3  ;;  %v20091_v2 = vld [vmem:[%s21082_s1 + $0x37d4] ss:$8 sps:$4 sm:$0xff]   ;;  %v20086_v3 = vld [vmem:[%s21082_s1 + $0x19d0] ss:$8 sps:$4 sm:$0xff]  }
 0x6eb   : > { %14874 = vmatprep.subr.bf16.mxu0 %v20013_v4  ;;  %v20089_v4 = vld [vmem:[%s21082_s1 + $0x37d0] ss:$8 sps:$4 sm:$0xff]  }
 0x6ec   : > { %13636 = vmatmul.mubr.bf16.vlgmr.msra.gmra.mrb[0].mxu1 %v1026_v27  ;;  %v23267_v27 = vld [vmem:[%s21074_s27 + $0x68] sm:$0xff] }
 0x6ed   : > { %14866 = vmatmul.mubr.bf16.vlgmr.msra.gmra.mrb[0].mxu0 %v1086_v28  ;;  %13645 = vmatpush1.bf16.msra.mxu1 %v20008_v31  ;;  %v23270_v28 = vld [vmem:[%s21074_s27 + $0xe0] sm:$0xff] }
 0x6ee   : > { %14875 = vmatpush1.bf16.msra.mxu0 %v20011_v32  ;;  %13646 = vmatprep.subr.bf16.mxu1 %v20016_v9  ;;  %v20092_v31 = vld [vmem:[%s21082_s1 + $0x19e0] ss:$8 sps:$4 sm:$0xff]   ;;  %v20100_v9 = vld [vmem:[%s21082_s1 + $0x19f4] ss:$8 sps:$4 sm:$0xff]  }
 0x6ef   : > { %14876 = vmatprep.subr.bf16.mxu0 %v20019_v10  ;;  %13676 = vmatprep.mubr.bf16.mxu1 %v1029_v11  ;;  %v20095_v32 = vld [vmem:[%s21082_s1 + $0x37e0] ss:$8 sps:$4 sm:$0xff]   ;;  %v20103_v10 = vld [vmem:[%s21082_s1 + $0x37f4] ss:$8 sps:$4 sm:$0xff]   ;;  %v23278_v11 = vrot.slane %v23267_v27, %v21150_v50 }
 0x6f0   : > { %14906 = vmatprep.mubr.bf16.mxu0 %v1089_v12  ;;  %v23282_v12 = vrot.slane %v23270_v28, %v21150_v50 }
 0x6f1   : > { %13647 = vmatpush1.bf16.msra.mxu1 %v20014_v51  ;;  %v20098_v51 = vld [vmem:[%s21082_s1 + $0x19f0] ss:$8 sps:$4 sm:$0xff]  }
 0x6f2   : > { %14877 = vmatpush1.bf16.msra.mxu0 %v20017_v52  ;;  %13648 = vmatprep.subr.bf16.mxu1 %v20022_v7  ;;  %v20101_v52 = vld [vmem:[%s21082_s1 + $0x37f0] ss:$8 sps:$4 sm:$0xff]   ;;  %v20107_v7 = vld [vmem:[%s21082_s1 + $0x1a04] ss:$8 sps:$4 sm:$0xff]  }
 0x6f3   : > { %14878 = vmatprep.subr.bf16.mxu0 %v20025_v8  ;;  %v20111_v8 = vld [vmem:[%s21082_s1 + $0x3804] ss:$8 sps:$4 sm:$0xff]  }
 0x6f5   : > { %13649 = vmatpush1.bf16.msra.mxu1 %v20020_v40  ;;  %v584_v40 = vcombine.high %v23278_v11, %v23278_v11 }
 0x6f6   : > { %14879 = vmatpush1.bf16.msra.mxu0 %v20023_v42  ;;  %13650 = vmatprep.subr.bf16.mxu1 %v20028_v21  ;;  %v839_v42 = vcombine.high %v23282_v12, %v23282_v12  ;;  %v1028_v21 = vpack.c.bf16 %v23193_v43, %v23193_v43  ;;  %v20112_v43 = vld [vmem:[%s21082_s1 + $0x1a10] ss:$8 sps:$4 sm:$0xff]  }
 0x6f7   : > { %14880 = vmatprep.subr.bf16.mxu0 %v20031_v22  ;;  %v1088_v22 = vpack.c.bf16 %v23196_v36, %v23196_v36  ;;  %v20115_v36 = vld [vmem:[%s21082_s1 + $0x3810] ss:$8 sps:$4 sm:$0xff]  }
 0x6f9   : > { %13651 = vmatpush1.bf16.msra.mxu1 %v20026_v17  ;;  %v20105_v17 = vld [vmem:[%s21082_s1 + $0x1a00] ss:$8 sps:$4 sm:$0xff]  }
 0x6fa   : > { %14881 = vmatpush1.bf16.msra.mxu0 %v20029_v18  ;;  %13652 = vmatprep.subr.bf16.mxu1 %v20034_v19  ;;  %v20109_v18 = vld [vmem:[%s21082_s1 + $0x3800] ss:$8 sps:$4 sm:$0xff]   ;;  %v20114_v19 = vld [vmem:[%s21082_s1 + $0x1a14] ss:$8 sps:$4 sm:$0xff]  }
 0x6fb   : > { %14882 = vmatprep.subr.bf16.mxu0 %v20037_v20  ;;  %v20117_v20 = vld [vmem:[%s21082_s1 + $0x3814] ss:$8 sps:$4 sm:$0xff]  }
 0x6fd   : > { %13653 = vmatpush1.bf16.msra.mxu1 %v20032_v53  ;;  %v1031_v53 = vpack.c.bf16 %v584_v40, %v584_v40  ;;  %v20184_v40 = vld [vmem:[%s21082_s1 + $0x1ad0] ss:$8 sps:$4 sm:$0xff]  }
 0x6fe   : > { %14883 = vmatpush1.bf16.msra.mxu0 %v20035_v54  ;;  %13654 = vmatprep.subr.bf16.mxu1 %v20040_v29  ;;  %v1091_v54 = vpack.c.bf16 %v839_v42, %v839_v42  ;;  %v20120_v29 = vld [vmem:[%s21082_s1 + $0x1a24] ss:$8 sps:$4 sm:$0xff]   ;;  %v20187_v42 = vld [vmem:[%s21082_s1 + $0x38d0] ss:$8 sps:$4 sm:$0xff]  }
 0x6ff   : > { %14884 = vmatprep.subr.bf16.mxu0 %v20043_v30  ;;  %v20123_v30 = vld [vmem:[%s21082_s1 + $0x3824] ss:$8 sps:$4 sm:$0xff]  }
 0x701   : > { %13655 = vmatpush1.bf16.msra.mxu1 %v20038_v25  ;;  %v20118_v25 = vld [vmem:[%s21082_s1 + $0x1a20] ss:$8 sps:$4 sm:$0xff]  }
 0x702   : > { %14885 = vmatpush1.bf16.msra.mxu0 %v20041_v26  ;;  %13656 = vmatprep.subr.bf16.mxu1 %v20046_v59  ;;  %v20121_v26 = vld [vmem:[%s21082_s1 + $0x3820] ss:$8 sps:$4 sm:$0xff]   ;;  %v20126_v59 = vld [vmem:[%s21082_s1 + $0x1a34] ss:$8 sps:$4 sm:$0xff]  }
 0x703   : > { %14886 = vmatprep.subr.bf16.mxu0 %v20049_v38  ;;  %v20129_v38 = vld [vmem:[%s21082_s1 + $0x3834] ss:$8 sps:$4 sm:$0xff]  }
 0x705   : > { %13657 = vmatpush1.bf16.msra.mxu1 %v20044_v61  ;;  %v20124_v61 = vld [vmem:[%s21082_s1 + $0x1a30] ss:$8 sps:$4 sm:$0xff]  }
 0x706   : > { %14887 = vmatpush1.bf16.msra.mxu0 %v20047_v62  ;;  %13658 = vmatprep.subr.bf16.mxu1 %v20052_v35  ;;  %v20127_v62 = vld [vmem:[%s21082_s1 + $0x3830] ss:$8 sps:$4 sm:$0xff]   ;;  %v20132_v35 = vld [vmem:[%s21082_s1 + $0x1a44] ss:$8 sps:$4 sm:$0xff]  }
 0x707   : > { %14888 = vmatprep.subr.bf16.mxu0 %v20055_v37  ;;  %v20135_v37 = vld [vmem:[%s21082_s1 + $0x3844] ss:$8 sps:$4 sm:$0xff]  }
 0x709   : > { %13659 = vmatpush1.bf16.msra.mxu1 %v20050_v16  ;;  %v20130_v16 = vld [vmem:[%s21082_s1 + $0x1a40] ss:$8 sps:$4 sm:$0xff]  }
 0x70a   : > { %14889 = vmatpush1.bf16.msra.mxu0 %v20053_v39  ;;  %13660 = vmatprep.subr.bf16.mxu1 %v20058_v33  ;;  %v20133_v39 = vld [vmem:[%s21082_s1 + $0x3840] ss:$8 sps:$4 sm:$0xff]   ;;  %v20138_v33 = vld [vmem:[%s21082_s1 + $0x1a54] ss:$8 sps:$4 sm:$0xff]  }
 0x70b   : > { %14890 = vmatprep.subr.bf16.mxu0 %v20061_v34  ;;  %v20141_v34 = vld [vmem:[%s21082_s1 + $0x3854] ss:$8 sps:$4 sm:$0xff]  }
 0x70d   : > { %13661 = vmatpush1.bf16.msra.mxu1 %v20056_v5  ;;  %v20136_v5 = vld [vmem:[%s21082_s1 + $0x1a50] ss:$8 sps:$4 sm:$0xff]  }
 0x70e   : > { %14891 = vmatpush1.bf16.msra.mxu0 %v20059_v6  ;;  %13662 = vmatprep.subr.bf16.mxu1 %v20064_v48  ;;  %v20139_v6 = vld [vmem:[%s21082_s1 + $0x3850] ss:$8 sps:$4 sm:$0xff]   ;;  %v20144_v48 = vld [vmem:[%s21082_s1 + $0x1a64] ss:$8 sps:$4 sm:$0xff]  }
 0x70f   : > { %14892 = vmatprep.subr.bf16.mxu0 %v20067_v49  ;;  %v20147_v49 = vld [vmem:[%s21082_s1 + $0x3864] ss:$8 sps:$4 sm:$0xff]  }
 0x711   : > { %13663 = vmatpush1.bf16.msra.mxu1 %v20062_v45  ;;  %v20142_v45 = vld [vmem:[%s21082_s1 + $0x1a60] ss:$8 sps:$4 sm:$0xff]  }
 0x712   : > { %14893 = vmatpush1.bf16.msra.mxu0 %v20065_v15  ;;  %13664 = vmatprep.subr.bf16.mxu1 %v20070_v46  ;;  %v20145_v15 = vld [vmem:[%s21082_s1 + $0x3860] ss:$8 sps:$4 sm:$0xff]   ;;  %v20150_v46 = vld [vmem:[%s21082_s1 + $0x1a74] ss:$8 sps:$4 sm:$0xff]  }
 0x713   : > { %14894 = vmatprep.subr.bf16.mxu0 %v20073_v47  ;;  %v20153_v47 = vld [vmem:[%s21082_s1 + $0x3874] ss:$8 sps:$4 sm:$0xff]  }
 0x715   : > { %13665 = vmatpush1.bf16.msra.mxu1 %v20068_v13  ;;  %v20148_v13 = vld [vmem:[%s21082_s1 + $0x1a70] ss:$8 sps:$4 sm:$0xff]  }
 0x716   : > { %14895 = vmatpush1.bf16.msra.mxu0 %v20071_v14  ;;  %13666 = vmatprep.subr.bf16.mxu1 %v20076_v41  ;;  %v20151_v14 = vld [vmem:[%s21082_s1 + $0x3870] ss:$8 sps:$4 sm:$0xff]   ;;  %v20156_v41 = vld [vmem:[%s21082_s1 + $0x1a84] ss:$8 sps:$4 sm:$0xff]  }
 0x717   : > { %14896 = vmatprep.subr.bf16.mxu0 %v20079_v60  ;;  %v20159_v60 = vld [vmem:[%s21082_s1 + $0x3884] ss:$8 sps:$4 sm:$0xff]  }
 0x719   : > { %13667 = vmatpush1.bf16.msra.mxu1 %v20074_v55  ;;  %v20154_v55 = vld [vmem:[%s21082_s1 + $0x1a80] ss:$8 sps:$4 sm:$0xff]  }
 0x71a   : > { %14897 = vmatpush1.bf16.msra.mxu0 %v20077_v56  ;;  %13668 = vmatprep.subr.bf16.mxu1 %v20082_v57  ;;  %v20157_v56 = vld [vmem:[%s21082_s1 + $0x3880] ss:$8 sps:$4 sm:$0xff]   ;;  %v20162_v57 = vld [vmem:[%s21082_s1 + $0x1a94] ss:$8 sps:$4 sm:$0xff]  }
 0x71b   : > { %14898 = vmatprep.subr.bf16.mxu0 %v20085_v58  ;;  %v20165_v58 = vld [vmem:[%s21082_s1 + $0x3894] ss:$8 sps:$4 sm:$0xff]  }
 0x71d   : > { %13669 = vmatpush1.bf16.msra.mxu1 %v20080_v23  ;;  %v20160_v23 = vld [vmem:[%s21082_s1 + $0x1a90] ss:$8 sps:$4 sm:$0xff]  }
 0x71e   : > { %14899 = vmatpush1.bf16.msra.mxu0 %v20083_v24  ;;  %13670 = vmatprep.subr.bf16.mxu1 %v20088_v1  ;;  %v20163_v24 = vld [vmem:[%s21082_s1 + $0x3890] ss:$8 sps:$4 sm:$0xff]   ;;  %v20168_v1 = vld [vmem:[%s21082_s1 + $0x1aa4] ss:$8 sps:$4 sm:$0xff]  }
 0x71f   : > { %14900 = vmatprep.subr.bf16.mxu0 %v20091_v2  ;;  %v20171_v2 = vld [vmem:[%s21082_s1 + $0x38a4] ss:$8 sps:$4 sm:$0xff]  }
 0x721   : > { %13671 = vmatpush1.bf16.msra.mxu1 %v20086_v3  ;;  %v20166_v3 = vld [vmem:[%s21082_s1 + $0x1aa0] ss:$8 sps:$4 sm:$0xff]  }
 0x722   : > { %14901 = vmatpush1.bf16.msra.mxu0 %v20089_v4  ;;  %13672 = vmatprep.subr.bf16.mxu1 %v20094_v63  ;;  %v20169_v4 = vld [vmem:[%s21082_s1 + $0x38a0] ss:$8 sps:$4 sm:$0xff]   ;;  %v20174_v63 = vld [vmem:[%s21082_s1 + $0x1ab4] ss:$8 sps:$4 sm:$0xff]  }
 0x723   : > { %14902 = vmatprep.subr.bf16.mxu0 %v20097_v0  ;;  %v20177_v0 = vld [vmem:[%s21082_s1 + $0x38b4] ss:$8 sps:$4 sm:$0xff]  }
 0x725   : > { %13673 = vmatpush1.bf16.msra.mxu1 %v20092_v31  ;;  %v20172_v31 = vld [vmem:[%s21082_s1 + $0x1ab0] ss:$8 sps:$4 sm:$0xff]  }
 0x726   : > { %14903 = vmatpush1.bf16.msra.mxu0 %v20095_v32  ;;  %13674 = vmatprep.subr.bf16.mxu1 %v20100_v9  ;;  %v20175_v32 = vld [vmem:[%s21082_s1 + $0x38b0] ss:$8 sps:$4 sm:$0xff]   ;;  %v20180_v9 = vld [vmem:[%s21082_s1 + $0x1ac4] ss:$8 sps:$4 sm:$0xff]  }
 0x727   : > { %14904 = vmatprep.subr.bf16.mxu0 %v20103_v10  ;;  %v20183_v10 = vld [vmem:[%s21082_s1 + $0x38c4] ss:$8 sps:$4 sm:$0xff]  }
 0x729   : > { %13675 = vmatpush1.bf16.msra.mxu1 %v20098_v51  ;;  %v20178_v51 = vld [vmem:[%s21082_s1 + $0x1ac0] ss:$8 sps:$4 sm:$0xff]  }
 0x72a   : > { %14905 = vmatpush1.bf16.msra.mxu0 %v20101_v52  ;;  %13685 = vmatprep.subr.bf16.mxu1 %v20107_v7  ;;  %v20181_v52 = vld [vmem:[%s21082_s1 + $0x38c0] ss:$8 sps:$4 sm:$0xff]   ;;  %v20186_v7 = vld [vmem:[%s21082_s1 + $0x1ad4] ss:$8 sps:$4 sm:$0xff]  }
 0x72b   : > { %14915 = vmatprep.subr.bf16.mxu0 %v20111_v8  ;;  %v20189_v8 = vld [vmem:[%s21082_s1 + $0x38d4] ss:$8 sps:$4 sm:$0xff]  }
 0x72c   : > { %13677 = vmatmul.mubr.bf16.vlgmr.msra.gmra.mrb[0].mxu1 %v1028_v21  ;;  %v20192_v21 = vld [vmem:[%s21082_s1 + $0x1ae4] ss:$8 sps:$4 sm:$0xff]  }
 0x72d   : > { %14907 = vmatmul.mubr.bf16.vlgmr.msra.gmra.mrb[0].mxu0 %v1088_v22  ;;  %13686 = vmatpush1.bf16.msra.mxu1 %v20105_v17  ;;  %v20195_v22 = vld [vmem:[%s21082_s1 + $0x38e4] ss:$8 sps:$4 sm:$0xff]   ;;  %v569_v17 = vcombine.high %v23267_v27, %v23267_v27  ;;  %v20196_v27 = vld [vmem:[%s21082_s1 + $0x1af0] ss:$8 sps:$4 sm:$0xff]  }
 0x72e   : > { %14916 = vmatpush1.bf16.msra.mxu0 %v20109_v18  ;;  %13687 = vmatprep.subr.bf16.mxu1 %v20114_v19  ;;  %v824_v18 = vcombine.high %v23270_v28, %v23270_v28  ;;  %v20190_v19 = vld [vmem:[%s21082_s1 + $0x1ae0] ss:$8 sps:$4 sm:$0xff]   ;;  %v20199_v28 = vld [vmem:[%s21082_s1 + $0x38f0] ss:$8 sps:$4 sm:$0xff]  }
 0x72f   : > { %14917 = vmatprep.subr.bf16.mxu0 %v20117_v20  ;;  %13717 = vmatprep.mubr.bf16.mxu1 %v1031_v53  ;;  %v20193_v20 = vld [vmem:[%s21082_s1 + $0x38e0] ss:$8 sps:$4 sm:$0xff]   ;;  %v20198_v53 = vld [vmem:[%s21082_s1 + $0x1af4] ss:$8 sps:$4 sm:$0xff]  }
 0x730   : > { %14947 = vmatprep.mubr.bf16.mxu0 %v1091_v54  ;;  %v20201_v54 = vld [vmem:[%s21082_s1 + $0x38f4] ss:$8 sps:$4 sm:$0xff]  }
 0x731   : > { %13688 = vmatpush1.bf16.msra.mxu1 %v20112_v43  ;;  %v23361_v43 = vrot.slane %v569_v17, %v21150_v50  ;;  %v20268_v17 = vld [vmem:[%s21082_s1 + $0x1bb0] ss:$8 sps:$4 sm:$0xff]  }
 0x732   : > { %14918 = vmatpush1.bf16.msra.mxu0 %v20115_v36  ;;  %13689 = vmatprep.subr.bf16.mxu1 %v20120_v29  ;;  %v23364_v36 = vrot.slane %v824_v18, %v21150_v50  ;;  %v20204_v29 = vld [vmem:[%s21082_s1 + $0x1b04] ss:$8 sps:$4 sm:$0xff]   ;;  %v20271_v18 = vld [vmem:[%s21082_s1 + $0x39b0] ss:$8 sps:$4 sm:$0xff]  }
 0x733   : > { %14919 = vmatprep.subr.bf16.mxu0 %v20123_v30  ;;  %v20207_v30 = vld [vmem:[%s21082_s1 + $0x3904] ss:$8 sps:$4 sm:$0xff]  }
 0x735   : > { %13690 = vmatpush1.bf16.msra.mxu1 %v20118_v25  ;;  %v585_v25 = vcombine.high %v23361_v43, %v23361_v43 }
 0x736   : > { %14920 = vmatpush1.bf16.msra.mxu0 %v20121_v26  ;;  %13691 = vmatprep.subr.bf16.mxu1 %v20126_v59  ;;  %v840_v26 = vcombine.high %v23364_v36, %v23364_v36  ;;  %v1030_v59 = vpack.c.bf16 %v23278_v11, %v23278_v11  ;;  %v20208_v11 = vld [vmem:[%s21082_s1 + $0x1b10] ss:$8 sps:$4 sm:$0xff]  }
 0x737   : > { %14921 = vmatprep.subr.bf16.mxu0 %v20129_v38  ;;  %v1090_v38 = vpack.c.bf16 %v23282_v12, %v23282_v12  ;;  %v20211_v12 = vld [vmem:[%s21082_s1 + $0x3910] ss:$8 sps:$4 sm:$0xff]  }
 0x739   : > { %13692 = vmatpush1.bf16.msra.mxu1 %v20124_v61  ;;  %v20202_v61 = vld [vmem:[%s21082_s1 + $0x1b00] ss:$8 sps:$4 sm:$0xff]  }
 0x73a   : > { %14922 = vmatpush1.bf16.msra.mxu0 %v20127_v62  ;;  %13693 = vmatprep.subr.bf16.mxu1 %v20132_v35  ;;  %v20205_v62 = vld [vmem:[%s21082_s1 + $0x3900] ss:$8 sps:$4 sm:$0xff]   ;;  %v20210_v35 = vld [vmem:[%s21082_s1 + $0x1b14] ss:$8 sps:$4 sm:$0xff]  }
 0x73b   : > { %14923 = vmatprep.subr.bf16.mxu0 %v20135_v37  ;;  %v20213_v37 = vld [vmem:[%s21082_s1 + $0x3914] ss:$8 sps:$4 sm:$0xff]  }
 0x73d   : > { %13694 = vmatpush1.bf16.msra.mxu1 %v20130_v16  ;;  %v1033_v16 = vpack.c.bf16 %v585_v25, %v585_v25  ;;  %v20288_v25 = vld [vmem:[%s21082_s1 + $0x1be4] ss:$8 sps:$4 sm:$0xff]  }
 0x73e   : > { %14924 = vmatpush1.bf16.msra.mxu0 %v20133_v39  ;;  %13695 = vmatprep.subr.bf16.mxu1 %v20138_v33  ;;  %v1093_v39 = vpack.c.bf16 %v840_v26, %v840_v26  ;;  %v20216_v33 = vld [vmem:[%s21082_s1 + $0x1b24] ss:$8 sps:$4 sm:$0xff]  }
 0x73f   : > { %14925 = vmatprep.subr.bf16.mxu0 %v20141_v34  ;;  %v20219_v34 = vld [vmem:[%s21082_s1 + $0x3924] ss:$8 sps:$4 sm:$0xff]  }
 0x740   : > { %v20291_v26 = vld [vmem:[%s21082_s1 + $0x39e4] ss:$8 sps:$4 sm:$0xff]  }
 0x741   : > { %13696 = vmatpush1.bf16.msra.mxu1 %v20136_v5  ;;  %v20214_v5 = vld [vmem:[%s21082_s1 + $0x1b20] ss:$8 sps:$4 sm:$0xff]  }
 0x742   : > { %14926 = vmatpush1.bf16.msra.mxu0 %v20139_v6  ;;  %13697 = vmatprep.subr.bf16.mxu1 %v20144_v48  ;;  %v20217_v6 = vld [vmem:[%s21082_s1 + $0x3920] ss:$8 sps:$4 sm:$0xff]   ;;  %v20222_v48 = vld [vmem:[%s21082_s1 + $0x1b34] ss:$8 sps:$4 sm:$0xff]  }
 0x743   : > { %14927 = vmatprep.subr.bf16.mxu0 %v20147_v49  ;;  %v20225_v49 = vld [vmem:[%s21082_s1 + $0x3934] ss:$8 sps:$4 sm:$0xff]  }
 0x745   : > { %13698 = vmatpush1.bf16.msra.mxu1 %v20142_v45  ;;  %v20220_v45 = vld [vmem:[%s21082_s1 + $0x1b30] ss:$8 sps:$4 sm:$0xff]  }
 0x746   : > { %14928 = vmatpush1.bf16.msra.mxu0 %v20145_v15  ;;  %13699 = vmatprep.subr.bf16.mxu1 %v20150_v46  ;;  %v20223_v15 = vld [vmem:[%s21082_s1 + $0x3930] ss:$8 sps:$4 sm:$0xff]   ;;  %v20228_v46 = vld [vmem:[%s21082_s1 + $0x1b44] ss:$8 sps:$4 sm:$0xff]  }
 0x747   : > { %14929 = vmatprep.subr.bf16.mxu0 %v20153_v47  ;;  %v20231_v47 = vld [vmem:[%s21082_s1 + $0x3944] ss:$8 sps:$4 sm:$0xff]  }
 0x749   : > { %13700 = vmatpush1.bf16.msra.mxu1 %v20148_v13  ;;  %v20226_v13 = vld [vmem:[%s21082_s1 + $0x1b40] ss:$8 sps:$4 sm:$0xff]  }
 0x74a   : > { %14930 = vmatpush1.bf16.msra.mxu0 %v20151_v14  ;;  %13701 = vmatprep.subr.bf16.mxu1 %v20156_v41  ;;  %v20229_v14 = vld [vmem:[%s21082_s1 + $0x3940] ss:$8 sps:$4 sm:$0xff]   ;;  %v20234_v41 = vld [vmem:[%s21082_s1 + $0x1b54] ss:$8 sps:$4 sm:$0xff]  }
 0x74b   : > { %14931 = vmatprep.subr.bf16.mxu0 %v20159_v60  ;;  %v20237_v60 = vld [vmem:[%s21082_s1 + $0x3954] ss:$8 sps:$4 sm:$0xff]  }
 0x74d   : > { %13702 = vmatpush1.bf16.msra.mxu1 %v20154_v55  ;;  %v20232_v55 = vld [vmem:[%s21082_s1 + $0x1b50] ss:$8 sps:$4 sm:$0xff]  }
 0x74e   : > { %14932 = vmatpush1.bf16.msra.mxu0 %v20157_v56  ;;  %13703 = vmatprep.subr.bf16.mxu1 %v20162_v57  ;;  %v20235_v56 = vld [vmem:[%s21082_s1 + $0x3950] ss:$8 sps:$4 sm:$0xff]   ;;  %v20240_v57 = vld [vmem:[%s21082_s1 + $0x1b64] ss:$8 sps:$4 sm:$0xff]  }
 0x74f   : > { %14933 = vmatprep.subr.bf16.mxu0 %v20165_v58  ;;  %v20243_v58 = vld [vmem:[%s21082_s1 + $0x3964] ss:$8 sps:$4 sm:$0xff]  }
 0x751   : > { %13704 = vmatpush1.bf16.msra.mxu1 %v20160_v23  ;;  %v20238_v23 = vld [vmem:[%s21082_s1 + $0x1b60] ss:$8 sps:$4 sm:$0xff]  }
 0x752   : > { %14934 = vmatpush1.bf16.msra.mxu0 %v20163_v24  ;;  %13705 = vmatprep.subr.bf16.mxu1 %v20168_v1  ;;  %v20241_v24 = vld [vmem:[%s21082_s1 + $0x3960] ss:$8 sps:$4 sm:$0xff]   ;;  %v20246_v1 = vld [vmem:[%s21082_s1 + $0x1b74] ss:$8 sps:$4 sm:$0xff]  }
 0x753   : > { %14935 = vmatprep.subr.bf16.mxu0 %v20171_v2  ;;  %v20249_v2 = vld [vmem:[%s21082_s1 + $0x3974] ss:$8 sps:$4 sm:$0xff]  }
 0x755   : > { %13706 = vmatpush1.bf16.msra.mxu1 %v20166_v3  ;;  %v20244_v3 = vld [vmem:[%s21082_s1 + $0x1b70] ss:$8 sps:$4 sm:$0xff]  }
 0x756   : > { %14936 = vmatpush1.bf16.msra.mxu0 %v20169_v4  ;;  %13707 = vmatprep.subr.bf16.mxu1 %v20174_v63  ;;  %v20247_v4 = vld [vmem:[%s21082_s1 + $0x3970] ss:$8 sps:$4 sm:$0xff]   ;;  %v20252_v63 = vld [vmem:[%s21082_s1 + $0x1b84] ss:$8 sps:$4 sm:$0xff]  }
 0x757   : > { %14937 = vmatprep.subr.bf16.mxu0 %v20177_v0  ;;  %v20255_v0 = vld [vmem:[%s21082_s1 + $0x3984] ss:$8 sps:$4 sm:$0xff]  }
 0x759   : > { %13708 = vmatpush1.bf16.msra.mxu1 %v20172_v31  ;;  %v20250_v31 = vld [vmem:[%s21082_s1 + $0x1b80] ss:$8 sps:$4 sm:$0xff]  }
 0x75a   : > { %14938 = vmatpush1.bf16.msra.mxu0 %v20175_v32  ;;  %13709 = vmatprep.subr.bf16.mxu1 %v20180_v9  ;;  %v20253_v32 = vld [vmem:[%s21082_s1 + $0x3980] ss:$8 sps:$4 sm:$0xff]   ;;  %v20258_v9 = vld [vmem:[%s21082_s1 + $0x1b94] ss:$8 sps:$4 sm:$0xff]  }
 0x75b   : > { %14939 = vmatprep.subr.bf16.mxu0 %v20183_v10  ;;  %v20261_v10 = vld [vmem:[%s21082_s1 + $0x3994] ss:$8 sps:$4 sm:$0xff]  }
 0x75d   : > { %13710 = vmatpush1.bf16.msra.mxu1 %v20178_v51  ;;  %v20256_v51 = vld [vmem:[%s21082_s1 + $0x1b90] ss:$8 sps:$4 sm:$0xff]  }
 0x75e   : > { %14940 = vmatpush1.bf16.msra.mxu0 %v20181_v52  ;;  %13711 = vmatprep.subr.bf16.mxu1 %v20186_v7  ;;  %v20259_v52 = vld [vmem:[%s21082_s1 + $0x3990] ss:$8 sps:$4 sm:$0xff]   ;;  %v20264_v7 = vld [vmem:[%s21082_s1 + $0x1ba4] ss:$8 sps:$4 sm:$0xff]  }
 0x75f   : > { %14941 = vmatprep.subr.bf16.mxu0 %v20189_v8  ;;  %v20267_v8 = vld [vmem:[%s21082_s1 + $0x39a4] ss:$8 sps:$4 sm:$0xff]  }
 0x761   : > { %13712 = vmatpush1.bf16.msra.mxu1 %v20184_v40  ;;  %v20262_v40 = vld [vmem:[%s21082_s1 + $0x1ba0] ss:$8 sps:$4 sm:$0xff]  }
 0x762   : > { %14942 = vmatpush1.bf16.msra.mxu0 %v20187_v42  ;;  %13713 = vmatprep.subr.bf16.mxu1 %v20192_v21  ;;  %v20265_v42 = vld [vmem:[%s21082_s1 + $0x39a0] ss:$8 sps:$4 sm:$0xff]   ;;  %v20270_v21 = vld [vmem:[%s21082_s1 + $0x1bb4] ss:$8 sps:$4 sm:$0xff]  }
 0x763   : > { %14943 = vmatprep.subr.bf16.mxu0 %v20195_v22  ;;  %v20273_v22 = vld [vmem:[%s21082_s1 + $0x39b4] ss:$8 sps:$4 sm:$0xff]  }
 0x765   : > { %13714 = vmatpush1.bf16.msra.mxu1 %v20190_v19  ;;  %v20276_v19 = vld [vmem:[%s21082_s1 + $0x1bc4] ss:$8 sps:$4 sm:$0xff]  }
 0x766   : > { %14944 = vmatpush1.bf16.msra.mxu0 %v20193_v20  ;;  %13715 = vmatprep.subr.bf16.mxu1 %v20198_v53  ;;  %v20279_v20 = vld [vmem:[%s21082_s1 + $0x39c4] ss:$8 sps:$4 sm:$0xff]   ;;  %v20274_v53 = vld [vmem:[%s21082_s1 + $0x1bc0] ss:$8 sps:$4 sm:$0xff]  }
 0x767   : > { %14945 = vmatprep.subr.bf16.mxu0 %v20201_v54  ;;  %v20277_v54 = vld [vmem:[%s21082_s1 + $0x39c0] ss:$8 sps:$4 sm:$0xff]  }
 0x769   : > { %13716 = vmatpush1.bf16.msra.mxu1 %v20196_v27  ;;  %v20282_v27 = vld [vmem:[%s21082_s1 + $0x1bd4] ss:$8 sps:$4 sm:$0xff]  }
 0x76a   : > { %14946 = vmatpush1.bf16.msra.mxu0 %v20199_v28  ;;  %13726 = vmatprep.subr.bf16.mxu1 %v20204_v29  ;;  %v20285_v28 = vld [vmem:[%s21082_s1 + $0x39d4] ss:$8 sps:$4 sm:$0xff]   ;;  %v20280_v29 = vld [vmem:[%s21082_s1 + $0x1bd0] ss:$8 sps:$4 sm:$0xff]  }
 0x76b   : > { %14956 = vmatprep.subr.bf16.mxu0 %v20207_v30  ;;  %v20283_v30 = vld [vmem:[%s21082_s1 + $0x39d0] ss:$8 sps:$4 sm:$0xff]  }
 0x76c   : > { %13718 = vmatmul.mubr.bf16.vlgmr.msra.gmra.mrb[0].mxu1 %v1030_v59  ;;  %v23435_v59 = vld [vmem:[%s21074_s27 + $0x70] sm:$0xff] }
 0x76d   : > { %14948 = vmatmul.mubr.bf16.vlgmr.msra.gmra.mrb[0].mxu0 %v1090_v38  ;;  %13727 = vmatpush1.bf16.msra.mxu1 %v20202_v61  ;;  %v23438_v38 = vld [vmem:[%s21074_s27 + $0xe8] sm:$0xff] }
 0x76e   : > { %14957 = vmatpush1.bf16.msra.mxu0 %v20205_v62  ;;  %13728 = vmatprep.subr.bf16.mxu1 %v20210_v35  ;;  %v20286_v61 = vld [vmem:[%s21082_s1 + $0x1be0] ss:$8 sps:$4 sm:$0xff]   ;;  %v20294_v35 = vld [vmem:[%s21082_s1 + $0x1bf4] ss:$8 sps:$4 sm:$0xff]  }
 0x76f   : > { %14958 = vmatprep.subr.bf16.mxu0 %v20213_v37  ;;  %13758 = vmatprep.mubr.bf16.mxu1 %v1033_v16  ;;  %v20289_v62 = vld [vmem:[%s21082_s1 + $0x39e0] ss:$8 sps:$4 sm:$0xff]   ;;  %v20297_v37 = vld [vmem:[%s21082_s1 + $0x39f4] ss:$8 sps:$4 sm:$0xff]   ;;  %v23446_v16 = vrot.slane %v23435_v59, %v21150_v50 }
 0x770   : > { %14988 = vmatprep.mubr.bf16.mxu0 %v1093_v39  ;;  %v23450_v39 = vrot.slane %v23438_v38, %v21150_v50 }
 0x771   : > { %13729 = vmatpush1.bf16.msra.mxu1 %v20208_v11  ;;  %v20292_v11 = vld [vmem:[%s21082_s1 + $0x1bf0] ss:$8 sps:$4 sm:$0xff]  }
 0x772   : > { %14959 = vmatpush1.bf16.msra.mxu0 %v20211_v12  ;;  %13730 = vmatprep.subr.bf16.mxu1 %v20216_v33  ;;  %v20295_v12 = vld [vmem:[%s21082_s1 + $0x39f0] ss:$8 sps:$4 sm:$0xff]   ;;  %v20301_v33 = vld [vmem:[%s21082_s1 + $0x1c04] ss:$8 sps:$4 sm:$0xff]  }
 0x773   : > { %14960 = vmatprep.subr.bf16.mxu0 %v20219_v34  ;;  %v20305_v34 = vld [vmem:[%s21082_s1 + $0x3a04] ss:$8 sps:$4 sm:$0xff]  }
 0x775   : > { %13731 = vmatpush1.bf16.msra.mxu1 %v20214_v5  ;;  %v601_v5 = vcombine.high %v23446_v16, %v23446_v16 }
 0x776   : > { %14961 = vmatpush1.bf16.msra.mxu0 %v20217_v6  ;;  %13732 = vmatprep.subr.bf16.mxu1 %v20222_v48  ;;  %v856_v6 = vcombine.high %v23450_v39, %v23450_v39  ;;  %v1032_v48 = vpack.c.bf16 %v23361_v43, %v23361_v43  ;;  %v20306_v43 = vld [vmem:[%s21082_s1 + $0x1c10] ss:$8 sps:$4 sm:$0xff]  }
 0x777   : > { %14962 = vmatprep.subr.bf16.mxu0 %v20225_v49  ;;  %v1092_v49 = vpack.c.bf16 %v23364_v36, %v23364_v36  ;;  %v20309_v36 = vld [vmem:[%s21082_s1 + $0x3a10] ss:$8 sps:$4 sm:$0xff]  }
 0x779   : > { %13733 = vmatpush1.bf16.msra.mxu1 %v20220_v45  ;;  %v20299_v45 = vld [vmem:[%s21082_s1 + $0x1c00] ss:$8 sps:$4 sm:$0xff]  }
 0x77a   : > { %14963 = vmatpush1.bf16.msra.mxu0 %v20223_v15  ;;  %13734 = vmatprep.subr.bf16.mxu1 %v20228_v46  ;;  %v20303_v15 = vld [vmem:[%s21082_s1 + $0x3a00] ss:$8 sps:$4 sm:$0xff]   ;;  %v20308_v46 = vld [vmem:[%s21082_s1 + $0x1c14] ss:$8 sps:$4 sm:$0xff]  }
 0x77b   : > { %14964 = vmatprep.subr.bf16.mxu0 %v20231_v47  ;;  %v20311_v47 = vld [vmem:[%s21082_s1 + $0x3a14] ss:$8 sps:$4 sm:$0xff]  }
 0x77d   : > { %13735 = vmatpush1.bf16.msra.mxu1 %v20226_v13  ;;  %v1035_v13 = vpack.c.bf16 %v601_v5, %v601_v5  ;;  %v20378_v5 = vld [vmem:[%s21082_s1 + $0x1cd0] ss:$8 sps:$4 sm:$0xff]  }
 0x77e   : > { %14965 = vmatpush1.bf16.msra.mxu0 %v20229_v14  ;;  %13736 = vmatprep.subr.bf16.mxu1 %v20234_v41  ;;  %v1095_v14 = vpack.c.bf16 %v856_v6, %v856_v6  ;;  %v20314_v41 = vld [vmem:[%s21082_s1 + $0x1c24] ss:$8 sps:$4 sm:$0xff]   ;;  %v20381_v6 = vld [vmem:[%s21082_s1 + $0x3ad0] ss:$8 sps:$4 sm:$0xff]  }
 0x77f   : > { %14966 = vmatprep.subr.bf16.mxu0 %v20237_v60  ;;  %v20317_v60 = vld [vmem:[%s21082_s1 + $0x3a24] ss:$8 sps:$4 sm:$0xff]  }
 0x781   : > { %13737 = vmatpush1.bf16.msra.mxu1 %v20232_v55  ;;  %v20312_v55 = vld [vmem:[%s21082_s1 + $0x1c20] ss:$8 sps:$4 sm:$0xff]  }
 0x782   : > { %14967 = vmatpush1.bf16.msra.mxu0 %v20235_v56  ;;  %13738 = vmatprep.subr.bf16.mxu1 %v20240_v57  ;;  %v20315_v56 = vld [vmem:[%s21082_s1 + $0x3a20] ss:$8 sps:$4 sm:$0xff]   ;;  %v20320_v57 = vld [vmem:[%s21082_s1 + $0x1c34] ss:$8 sps:$4 sm:$0xff]  }
 0x783   : > { %14968 = vmatprep.subr.bf16.mxu0 %v20243_v58  ;;  %v20323_v58 = vld [vmem:[%s21082_s1 + $0x3a34] ss:$8 sps:$4 sm:$0xff]  }
 0x785   : > { %13739 = vmatpush1.bf16.msra.mxu1 %v20238_v23  ;;  %v20318_v23 = vld [vmem:[%s21082_s1 + $0x1c30] ss:$8 sps:$4 sm:$0xff]  }
 0x786   : > { %14969 = vmatpush1.bf16.msra.mxu0 %v20241_v24  ;;  %13740 = vmatprep.subr.bf16.mxu1 %v20246_v1  ;;  %v20321_v24 = vld [vmem:[%s21082_s1 + $0x3a30] ss:$8 sps:$4 sm:$0xff]   ;;  %v20326_v1 = vld [vmem:[%s21082_s1 + $0x1c44] ss:$8 sps:$4 sm:$0xff]  }
 0x787   : > { %14970 = vmatprep.subr.bf16.mxu0 %v20249_v2  ;;  %v20329_v2 = vld [vmem:[%s21082_s1 + $0x3a44] ss:$8 sps:$4 sm:$0xff]  }
 0x789   : > { %13741 = vmatpush1.bf16.msra.mxu1 %v20244_v3  ;;  %v20324_v3 = vld [vmem:[%s21082_s1 + $0x1c40] ss:$8 sps:$4 sm:$0xff]  }
 0x78a   : > { %14971 = vmatpush1.bf16.msra.mxu0 %v20247_v4  ;;  %13742 = vmatprep.subr.bf16.mxu1 %v20252_v63  ;;  %v20327_v4 = vld [vmem:[%s21082_s1 + $0x3a40] ss:$8 sps:$4 sm:$0xff]   ;;  %v20332_v63 = vld [vmem:[%s21082_s1 + $0x1c54] ss:$8 sps:$4 sm:$0xff]  }
 0x78b   : > { %14972 = vmatprep.subr.bf16.mxu0 %v20255_v0  ;;  %v20335_v0 = vld [vmem:[%s21082_s1 + $0x3a54] ss:$8 sps:$4 sm:$0xff]  }
 0x78d   : > { %13743 = vmatpush1.bf16.msra.mxu1 %v20250_v31  ;;  %v20330_v31 = vld [vmem:[%s21082_s1 + $0x1c50] ss:$8 sps:$4 sm:$0xff]  }
 0x78e   : > { %14973 = vmatpush1.bf16.msra.mxu0 %v20253_v32  ;;  %13744 = vmatprep.subr.bf16.mxu1 %v20258_v9  ;;  %v20333_v32 = vld [vmem:[%s21082_s1 + $0x3a50] ss:$8 sps:$4 sm:$0xff]   ;;  %v20338_v9 = vld [vmem:[%s21082_s1 + $0x1c64] ss:$8 sps:$4 sm:$0xff]  }
 0x78f   : > { %14974 = vmatprep.subr.bf16.mxu0 %v20261_v10  ;;  %v20341_v10 = vld [vmem:[%s21082_s1 + $0x3a64] ss:$8 sps:$4 sm:$0xff]  }
 0x791   : > { %13745 = vmatpush1.bf16.msra.mxu1 %v20256_v51  ;;  %v20336_v51 = vld [vmem:[%s21082_s1 + $0x1c60] ss:$8 sps:$4 sm:$0xff]  }
 0x792   : > { %14975 = vmatpush1.bf16.msra.mxu0 %v20259_v52  ;;  %13746 = vmatprep.subr.bf16.mxu1 %v20264_v7  ;;  %v20339_v52 = vld [vmem:[%s21082_s1 + $0x3a60] ss:$8 sps:$4 sm:$0xff]   ;;  %v20344_v7 = vld [vmem:[%s21082_s1 + $0x1c74] ss:$8 sps:$4 sm:$0xff]  }
 0x793   : > { %14976 = vmatprep.subr.bf16.mxu0 %v20267_v8  ;;  %v20347_v8 = vld [vmem:[%s21082_s1 + $0x3a74] ss:$8 sps:$4 sm:$0xff]  }
 0x795   : > { %13747 = vmatpush1.bf16.msra.mxu1 %v20262_v40  ;;  %v20342_v40 = vld [vmem:[%s21082_s1 + $0x1c70] ss:$8 sps:$4 sm:$0xff]  }
 0x796   : > { %14977 = vmatpush1.bf16.msra.mxu0 %v20265_v42  ;;  %13748 = vmatprep.subr.bf16.mxu1 %v20270_v21  ;;  %v20345_v42 = vld [vmem:[%s21082_s1 + $0x3a70] ss:$8 sps:$4 sm:$0xff]   ;;  %v20350_v21 = vld [vmem:[%s21082_s1 + $0x1c84] ss:$8 sps:$4 sm:$0xff]  }
 0x797   : > { %14978 = vmatprep.subr.bf16.mxu0 %v20273_v22  ;;  %v20353_v22 = vld [vmem:[%s21082_s1 + $0x3a84] ss:$8 sps:$4 sm:$0xff]  }
 0x799   : > { %13749 = vmatpush1.bf16.msra.mxu1 %v20268_v17  ;;  %v20348_v17 = vld [vmem:[%s21082_s1 + $0x1c80] ss:$8 sps:$4 sm:$0xff]  }
 0x79a   : > { %14979 = vmatpush1.bf16.msra.mxu0 %v20271_v18  ;;  %13750 = vmatprep.subr.bf16.mxu1 %v20276_v19  ;;  %v20351_v18 = vld [vmem:[%s21082_s1 + $0x3a80] ss:$8 sps:$4 sm:$0xff]   ;;  %v20356_v19 = vld [vmem:[%s21082_s1 + $0x1c94] ss:$8 sps:$4 sm:$0xff]  }
 0x79b   : > { %14980 = vmatprep.subr.bf16.mxu0 %v20279_v20  ;;  %v20359_v20 = vld [vmem:[%s21082_s1 + $0x3a94] ss:$8 sps:$4 sm:$0xff]  }
 0x79d   : > { %13751 = vmatpush1.bf16.msra.mxu1 %v20274_v53  ;;  %v20354_v53 = vld [vmem:[%s21082_s1 + $0x1c90] ss:$8 sps:$4 sm:$0xff]  }
 0x79e   : > { %14981 = vmatpush1.bf16.msra.mxu0 %v20277_v54  ;;  %13752 = vmatprep.subr.bf16.mxu1 %v20282_v27  ;;  %v20357_v54 = vld [vmem:[%s21082_s1 + $0x3a90] ss:$8 sps:$4 sm:$0xff]   ;;  %v20362_v27 = vld [vmem:[%s21082_s1 + $0x1ca4] ss:$8 sps:$4 sm:$0xff]  }
 0x79f   : > { %14982 = vmatprep.subr.bf16.mxu0 %v20285_v28  ;;  %v20365_v28 = vld [vmem:[%s21082_s1 + $0x3aa4] ss:$8 sps:$4 sm:$0xff]  }
 0x7a1   : > { %13753 = vmatpush1.bf16.msra.mxu1 %v20280_v29  ;;  %v20360_v29 = vld [vmem:[%s21082_s1 + $0x1ca0] ss:$8 sps:$4 sm:$0xff]  }
 0x7a2   : > { %14983 = vmatpush1.bf16.msra.mxu0 %v20283_v30  ;;  %13754 = vmatprep.subr.bf16.mxu1 %v20288_v25  ;;  %v20363_v30 = vld [vmem:[%s21082_s1 + $0x3aa0] ss:$8 sps:$4 sm:$0xff]   ;;  %v20368_v25 = vld [vmem:[%s21082_s1 + $0x1cb4] ss:$8 sps:$4 sm:$0xff]  }
 0x7a3   : > { %14984 = vmatprep.subr.bf16.mxu0 %v20291_v26  ;;  %v20371_v26 = vld [vmem:[%s21082_s1 + $0x3ab4] ss:$8 sps:$4 sm:$0xff]  }
 0x7a5   : > { %13755 = vmatpush1.bf16.msra.mxu1 %v20286_v61  ;;  %v20366_v61 = vld [vmem:[%s21082_s1 + $0x1cb0] ss:$8 sps:$4 sm:$0xff]  }
 0x7a6   : > { %14985 = vmatpush1.bf16.msra.mxu0 %v20289_v62  ;;  %13756 = vmatprep.subr.bf16.mxu1 %v20294_v35  ;;  %v20369_v62 = vld [vmem:[%s21082_s1 + $0x3ab0] ss:$8 sps:$4 sm:$0xff]   ;;  %v20374_v35 = vld [vmem:[%s21082_s1 + $0x1cc4] ss:$8 sps:$4 sm:$0xff]  }
 0x7a7   : > { %14986 = vmatprep.subr.bf16.mxu0 %v20297_v37  ;;  %v20377_v37 = vld [vmem:[%s21082_s1 + $0x3ac4] ss:$8 sps:$4 sm:$0xff]  }
 0x7a9   : > { %13757 = vmatpush1.bf16.msra.mxu1 %v20292_v11  ;;  %v20372_v11 = vld [vmem:[%s21082_s1 + $0x1cc0] ss:$8 sps:$4 sm:$0xff]  }
 0x7aa   : > { %14987 = vmatpush1.bf16.msra.mxu0 %v20295_v12  ;;  %13767 = vmatprep.subr.bf16.mxu1 %v20301_v33  ;;  %v20375_v12 = vld [vmem:[%s21082_s1 + $0x3ac0] ss:$8 sps:$4 sm:$0xff]   ;;  %v20380_v33 = vld [vmem:[%s21082_s1 + $0x1cd4] ss:$8 sps:$4 sm:$0xff]  }
 0x7ab   : > { %14997 = vmatprep.subr.bf16.mxu0 %v20305_v34  ;;  %v20383_v34 = vld [vmem:[%s21082_s1 + $0x3ad4] ss:$8 sps:$4 sm:$0xff]  }
 0x7ac   : > { %13759 = vmatmul.mubr.bf16.vlgmr.msra.gmra.mrb[0].mxu1 %v1032_v48  ;;  %v20386_v48 = vld [vmem:[%s21082_s1 + $0x1ce4] ss:$8 sps:$4 sm:$0xff]  }
 0x7ad   : > { %14989 = vmatmul.mubr.bf16.vlgmr.msra.gmra.mrb[0].mxu0 %v1092_v49  ;;  %13768 = vmatpush1.bf16.msra.mxu1 %v20299_v45  ;;  %v20389_v49 = vld [vmem:[%s21082_s1 + $0x3ae4] ss:$8 sps:$4 sm:$0xff]   ;;  %v586_v45 = vcombine.high %v23435_v59, %v23435_v59  ;;  %v20390_v59 = vld [vmem:[%s21082_s1 + $0x1cf0] ss:$8 sps:$4 sm:$0xff]  }
 0x7ae   : > { %14998 = vmatpush1.bf16.msra.mxu0 %v20303_v15  ;;  %13769 = vmatprep.subr.bf16.mxu1 %v20308_v46  ;;  %v841_v15 = vcombine.high %v23438_v38, %v23438_v38  ;;  %v20384_v46 = vld [vmem:[%s21082_s1 + $0x1ce0] ss:$8 sps:$4 sm:$0xff]   ;;  %v20393_v38 = vld [vmem:[%s21082_s1 + $0x3af0] ss:$8 sps:$4 sm:$0xff]  }
 0x7af   : > { %14999 = vmatprep.subr.bf16.mxu0 %v20311_v47  ;;  %13799 = vmatprep.mubr.bf16.mxu1 %v1035_v13  ;;  %v20387_v47 = vld [vmem:[%s21082_s1 + $0x3ae0] ss:$8 sps:$4 sm:$0xff]   ;;  %v20392_v13 = vld [vmem:[%s21082_s1 + $0x1cf4] ss:$8 sps:$4 sm:$0xff]  }
 0x7b0   : > { %15029 = vmatprep.mubr.bf16.mxu0 %v1095_v14  ;;  %v20395_v14 = vld [vmem:[%s21082_s1 + $0x3af4] ss:$8 sps:$4 sm:$0xff]  }
 0x7b1   : > { %13770 = vmatpush1.bf16.msra.mxu1 %v20306_v43  ;;  %v23529_v43 = vrot.slane %v586_v45, %v21150_v50  ;;  %v20462_v45 = vld [vmem:[%s21082_s1 + $0x1db0] ss:$8 sps:$4 sm:$0xff]  }
 0x7b2   : > { %15000 = vmatpush1.bf16.msra.mxu0 %v20309_v36  ;;  %13771 = vmatprep.subr.bf16.mxu1 %v20314_v41  ;;  %v23532_v36 = vrot.slane %v841_v15, %v21150_v50  ;;  %v20398_v41 = vld [vmem:[%s21082_s1 + $0x1d04] ss:$8 sps:$4 sm:$0xff]   ;;  %v20465_v15 = vld [vmem:[%s21082_s1 + $0x3bb0] ss:$8 sps:$4 sm:$0xff]  }
 0x7b3   : > { %15001 = vmatprep.subr.bf16.mxu0 %v20317_v60  ;;  %v20401_v60 = vld [vmem:[%s21082_s1 + $0x3b04] ss:$8 sps:$4 sm:$0xff]  }
 0x7b5   : > { %13772 = vmatpush1.bf16.msra.mxu1 %v20312_v55  ;;  %v602_v55 = vcombine.high %v23529_v43, %v23529_v43 }
 0x7b6   : > { %15002 = vmatpush1.bf16.msra.mxu0 %v20315_v56  ;;  %13773 = vmatprep.subr.bf16.mxu1 %v20320_v57  ;;  %v857_v56 = vcombine.high %v23532_v36, %v23532_v36  ;;  %v1034_v57 = vpack.c.bf16 %v23446_v16, %v23446_v16  ;;  %v20402_v16 = vld [vmem:[%s21082_s1 + $0x1d10] ss:$8 sps:$4 sm:$0xff]  }
 0x7b7   : > { %15003 = vmatprep.subr.bf16.mxu0 %v20323_v58  ;;  %v1094_v58 = vpack.c.bf16 %v23450_v39, %v23450_v39  ;;  %v20405_v39 = vld [vmem:[%s21082_s1 + $0x3b10] ss:$8 sps:$4 sm:$0xff]  }
 0x7b9   : > { %13774 = vmatpush1.bf16.msra.mxu1 %v20318_v23  ;;  %v20396_v23 = vld [vmem:[%s21082_s1 + $0x1d00] ss:$8 sps:$4 sm:$0xff]  }
 0x7ba   : > { %15004 = vmatpush1.bf16.msra.mxu0 %v20321_v24  ;;  %13775 = vmatprep.subr.bf16.mxu1 %v20326_v1  ;;  %v20399_v24 = vld [vmem:[%s21082_s1 + $0x3b00] ss:$8 sps:$4 sm:$0xff]   ;;  %v20404_v1 = vld [vmem:[%s21082_s1 + $0x1d14] ss:$8 sps:$4 sm:$0xff]  }
 0x7bb   : > { %15005 = vmatprep.subr.bf16.mxu0 %v20329_v2  ;;  %v20407_v2 = vld [vmem:[%s21082_s1 + $0x3b14] ss:$8 sps:$4 sm:$0xff]  }
 0x7bd   : > { %13776 = vmatpush1.bf16.msra.mxu1 %v20324_v3  ;;  %v1037_v3 = vpack.c.bf16 %v602_v55, %v602_v55  ;;  %v20482_v55 = vld [vmem:[%s21082_s1 + $0x1de4] ss:$8 sps:$4 sm:$0xff]  }
 0x7be   : > { %15006 = vmatpush1.bf16.msra.mxu0 %v20327_v4  ;;  %13777 = vmatprep.subr.bf16.mxu1 %v20332_v63  ;;  %v1097_v4 = vpack.c.bf16 %v857_v56, %v857_v56  ;;  %v20410_v63 = vld [vmem:[%s21082_s1 + $0x1d24] ss:$8 sps:$4 sm:$0xff]  }
 0x7bf   : > { %15007 = vmatprep.subr.bf16.mxu0 %v20335_v0  ;;  %v20413_v0 = vld [vmem:[%s21082_s1 + $0x3b24] ss:$8 sps:$4 sm:$0xff]  }
 0x7c0   : > { %v20485_v56 = vld [vmem:[%s21082_s1 + $0x3be4] ss:$8 sps:$4 sm:$0xff]  }
 0x7c1   : > { %13778 = vmatpush1.bf16.msra.mxu1 %v20330_v31  ;;  %v20408_v31 = vld [vmem:[%s21082_s1 + $0x1d20] ss:$8 sps:$4 sm:$0xff]  }
 0x7c2   : > { %15008 = vmatpush1.bf16.msra.mxu0 %v20333_v32  ;;  %13779 = vmatprep.subr.bf16.mxu1 %v20338_v9  ;;  %v20411_v32 = vld [vmem:[%s21082_s1 + $0x3b20] ss:$8 sps:$4 sm:$0xff]   ;;  %v20416_v9 = vld [vmem:[%s21082_s1 + $0x1d34] ss:$8 sps:$4 sm:$0xff]  }
 0x7c3   : > { %15009 = vmatprep.subr.bf16.mxu0 %v20341_v10  ;;  %v20419_v10 = vld [vmem:[%s21082_s1 + $0x3b34] ss:$8 sps:$4 sm:$0xff]  }
 0x7c5   : > { %13780 = vmatpush1.bf16.msra.mxu1 %v20336_v51  ;;  %v20414_v51 = vld [vmem:[%s21082_s1 + $0x1d30] ss:$8 sps:$4 sm:$0xff]  }
 0x7c6   : > { %15010 = vmatpush1.bf16.msra.mxu0 %v20339_v52  ;;  %13781 = vmatprep.subr.bf16.mxu1 %v20344_v7  ;;  %v20417_v52 = vld [vmem:[%s21082_s1 + $0x3b30] ss:$8 sps:$4 sm:$0xff]   ;;  %v20422_v7 = vld [vmem:[%s21082_s1 + $0x1d44] ss:$8 sps:$4 sm:$0xff]  }
 0x7c7   : > { %15011 = vmatprep.subr.bf16.mxu0 %v20347_v8  ;;  %v20425_v8 = vld [vmem:[%s21082_s1 + $0x3b44] ss:$8 sps:$4 sm:$0xff]  }
 0x7c9   : > { %13782 = vmatpush1.bf16.msra.mxu1 %v20342_v40  ;;  %v20420_v40 = vld [vmem:[%s21082_s1 + $0x1d40] ss:$8 sps:$4 sm:$0xff]  }
 0x7ca   : > { %15012 = vmatpush1.bf16.msra.mxu0 %v20345_v42  ;;  %13783 = vmatprep.subr.bf16.mxu1 %v20350_v21  ;;  %v20423_v42 = vld [vmem:[%s21082_s1 + $0x3b40] ss:$8 sps:$4 sm:$0xff]   ;;  %v20428_v21 = vld [vmem:[%s21082_s1 + $0x1d54] ss:$8 sps:$4 sm:$0xff]  }
 0x7cb   : > { %15013 = vmatprep.subr.bf16.mxu0 %v20353_v22  ;;  %v20431_v22 = vld [vmem:[%s21082_s1 + $0x3b54] ss:$8 sps:$4 sm:$0xff]  }
 0x7cd   : > { %13784 = vmatpush1.bf16.msra.mxu1 %v20348_v17  ;;  %v20426_v17 = vld [vmem:[%s21082_s1 + $0x1d50] ss:$8 sps:$4 sm:$0xff]  }
 0x7ce   : > { %15014 = vmatpush1.bf16.msra.mxu0 %v20351_v18  ;;  %13785 = vmatprep.subr.bf16.mxu1 %v20356_v19  ;;  %v20429_v18 = vld [vmem:[%s21082_s1 + $0x3b50] ss:$8 sps:$4 sm:$0xff]   ;;  %v20434_v19 = vld [vmem:[%s21082_s1 + $0x1d64] ss:$8 sps:$4 sm:$0xff]  }
 0x7cf   : > { %15015 = vmatprep.subr.bf16.mxu0 %v20359_v20  ;;  %v20437_v20 = vld [vmem:[%s21082_s1 + $0x3b64] ss:$8 sps:$4 sm:$0xff]  }
 0x7d1   : > { %13786 = vmatpush1.bf16.msra.mxu1 %v20354_v53  ;;  %v20432_v53 = vld [vmem:[%s21082_s1 + $0x1d60] ss:$8 sps:$4 sm:$0xff]  }
 0x7d2   : > { %15016 = vmatpush1.bf16.msra.mxu0 %v20357_v54  ;;  %13787 = vmatprep.subr.bf16.mxu1 %v20362_v27  ;;  %v20435_v54 = vld [vmem:[%s21082_s1 + $0x3b60] ss:$8 sps:$4 sm:$0xff]   ;;  %v20440_v27 = vld [vmem:[%s21082_s1 + $0x1d74] ss:$8 sps:$4 sm:$0xff]  }
 0x7d3   : > { %15017 = vmatprep.subr.bf16.mxu0 %v20365_v28  ;;  %v20443_v28 = vld [vmem:[%s21082_s1 + $0x3b74] ss:$8 sps:$4 sm:$0xff]  }
 0x7d5   : > { %13788 = vmatpush1.bf16.msra.mxu1 %v20360_v29  ;;  %v20438_v29 = vld [vmem:[%s21082_s1 + $0x1d70] ss:$8 sps:$4 sm:$0xff]  }
 0x7d6   : > { %15018 = vmatpush1.bf16.msra.mxu0 %v20363_v30  ;;  %13789 = vmatprep.subr.bf16.mxu1 %v20368_v25  ;;  %v20441_v30 = vld [vmem:[%s21082_s1 + $0x3b70] ss:$8 sps:$4 sm:$0xff]   ;;  %v20446_v25 = vld [vmem:[%s21082_s1 + $0x1d84] ss:$8 sps:$4 sm:$0xff]  }
 0x7d7   : > { %15019 = vmatprep.subr.bf16.mxu0 %v20371_v26  ;;  %v20449_v26 = vld [vmem:[%s21082_s1 + $0x3b84] ss:$8 sps:$4 sm:$0xff]  }
 0x7d9   : > { %13790 = vmatpush1.bf16.msra.mxu1 %v20366_v61  ;;  %v20444_v61 = vld [vmem:[%s21082_s1 + $0x1d80] ss:$8 sps:$4 sm:$0xff]  }
 0x7da   : > { %15020 = vmatpush1.bf16.msra.mxu0 %v20369_v62  ;;  %13791 = vmatprep.subr.bf16.mxu1 %v20374_v35  ;;  %v20447_v62 = vld [vmem:[%s21082_s1 + $0x3b80] ss:$8 sps:$4 sm:$0xff]   ;;  %v20452_v35 = vld [vmem:[%s21082_s1 + $0x1d94] ss:$8 sps:$4 sm:$0xff]  }
 0x7db   : > { %15021 = vmatprep.subr.bf16.mxu0 %v20377_v37  ;;  %v20455_v37 = vld [vmem:[%s21082_s1 + $0x3b94] ss:$8 sps:$4 sm:$0xff]  }
 0x7dd   : > { %13792 = vmatpush1.bf16.msra.mxu1 %v20372_v11  ;;  %v20450_v11 = vld [vmem:[%s21082_s1 + $0x1d90] ss:$8 sps:$4 sm:$0xff]  }
 0x7de   : > { %15022 = vmatpush1.bf16.msra.mxu0 %v20375_v12  ;;  %13793 = vmatprep.subr.bf16.mxu1 %v20380_v33  ;;  %v20453_v12 = vld [vmem:[%s21082_s1 + $0x3b90] ss:$8 sps:$4 sm:$0xff]   ;;  %v20458_v33 = vld [vmem:[%s21082_s1 + $0x1da4] ss:$8 sps:$4 sm:$0xff]  }
 0x7df   : > { %15023 = vmatprep.subr.bf16.mxu0 %v20383_v34  ;;  %v20461_v34 = vld [vmem:[%s21082_s1 + $0x3ba4] ss:$8 sps:$4 sm:$0xff]  }
 0x7e1   : > { %13794 = vmatpush1.bf16.msra.mxu1 %v20378_v5  ;;  %v20456_v5 = vld [vmem:[%s21082_s1 + $0x1da0] ss:$8 sps:$4 sm:$0xff]  }
 0x7e2   : > { %15024 = vmatpush1.bf16.msra.mxu0 %v20381_v6  ;;  %13795 = vmatprep.subr.bf16.mxu1 %v20386_v48  ;;  %v20459_v6 = vld [vmem:[%s21082_s1 + $0x3ba0] ss:$8 sps:$4 sm:$0xff]   ;;  %v20464_v48 = vld [vmem:[%s21082_s1 + $0x1db4] ss:$8 sps:$4 sm:$0xff]  }
 0x7e3   : > { %15025 = vmatprep.subr.bf16.mxu0 %v20389_v49  ;;  %v20467_v49 = vld [vmem:[%s21082_s1 + $0x3bb4] ss:$8 sps:$4 sm:$0xff]  }
 0x7e5   : > { %13796 = vmatpush1.bf16.msra.mxu1 %v20384_v46  ;;  %v20470_v46 = vld [vmem:[%s21082_s1 + $0x1dc4] ss:$8 sps:$4 sm:$0xff]  }
 0x7e6   : > { %15026 = vmatpush1.bf16.msra.mxu0 %v20387_v47  ;;  %13797 = vmatprep.subr.bf16.mxu1 %v20392_v13  ;;  %v20473_v47 = vld [vmem:[%s21082_s1 + $0x3bc4] ss:$8 sps:$4 sm:$0xff]   ;;  %v20468_v13 = vld [vmem:[%s21082_s1 + $0x1dc0] ss:$8 sps:$4 sm:$0xff]  }
 0x7e7   : > { %15027 = vmatprep.subr.bf16.mxu0 %v20395_v14  ;;  %v20471_v14 = vld [vmem:[%s21082_s1 + $0x3bc0] ss:$8 sps:$4 sm:$0xff]  }
 0x7e9   : > { %13798 = vmatpush1.bf16.msra.mxu1 %v20390_v59  ;;  %v20476_v59 = vld [vmem:[%s21082_s1 + $0x1dd4] ss:$8 sps:$4 sm:$0xff]  }
 0x7ea   : > { %15028 = vmatpush1.bf16.msra.mxu0 %v20393_v38  ;;  %13808 = vmatprep.subr.bf16.mxu1 %v20398_v41  ;;  %v20479_v38 = vld [vmem:[%s21082_s1 + $0x3bd4] ss:$8 sps:$4 sm:$0xff]   ;;  %v20474_v41 = vld [vmem:[%s21082_s1 + $0x1dd0] ss:$8 sps:$4 sm:$0xff]  }
 0x7eb   : > { %15038 = vmatprep.subr.bf16.mxu0 %v20401_v60  ;;  %v20477_v60 = vld [vmem:[%s21082_s1 + $0x3bd0] ss:$8 sps:$4 sm:$0xff]  }
 0x7ec   : > { %13800 = vmatmul.mubr.bf16.vlgmr.msra.gmra.mrb[0].mxu1 %v1034_v57  ;;  %v20480_v57 = vld [vmem:[%s21082_s1 + $0x1de0] ss:$8 sps:$4 sm:$0xff]  }
 0x7ed   : > { %15030 = vmatmul.mubr.bf16.vlgmr.msra.gmra.mrb[0].mxu0 %v1094_v58  ;;  %13809 = vmatpush1.bf16.msra.mxu1 %v20396_v23  ;;  %v20483_v58 = vld [vmem:[%s21082_s1 + $0x3be0] ss:$8 sps:$4 sm:$0xff]   ;;  %v20488_v23 = vld [vmem:[%s21082_s1 + $0x1df4] ss:$8 sps:$4 sm:$0xff]  }
 0x7ee   : > { %15039 = vmatpush1.bf16.msra.mxu0 %v20399_v24  ;;  %13810 = vmatprep.subr.bf16.mxu1 %v20404_v1  ;;  %v20491_v24 = vld [vmem:[%s21082_s1 + $0x3bf4] ss:$8 sps:$4 sm:$0xff]   ;;  %v20486_v1 = vld [vmem:[%s21082_s1 + $0x1df0] ss:$8 sps:$4 sm:$0xff]  }
 0x7ef   : > { %15040 = vmatprep.subr.bf16.mxu0 %v20407_v2  ;;  %13840 = vmatprep.mubr.bf16.mxu1 %v1037_v3  ;;  %v20489_v2 = vld [vmem:[%s21082_s1 + $0x3bf0] ss:$8 sps:$4 sm:$0xff]   ;;  %v1036_v3 = vpack.c.bf16 %v23529_v43, %v23529_v43 }
 0x7f0   : > { %15070 = vmatprep.mubr.bf16.mxu0 %v1097_v4  ;;  %v1096_v4 = vpack.c.bf16 %v23532_v36, %v23532_v36 }
 0x7f1   : > { %13811 = vmatpush1.bf16.msra.mxu1 %v20402_v16 }
 0x7f2   : > { %15041 = vmatpush1.bf16.msra.mxu0 %v20405_v39  ;;  %13812 = vmatprep.subr.bf16.mxu1 %v20410_v63 }
 0x7f3   : > { %15042 = vmatprep.subr.bf16.mxu0 %v20413_v0 }
 0x7f5   : > { %13813 = vmatpush1.bf16.msra.mxu1 %v20408_v31 }
 0x7f6   : > { %15043 = vmatpush1.bf16.msra.mxu0 %v20411_v32  ;;  %13814 = vmatprep.subr.bf16.mxu1 %v20416_v9 }
 0x7f7   : > { %15044 = vmatprep.subr.bf16.mxu0 %v20419_v10 }
 0x7f9   : > { %13815 = vmatpush1.bf16.msra.mxu1 %v20414_v51 }
 0x7fa   : > { %15045 = vmatpush1.bf16.msra.mxu0 %v20417_v52  ;;  %13816 = vmatprep.subr.bf16.mxu1 %v20422_v7  ;;  %v1098_v7 = vld [vmem:[%s21099_s21] sm:$0xf] }
 0x7fb   : > { %15046 = vmatprep.subr.bf16.mxu0 %v20425_v8 }
 0x7fd   : > { %13817 = vmatpush1.bf16.msra.mxu1 %v20420_v40  ;;  %v15097_v40 = vld [vmem:[%s21092_s23] sm:$0x3] (!%p17195_p11) }
 0x7fe   : > { %15047 = vmatpush1.bf16.msra.mxu0 %v20423_v42  ;;  %13818 = vmatprep.subr.bf16.mxu1 %v20428_v21  ;;  %v15101_v42 = vsub.s32 (!%p17195_p11), 0, %v21142_v44  ;;  %v15105_v21 = vsub.s32 (!%p17195_p11), 1, %v21142_v44 }
 0x7ff   : > { %15048 = vmatprep.subr.bf16.mxu0 %v20431_v22 }
 0x800   : > { %v15102_v22 = vrot.slane (!%p17195_p11), %v15097_v40, %v15101_v42 }
 0x801   : > { %13819 = vmatpush1.bf16.msra.mxu1 %v20426_v17  ;;  %v15106_v17 = vrot.slane (!%p17195_p11), %v15097_v40, %v15105_v21 }
 0x802   : > { %15049 = vmatpush1.bf16.msra.mxu0 %v20429_v18  ;;  %13820 = vmatprep.subr.bf16.mxu1 %v20434_v19 }
 0x803   : > { %15050 = vmatprep.subr.bf16.mxu0 %v20437_v20  ;;  %v15107_v18 = vcombine.low (!%p17195_p11), %v15102_v22, %v15106_v17 }
 0x805   : > { %13821 = vmatpush1.bf16.msra.mxu1 %v20432_v53  ;;  %v15114_v20 = vrot.slane (!%p17195_p11), %v15107_v18, %v21150_v50 }
 0x806   : > { %15051 = vmatpush1.bf16.msra.mxu0 %v20435_v54  ;;  %13822 = vmatprep.subr.bf16.mxu1 %v20440_v27 }
 0x807   : > { %15052 = vmatprep.subr.bf16.mxu0 %v20443_v28 }
 0x809   : > { %13823 = vmatpush1.bf16.msra.mxu1 %v20438_v29 }
 0x80a   : > { %15053 = vmatpush1.bf16.msra.mxu0 %v20441_v30  ;;  %13824 = vmatprep.subr.bf16.mxu1 %v20446_v25 }
 0x80b   : > { %15054 = vmatprep.subr.bf16.mxu0 %v20449_v26 }
 0x80d   : > { %13825 = vmatpush1.bf16.msra.mxu1 %v20444_v61 }
 0x80e   : > { %15055 = vmatpush1.bf16.msra.mxu0 %v20447_v62  ;;  %13826 = vmatprep.subr.bf16.mxu1 %v20452_v35 }
 0x80f   : > { %15056 = vmatprep.subr.bf16.mxu0 %v20455_v37 }
 0x811   : > { %13827 = vmatpush1.bf16.msra.mxu1 %v20450_v11 }
 0x812   : > { %15057 = vmatpush1.bf16.msra.mxu0 %v20453_v12  ;;  %13828 = vmatprep.subr.bf16.mxu1 %v20458_v33 }
 0x813   : > { %15058 = vmatprep.subr.bf16.mxu0 %v20461_v34 }
 0x815   : > { %13829 = vmatpush1.bf16.msra.mxu1 %v20456_v5 }
 0x816   : > { %15059 = vmatpush1.bf16.msra.mxu0 %v20459_v6  ;;  %13830 = vmatprep.subr.bf16.mxu1 %v20464_v48 }
 0x817   : > { %15060 = vmatprep.subr.bf16.mxu0 %v20467_v49 }
 0x819   : > { %13831 = vmatpush1.bf16.msra.mxu1 %v20462_v45 }
 0x81a   : > { %15061 = vmatpush1.bf16.msra.mxu0 %v20465_v15  ;;  %13832 = vmatprep.subr.bf16.mxu1 %v20470_v46 }
 0x81b   : > { %15062 = vmatprep.subr.bf16.mxu0 %v20473_v47 }
 0x81d   : > { %13833 = vmatpush1.bf16.msra.mxu1 %v20468_v13 }
 0x81e   : > { %15063 = vmatpush1.bf16.msra.mxu0 %v20471_v14  ;;  %13834 = vmatprep.subr.bf16.mxu1 %v20476_v59 }
 0x81f   : > { %15064 = vmatprep.subr.bf16.mxu0 %v20479_v38 }
 0x821   : > { %13835 = vmatpush1.bf16.msra.mxu1 %v20474_v41 }
 0x822   : > { %15065 = vmatpush1.bf16.msra.mxu0 %v20477_v60  ;;  %13836 = vmatprep.subr.bf16.mxu1 %v20482_v55 }
 0x823   : > { %15066 = vmatprep.subr.bf16.mxu0 %v20485_v56 }
 0x825   : > { %13837 = vmatpush1.bf16.msra.mxu1 %v20480_v57 }
 0x826   : > { %15067 = vmatpush1.bf16.msra.mxu0 %v20483_v58  ;;  %13838 = vmatprep.subr.bf16.mxu1 %v20488_v23 }
 0x827   : > { %15068 = vmatprep.subr.bf16.mxu0 %v20491_v24 }
 0x829   : > { %13839 = vmatpush1.bf16.msra.mxu1 %v20486_v1 }
 0x82a   : > { %15069 = vmatpush1.bf16.msra.mxu0 %v20489_v2 }
 0x82c   : > { %13841 = vmatmul.mubr.bf16.vlgmr.msra.gmra.mrb[0].mxu1 %v1036_v3 }
 0x82d   : > { %15071 = vmatmul.mubr.bf16.vlgmr.msra.gmra.mrb[0].mxu0 %v1096_v4 }
 0x8ff   : > { %v13842_v16 = vpop.f32.mrb[0].mxu1 }
 0x900   : > { %v15072_v39 = vpop.f32.mrb[0].mxu0  ;;  %v13844_v0 = vpop.f32.mrb[1].mxu1 }
 0x901   : > { %v17205_v63 = vadd.f32 %v15072_v39, %v13842_v16  ;;  %v15074_v31 = vpop.f32.mrb[1].mxu0  ;;  %v13846_v9 = vpop.f32.mrb[2].mxu1 }
 0x902   : > { %v17206_v32 = vadd.f32 %v15074_v31, %v13844_v0  ;;  %v15076_v10 = vpop.f32.mrb[2].mxu0  ;;  %v13847_v51 = vpop.f32.mrb[3].mxu1 }
 0x903   : > { %v15077_v52 = vpop.f32.mrb[3].mxu0 }
 0x904   : > { %v15081_v43 = vcombine.low %v17205_v63, %v17206_v32  ;;  %15095 = sbr.rel (%p17195_p11) target bundleno = 2327 (0x917), region = 52 }
 0x906   : > { %v15088_v36 = vrot.slane %v15081_v43, %v21150_v50 }
 0x908   : > { %v15090_v8 = vadd.f32 %v15088_v36, %v1098_v7 }
 0x90a   : > { %15091 = vst [vmem:[%s21099_s21] sm:$0xf] %v15090_v8 }
 0x911   : > { %v15096_v19 = vld [vmem:[%s21099_s21] sm:$0xf] }
 0x912   : > { %v15116_v53 = vadd.f32 %v15114_v20, %v15096_v19 }
 0x914   : > { %v15117_v54 = vmax.f32 %v15116_v53, 0.0 }
 0x916   : > { %15118 = vst [vmem:[%s21099_s21] sm:$0xf] %v15117_v54 }
 0x917 PF: > { %s23750_s3 = sld [smem:[#allocation14_spill]]  ;;  %s23751_s27 = sld [smem:[#allocation21_spill]] }
 0x918   : > { %s15134_s26 = sshll.u32 %s21099_s21, 4  ;;  %s15120_s15 = scalar_lea.sflag [#allocation4], %s21089_s29  ;;  %s15135_s26 = int_to_ptr.vmem [resolvable:$true] %s15134_s26 }
 0x919   : > { %s20584_s9 = scalar_lea.vmem %s15135_s26, 64  ;;  %p23752_p3 = scmp.ne.s32.totalorder %s23740_s22, 0 }
 0x91a   : > { %p20585_p7 = scmp.ne.s32.totalorder %s15135_s26, %s20584_s9  ;;  %s20747_s1 = smov [#allocation8]  }
 0x91b   : > { %s20588_s7 = sshll.u32 %s20747_s1, 4  ;;  %s20589_s7 = int_to_ptr.vmem [resolvable:$false] %s20588_s7 }
 0x91c   : > { %p20586_p8 = pnand %p20585_p7, %p23752_p3  ;;  %s20590_s23 = scalar_lea.vmem %s20589_s7, 128 }
 0x91d   : > { %s17204_s18 = sshll.u32 %s23750_s3, 6  ;;  %p20591_p2 = scmp.lt.s32.totalorder %s15135_s26, %s20589_s7 }
 0x91e   : > { %s23626_s28 = scalar_lea.hbm %s23751_s27, %s17204_s18  ;;  %p20587_p10 = pneg %p20586_p8 }
 0x91f   : > { %p20592_p0 = scmp.lt.s32.totalorder %s20590_s23, %s20584_s9 }
 0x921   : > { %p20593_p1 = por %p20592_p0, %p20591_p2 }
 0x923   : > { %p20594_p12 = pnand %p20593_p1, %p20587_p10 }
 0x925   : > { %20597 = shalt.err (!%p20594_p12)
}
 0x926   : > { %s20598_s29 = scalar_lea.hbm %s23626_s28, 64  ;;  %s20602_s6 = scalar_lea.hbm %s23751_s27, 128 }
 0x927   : > { %p20599_p13 = scmp.ne.s32.totalorder %s23626_s28, %s20598_s29  ;;  %p20603_p6 = scmp.lt.u32.totalorder %s23626_s28, %s23751_s27 }
 0x928   : > { %p20604_p9 = scmp.lt.u32.totalorder %s20602_s6, %s20598_s29  ;;  %p20606_p7 = scmp.lt.u32.totalorder %s20598_s29, %s23626_s28 }
 0x929   : > { %p20600_p4 = pnand %p20599_p13, %p23752_p3 }
 0x92a   : > { %p20605_p11 = por %p20604_p9, %p20603_p6 }
 0x92b   : > { %p20601_p5 = pneg %p20600_p4 }
 0x92c   : > { %p20607_p8 = por %p20606_p7, %p20605_p11 }
 0x92e   : > { %p20608_p10 = pnand %p20607_p8, %p20601_p5 }
 0x930   : > { %20611 = shalt.err (!%p20608_p10)
}
 0x931   : > { %17450 = dma.vmem_to_hbm [thread:$0]  (%p23752_p3), %s15135_s26, 64, %s23626_s28, %s15120_s15  }
 0x932 PF: > { %p17467_p2 = scmp.ge.s32.totalorder %s20738_s25, 2  ;;  %s15146_s18 = sand.u32 1, %s20686_s12  }
 0x933   : > { %p23753_p0 = scmp.ne.s32.totalorder %s23741_s5, 0  ;;  %s15147_s4 = scalar_lea.sflag [#allocation4], %s15146_s18 }
 0x935   : > { %p17463_p1 = pnand %p17467_p2, %p23753_p0 }
 0x937   : > { %20681 = dma.done.wait (!%p17463_p1), %s15147_s4, 64  }
 0x938   : > { %20683 = vsyncadd (!%p17463_p1), %s15147_s4, 4294967232  ;;  %s22_s25 = sadd.s32 1, %s20738_s25   ;;  %s23755_s22 = sld [smem:[#allocation18_spill]] }
 0x939   : > { %p23652_p12 = scmp.ge.s32.totalorder %s22_s25, 6   ;;  %s23756_s21 = sld [smem:[#allocation15_spill]] }
 0x93a   : > { %s23757_s23 = sld [smem:[#allocation16_spill]]  ;;  %s23758_s5 = sld [smem:[#allocation17_spill]] }
 0x93b   : > { %s23759_s12 = smov %s20690_s13  ;;  %s23760_s13 = smov %s20694_s14 }
 0x93c   : > { %s23761_s14 = smov %s21009_s30  ;;  %s23762_s15 = smov %s20702_s16 }
 0x93d   : > { %s23763_s16 = smov %s20706_s17  ;;  %s23764_s17 = smov %s20875_s10 }
 0x93e   : > { %s23765_s18 = smov %s20714_s19  ;;  %s23766_s19 = smov %s20718_s20 }
 0x93f   : > { %s23767_s20 = smov %s23755_s22  ;;  %s23768_s22 = smov %s20734_s24 }
 0x940   : > { %s23769_s24 = smov %s23758_s5  ;;  %21 = sbr.rel (!%p23652_p12) target bundleno = 16 (0x10), region = 109 }
 0x947   :  { %15152 = vsyncpa [#allocation3], 1 }
 0x948   :  { %15154 = vsyncpa [#allocation3 + $0x1], 1 }
 0x949   :  { %15155 = vsyncpa [#allocation6], 1 }
 0x94a   :  { %15157 = vsyncpa [#allocation6 + $0x1], 1 }
 0x94b   :  { %15158 = vsyncpa [#allocation4], 1 }
 0x94c   :  { %15160 = vsyncpa [#allocation4 + $0x1], 1 }

</bundles_post_ra>
